<compile_context>
chip_gen: v5e
topology: v5e:2x2
jax: 0.10.0
libtpu: 0.0.40
codegen_flags: <defaults>
</compile_context>

<pallas_src>
import functools

import jax
import jax.numpy as jnp
from jax.experimental import pallas as pl
from jax.experimental.pallas import tpu as pltpu

EPS = 1e-5
_LANE = 128
_VMEM_LIMIT = 48 * 1024 * 1024


def _compiler_params(semantics):
    return pltpu.CompilerParams(
        dimension_semantics=semantics,
        vmem_limit_bytes=_VMEM_LIMIT,
    )


def _choose_tile(m, n_batch, cin, max_tile):
    """Pixel (lane-axis) tile: the whole axis if it fits, else a big multiple of 128."""
    cap_bytes = 4 * 1024 * 1024                      # per double-buffered input block
    cap = cap_bytes // (2 * n_batch * cin * 4)
    cap = min(cap, max_tile)
    cap = max(_LANE, (cap // _LANE) * _LANE)
    if m <= cap:
        return m                                     # full-dim block is always legal
    return cap


# ---------------------------------------------------------------------------
# Kernel 1: per-channel sum / sum-of-squares of conv1(x17) over ALL pixels.
#   x_ref: (N, Cin, T)  w1_ref: (Cmid, Cin)  sum/ssq: (Cmid, 1) resident accums.
# Partial tail tiles are masked in-kernel (no host-side padding).
# ---------------------------------------------------------------------------
def _stats1_kernel(x_ref, w1_ref, sum_ref, ssq_ref, *, m_valid, tile, n_batch):
    t = pl.program_id(0)

    @pl.when(t == 0)
    def _init():
        sum_ref[...] = jnp.zeros_like(sum_ref)
        ssq_ref[...] = jnp.zeros_like(ssq_ref)

    w1 = w1_ref[...]
    for n in range(n_batch):
        x = x_ref[n]                                             # (Cin, tile)
        lane = jax.lax.broadcasted_iota(jnp.int32, x.shape, 1)
        x = jnp.where(t * tile + lane < m_valid, x, 0.0)         # mask OOB tail
        y = jnp.dot(w1, x, preferred_element_type=jnp.float32)   # raw conv1
        sum_ref[...] += jnp.sum(y, axis=1, keepdims=True)
        ssq_ref[...] += jnp.sum(y * y, axis=1, keepdims=True)


# ---------------------------------------------------------------------------
# Kernel 2 (fused mid + final), two-phase grid (2, T):
#   phase 0: z = relu(x5 + A1@x + c1)  (BN1 folded into conv1 weight in-kernel),
#            y2 = W2 @ z stored in a resident VMEM scratch, BN5 sum/ssq accums.
#   phase 1: out = a2 * y2 + c2        (BN5 folded), lane-dense output tiles.
# ---------------------------------------------------------------------------
def _fused_kernel(xs_ref, rs_ref, w1_ref, g1_ref, b1_ref, s1_ref, q1_ref,
                  w2_ref, g2_ref, b2_ref, out_ref,
                  y2_scr, sum2_scr, ssq2_scr,
                  *, m1, m2, m_valid, tile, n_batch):
    p = pl.program_id(0)                     # phase
    t = pl.program_id(1)                     # pixel tile

    @pl.when((p == 0) & (t == 0))
    def _init():
        sum2_scr[...] = jnp.zeros_like(sum2_scr)
        ssq2_scr[...] = jnp.zeros_like(ssq2_scr)

    @pl.when(p == 0)
    def _phase0():
        # Fold BN1 (global batch stats from kernel 1) into the conv1 weight.
        mean1 = s1_ref[...] / m1
        var1 = q1_ref[...] / m1 - mean1 * mean1
        a1 = g1_ref[...] * jax.lax.rsqrt(var1 + EPS)
        c1 = b1_ref[...] - mean1 * a1
        A1 = w1_ref[...] * a1                                    # (Cmid, Cin)
        w2 = w2_ref[...]
        for n in range(n_batch):
            x = xs_ref[n]                                        # (Cin, tile)
            y1 = jnp.dot(A1, x, preferred_element_type=jnp.float32)
            z = jnp.maximum(rs_ref[n] + y1 + c1, 0.0)            # (Cmid, tile)
            lane = jax.lax.broadcasted_iota(jnp.int32, z.shape, 1)
            z = jnp.where(t * tile + lane < m_valid, z, 0.0)     # mask OOB tail
            y2 = jnp.dot(w2, z, preferred_element_type=jnp.float32)  # (Cout, tile)
            y2_scr[t, n] = y2                                    # VMEM-resident
            sum2_scr[...] += jnp.sum(y2, axis=1, keepdims=True)
            ssq2_scr[...] += jnp.sum(y2 * y2, axis=1, keepdims=True)

    @pl.when(p == 1)
    def _phase1():
        mean2 = sum2_scr[...] / m2
        var2 = ssq2_scr[...] / m2 - mean2 * mean2
        a2 = g2_ref[...] * jax.lax.rsqrt(var2 + EPS)
        c2 = b2_ref[...] - mean2 * a2
        for n in range(n_batch):
            out_ref[n] = y2_scr[t, n] * a2 + c2


# ---------------------------------------------------------------------------
# pallas_call wrappers
# ---------------------------------------------------------------------------
def _stats1_call(x_flat, w1, tile, m_valid):
    n, cin, _ = x_flat.shape
    cmid = w1.shape[0]
    kern = functools.partial(_stats1_kernel, m_valid=m_valid, tile=tile, n_batch=n)
    return pl.pallas_call(
        kern,
        out_shape=(jax.ShapeDtypeStruct((cmid, 1), jnp.float32),
                   jax.ShapeDtypeStruct((cmid, 1), jnp.float32)),
        grid_spec=pltpu.PrefetchScalarGridSpec(
            num_scalar_prefetch=0,
            grid=(pl.cdiv(m_valid, tile),),
            in_specs=[pl.BlockSpec((n, cin, tile), lambda i: (0, 0, i)),
                      pl.BlockSpec((cmid, cin), lambda i: (0, 0))],
            out_specs=(pl.BlockSpec((cmid, 1), lambda i: (0, 0)),
                       pl.BlockSpec((cmid, 1), lambda i: (0, 0))),
        ),
        compiler_params=_compiler_params(("arbitrary",)),
    )(x_flat, w1)


def _fused_call(xs, rs, w1, g1, b1, s1, q1, w2, g2, b2, *, m1, m2, tile):
    n, cin, mo = xs.shape
    cmid, cout = w1.shape[0], w2.shape[0]
    t2 = pl.cdiv(mo, tile)
    kern = functools.partial(_fused_kernel, m1=m1, m2=m2, m_valid=mo,
                             tile=tile, n_batch=n)

    def xin_idx(p, t):
        # Consumed only in phase 0; frozen at the last block during phase 1
        # so no redundant DMAs are issued.
        return (0, 0, t * (1 - p) + (t2 - 1) * p)

    def small_idx(p, t):
        return (0, 0)

    return pl.pallas_call(
        kern,
        out_shape=jax.ShapeDtypeStruct((n, cout, mo), jnp.float32),
        grid_spec=pltpu.PrefetchScalarGridSpec(
            num_scalar_prefetch=0,
            grid=(2, t2),
            in_specs=[
                pl.BlockSpec((n, cin, tile), xin_idx),   # x17 stride-2 pixels
                pl.BlockSpec((n, cin, tile), xin_idx),   # x5  stride-2 pixels
                pl.BlockSpec((cmid, cin), small_idx),    # conv1 weight
                pl.BlockSpec((cmid, 1), small_idx),      # BN1 gamma
                pl.BlockSpec((cmid, 1), small_idx),      # BN1 beta
                pl.BlockSpec((cmid, 1), small_idx),      # conv1 per-channel sum
                pl.BlockSpec((cmid, 1), small_idx),      # conv1 per-channel sumsq
                pl.BlockSpec((cout, cmid), small_idx),   # conv2 weight
                pl.BlockSpec((cout, 1), small_idx),      # BN5 gamma
                pl.BlockSpec((cout, 1), small_idx),      # BN5 beta
            ],
            # Phase 0 never writes the output: keep its block index frozen at 0
            # so nothing is written back to HBM before phase 1 fills the buffer.
            out_specs=pl.BlockSpec((n, cout, tile), lambda p, t: (0, 0, t * p)),
            scratch_shapes=[
                pltpu.VMEM((t2, n, cout, tile), jnp.float32),   # raw conv2 output
                pltpu.VMEM((cout, 1), jnp.float32),             # BN5 sum accum
                pltpu.VMEM((cout, 1), jnp.float32),             # BN5 sumsq accum
            ],
        ),
        compiler_params=_compiler_params(("arbitrary", "arbitrary")),
    )(xs, rs, w1, g1, b1, s1, q1, w2, g2, b2)


# ---------------------------------------------------------------------------
# Host-side glue (free reshapes + the stride-2 gather only)
# ---------------------------------------------------------------------------
def model_forward(x17, x5, params, *, max_tile=4096):
    """x17, x5: NCHW float32. Returns NCHW float32 (N, 144, ceil(H/2), ceil(W/2))."""
    w1, g1, b1, w2, g2, b2 = params                  # w1: (64,64), w2: (144,64)
    n, c, h, wdt = x17.shape
    cmid, cout = w1.shape[0], w2.shape[0]
    ho, wo = (h + 1) // 2, (wdt + 1) // 2            # 1x1 conv, stride 2
    hw, hwo = h * wdt, ho * wo

    # BN1 batch statistics over the FULL-resolution conv1 output.
    x17_flat = x17.reshape(n, c, hw)                 # free (contiguous) reshape
    tile1 = _choose_tile(hw, n, c, max_tile)
    sum1, ssq1 = _stats1_call(x17_flat, w1, tile1, hw)

    # Everything downstream only consumes the stride-2 pixels.
    # TODO(synk): this stride-2 gather is still XLA glue (one extra HBM pass per
    # input); folding it into the kernel needs an in-kernel strided/blocked gather.
    xs = x17[:, :, ::2, ::2].reshape(n, c, hwo)
    rs = x5[:, :, ::2, ::2].reshape(n, c, hwo)

    tile2 = _choose_tile(hwo, n, c, max_tile)
    out_flat = _fused_call(
        xs, rs, w1,
        g1.reshape(cmid, 1), b1.reshape(cmid, 1), sum1, ssq1,
        w2, g2.reshape(cout, 1), b2.reshape(cout, 1),
        m1=n * hw, m2=n * hwo, tile=tile2)
    return out_flat.reshape(n, cout, ho, wo)         # free reshape


# ---------------------------------------------------------------------------
# Pure-JAX reference (PyTorch module semantics, training-mode BN)
# ---------------------------------------------------------------------------
def reference_forward(x17, x5, params):
    w1, g1, b1, w2, g2, b2 = params

    def bn(x, g, b):
        mean = jnp.mean(x, axis=(0, 2, 3), keepdims=True)
        var = jnp.mean((x - mean) ** 2, axis=(0, 2, 3), keepdims=True)
        xh = (x - mean) * jax.lax.rsqrt(var + EPS)
        return xh * g[None, :, None, None] + b[None, :, None, None]

    y1 = jnp.einsum("oi,nihw->nohw", w1, x17)
    z = jnp.maximum(x5 + bn(y1, g1, b1), 0.0)
    y2 = jnp.einsum("oi,nihw->nohw", w2, z[:, :, ::2, ::2])
    return bn(y2, g2, b2)


def init_params(key):
    k1, k2, k3, k4, k5, k6 = jax.random.split(key, 6)
    w1 = jax.random.normal(k1, (64, 64), jnp.float32) * 0.1     # conv2d6 (Cout, Cin)
    g1 = 1.0 + 0.1 * jax.random.normal(k2, (64,), jnp.float32)  # BN4 gamma
    b1 = 0.1 * jax.random.normal(k3, (64,), jnp.float32)        # BN4 beta
    w2 = jax.random.normal(k4, (144, 64), jnp.float32) * 0.1    # conv2d7 (Cout, Cin)
    g2 = 1.0 + 0.1 * jax.random.normal(k5, (144,), jnp.float32) # BN5 gamma
    b2 = 0.1 * jax.random.normal(k6, (144,), jnp.float32)       # BN5 beta
    return (w1, g1, b1, w2, g2, b2)


if __name__ == "__main__":
    key = jax.random.PRNGKey(0)
    kx, kr, kp = jax.random.split(key, 3)

    # Small shapes consistent with the module (channels fixed at 64 by the spec;
    # original spec shape is (1, 64, 56, 56)).
    N, C, H, W = 2, 64, 40, 40
    x17 = jax.random.normal(kx, (N, C, H, W), jnp.float32)
    x5 = jax.random.normal(kr, (N, C, H, W), jnp.float32)
    params = init_params(kp)

    ref = reference_forward(x17, x5, params)
    Ho, Wo = (H + 1) // 2, (W + 1) // 2

    # Default path: large tiles -> single-block grids (the fast production path).
    out = jax.jit(model_forward)(x17, x5, params)
    jax.block_until_ready(out)
    assert out.shape == (N, 144, Ho, Wo), (out.shape, (N, 144, Ho, Wo))
    assert out.dtype == jnp.float32
    err = float(jnp.max(jnp.abs(out - ref)))
    assert jnp.allclose(out, ref, rtol=2e-2, atol=2e-2), err

    # Small-tile path: exercises multi-tile grids, in-kernel tail masking and the
    # two-phase (stats -> normalize) pipeline with the VMEM-resident conv2 buffer.
    out_small = jax.jit(functools.partial(model_forward, max_tile=256))(x17, x5, params)
    jax.block_until_ready(out_small)
    err2 = float(jnp.max(jnp.abs(out_small - ref)))
    assert jnp.allclose(out_small, ref, rtol=2e-2, atol=2e-2), err2

    print("KERNEL_OK")
</pallas_src>

<mosaic_0001>
module attributes {stable_mosaic.version = 11 : i64} {
  func.func @_stats1_kernel(%arg0: i32, %arg1: memref<2x64x1600xf32, #tpu.memory_space<vmem>>, %arg2: memref<64x64xf32, #tpu.memory_space<vmem>>, %arg3: memref<64x1xf32, #tpu.memory_space<vmem>>, %arg4: memref<64x1xf32, #tpu.memory_space<vmem>>) attributes {dimension_semantics = [#tpu.dimension_semantics<arbitrary>], iteration_bounds = array<i64: 1>, scalar_prefetch = 0 : i64, scratch_operands = 0 : i64, tpu.core_type = #tpu.core_type<tc>, window_params = [{transform_indices = @transform_0, window_bounds = array<i64: 2, 64, 1600>}, {pipeline_mode = #tpu.pipeline_mode<synchronous>, transform_indices = @transform_1, window_bounds = array<i64: 64, 64>}, {pipeline_mode = #tpu.pipeline_mode<synchronous>, transform_indices = @transform_2, window_bounds = array<i64: 64, 1>}, {pipeline_mode = #tpu.pipeline_mode<synchronous>, transform_indices = @transform_3, window_bounds = array<i64: 64, 1>}]} {
    %c0_i32 = arith.constant 0 : i32
    %0 = arith.cmpi eq, %arg0, %c0_i32 : i32
    %1 = arith.extui %0 : i1 to i32
    %c0_i32_0 = arith.constant 0 : i32
    %2 = arith.cmpi ne, %1, %c0_i32_0 : i32
    scf.if %2 {
      %cst_33 = arith.constant 0.000000e+00 : f32
      %48 = vector.broadcast %cst_33 : f32 to vector<64x1xf32>
      %c0_34 = arith.constant 0 : index
      %c0_35 = arith.constant 0 : index
      %49 = vector.load %arg3[%c0_34, %c0_35] : memref<64x1xf32, #tpu.memory_space<vmem>>, vector<64x1xf32>
      tpu.vector_store %arg3[%c0_34, %c0_35], %48 {strides = array<i32>} : memref<64x1xf32, #tpu.memory_space<vmem>>, vector<64x1xf32>,
      %cst_36 = arith.constant 0.000000e+00 : f32
      %50 = vector.broadcast %cst_36 : f32 to vector<64x1xf32>
      %c0_37 = arith.constant 0 : index
      %c0_38 = arith.constant 0 : index
      %51 = vector.load %arg4[%c0_37, %c0_38] : memref<64x1xf32, #tpu.memory_space<vmem>>, vector<64x1xf32>
      tpu.vector_store %arg4[%c0_37, %c0_38], %50 {strides = array<i32>} : memref<64x1xf32, #tpu.memory_space<vmem>>, vector<64x1xf32>,
    } else {
    }
    %c0 = arith.constant 0 : index
    %c0_1 = arith.constant 0 : index
    %3 = vector.load %arg2[%c0, %c0_1] : memref<64x64xf32, #tpu.memory_space<vmem>>, vector<64x64xf32>
    %c0_2 = arith.constant 0 : index
    %c0_3 = arith.constant 0 : index
    %c0_4 = arith.constant 0 : index
    %4 = vector.load %arg1[%c0_2, %c0_3, %c0_4] : memref<2x64x1600xf32, #tpu.memory_space<vmem>>, vector<1x64x1600xf32>
    %5 = vector.shape_cast %4 : vector<1x64x1600xf32> to vector<64x1600xf32>
    %6 = tpu.iota {dimensions = array<i32: 1>} : vector<64x1600xi32>
    %c1600_i32 = arith.constant 1600 : i32
    %7 = arith.muli %arg0, %c1600_i32 : i32
    %8 = vector.broadcast %7 : i32 to vector<64x1600xi32>
    %9 = arith.addi %8, %6 : vector<64x1600xi32>
    %c1600_i32_5 = arith.constant 1600 : i32
    %10 = vector.broadcast %c1600_i32_5 : i32 to vector<64x1600xi32>
    %11 = arith.cmpi slt, %9, %10 : vector<64x1600xi32>
    %cst = arith.constant 0.000000e+00 : f32
    %12 = vector.broadcast %cst : f32 to vector<64x1600xf32>
    %13 = arith.select %11, %5, %12 : vector<64x1600xi1>, vector<64x1600xf32>
    %cst_6 = arith.constant dense<0.000000e+00> : vector<64x1600xf32>
    %14 = tpu.matmul %3, %13, %cst_6 {dimension_numbers = #tpu.dot_dimension_numbers<[1], [0], [0], [1], [0, 0, 1, 1], [], []>} : vector<64x64xf32>, vector<64x1600xf32>, vector<64x1600xf32> -> vector<64x1600xf32>
    %c0_7 = arith.constant 0 : index
    %c0_8 = arith.constant 0 : index
    %15 = vector.load %arg3[%c0_7, %c0_8] : memref<64x1xf32, #tpu.memory_space<vmem>>, vector<64x1xf32>
    %cst_9 = arith.constant dense<0.000000e+00> : vector<64xf32>
    %16 = vector.multi_reduction <add>, %14, %cst_9 [1] : vector<64x1600xf32> to vector<64xf32>
    %17 = vector.shape_cast %16 : vector<64xf32> to vector<64x1xf32>
    %18 = arith.addf %15, %17 : vector<64x1xf32>
    %c0_10 = arith.constant 0 : index
    %c0_11 = arith.constant 0 : index
    %19 = vector.load %arg3[%c0_10, %c0_11] : memref<64x1xf32, #tpu.memory_space<vmem>>, vector<64x1xf32>
    tpu.vector_store %arg3[%c0_10, %c0_11], %18 {strides = array<i32>} : memref<64x1xf32, #tpu.memory_space<vmem>>, vector<64x1xf32>,
    %c0_12 = arith.constant 0 : index
    %c0_13 = arith.constant 0 : index
    %20 = vector.load %arg4[%c0_12, %c0_13] : memref<64x1xf32, #tpu.memory_space<vmem>>, vector<64x1xf32>
    %21 = arith.mulf %14, %14 : vector<64x1600xf32>
    %cst_14 = arith.constant dense<0.000000e+00> : vector<64xf32>
    %22 = vector.multi_reduction <add>, %21, %cst_14 [1] : vector<64x1600xf32> to vector<64xf32>
    %23 = vector.shape_cast %22 : vector<64xf32> to vector<64x1xf32>
    %24 = arith.addf %20, %23 : vector<64x1xf32>
    %c0_15 = arith.constant 0 : index
    %c0_16 = arith.constant 0 : index
    %25 = vector.load %arg4[%c0_15, %c0_16] : memref<64x1xf32, #tpu.memory_space<vmem>>, vector<64x1xf32>
    tpu.vector_store %arg4[%c0_15, %c0_16], %24 {strides = array<i32>} : memref<64x1xf32, #tpu.memory_space<vmem>>, vector<64x1xf32>,
    %c1 = arith.constant 1 : index
    %c0_17 = arith.constant 0 : index
    %c0_18 = arith.constant 0 : index
    %26 = vector.load %arg1[%c1, %c0_17, %c0_18] : memref<2x64x1600xf32, #tpu.memory_space<vmem>>, vector<1x64x1600xf32>
    %27 = vector.shape_cast %26 : vector<1x64x1600xf32> to vector<64x1600xf32>
    %28 = tpu.iota {dimensions = array<i32: 1>} : vector<64x1600xi32>
    %c1600_i32_19 = arith.constant 1600 : i32
    %29 = arith.muli %arg0, %c1600_i32_19 : i32
    %30 = vector.broadcast %29 : i32 to vector<64x1600xi32>
    %31 = arith.addi %30, %28 : vector<64x1600xi32>
    %c1600_i32_20 = arith.constant 1600 : i32
    %32 = vector.broadcast %c1600_i32_20 : i32 to vector<64x1600xi32>
    %33 = arith.cmpi slt, %31, %32 : vector<64x1600xi32>
    %cst_21 = arith.constant 0.000000e+00 : f32
    %34 = vector.broadcast %cst_21 : f32 to vector<64x1600xf32>
    %35 = arith.select %33, %27, %34 : vector<64x1600xi1>, vector<64x1600xf32>
    %cst_22 = arith.constant dense<0.000000e+00> : vector<64x1600xf32>
    %36 = tpu.matmul %3, %35, %cst_22 {dimension_numbers = #tpu.dot_dimension_numbers<[1], [0], [0], [1], [0, 0, 1, 1], [], []>} : vector<64x64xf32>, vector<64x1600xf32>, vector<64x1600xf32> -> vector<64x1600xf32>
    %c0_23 = arith.constant 0 : index
    %c0_24 = arith.constant 0 : index
    %37 = vector.load %arg3[%c0_23, %c0_24] : memref<64x1xf32, #tpu.memory_space<vmem>>, vector<64x1xf32>
    %cst_25 = arith.constant dense<0.000000e+00> : vector<64xf32>
    %38 = vector.multi_reduction <add>, %36, %cst_25 [1] : vector<64x1600xf32> to vector<64xf32>
    %39 = vector.shape_cast %38 : vector<64xf32> to vector<64x1xf32>
    %40 = arith.addf %37, %39 : vector<64x1xf32>
    %c0_26 = arith.constant 0 : index
    %c0_27 = arith.constant 0 : index
    %41 = vector.load %arg3[%c0_26, %c0_27] : memref<64x1xf32, #tpu.memory_space<vmem>>, vector<64x1xf32>
    tpu.vector_store %arg3[%c0_26, %c0_27], %40 {strides = array<i32>} : memref<64x1xf32, #tpu.memory_space<vmem>>, vector<64x1xf32>,
    %c0_28 = arith.constant 0 : index
    %c0_29 = arith.constant 0 : index
    %42 = vector.load %arg4[%c0_28, %c0_29] : memref<64x1xf32, #tpu.memory_space<vmem>>, vector<64x1xf32>
    %43 = arith.mulf %36, %36 : vector<64x1600xf32>
    %cst_30 = arith.constant dense<0.000000e+00> : vector<64xf32>
    %44 = vector.multi_reduction <add>, %43, %cst_30 [1] : vector<64x1600xf32> to vector<64xf32>
    %45 = vector.shape_cast %44 : vector<64xf32> to vector<64x1xf32>
    %46 = arith.addf %42, %45 : vector<64x1xf32>
    %c0_31 = arith.constant 0 : index
    %c0_32 = arith.constant 0 : index
    %47 = vector.load %arg4[%c0_31, %c0_32] : memref<64x1xf32, #tpu.memory_space<vmem>>, vector<64x1xf32>
    tpu.vector_store %arg4[%c0_31, %c0_32], %46 {strides = array<i32>} : memref<64x1xf32, #tpu.memory_space<vmem>>, vector<64x1xf32>,
    return
  }
  func.func @transform_0(%arg0: i32) -> (i32, i32, i32) {
    %c0_i32 = arith.constant 0 : i32
    %c0_i32_0 = arith.constant 0 : i32
    %c0_i32_1 = arith.constant 0 : i32
    return %c0_i32, %c0_i32_0, %arg0 : i32, i32, i32
  }
  func.func @transform_1(%arg0: i32) -> (i32, i32) {
    %c0_i32 = arith.constant 0 : i32
    %c0_i32_0 = arith.constant 0 : i32
    %c0_i32_1 = arith.constant 0 : i32
    return %c0_i32, %c0_i32_0 : i32, i32
  }
  func.func @transform_2(%arg0: i32) -> (i32, i32) {
    %c0_i32 = arith.constant 0 : i32
    %c0_i32_0 = arith.constant 0 : i32
    %c0_i32_1 = arith.constant 0 : i32
    return %c0_i32, %c0_i32_0 : i32, i32
  }
  func.func @transform_3(%arg0: i32) -> (i32, i32) {
    %c0_i32 = arith.constant 0 : i32
    %c0_i32_0 = arith.constant 0 : i32
    %c0_i32_1 = arith.constant 0 : i32
    return %c0_i32, %c0_i32_0 : i32, i32
  }
}

module attributes {stable_mosaic.version = 11 : i64} {
  func.func @_fused_kernel(%arg0: i32, %arg1: i32, %arg2: memref<2x64x400xf32, #tpu.memory_space<vmem>>, %arg3: memref<2x64x400xf32, #tpu.memory_space<vmem>>, %arg4: memref<64x64xf32, #tpu.memory_space<vmem>>, %arg5: memref<64x1xf32, #tpu.memory_space<vmem>>, %arg6: memref<64x1xf32, #tpu.memory_space<vmem>>, %arg7: memref<64x1xf32, #tpu.memory_space<vmem>>, %arg8: memref<64x1xf32, #tpu.memory_space<vmem>>, %arg9: memref<144x64xf32, #tpu.memory_space<vmem>>, %arg10: memref<144x1xf32, #tpu.memory_space<vmem>>, %arg11: memref<144x1xf32, #tpu.memory_space<vmem>>, %arg12: memref<2x144x400xf32, #tpu.memory_space<vmem>>, %arg13: memref<1x2x144x400xf32, #tpu.memory_space<vmem>>, %arg14: memref<144x1xf32, #tpu.memory_space<vmem>>, %arg15: memref<144x1xf32, #tpu.memory_space<vmem>>) attributes {dimension_semantics = [#tpu.dimension_semantics<arbitrary>, #tpu.dimension_semantics<arbitrary>], iteration_bounds = array<i64: 2, 1>, scalar_prefetch = 0 : i64, scratch_operands = 3 : i64, tpu.core_type = #tpu.core_type<tc>, window_params = [{transform_indices = @transform_0, window_bounds = array<i64: 2, 64, 400>}, {transform_indices = @transform_1, window_bounds = array<i64: 2, 64, 400>}, {pipeline_mode = #tpu.pipeline_mode<synchronous>, transform_indices = @transform_2, window_bounds = array<i64: 64, 64>}, {pipeline_mode = #tpu.pipeline_mode<synchronous>, transform_indices = @transform_3, window_bounds = array<i64: 64, 1>}, {pipeline_mode = #tpu.pipeline_mode<synchronous>, transform_indices = @transform_4, window_bounds = array<i64: 64, 1>}, {pipeline_mode = #tpu.pipeline_mode<synchronous>, transform_indices = @transform_5, window_bounds = array<i64: 64, 1>}, {pipeline_mode = #tpu.pipeline_mode<synchronous>, transform_indices = @transform_6, window_bounds = array<i64: 64, 1>}, {pipeline_mode = #tpu.pipeline_mode<synchronous>, transform_indices = @transform_7, window_bounds = array<i64: 144, 64>}, {pipeline_mode = #tpu.pipeline_mode<synchronous>, transform_indices = @transform_8, window_bounds = array<i64: 144, 1>}, {pipeline_mode = #tpu.pipeline_mode<synchronous>, transform_indices = @transform_9, window_bounds = array<i64: 144, 1>}, {transform_indices = @transform_10, window_bounds = array<i64: 2, 144, 400>}]} {
    %c0_i32 = arith.constant 0 : i32
    %0 = arith.cmpi eq, %arg0, %c0_i32 : i32
    %c0_i32_0 = arith.constant 0 : i32
    %1 = arith.cmpi eq, %arg1, %c0_i32_0 : i32
    %2 = arith.andi %0, %1 : i1
    %3 = arith.extui %2 : i1 to i32
    %c0_i32_1 = arith.constant 0 : i32
    %4 = arith.cmpi ne, %3, %c0_i32_1 : i32
    scf.if %4 {
      %cst = arith.constant 0.000000e+00 : f32
      %11 = vector.broadcast %cst : f32 to vector<144x1xf32>
      %c0 = arith.constant 0 : index
      %c0_5 = arith.constant 0 : index
      %12 = vector.load %arg14[%c0, %c0_5] : memref<144x1xf32, #tpu.memory_space<vmem>>, vector<144x1xf32>
      tpu.vector_store %arg14[%c0, %c0_5], %11 {strides = array<i32>} : memref<144x1xf32, #tpu.memory_space<vmem>>, vector<144x1xf32>,
      %cst_6 = arith.constant 0.000000e+00 : f32
      %13 = vector.broadcast %cst_6 : f32 to vector<144x1xf32>
      %c0_7 = arith.constant 0 : index
      %c0_8 = arith.constant 0 : index
      %14 = vector.load %arg15[%c0_7, %c0_8] : memref<144x1xf32, #tpu.memory_space<vmem>>, vector<144x1xf32>
      tpu.vector_store %arg15[%c0_7, %c0_8], %13 {strides = array<i32>} : memref<144x1xf32, #tpu.memory_space<vmem>>, vector<144x1xf32>,
    } else {
    }
    %c0_i32_2 = arith.constant 0 : i32
    %5 = arith.cmpi eq, %arg0, %c0_i32_2 : i32
    %6 = arith.extui %5 : i1 to i32
    %c0_i32_3 = arith.constant 0 : i32
    %7 = arith.cmpi ne, %6, %c0_i32_3 : i32
    scf.if %7 {
      %c0 = arith.constant 0 : index
      %c0_5 = arith.constant 0 : index
      %11 = vector.load %arg7[%c0, %c0_5] : memref<64x1xf32, #tpu.memory_space<vmem>>, vector<64x1xf32>
      %cst = arith.constant 3.200000e+03 : f32
      %12 = vector.broadcast %cst : f32 to vector<64x1xf32>
      %13 = arith.divf %11, %12 : vector<64x1xf32>
      %c0_6 = arith.constant 0 : index
      %c0_7 = arith.constant 0 : index
      %14 = vector.load %arg8[%c0_6, %c0_7] : memref<64x1xf32, #tpu.memory_space<vmem>>, vector<64x1xf32>
      %cst_8 = arith.constant 3.200000e+03 : f32
      %15 = vector.broadcast %cst_8 : f32 to vector<64x1xf32>
      %16 = arith.divf %14, %15 : vector<64x1xf32>
      %17 = arith.mulf %13, %13 : vector<64x1xf32>
      %18 = arith.subf %16, %17 : vector<64x1xf32>
      %c0_9 = arith.constant 0 : index
      %c0_10 = arith.constant 0 : index
      %19 = vector.load %arg5[%c0_9, %c0_10] : memref<64x1xf32, #tpu.memory_space<vmem>>, vector<64x1xf32>
      %cst_11 = arith.constant 9.99999974E-6 : f32
      %20 = vector.broadcast %cst_11 : f32 to vector<64x1xf32>
      %21 = arith.addf %18, %20 : vector<64x1xf32>
      %22 = math.rsqrt %21 : vector<64x1xf32>
      %23 = arith.mulf %19, %22 : vector<64x1xf32>
      %c0_12 = arith.constant 0 : index
      %c0_13 = arith.constant 0 : index
      %24 = vector.load %arg6[%c0_12, %c0_13] : memref<64x1xf32, #tpu.memory_space<vmem>>, vector<64x1xf32>
      %25 = arith.mulf %13, %23 : vector<64x1xf32>
      %26 = arith.subf %24, %25 : vector<64x1xf32>
      %c0_14 = arith.constant 0 : index
      %c0_15 = arith.constant 0 : index
      %27 = vector.load %arg4[%c0_14, %c0_15] : memref<64x64xf32, #tpu.memory_space<vmem>>, vector<64x64xf32>
      %28 = vector.broadcast %23 : vector<64x1xf32> to vector<64x64xf32>
      %29 = arith.mulf %27, %28 : vector<64x64xf32>
      %c0_16 = arith.constant 0 : index
      %c0_17 = arith.constant 0 : index
      %30 = vector.load %arg9[%c0_16, %c0_17] : memref<144x64xf32, #tpu.memory_space<vmem>>, vector<144x64xf32>
      %c0_18 = arith.constant 0 : index
      %c0_19 = arith.constant 0 : index
      %c0_20 = arith.constant 0 : index
      %31 = vector.load %arg2[%c0_18, %c0_19, %c0_20] : memref<2x64x400xf32, #tpu.memory_space<vmem>>, vector<1x64x400xf32>
      %32 = vector.shape_cast %31 : vector<1x64x400xf32> to vector<64x400xf32>
      %cst_21 = arith.constant dense<0.000000e+00> : vector<64x400xf32>
      %33 = tpu.matmul %29, %32, %cst_21 {dimension_numbers = #tpu.dot_dimension_numbers<[1], [0], [0], [1], [0, 0, 1, 1], [], []>} : vector<64x64xf32>, vector<64x400xf32>, vector<64x400xf32> -> vector<64x400xf32>
      %c0_22 = arith.constant 0 : index
      %c0_23 = arith.constant 0 : index
      %c0_24 = arith.constant 0 : index
      %34 = vector.load %arg3[%c0_22, %c0_23, %c0_24] : memref<2x64x400xf32, #tpu.memory_space<vmem>>, vector<1x64x400xf32>
      %35 = vector.shape_cast %34 : vector<1x64x400xf32> to vector<64x400xf32>
      %36 = arith.addf %35, %33 : vector<64x400xf32>
      %37 = vector.broadcast %26 : vector<64x1xf32> to vector<64x400xf32>
      %38 = arith.addf %36, %37 : vector<64x400xf32>
      %cst_25 = arith.constant 0.000000e+00 : f32
      %39 = vector.broadcast %cst_25 : f32 to vector<64x400xf32>
      %40 = arith.maximumf %38, %39 : vector<64x400xf32>
      %41 = tpu.iota {dimensions = array<i32: 1>} : vector<64x400xi32>
      %c400_i32 = arith.constant 400 : i32
      %42 = arith.muli %arg1, %c400_i32 : i32
      %43 = vector.broadcast %42 : i32 to vector<64x400xi32>
      %44 = arith.addi %43, %41 : vector<64x400xi32>
      %c400_i32_26 = arith.constant 400 : i32
      %45 = vector.broadcast %c400_i32_26 : i32 to vector<64x400xi32>
      %46 = arith.cmpi slt, %44, %45 : vector<64x400xi32>
      %cst_27 = arith.constant 0.000000e+00 : f32
      %47 = vector.broadcast %cst_27 : f32 to vector<64x400xf32>
      %48 = arith.select %46, %40, %47 : vector<64x400xi1>, vector<64x400xf32>
      %cst_28 = arith.constant dense<0.000000e+00> : vector<144x400xf32>
      %49 = tpu.matmul %30, %48, %cst_28 {dimension_numbers = #tpu.dot_dimension_numbers<[1], [0], [0], [1], [0, 0, 1, 1], [], []>} : vector<144x64xf32>, vector<64x400xf32>, vector<144x400xf32> -> vector<144x400xf32>
      %50 = arith.index_cast %arg1 : i32 to index
      %c0_29 = arith.constant 0 : index
      %c0_30 = arith.constant 0 : index
      %c0_31 = arith.constant 0 : index
      %51 = vector.load %arg13[%50, %c0_29, %c0_30, %c0_31] : memref<1x2x144x400xf32, #tpu.memory_space<vmem>>, vector<1x1x144x400xf32>
      %52 = vector.shape_cast %51 : vector<1x1x144x400xf32> to vector<144x400xf32>
      %53 = vector.shape_cast %49 : vector<144x400xf32> to vector<1x1x144x400xf32>
      tpu.vector_store %arg13[%50, %c0_29, %c0_30, %c0_31], %53 {strides = array<i32>} : memref<1x2x144x400xf32, #tpu.memory_space<vmem>>, vector<1x1x144x400xf32>,
      %c0_32 = arith.constant 0 : index
      %c0_33 = arith.constant 0 : index
      %54 = vector.load %arg14[%c0_32, %c0_33] : memref<144x1xf32, #tpu.memory_space<vmem>>, vector<144x1xf32>
      %cst_34 = arith.constant dense<0.000000e+00> : vector<144xf32>
      %55 = vector.multi_reduction <add>, %49, %cst_34 [1] : vector<144x400xf32> to vector<144xf32>
      %56 = vector.shape_cast %55 : vector<144xf32> to vector<144x1xf32>
      %57 = arith.addf %54, %56 : vector<144x1xf32>
      %c0_35 = arith.constant 0 : index
      %c0_36 = arith.constant 0 : index
      %58 = vector.load %arg14[%c0_35, %c0_36] : memref<144x1xf32, #tpu.memory_space<vmem>>, vector<144x1xf32>
      tpu.vector_store %arg14[%c0_35, %c0_36], %57 {strides = array<i32>} : memref<144x1xf32, #tpu.memory_space<vmem>>, vector<144x1xf32>,
      %c0_37 = arith.constant 0 : index
      %c0_38 = arith.constant 0 : index
      %59 = vector.load %arg15[%c0_37, %c0_38] : memref<144x1xf32, #tpu.memory_space<vmem>>, vector<144x1xf32>
      %60 = arith.mulf %49, %49 : vector<144x400xf32>
      %cst_39 = arith.constant dense<0.000000e+00> : vector<144xf32>
      %61 = vector.multi_reduction <add>, %60, %cst_39 [1] : vector<144x400xf32> to vector<144xf32>
      %62 = vector.shape_cast %61 : vector<144xf32> to vector<144x1xf32>
      %63 = arith.addf %59, %62 : vector<144x1xf32>
      %c0_40 = arith.constant 0 : index
      %c0_41 = arith.constant 0 : index
      %64 = vector.load %arg15[%c0_40, %c0_41] : memref<144x1xf32, #tpu.memory_space<vmem>>, vector<144x1xf32>
      tpu.vector_store %arg15[%c0_40, %c0_41], %63 {strides = array<i32>} : memref<144x1xf32, #tpu.memory_space<vmem>>, vector<144x1xf32>,
      %c1 = arith.constant 1 : index
      %c0_42 = arith.constant 0 : index
      %c0_43 = arith.constant 0 : index
      %65 = vector.load %arg2[%c1, %c0_42, %c0_43] : memref<2x64x400xf32, #tpu.memory_space<vmem>>, vector<1x64x400xf32>
      %66 = vector.shape_cast %65 : vector<1x64x400xf32> to vector<64x400xf32>
      %cst_44 = arith.constant dense<0.000000e+00> : vector<64x400xf32>
      %67 = tpu.matmul %29, %66, %cst_44 {dimension_numbers = #tpu.dot_dimension_numbers<[1], [0], [0], [1], [0, 0, 1, 1], [], []>} : vector<64x64xf32>, vector<64x400xf32>, vector<64x400xf32> -> vector<64x400xf32>
      %c1_45 = arith.constant 1 : index
      %c0_46 = arith.constant 0 : index
      %c0_47 = arith.constant 0 : index
      %68 = vector.load %arg3[%c1_45, %c0_46, %c0_47] : memref<2x64x400xf32, #tpu.memory_space<vmem>>, vector<1x64x400xf32>
      %69 = vector.shape_cast %68 : vector<1x64x400xf32> to vector<64x400xf32>
      %70 = arith.addf %69, %67 : vector<64x400xf32>
      %71 = vector.broadcast %26 : vector<64x1xf32> to vector<64x400xf32>
      %72 = arith.addf %70, %71 : vector<64x400xf32>
      %cst_48 = arith.constant 0.000000e+00 : f32
      %73 = vector.broadcast %cst_48 : f32 to vector<64x400xf32>
      %74 = arith.maximumf %72, %73 : vector<64x400xf32>
      %75 = tpu.iota {dimensions = array<i32: 1>} : vector<64x400xi32>
      %c400_i32_49 = arith.constant 400 : i32
      %76 = arith.muli %arg1, %c400_i32_49 : i32
      %77 = vector.broadcast %76 : i32 to vector<64x400xi32>
      %78 = arith.addi %77, %75 : vector<64x400xi32>
      %c400_i32_50 = arith.constant 400 : i32
      %79 = vector.broadcast %c400_i32_50 : i32 to vector<64x400xi32>
      %80 = arith.cmpi slt, %78, %79 : vector<64x400xi32>
      %cst_51 = arith.constant 0.000000e+00 : f32
      %81 = vector.broadcast %cst_51 : f32 to vector<64x400xf32>
      %82 = arith.select %80, %74, %81 : vector<64x400xi1>, vector<64x400xf32>
      %cst_52 = arith.constant dense<0.000000e+00> : vector<144x400xf32>
      %83 = tpu.matmul %30, %82, %cst_52 {dimension_numbers = #tpu.dot_dimension_numbers<[1], [0], [0], [1], [0, 0, 1, 1], [], []>} : vector<144x64xf32>, vector<64x400xf32>, vector<144x400xf32> -> vector<144x400xf32>
      %84 = arith.index_cast %arg1 : i32 to index
      %c1_53 = arith.constant 1 : index
      %c0_54 = arith.constant 0 : index
      %c0_55 = arith.constant 0 : index
      %85 = vector.load %arg13[%84, %c1_53, %c0_54, %c0_55] : memref<1x2x144x400xf32, #tpu.memory_space<vmem>>, vector<1x1x144x400xf32>
      %86 = vector.shape_cast %85 : vector<1x1x144x400xf32> to vector<144x400xf32>
      %87 = vector.shape_cast %83 : vector<144x400xf32> to vector<1x1x144x400xf32>
      tpu.vector_store %arg13[%84, %c1_53, %c0_54, %c0_55], %87 {strides = array<i32>} : memref<1x2x144x400xf32, #tpu.memory_space<vmem>>, vector<1x1x144x400xf32>,
      %c0_56 = arith.constant 0 : index
      %c0_57 = arith.constant 0 : index
      %88 = vector.load %arg14[%c0_56, %c0_57] : memref<144x1xf32, #tpu.memory_space<vmem>>, vector<144x1xf32>
      %cst_58 = arith.constant dense<0.000000e+00> : vector<144xf32>
      %89 = vector.multi_reduction <add>, %83, %cst_58 [1] : vector<144x400xf32> to vector<144xf32>
      %90 = vector.shape_cast %89 : vector<144xf32> to vector<144x1xf32>
      %91 = arith.addf %88, %90 : vector<144x1xf32>
      %c0_59 = arith.constant 0 : index
      %c0_60 = arith.constant 0 : index
      %92 = vector.load %arg14[%c0_59, %c0_60] : memref<144x1xf32, #tpu.memory_space<vmem>>, vector<144x1xf32>
      tpu.vector_store %arg14[%c0_59, %c0_60], %91 {strides = array<i32>} : memref<144x1xf32, #tpu.memory_space<vmem>>, vector<144x1xf32>,
      %c0_61 = arith.constant 0 : index
      %c0_62 = arith.constant 0 : index
      %93 = vector.load %arg15[%c0_61, %c0_62] : memref<144x1xf32, #tpu.memory_space<vmem>>, vector<144x1xf32>
      %94 = arith.mulf %83, %83 : vector<144x400xf32>
      %cst_63 = arith.constant dense<0.000000e+00> : vector<144xf32>
      %95 = vector.multi_reduction <add>, %94, %cst_63 [1] : vector<144x400xf32> to vector<144xf32>
      %96 = vector.shape_cast %95 : vector<144xf32> to vector<144x1xf32>
      %97 = arith.addf %93, %96 : vector<144x1xf32>
      %c0_64 = arith.constant 0 : index
      %c0_65 = arith.constant 0 : index
      %98 = vector.load %arg15[%c0_64, %c0_65] : memref<144x1xf32, #tpu.memory_space<vmem>>, vector<144x1xf32>
      tpu.vector_store %arg15[%c0_64, %c0_65], %97 {strides = array<i32>} : memref<144x1xf32, #tpu.memory_space<vmem>>, vector<144x1xf32>,
    } else {
    }
    %c1_i32 = arith.constant 1 : i32
    %8 = arith.cmpi eq, %arg0, %c1_i32 : i32
    %9 = arith.extui %8 : i1 to i32
    %c0_i32_4 = arith.constant 0 : i32
    %10 = arith.cmpi ne, %9, %c0_i32_4 : i32
    scf.if %10 {
      %c0 = arith.constant 0 : index
      %c0_5 = arith.constant 0 : index
      %11 = vector.load %arg14[%c0, %c0_5] : memref<144x1xf32, #tpu.memory_space<vmem>>, vector<144x1xf32>
      %cst = arith.constant 8.000000e+02 : f32
      %12 = vector.broadcast %cst : f32 to vector<144x1xf32>
      %13 = arith.divf %11, %12 : vector<144x1xf32>
      %c0_6 = arith.constant 0 : index
      %c0_7 = arith.constant 0 : index
      %14 = vector.load %arg15[%c0_6, %c0_7] : memref<144x1xf32, #tpu.memory_space<vmem>>, vector<144x1xf32>
      %cst_8 = arith.constant 8.000000e+02 : f32
      %15 = vector.broadcast %cst_8 : f32 to vector<144x1xf32>
      %16 = arith.divf %14, %15 : vector<144x1xf32>
      %17 = arith.mulf %13, %13 : vector<144x1xf32>
      %18 = arith.subf %16, %17 : vector<144x1xf32>
      %c0_9 = arith.constant 0 : index
      %c0_10 = arith.constant 0 : index
      %19 = vector.load %arg10[%c0_9, %c0_10] : memref<144x1xf32, #tpu.memory_space<vmem>>, vector<144x1xf32>
      %cst_11 = arith.constant 9.99999974E-6 : f32
      %20 = vector.broadcast %cst_11 : f32 to vector<144x1xf32>
      %21 = arith.addf %18, %20 : vector<144x1xf32>
      %22 = math.rsqrt %21 : vector<144x1xf32>
      %23 = arith.mulf %19, %22 : vector<144x1xf32>
      %c0_12 = arith.constant 0 : index
      %c0_13 = arith.constant 0 : index
      %24 = vector.load %arg11[%c0_12, %c0_13] : memref<144x1xf32, #tpu.memory_space<vmem>>, vector<144x1xf32>
      %25 = arith.mulf %13, %23 : vector<144x1xf32>
      %26 = arith.subf %24, %25 : vector<144x1xf32>
      %27 = arith.index_cast %arg1 : i32 to index
      %c0_14 = arith.constant 0 : index
      %c0_15 = arith.constant 0 : index
      %c0_16 = arith.constant 0 : index
      %28 = vector.load %arg13[%27, %c0_14, %c0_15, %c0_16] : memref<1x2x144x400xf32, #tpu.memory_space<vmem>>, vector<1x1x144x400xf32>
      %29 = vector.shape_cast %28 : vector<1x1x144x400xf32> to vector<144x400xf32>
      %30 = vector.broadcast %23 : vector<144x1xf32> to vector<144x400xf32>
      %31 = arith.mulf %29, %30 : vector<144x400xf32>
      %32 = vector.broadcast %26 : vector<144x1xf32> to vector<144x400xf32>
      %33 = arith.addf %31, %32 : vector<144x400xf32>
      %c0_17 = arith.constant 0 : index
      %c0_18 = arith.constant 0 : index
      %c0_19 = arith.constant 0 : index
      %34 = vector.load %arg12[%c0_17, %c0_18, %c0_19] : memref<2x144x400xf32, #tpu.memory_space<vmem>>, vector<1x144x400xf32>
      %35 = vector.shape_cast %34 : vector<1x144x400xf32> to vector<144x400xf32>
      %36 = vector.shape_cast %33 : vector<144x400xf32> to vector<1x144x400xf32>
      tpu.vector_store %arg12[%c0_17, %c0_18, %c0_19], %36 {strides = array<i32>} : memref<2x144x400xf32, #tpu.memory_space<vmem>>, vector<1x144x400xf32>,
      %37 = arith.index_cast %arg1 : i32 to index
      %c1 = arith.constant 1 : index
      %c0_20 = arith.constant 0 : index
      %c0_21 = arith.constant 0 : index
      %38 = vector.load %arg13[%37, %c1, %c0_20, %c0_21] : memref<1x2x144x400xf32, #tpu.memory_space<vmem>>, vector<1x1x144x400xf32>
      %39 = vector.shape_cast %38 : vector<1x1x144x400xf32> to vector<144x400xf32>
      %40 = vector.broadcast %23 : vector<144x1xf32> to vector<144x400xf32>
      %41 = arith.mulf %39, %40 : vector<144x400xf32>
      %42 = vector.broadcast %26 : vector<144x1xf32> to vector<144x400xf32>
      %43 = arith.addf %41, %42 : vector<144x400xf32>
      %c1_22 = arith.constant 1 : index
      %c0_23 = arith.constant 0 : index
      %c0_24 = arith.constant 0 : index
      %44 = vector.load %arg12[%c1_22, %c0_23, %c0_24] : memref<2x144x400xf32, #tpu.memory_space<vmem>>, vector<1x144x400xf32>
      %45 = vector.shape_cast %44 : vector<1x144x400xf32> to vector<144x400xf32>
      %46 = vector.shape_cast %43 : vector<144x400xf32> to vector<1x144x400xf32>
      tpu.vector_store %arg12[%c1_22, %c0_23, %c0_24], %46 {strides = array<i32>} : memref<2x144x400xf32, #tpu.memory_space<vmem>>, vector<1x144x400xf32>,
    } else {
    }
    return
  }
  func.func @transform_0(%arg0: i32, %arg1: i32) -> (i32, i32, i32) {
    %c1_i32 = arith.constant 1 : i32
    %0 = arith.subi %c1_i32, %arg0 : i32
    %1 = arith.muli %arg1, %0 : i32
    %c0_i32 = arith.constant 0 : i32
    %2 = arith.muli %c0_i32, %arg0 : i32
    %3 = arith.addi %1, %2 : i32
    %c0_i32_0 = arith.constant 0 : i32
    %c0_i32_1 = arith.constant 0 : i32
    %c0_i32_2 = arith.constant 0 : i32
    return %c0_i32_0, %c0_i32_1, %3 : i32, i32, i32
  }
  func.func @transform_1(%arg0: i32, %arg1: i32) -> (i32, i32, i32) {
    %c1_i32 = arith.constant 1 : i32
    %0 = arith.subi %c1_i32, %arg0 : i32
    %1 = arith.muli %arg1, %0 : i32
    %c0_i32 = arith.constant 0 : i32
    %2 = arith.muli %c0_i32, %arg0 : i32
    %3 = arith.addi %1, %2 : i32
    %c0_i32_0 = arith.constant 0 : i32
    %c0_i32_1 = arith.constant 0 : i32
    %c0_i32_2 = arith.constant 0 : i32
    return %c0_i32_0, %c0_i32_1, %3 : i32, i32, i32
  }
  func.func @transform_2(%arg0: i32, %arg1: i32) -> (i32, i32) {
    %c0_i32 = arith.constant 0 : i32
    %c0_i32_0 = arith.constant 0 : i32
    %c0_i32_1 = arith.constant 0 : i32
    return %c0_i32, %c0_i32_0 : i32, i32
  }
  func.func @transform_3(%arg0: i32, %arg1: i32) -> (i32, i32) {
    %c0_i32 = arith.constant 0 : i32
    %c0_i32_0 = arith.constant 0 : i32
    %c0_i32_1 = arith.constant 0 : i32
    return %c0_i32, %c0_i32_0 : i32, i32
  }
  func.func @transform_4(%arg0: i32, %arg1: i32) -> (i32, i32) {
    %c0_i32 = arith.constant 0 : i32
    %c0_i32_0 = arith.constant 0 : i32
    %c0_i32_1 = arith.constant 0 : i32
    return %c0_i32, %c0_i32_0 : i32, i32
  }
  func.func @transform_5(%arg0: i32, %arg1: i32) -> (i32, i32) {
    %c0_i32 = arith.constant 0 : i32
    %c0_i32_0 = arith.constant 0 : i32
    %c0_i32_1 = arith.constant 0 : i32
    return %c0_i32, %c0_i32_0 : i32, i32
  }
  func.func @transform_6(%arg0: i32, %arg1: i32) -> (i32, i32) {
    %c0_i32 = arith.constant 0 : i32
    %c0_i32_0 = arith.constant 0 : i32
    %c0_i32_1 = arith.constant 0 : i32
    return %c0_i32, %c0_i32_0 : i32, i32
  }
  func.func @transform_7(%arg0: i32, %arg1: i32) -> (i32, i32) {
    %c0_i32 = arith.constant 0 : i32
    %c0_i32_0 = arith.constant 0 : i32
    %c0_i32_1 = arith.constant 0 : i32
    return %c0_i32, %c0_i32_0 : i32, i32
  }
  func.func @transform_8(%arg0: i32, %arg1: i32) -> (i32, i32) {
    %c0_i32 = arith.constant 0 : i32
    %c0_i32_0 = arith.constant 0 : i32
    %c0_i32_1 = arith.constant 0 : i32
    return %c0_i32, %c0_i32_0 : i32, i32
  }
  func.func @transform_9(%arg0: i32, %arg1: i32) -> (i32, i32) {
    %c0_i32 = arith.constant 0 : i32
    %c0_i32_0 = arith.constant 0 : i32
    %c0_i32_1 = arith.constant 0 : i32
    return %c0_i32, %c0_i32_0 : i32, i32
  }
  func.func @transform_10(%arg0: i32, %arg1: i32) -> (i32, i32, i32) {
    %0 = arith.muli %arg1, %arg0 : i32
    %c0_i32 = arith.constant 0 : i32
    %c0_i32_0 = arith.constant 0 : i32
    %c0_i32_1 = arith.constant 0 : i32
    return %c0_i32, %c0_i32_0, %0 : i32, i32, i32
  }
}

</mosaic_0001>

<bundles_post_ra>
// kernel: model_forward.2
= control target key start
LH: loop header
LB: loop body
LE: loop exit
PB: predicated region body
PF: predicated region fallthrough
CT: control target
= control target key end

     0   :  { %vm292_vm0 = vcmask 523264   ;;  %vm17_vm2 = vcmask 7168   ;;  %s4859_s0 = inlined_call_operand.vmem [shape: f32[2,64,1600], index: 0, kind: input, shape index: {}]   ;;  %s4860_s1 = inlined_call_operand.vmem [shape: f32[64,64], index: 1, kind: input, shape index: {}]   ;;  %s4861_s2 = inlined_call_operand.vmem [shape: f32[64,1], index: 2, kind: output, shape index: {0}]   ;;  %s4862_s3 = inlined_call_operand.vmem [shape: f32[64,1], index: 3, kind: output, shape index: {1}]  }
   0x1   :  { %v133_v0 = vld [vmem:[%s4859_s0 + $0x2d8] sm:$0xff]  ;;  %v134_v1 = vld [vmem:[%s4859_s0 + $0x2e0] sm:$0xff]  ;;  %v120_v2 = vld [vmem:[%s4859_s0 + $0x270] sm:$0xff] }
   0x2   :  { %2713 = vmatpush.msra.mxu2 %v133_v0  ;;  %2721 = vmatpush.msra.mxu3 %v134_v1  ;;  %v121_v3 = vld [vmem:[%s4859_s0 + $0x278] sm:$0xff]  ;;  %v107_v4 = vld [vmem:[%s4859_s0 + $0x208] sm:$0xff]  ;;  %v108_v5 = vld [vmem:[%s4859_s0 + $0x210] sm:$0xff] }
   0x3   :  { %325 = vmatpush.msra.mxu0 %v133_v0  ;;  %366 = vmatpush.msra.mxu1 %v134_v1  ;;  %v94_v6 = vld [vmem:[%s4859_s0 + $0x1a0] sm:$0xff]  ;;  %v95_v7 = vld [vmem:[%s4859_s0 + $0x1a8] sm:$0xff]  ;;  %v81_v8 = vld [vmem:[%s4859_s0 + $0x138] sm:$0xff] }
   0x4   :  { %2714 = vmatpush.msra.mxu2 %v120_v2  ;;  %2722 = vmatpush.msra.mxu3 %v121_v3  ;;  %v82_v9 = vld [vmem:[%s4859_s0 + $0x140] sm:$0xff]  ;;  %v68_v10 = vld [vmem:[%s4859_s0 + $0xd0] sm:$0xff]  ;;  %v69_v11 = vld [vmem:[%s4859_s0 + $0xd8] sm:$0xff] }
   0x5   :  { %326 = vmatpush.msra.mxu0 %v120_v2  ;;  %367 = vmatpush.msra.mxu1 %v121_v3  ;;  %v55_v12 = vld [vmem:[%s4859_s0 + $0x68] sm:$0xff]  ;;  %v56_v13 = vld [vmem:[%s4859_s0 + $0x70] sm:$0xff]  ;;  %v42_v14 = vld [vmem:[%s4859_s0] sm:$0xff] }
   0x6   :  { %2715 = vmatpush.msra.mxu2 %v107_v4  ;;  %2723 = vmatpush.msra.mxu3 %v108_v5  ;;  %v43_v15 = vld [vmem:[%s4859_s0 + $0x8] sm:$0xff]  ;;  %v2814_v16 = vld [vmem:[%s4860_s1 + $0x20] sm:$0xff]  ;;  %v136_v18 = vld [vmem:[%s4859_s0 + $0x2f0] sm:$0xff] }
   0x7   :  { %327 = vmatpush.msra.mxu0 %v107_v4  ;;  %368 = vmatpush.msra.mxu1 %v108_v5  ;;  %v135_v17 = vld [vmem:[%s4859_s0 + $0x2e8] sm:$0xff]  ;;  %v122_v19 = vld [vmem:[%s4859_s0 + $0x280] sm:$0xff]  ;;  %v109_v22 = vld [vmem:[%s4859_s0 + $0x218] sm:$0xff] }
   0x8   :  { %2716 = vmatpush.msra.mxu2 %v94_v6  ;;  %2724 = vmatpush.msra.mxu3 %v95_v7  ;;  %v123_v20 = vld [vmem:[%s4859_s0 + $0x288] sm:$0xff]  ;;  %v2835_v21 = vld [vmem:[%s4860_s1] sm:$0xff]  ;;  %v137_v24 = vld [vmem:[%s4859_s0 + $0x2f8] sm:$0xff] }
   0x9   :  { %328 = vmatpush.msra.mxu0 %v94_v6  ;;  %369 = vmatpush.msra.mxu1 %v95_v7  ;;  %v110_v23 = vld [vmem:[%s4859_s0 + $0x220] sm:$0xff]  ;;  %v96_v26 = vld [vmem:[%s4859_s0 + $0x1b0] sm:$0xff]  ;;  %v97_v27 = vld [vmem:[%s4859_s0 + $0x1b8] sm:$0xff] }
   0xa   :  { %2717 = vmatpush.msra.mxu2 %v81_v8  ;;  %2725 = vmatpush.msra.mxu3 %v82_v9  ;;  %v138_v25 = vld [vmem:[%s4859_s0 + $0x300] sm:$0xff]  ;;  %v2862_v28 = vld [vmem:[%s4860_s1 + $0x28] sm:$0xff]  ;;  %v124_v29 = vld [vmem:[%s4859_s0 + $0x290] sm:$0xff] }
   0xb   :  { %329 = vmatpush.msra.mxu0 %v81_v8  ;;  %370 = vmatpush.msra.mxu1 %v82_v9  ;;  %v125_v30 = vld [vmem:[%s4859_s0 + $0x298] sm:$0xff]  ;;  %v83_v31 = vld [vmem:[%s4859_s0 + $0x148] sm:$0xff]  ;;  %v84_v32 = vld [vmem:[%s4859_s0 + $0x150] sm:$0xff] }
   0xc   :  { %2718 = vmatpush.msra.mxu2 %v68_v10  ;;  %2726 = vmatpush.msra.mxu3 %v69_v11  ;;  %v111_v33 = vld [vmem:[%s4859_s0 + $0x228] sm:$0xff]  ;;  %v112_v34 = vld [vmem:[%s4859_s0 + $0x230] sm:$0xff]  ;;  %v70_v36 = vld [vmem:[%s4859_s0 + $0xe0] sm:$0xff] }
   0xd   :  { %330 = vmatpush.msra.mxu0 %v68_v10  ;;  %371 = vmatpush.msra.mxu1 %v69_v11  ;;  %v2889_v35 = vld [vmem:[%s4860_s1 + $0x8] sm:$0xff]  ;;  %v98_v38 = vld [vmem:[%s4859_s0 + $0x1c0] sm:$0xff]  ;;  %v57_v40 = vld [vmem:[%s4859_s0 + $0x78] sm:$0xff] }
   0xe   :  { %2719 = vmatpush.msra.mxu2 %v55_v12  ;;  %2727 = vmatpush.msra.mxu3 %v56_v13  ;;  %v71_v37 = vld [vmem:[%s4859_s0 + $0xe8] sm:$0xff]  ;;  %v58_v41 = vld [vmem:[%s4859_s0 + $0x80] sm:$0xff]  ;;  %v2916_v42 = vld [vmem:[%s4860_s1 + $0x30] sm:$0xff] }
   0xf   :  { %331 = vmatpush.msra.mxu0 %v55_v12  ;;  %372 = vmatpush.msra.mxu1 %v56_v13  ;;  %v99_v39 = vld [vmem:[%s4859_s0 + $0x1c8] sm:$0xff]  ;;  %v85_v43 = vld [vmem:[%s4859_s0 + $0x158] sm:$0xff]  ;;  %v86_v44 = vld [vmem:[%s4859_s0 + $0x160] sm:$0xff] }
  0x10   :  { %2720 = vmatpush.msra.mxu2 %v42_v14  ;;  %2728 = vmatpush.msra.mxu3 %v43_v15  ;;  %v44_v45 = vld [vmem:[%s4859_s0 + $0x10] sm:$0xff]  ;;  %v45_v46 = vld [vmem:[%s4859_s0 + $0x18] sm:$0xff]  ;;  %v139_v50 = vld [vmem:[%s4859_s0 + $0x308] sm:$0xff] }
  0x11   :  { %2389 = vmatmul.msk.f32.vlgmr.msra.gmra.mxu2 %vm292_vm0, %v2814_v16  ;;  %2397 = vmatmul.msk.f32.vlgmr.msra.gmra.mxu3 %vm292_vm0, %v2814_v16  ;;  %v72_v47 = vld [vmem:[%s4859_s0 + $0xf0] sm:$0xff]  ;;  %v73_v48 = vld [vmem:[%s4859_s0 + $0xf8] sm:$0xff]  ;;  %v59_v51 = vld [vmem:[%s4859_s0 + $0x88] sm:$0xff] }
  0x12   :  { %407 = vmatpush.msrb.mxu2 %v135_v17  ;;  %448 = vmatpush.msrb.mxu3 %v136_v18  ;;  %v2943_v49 = vld [vmem:[%s4860_s1 + $0x10] sm:$0xff]  ;;  %v46_v54 = vld [vmem:[%s4859_s0 + $0x20] sm:$0xff]  ;;  %v2970_v56 = vld [vmem:[%s4860_s1 + $0x38] sm:$0xff] }
  0x13   :  { %332 = vmatpush.msra.mxu0 %v42_v14  ;;  %373 = vmatpush.msra.mxu1 %v43_v15  ;;  %v140_v52 = vld [vmem:[%s4859_s0 + $0x310] sm:$0xff]  ;;  %v126_v55 = vld [vmem:[%s4859_s0 + $0x2a0] sm:$0xff]  ;;  %v47_v57 = vld [vmem:[%s4859_s0 + $0x28] sm:$0xff] }
  0x14   :  { %408 = vmatpush.msrb.mxu2 %v122_v19  ;;  %449 = vmatpush.msrb.mxu3 %v123_v20  ;;  %v60_v53 = vld [vmem:[%s4859_s0 + $0x90] sm:$0xff]  ;;  %v127_v58 = vld [vmem:[%s4859_s0 + $0x2a8] sm:$0xff]  ;;  %v141_v59 = vld [vmem:[%s4859_s0 + $0x318] sm:$0xff] }
  0x15   :  { %2385 = vmatmul.msk.f32.vlgmr.msra.gmra.mxu0 %vm292_vm0, %v2835_v21  ;;  %2393 = vmatmul.msk.f32.vlgmr.msra.gmra.mxu1 %vm292_vm0, %v2835_v21  ;;  %v142_v60 = vld [vmem:[%s4859_s0 + $0x320] sm:$0xff]  ;;  %v113_v61 = vld [vmem:[%s4859_s0 + $0x238] sm:$0xff]  ;;  %v128_v0 = vld [vmem:[%s4859_s0 + $0x2b0] sm:$0xff] }
  0x16   :  { %409 = vmatpush.msrb.mxu2 %v109_v22  ;;  %450 = vmatpush.msrb.mxu3 %v110_v23  ;;  %v114_v62 = vld [vmem:[%s4859_s0 + $0x240] sm:$0xff]  ;;  %v2997_v63 = vld [vmem:[%s4860_s1 + $0x18] sm:$0xff]  ;;  %v100_v2 = vld [vmem:[%s4859_s0 + $0x1d0] sm:$0xff] }
  0x17   :  { %489 = vmatpush.msrb.mxu0 %v137_v24  ;;  %530 = vmatpush.msrb.mxu1 %v138_v25  ;;  %v129_v1 = vld [vmem:[%s4859_s0 + $0x2b8] sm:$0xff]  ;;  %v115_v4 = vld [vmem:[%s4859_s0 + $0x248] sm:$0xff]  ;;  %v116_v5 = vld [vmem:[%s4859_s0 + $0x250] sm:$0xff] }
  0x18   :  { %410 = vmatpush.msrb.mxu2 %v96_v26  ;;  %451 = vmatpush.msrb.mxu3 %v97_v27  ;;  %v101_v3 = vld [vmem:[%s4859_s0 + $0x1d8] sm:$0xff]  ;;  %v87_v6 = vld [vmem:[%s4859_s0 + $0x168] sm:$0xff]  ;;  %v88_v7 = vld [vmem:[%s4859_s0 + $0x170] sm:$0xff] }
  0x19   :  { %2390 = vmatmul.msk.f32.gmra.mxu2 %vm292_vm0, %v2862_v28  ;;  %2398 = vmatmul.msk.f32.gmra.mxu3 %vm292_vm0, %v2862_v28  ;;  %v102_v8 = vld [vmem:[%s4859_s0 + $0x1e0] sm:$0xff]  ;;  %v103_v9 = vld [vmem:[%s4859_s0 + $0x1e8] sm:$0xff]  ;;  %v89_v12 = vld [vmem:[%s4859_s0 + $0x178] sm:$0xff] }
  0x1a   :  { %490 = vmatpush.msrb.mxu0 %v124_v29  ;;  %531 = vmatpush.msrb.mxu1 %v125_v30  ;;  %v74_v10 = vld [vmem:[%s4859_s0 + $0x100] sm:$0xff]  ;;  %v75_v11 = vld [vmem:[%s4859_s0 + $0x108] sm:$0xff]  ;;  %v61_v14 = vld [vmem:[%s4859_s0 + $0x98] sm:$0xff] }
  0x1b   :  { %411 = vmatpush.msrb.mxu2 %v83_v31  ;;  %452 = vmatpush.msrb.mxu3 %v84_v32  ;;  %v90_v13 = vld [vmem:[%s4859_s0 + $0x180] sm:$0xff]  ;;  %v76_v17 = vld [vmem:[%s4859_s0 + $0x110] sm:$0xff]  ;;  %v77_v18 = vld [vmem:[%s4859_s0 + $0x118] sm:$0xff]  ;;  %v146_v31 = vlaneseq }
  0x1c   :  { %491 = vmatpush.msrb.mxu0 %v111_v33  ;;  %532 = vmatpush.msrb.mxu1 %v112_v34  ;;  %v62_v15 = vld [vmem:[%s4859_s0 + $0xa0] sm:$0xff]  ;;  %v48_v19 = vld [vmem:[%s4859_s0 + $0x30] sm:$0xff]  ;;  %v49_v20 = vld [vmem:[%s4859_s0 + $0x38] sm:$0xff] }
  0x1d   :  { %2386 = vmatmul.msk.f32.gmra.mxu0 %vm292_vm0, %v2889_v35  ;;  %2394 = vmatmul.msk.f32.gmra.mxu1 %vm292_vm0, %v2889_v35  ;;  %v63_v22 = vld [vmem:[%s4859_s0 + $0xa8] sm:$0xff]  ;;  %v64_v23 = vld [vmem:[%s4859_s0 + $0xb0] sm:$0xff]  ;;  %v50_v25 = vld [vmem:[%s4859_s0 + $0x40] sm:$0xff]  ;;  %v147_v33 = vand.u32 127, %v146_v31 }
  0x1e   :  { %412 = vmatpush.msrb.mxu2 %v70_v36  ;;  %453 = vmatpush.msrb.mxu3 %v71_v37  ;;  %v143_v24 = vld [vmem:[%s4859_s0 + $0x328] sm:$0xff]  ;;  %v144_v26 = vld [vmem:[%s4859_s0 + $0x330] sm:$0xff]  ;;  %v130_v29 = vld [vmem:[%s4859_s0 + $0x2c0] sm:$0xff] }
  0x1f   :  { %492 = vmatpush.msrb.mxu0 %v98_v38  ;;  %533 = vmatpush.msrb.mxu1 %v99_v39  ;;  %v51_v27 = vld [vmem:[%s4859_s0 + $0x48] sm:$0xff]  ;;  %v2588_v32 = vld [vmem:[%s4859_s0 + $0x618] sm:$0xff]  ;;  %v3141_v36 = vadd.s32 1536, %v147_v33  ;;  %v118_v38 = vld [vmem:[%s4859_s0 + $0x260] sm:$0xff] }
  0x20   :  { %413 = vmatpush.msrb.mxu2 %v57_v40  ;;  %454 = vmatpush.msrb.mxu3 %v58_v41  ;;  %v131_v30 = vld [vmem:[%s4859_s0 + $0x2c8] sm:$0xff]  ;;  %v145_v34 = vld [vmem:[%s4859_s0 + $0x338] sm:$0xff]  ;;  %v132_v39 = vld [vmem:[%s4859_s0 + $0x2d0] sm:$0xff] }
  0x21   :  { %2391 = vmatmul.msk.f32.gmra.mxu2 %vm292_vm0, %v2916_v42  ;;  %2399 = vmatmul.msk.f32.gmra.mxu3 %vm292_vm0, %v2916_v42  ;;  %vm187_vm1 = vcmp.lt.s32.totalorder %v3141_v36, 1600  ;;  %v117_v37 = vld [vmem:[%s4859_s0 + $0x258] sm:$0xff]  ;;  %v2575_v40 = vld [vmem:[%s4859_s0 + $0x5b0] sm:$0xff] }
  0x22   :  { %493 = vmatpush.msrb.mxu0 %v85_v43  ;;  %534 = vmatpush.msrb.mxu1 %v86_v44  ;;  %v104_v41 = vld [vmem:[%s4859_s0 + $0x1f0] sm:$0xff]  ;;  %v105_v43 = vld [vmem:[%s4859_s0 + $0x1f8] sm:$0xff]  ;;  %v119_v44 = vld [vmem:[%s4859_s0 + $0x268] sm:$0xff] }
  0x23   :  { %414 = vmatpush.msrb.mxu2 %v44_v45  ;;  %455 = vmatpush.msrb.mxu3 %v45_v46  ;;  %v2562_v45 = vld [vmem:[%s4859_s0 + $0x548] sm:$0xff] }
  0x24   :  { %494 = vmatpush.msrb.mxu0 %v72_v47  ;;  %535 = vmatpush.msrb.mxu1 %v73_v48  ;;  %v91_v46 = vld [vmem:[%s4859_s0 + $0x188] sm:$0xff]  ;;  %v92_v47 = vld [vmem:[%s4859_s0 + $0x190] sm:$0xff]  ;;  %v106_v48 = vld [vmem:[%s4859_s0 + $0x200] sm:$0xff] }
  0x25   :  { %2387 = vmatmul.msk.f32.gmra.mxu0 %vm292_vm0, %v2943_v49  ;;  %2395 = vmatmul.msk.f32.gmra.mxu1 %vm292_vm0, %v2943_v49 }
  0x26   :  { %571 = vmatpush.msra.mxu2 %v139_v50  ;;  %495 = vmatpush.msrb.mxu0 %v59_v51  ;;  %v2549_v50 = vld [vmem:[%s4859_s0 + $0x4e0] sm:$0xff] }
  0x27   :  { %612 = vmatpush.msra.mxu3 %v140_v52  ;;  %536 = vmatpush.msrb.mxu1 %v60_v53  ;;  %v78_v51 = vld [vmem:[%s4859_s0 + $0x120] sm:$0xff]  ;;  %v79_v52 = vld [vmem:[%s4859_s0 + $0x128] sm:$0xff]  ;;  %v93_v53 = vld [vmem:[%s4859_s0 + $0x198] sm:$0xff] }
  0x28   :  { %496 = vmatpush.msrb.mxu0 %v46_v54  ;;  %572 = vmatpush.msra.mxu2 %v126_v55  ;;  %v2536_v54 = vld [vmem:[%s4859_s0 + $0x478] sm:$0xff] }
  0x29   :  { %2392 = vmatmul.msk.f32.gmra.mxu2 %vm292_vm0, %v2970_v56  ;;  %2400 = vmatmul.msk.f32.gmra.mxu3 %vm292_vm0, %v2970_v56  ;;  %v65_v55 = vld [vmem:[%s4859_s0 + $0xb8] sm:$0xff] }
  0x2a   :  { %537 = vmatpush.msrb.mxu1 %v47_v57  ;;  %613 = vmatpush.msra.mxu3 %v127_v58  ;;  %v66_v57 = vld [vmem:[%s4859_s0 + $0xc0] sm:$0xff]  ;;  %v80_v58 = vld [vmem:[%s4859_s0 + $0x130] sm:$0xff] }
  0x2b   :  { %653 = vmatpush.msra.mxu0 %v141_v59  ;;  %573 = vmatpush.msra.mxu2 %v113_v61  ;;  %v2523_v59 = vld [vmem:[%s4859_s0 + $0x410] sm:$0xff]  ;;  %v53_v61 = vld [vmem:[%s4859_s0 + $0x58] sm:$0xff] }
  0x2c   :  { %694 = vmatpush.msra.mxu1 %v142_v60  ;;  %614 = vmatpush.msra.mxu3 %v114_v62  ;;  %v52_v60 = vld [vmem:[%s4859_s0 + $0x50] sm:$0xff]  ;;  %v67_v62 = vld [vmem:[%s4859_s0 + $0xc8] sm:$0xff] }
  0x2d   :  { %2388 = vmatmul.msk.f32.gmra.mxu0 %vm292_vm0, %v2997_v63  ;;  %2396 = vmatmul.msk.f32.gmra.mxu1 %vm292_vm0, %v2997_v63 }
  0x2e   :  { %654 = vmatpush.msra.mxu0 %v128_v0  ;;  %695 = vmatpush.msra.mxu1 %v129_v1  ;;  %v2510_v0 = vld [vmem:[%s4859_s0 + $0x3a8] sm:$0xff]  ;;  %v2589_v1 = vld [vmem:[%s4859_s0 + $0x620] sm:$0xff] }
  0x2f   :  { %574 = vmatpush.msra.mxu2 %v100_v2  ;;  %615 = vmatpush.msra.mxu3 %v101_v3  ;;  %v54_v2 = vld [vmem:[%s4859_s0 + $0x60] sm:$0xff]  ;;  %v2590_v3 = vld [vmem:[%s4859_s0 + $0x628] sm:$0xff] }
  0x30   :  { %655 = vmatpush.msra.mxu0 %v115_v4  ;;  %696 = vmatpush.msra.mxu1 %v116_v5 }
  0x31   :  { %2401 = vmatmul.msk.f32.vlgmr.msrb.gmra.mxu2 %vm292_vm0, %v2835_v21  ;;  %2409 = vmatmul.msk.f32.vlgmr.msrb.gmra.mxu3 %vm292_vm0, %v2835_v21 }
  0x32   :  { %575 = vmatpush.msra.mxu2 %v87_v6  ;;  %616 = vmatpush.msra.mxu3 %v88_v7 }
  0x33   :  { %656 = vmatpush.msra.mxu0 %v102_v8  ;;  %697 = vmatpush.msra.mxu1 %v103_v9 }
  0x34   :  { %576 = vmatpush.msra.mxu2 %v74_v10  ;;  %617 = vmatpush.msra.mxu3 %v75_v11 }
  0x35   :  { %2417 = vmatmul.msk.f32.vlgmr.msrb.gmra.mxu0 %vm292_vm0, %v2835_v21  ;;  %2425 = vmatmul.msk.f32.vlgmr.msrb.gmra.mxu1 %vm292_vm0, %v2835_v21 }
  0x36   :  { %657 = vmatpush.msra.mxu0 %v89_v12  ;;  %698 = vmatpush.msra.mxu1 %v90_v13  ;;  %v2497_v12 = vld [vmem:[%s4859_s0 + $0x340] sm:$0xff] }
  0x37   :  { %577 = vmatpush.msra.mxu2 %v61_v14  ;;  %618 = vmatpush.msra.mxu3 %v62_v15 }
  0x38   :  { %658 = vmatpush.msra.mxu0 %v76_v17  ;;  %699 = vmatpush.msra.mxu1 %v77_v18 }
  0x39   :  { %2402 = vmatmul.msk.f32.gmra.mxu2 %vm292_vm0, %v2889_v35  ;;  %2410 = vmatmul.msk.f32.gmra.mxu3 %vm292_vm0, %v2889_v35 }
  0x3a   :  { %578 = vmatpush.msra.mxu2 %v48_v19  ;;  %619 = vmatpush.msra.mxu3 %v49_v20 }
  0x3b   :  { %659 = vmatpush.msra.mxu0 %v63_v22  ;;  %700 = vmatpush.msra.mxu1 %v64_v23  ;;  %v2576_v22 = vld [vmem:[%s4859_s0 + $0x5b8] sm:$0xff]  ;;  %v2577_v23 = vld [vmem:[%s4859_s0 + $0x5c0] sm:$0xff] }
  0x3c   :  { %735 = vmatpush.msrb.mxu2 %v143_v24  ;;  %776 = vmatpush.msrb.mxu3 %v144_v26  ;;  %v2591_v24 = vld [vmem:[%s4859_s0 + $0x630] sm:$0xff]  ;;  %v2592_v26 = vld [vmem:[%s4859_s0 + $0x638] sm:$0xff] }
  0x3d   :  { %2418 = vmatmul.msk.f32.gmra.mxu0 %vm292_vm0, %v2889_v35  ;;  %2426 = vmatmul.msk.f32.gmra.mxu1 %vm292_vm0, %v2889_v35 }
  0x3e   :  { %660 = vmatpush.msra.mxu0 %v50_v25  ;;  %701 = vmatpush.msra.mxu1 %v51_v27 }
  0x3f   :  { %736 = vmatpush.msrb.mxu2 %v130_v29  ;;  %777 = vmatpush.msrb.mxu3 %v131_v30 }
  0x40   :  { %1460 = vmatpush.msrb.mxu1 %v2588_v32  ;;  %2481 = vmatpush.msk.msrb.mxu0 %vm187_vm1, %v145_v34 }
  0x41   :  { %2403 = vmatmul.msk.f32.gmra.mxu2 %vm292_vm0, %v2943_v49  ;;  %2411 = vmatmul.msk.f32.gmra.mxu3 %vm292_vm0, %v2943_v49 }
  0x42   :  { %737 = vmatpush.msrb.mxu2 %v117_v37  ;;  %778 = vmatpush.msrb.mxu3 %v118_v38  ;;  %v2563_v37 = vld [vmem:[%s4859_s0 + $0x550] sm:$0xff]  ;;  %v2564_v38 = vld [vmem:[%s4859_s0 + $0x558] sm:$0xff] }
  0x43   :  { %2482 = vmatpush.msk.msrb.mxu0 %vm187_vm1, %v132_v39  ;;  %1461 = vmatpush.msrb.mxu1 %v2575_v40  ;;  %v2578_v39 = vld [vmem:[%s4859_s0 + $0x5c8] sm:$0xff] }
  0x44   :  { %738 = vmatpush.msrb.mxu2 %v104_v41  ;;  %779 = vmatpush.msrb.mxu3 %v105_v43  ;;  %v2579_v41 = vld [vmem:[%s4859_s0 + $0x5d0] sm:$0xff] }
  0x45   :  { %2419 = vmatmul.msk.f32.gmra.mxu0 %vm292_vm0, %v2943_v49  ;;  %2427 = vmatmul.msk.f32.gmra.mxu1 %vm292_vm0, %v2943_v49 }
  0x46   :  { %2483 = vmatpush.msk.msrb.mxu0 %vm187_vm1, %v119_v44  ;;  %1462 = vmatpush.msrb.mxu1 %v2562_v45 }
  0x47   :  { %739 = vmatpush.msrb.mxu2 %v91_v46  ;;  %780 = vmatpush.msrb.mxu3 %v92_v47 }
  0x48   :  { %2484 = vmatpush.msk.msrb.mxu0 %vm187_vm1, %v106_v48  ;;  %1463 = vmatpush.msrb.mxu1 %v2549_v50 }
  0x49   :  { %2404 = vmatmul.msk.f32.gmra.mxu2 %vm292_vm0, %v2997_v63  ;;  %2412 = vmatmul.msk.f32.gmra.mxu3 %vm292_vm0, %v2997_v63 }
  0x4a   :  { %740 = vmatpush.msrb.mxu2 %v78_v51  ;;  %781 = vmatpush.msrb.mxu3 %v79_v52  ;;  %v2550_v51 = vld [vmem:[%s4859_s0 + $0x4e8] sm:$0xff]  ;;  %v2551_v52 = vld [vmem:[%s4859_s0 + $0x4f0] sm:$0xff] }
  0x4b   :  { %2485 = vmatpush.msk.msrb.mxu0 %vm187_vm1, %v93_v53  ;;  %1464 = vmatpush.msrb.mxu1 %v2536_v54  ;;  %v2565_v53 = vld [vmem:[%s4859_s0 + $0x560] sm:$0xff] }
  0x4c   :  { %741 = vmatpush.msrb.mxu2 %v65_v55  ;;  %782 = vmatpush.msrb.mxu3 %v66_v57  ;;  %v2566_v55 = vld [vmem:[%s4859_s0 + $0x568] sm:$0xff] }
  0x4d   :  { %2420 = vmatmul.msk.f32.gmra.mxu0 %vm292_vm0, %v2997_v63  ;;  %2428 = vmatmul.msk.f32.gmra.mxu1 %vm292_vm0, %v2997_v63 }
  0x4e   :  { %2486 = vmatpush.msk.msrb.mxu0 %vm187_vm1, %v80_v58  ;;  %1465 = vmatpush.msrb.mxu1 %v2523_v59 }
  0x4f   :  { %742 = vmatpush.msrb.mxu2 %v52_v60  ;;  %783 = vmatpush.msrb.mxu3 %v53_v61 }
  0x50   :  { %2487 = vmatpush.msk.msrb.mxu0 %vm187_vm1, %v67_v62  ;;  %1466 = vmatpush.msrb.mxu1 %v2510_v0 }
  0x51   :  { %2405 = vmatmul.msk.f32.gmra.mxu2 %vm292_vm0, %v2814_v16  ;;  %2413 = vmatmul.msk.f32.gmra.mxu3 %vm292_vm0, %v2814_v16 }
  0x52   :  { %2488 = vmatpush.msk.msrb.mxu0 %vm187_vm1, %v54_v2  ;;  %1467 = vmatpush.msrb.mxu1 %v2497_v12  ;;  %v2553_v12 = vld [vmem:[%s4859_s0 + $0x500] sm:$0xff] }
  0x55   :  { %2421 = vmatmul.msk.f32.gmra.mxu0 %vm292_vm0, %v2814_v16  ;;  %2429 = vmatmul.msk.f32.gmra.mxu1 %vm292_vm0, %v2814_v16 }
  0x59   :  { %2406 = vmatmul.msk.f32.gmra.mxu2 %vm292_vm0, %v2862_v28  ;;  %2414 = vmatmul.msk.f32.gmra.mxu3 %vm292_vm0, %v2862_v28 }
  0x5d   :  { %2422 = vmatmul.msk.f32.gmra.mxu0 %vm292_vm0, %v2862_v28  ;;  %2430 = vmatmul.msk.f32.gmra.mxu1 %vm292_vm0, %v2862_v28 }
  0x61   :  { %2407 = vmatmul.msk.f32.gmra.mxu2 %vm292_vm0, %v2916_v42  ;;  %2415 = vmatmul.msk.f32.gmra.mxu3 %vm292_vm0, %v2916_v42 }
  0x65   :  { %2423 = vmatmul.msk.f32.gmra.mxu0 %vm292_vm0, %v2916_v42  ;;  %2431 = vmatmul.msk.f32.gmra.mxu1 %vm292_vm0, %v2916_v42 }
  0x69   :  { %2408 = vmatmul.msk.f32.gmra.mxu2 %vm292_vm0, %v2970_v56  ;;  %2416 = vmatmul.msk.f32.gmra.mxu3 %vm292_vm0, %v2970_v56 }
  0x6d   :  { %2424 = vmatmul.msk.f32.gmra.mxu0 %vm292_vm0, %v2970_v56  ;;  %2432 = vmatmul.msk.f32.gmra.mxu1 %vm292_vm0, %v2970_v56 }
  0x71   :  { %2433 = vmatmul.msk.f32.vlgmr.msra.gmra.mxu2 %vm292_vm0, %v2835_v21  ;;  %2441 = vmatmul.msk.f32.vlgmr.msra.gmra.mxu3 %vm292_vm0, %v2835_v21 }
  0x72   :  { %1501 = vmatpush.msra.mxu2 %v2589_v1  ;;  %1542 = vmatpush.msra.mxu3 %v2590_v3 }
  0x74   :  { %1502 = vmatpush.msra.mxu2 %v2576_v22  ;;  %1543 = vmatpush.msra.mxu3 %v2577_v23 }
  0x75   :  { %2449 = vmatmul.msk.f32.vlgmr.msra.gmra.mxu0 %vm292_vm0, %v2835_v21  ;;  %2457 = vmatmul.msk.f32.vlgmr.msra.gmra.mxu1 %vm292_vm0, %v2835_v21 }
  0x76   :  { %1583 = vmatpush.msra.mxu0 %v2591_v24  ;;  %1624 = vmatpush.msra.mxu1 %v2592_v26 }
  0x77   :  { %1503 = vmatpush.msra.mxu2 %v2563_v37  ;;  %1544 = vmatpush.msra.mxu3 %v2564_v38  ;;  %v2525_v37 = vld [vmem:[%s4859_s0 + $0x420] sm:$0xff] }
  0x78   :  { %1584 = vmatpush.msra.mxu0 %v2578_v39  ;;  %1625 = vmatpush.msra.mxu1 %v2579_v41  ;;  %v2540_v39 = vld [vmem:[%s4859_s0 + $0x498] sm:$0xff] }
  0x79   :  { %2434 = vmatmul.msk.f32.gmra.mxu2 %vm292_vm0, %v2889_v35  ;;  %2442 = vmatmul.msk.f32.gmra.mxu3 %vm292_vm0, %v2889_v35 }
  0x7a   :  { %1504 = vmatpush.msra.mxu2 %v2550_v51  ;;  %1545 = vmatpush.msra.mxu3 %v2551_v52 }
  0x7b   :  { %1585 = vmatpush.msra.mxu0 %v2565_v53  ;;  %1626 = vmatpush.msra.mxu1 %v2566_v55 }
  0x7d   :  { %2450 = vmatmul.msk.f32.gmra.mxu0 %vm292_vm0, %v2889_v35  ;;  %2458 = vmatmul.msk.f32.gmra.mxu1 %vm292_vm0, %v2889_v35 }
  0x7e   :  { %1627 = vmatpush.msra.mxu1 %v2553_v12 }
  0x80   :  { %1628 = vmatpush.msra.mxu1 %v2540_v39 }
  0x81   :  { %2435 = vmatmul.msk.f32.gmra.mxu2 %vm292_vm0, %v2943_v49  ;;  %2443 = vmatmul.msk.f32.gmra.mxu3 %vm292_vm0, %v2943_v49 }
  0x85   :  { %2451 = vmatmul.msk.f32.gmra.mxu0 %vm292_vm0, %v2943_v49  ;;  %2459 = vmatmul.msk.f32.gmra.mxu1 %vm292_vm0, %v2943_v49 }
  0x89   :  { %2436 = vmatmul.msk.f32.gmra.mxu2 %vm292_vm0, %v2997_v63  ;;  %2444 = vmatmul.msk.f32.gmra.mxu3 %vm292_vm0, %v2997_v63 }
  0x8d   :  { %2452 = vmatmul.msk.f32.gmra.mxu0 %vm292_vm0, %v2997_v63  ;;  %2460 = vmatmul.msk.f32.gmra.mxu1 %vm292_vm0, %v2997_v63 }
  0x91   :  { %2437 = vmatmul.msk.f32.gmra.mxu2 %vm292_vm0, %v2814_v16  ;;  %2445 = vmatmul.msk.f32.gmra.mxu3 %vm292_vm0, %v2814_v16 }
  0x92   :  { %v3291_v4 = vpop.f32.mrf.mxu0  ;;  %v3293_v5 = vpop.f32.mrf.mxu1 }
  0x93   :  { %v1003_v57 = vmul.f32 %v3291_v4, %v3291_v4  ;;  %v1004_v58 = vmul.f32 %v3293_v5, %v3293_v5  ;;  %v858_v61 = vadd.f32 %v3293_v5, %v3291_v4  ;;  %v2552_v4 = vld [vmem:[%s4859_s0 + $0x4f8] sm:$0xff] }
  0x94   :  { %v346_v6 = vpop.f32.mrf.mxu2  ;;  %v387_v7 = vpop.f32.mrf.mxu3  ;;  %1586 = vmatpush.msra.mxu0 %v2552_v4 }
  0x95   :  { %v1055_v8 = vmul.f32 %v346_v6, %v346_v6  ;;  %v3297_v9 = vadd.f32 %v387_v7, %v346_v6  ;;  %v1056_v10 = vmul.f32 %v387_v7, %v387_v7  ;;  %2453 = vmatmul.msk.f32.gmra.mxu0 %vm292_vm0, %v2814_v16  ;;  %2461 = vmatmul.msk.f32.gmra.mxu1 %vm292_vm0, %v2814_v16  ;;  %v2537_v7 = vld [vmem:[%s4859_s0 + $0x480] sm:$0xff] }
  0x96   :  { %v1107_v1 = vadd.f32 %v1004_v58, %v1003_v57  ;;  %1505 = vmatpush.msra.mxu2 %v2537_v7 }
  0x97   :  { %v3303_v11 = vadd.f32 %v1056_v10, %v1055_v8  ;;  %v2538_v8 = vld [vmem:[%s4859_s0 + $0x488] sm:$0xff] }
  0x98   :  { %1546 = vmatpush.msra.mxu3 %v2538_v8 }
  0x99   :  { %2438 = vmatmul.msk.f32.gmra.mxu2 %vm292_vm0, %v2862_v28  ;;  %2446 = vmatmul.msk.f32.gmra.mxu3 %vm292_vm0, %v2862_v28 }
  0x9a   :  { %v3312_v13 = vpop.f32.mrf.mxu0  ;;  %v3314_v14 = vpop.f32.mrf.mxu1  ;;  %1547 = vmatpush.msra.mxu3 %v2525_v37 }
  0x9b   :  { %v873_v22 = vadd.f32 %v3314_v14, %v3312_v13 }
  0x9c   :  { %v349_v15 = vpop.f32.mrf.mxu2  ;;  %v390_v17 = vpop.f32.mrf.mxu3 }
  0x9d   :  { %v1068_v18 = vmul.f32 %v349_v15, %v349_v15  ;;  %v3316_v19 = vadd.f32 %v390_v17, %v349_v15  ;;  %v1069_v20 = vmul.f32 %v390_v17, %v390_v17  ;;  %2454 = vmatmul.msk.f32.gmra.mxu0 %vm292_vm0, %v2862_v28  ;;  %2462 = vmatmul.msk.f32.gmra.mxu1 %vm292_vm0, %v2862_v28 }
  0x9e   :  { %v1016_v15 = vmul.f32 %v3312_v13, %v3312_v13  ;;  %v1017_v17 = vmul.f32 %v3314_v14, %v3314_v14  ;;  %v2539_v13 = vld [vmem:[%s4859_s0 + $0x490] sm:$0xff] }
  0x9f   :  { %v3331_v25 = vadd.f32 %v1069_v20, %v1068_v18  ;;  %1587 = vmatpush.msra.mxu0 %v2539_v13 }
  0xa0   :  { %v1122_v26 = vadd.f32 %v1017_v17, %v1016_v15 }
  0xa1   :  { %2439 = vmatmul.msk.f32.gmra.mxu2 %vm292_vm0, %v2916_v42  ;;  %2447 = vmatmul.msk.f32.gmra.mxu3 %vm292_vm0, %v2916_v42 }
  0xa2   :  { %v3340_v27 = vpop.f32.mrf.mxu0  ;;  %v3342_v29 = vpop.f32.mrf.mxu1 }
  0xa3   :  { %v1029_v41 = vmul.f32 %v3340_v27, %v3340_v27 }
  0xa4   :  { %v352_v30 = vpop.f32.mrf.mxu2  ;;  %v393_v31 = vpop.f32.mrf.mxu3 }
  0xa5   :  { %v1081_v32 = vmul.f32 %v352_v30, %v352_v30  ;;  %v3344_v33 = vadd.f32 %v393_v31, %v352_v30  ;;  %v1082_v34 = vmul.f32 %v393_v31, %v393_v31  ;;  %2455 = vmatmul.msk.f32.gmra.mxu0 %vm292_vm0, %v2916_v42  ;;  %2463 = vmatmul.msk.f32.gmra.mxu1 %vm292_vm0, %v2916_v42 }
  0xa7   :  { %v3359_v40 = vadd.f32 %v1082_v34, %v1081_v32  ;;  %v2524_v34 = vld [vmem:[%s4859_s0 + $0x418] sm:$0xff] }
  0xa8   :  { %1506 = vmatpush.msra.mxu2 %v2524_v34 }
  0xa9   :  { %2440 = vmatmul.msk.f32.gmra.mxu2 %vm292_vm0, %v2970_v56  ;;  %2448 = vmatmul.msk.f32.gmra.mxu3 %vm292_vm0, %v2970_v56 }
  0xaa   :  { %v3368_v43 = vpop.f32.mrf.mxu0  ;;  %v3370_v44 = vpop.f32.mrf.mxu1 }
  0xab   :  { %v903_v4 = vadd.f32 %v3370_v44, %v3368_v43 }
  0xac   :  { %v355_v45 = vpop.f32.mrf.mxu2  ;;  %v396_v46 = vpop.f32.mrf.mxu3 }
  0xad   :  { %v1094_v47 = vmul.f32 %v355_v45, %v355_v45  ;;  %v3372_v48 = vadd.f32 %v396_v46, %v355_v45  ;;  %v1095_v50 = vmul.f32 %v396_v46, %v396_v46  ;;  %2456 = vmatmul.msk.f32.gmra.mxu0 %vm292_vm0, %v2970_v56  ;;  %2464 = vmatmul.msk.f32.gmra.mxu1 %vm292_vm0, %v2970_v56 }
  0xae   :  { %v1030_v45 = vmul.f32 %v3342_v29, %v3342_v29 }
  0xaf   :  { %v3387_v54 = vadd.f32 %v1095_v50, %v1094_v47  ;;  %v888_v50 = vadd.f32 %v3342_v29, %v3340_v27  ;;  %v2526_v27 = vld [vmem:[%s4859_s0 + $0x428] sm:$0xff] }
  0xb0   :  { %v1137_v53 = vadd.f32 %v1030_v45, %v1029_v41  ;;  %1588 = vmatpush.msra.mxu0 %v2526_v27 }
  0xb1   :  { %2465 = vmatmul.msk.f32.vlgmr.msrb.gmra.mxu2 %vm292_vm0, %v2835_v21  ;;  %2473 = vmatmul.msk.f32.vlgmr.msrb.gmra.mxu3 %vm292_vm0, %v2835_v21 }
  0xb2   :  { %v3400_v59 = vpop.f32.mrf.mxu0  ;;  %v3402_v60 = vpop.f32.mrf.mxu1 }
  0xb4   :  { %v416_v62 = vpop.f32.mrf.mxu2  ;;  %v457_v0 = vpop.f32.mrf.mxu3 }
  0xb5   :  { %v859_v2 = vadd.f32 %v858_v61, %v416_v62  ;;  %v1005_v3 = vmul.f32 %v416_v62, %v416_v62  ;;  %v1006_v6 = vmul.f32 %v457_v0, %v457_v0  ;;  %2489 = vmatmul.msk.f32.vlgmr.msrb.gmra.mxu0 %vm292_vm0, %v2835_v21  ;;  %2601 = vmatmul.msk.f32.vlgmr.msrb.gmra.mxu1 %vm292_vm0, %v2835_v21  ;;  %v2511_v61 = vld [vmem:[%s4859_s0 + $0x3b0] sm:$0xff]  ;;  %v2512_v62 = vld [vmem:[%s4859_s0 + $0x3b8] sm:$0xff] }
  0xb6   :  { %1507 = vmatpush.msra.mxu2 %v2511_v61  ;;  %1548 = vmatpush.msra.mxu3 %v2512_v62 }
  0xb7   :  { %v1108_v5 = vadd.f32 %v1107_v1, %v1005_v3  ;;  %v3419_v10 = vadd.f32 %v859_v2, %v457_v0  ;;  %v2527_v1 = vld [vmem:[%s4859_s0 + $0x430] sm:$0xff]  ;;  %v1042_v2 = vmul.f32 %v3368_v43, %v3368_v43  ;;  %v1043_v3 = vmul.f32 %v3370_v44, %v3370_v44  ;;  %v2513_v43 = vld [vmem:[%s4859_s0 + $0x3c0] sm:$0xff] }
  0xb8   :  { %1629 = vmatpush.msra.mxu1 %v2527_v1  ;;  %1589 = vmatpush.msra.mxu0 %v2513_v43  ;;  %v2580_v1 = vld [vmem:[%s4859_s0 + $0x5d8] sm:$0xff] }
  0xb9   :  { %v3428_v18 = vadd.f32 %v1108_v5, %v1006_v6  ;;  %2466 = vmatmul.msk.f32.gmra.mxu2 %vm292_vm0, %v2889_v35  ;;  %2474 = vmatmul.msk.f32.gmra.mxu3 %vm292_vm0, %v2889_v35  ;;  %v1152_v15 = vadd.f32 %v1043_v3, %v1042_v2  ;;  %v2581_v2 = vld [vmem:[%s4859_s0 + $0x5e0] sm:$0xff]  ;;  %v2595_v3 = vld [vmem:[%s4859_s0 + $0x650] sm:$0xff]  ;;  %v2568_v43 = vld [vmem:[%s4859_s0 + $0x578] sm:$0xff] }
  0xba   :  { %v3434_v21 = vpop.f32.mrf.mxu0  ;;  %v3436_v20 = vpop.f32.mrf.mxu1 }
  0xbc   :  { %v419_v23 = vpop.f32.mrf.mxu2  ;;  %v460_v24 = vpop.f32.mrf.mxu3 }
  0xbd   :  { %v874_v30 = vadd.f32 %v873_v22, %v419_v23  ;;  %v1018_v31 = vmul.f32 %v419_v23, %v419_v23  ;;  %v1019_v32 = vmul.f32 %v460_v24, %v460_v24  ;;  %2490 = vmatmul.msk.f32.gmra.mxu0 %vm292_vm0, %v2889_v35  ;;  %2602 = vmatmul.msk.f32.gmra.mxu1 %vm292_vm0, %v2889_v35 }
  0xbf   :  { %v1123_v14 = vadd.f32 %v1122_v26, %v1018_v31  ;;  %v3453_v38 = vadd.f32 %v874_v30, %v460_v24  ;;  %v2498_v24 = vld [vmem:[%s4859_s0 + $0x348] sm:$0xff]  ;;  %v2499_v26 = vld [vmem:[%s4859_s0 + $0x350] sm:$0xff] }
  0xc0   :  { %1508 = vmatpush.msra.mxu2 %v2498_v24  ;;  %1549 = vmatpush.msra.mxu3 %v2499_v26  ;;  %v2514_v31 = vld [vmem:[%s4859_s0 + $0x3c8] sm:$0xff]  ;;  %v2567_v26 = vld [vmem:[%s4859_s0 + $0x570] sm:$0xff] }
  0xc1   :  { %v3462_v46 = vadd.f32 %v1123_v14, %v1019_v32  ;;  %2467 = vmatmul.msk.f32.gmra.mxu2 %vm292_vm0, %v2943_v49  ;;  %2475 = vmatmul.msk.f32.gmra.mxu3 %vm292_vm0, %v2943_v49 }
  0xc2   :  { %v3468_v35 = vpop.f32.mrf.mxu0  ;;  %v3470_v47 = vpop.f32.mrf.mxu1  ;;  %1630 = vmatpush.msra.mxu1 %v2514_v31 }
  0xc4   :  { %v422_v51 = vpop.f32.mrf.mxu2  ;;  %v463_v52 = vpop.f32.mrf.mxu3 }
  0xc5   :  { %v889_v55 = vadd.f32 %v888_v50, %v422_v51  ;;  %v1031_v57 = vmul.f32 %v422_v51, %v422_v51  ;;  %v1032_v58 = vmul.f32 %v463_v52, %v463_v52  ;;  %2491 = vmatmul.msk.f32.gmra.mxu0 %vm292_vm0, %v2943_v49  ;;  %2603 = vmatmul.msk.f32.gmra.mxu1 %vm292_vm0, %v2943_v49  ;;  %v2593_v50 = vld [vmem:[%s4859_s0 + $0x640] sm:$0xff]  ;;  %v2500_v51 = vld [vmem:[%s4859_s0 + $0x358] sm:$0xff] }
  0xc6   :  { %1665 = vmatpush.msrb.mxu2 %v2593_v50  ;;  %1590 = vmatpush.msra.mxu0 %v2500_v51 }
  0xc7   :  { %v1138_v29 = vadd.f32 %v1137_v53, %v1031_v57  ;;  %v3487_v0 = vadd.f32 %v889_v55, %v463_v52  ;;  %v2594_v52 = vld [vmem:[%s4859_s0 + $0x648] sm:$0xff]  ;;  %v2501_v55 = vld [vmem:[%s4859_s0 + $0x360] sm:$0xff] }
  0xc8   :  { %1706 = vmatpush.msrb.mxu3 %v2594_v52  ;;  %1631 = vmatpush.msra.mxu1 %v2501_v55  ;;  %v2554_v52 = vld [vmem:[%s4859_s0 + $0x508] sm:$0xff]  ;;  %v2569_v55 = vld [vmem:[%s4859_s0 + $0x580] sm:$0xff] }
  0xc9   :  { %v3496_v6 = vadd.f32 %v1138_v29, %v1032_v58  ;;  %2468 = vmatmul.msk.f32.gmra.mxu2 %vm292_vm0, %v2997_v63  ;;  %2476 = vmatmul.msk.f32.gmra.mxu3 %vm292_vm0, %v2997_v63 }
  0xca   :  { %v3502_v7 = vpop.f32.mrf.mxu0  ;;  %v3504_v8 = vpop.f32.mrf.mxu1  ;;  %1666 = vmatpush.msrb.mxu2 %v2580_v1  ;;  %1707 = vmatpush.msrb.mxu3 %v2581_v2  ;;  %v2541_v2 = vld [vmem:[%s4859_s0 + $0x4a0] sm:$0xff] }
  0xcb   :  { %1747 = vmatpush.msrb.mxu0 %v2595_v3  ;;  %v2542_v3 = vld [vmem:[%s4859_s0 + $0x4a8] sm:$0xff] }
  0xcc   :  { %v425_v5 = vpop.f32.mrf.mxu2  ;;  %v466_v12 = vpop.f32.mrf.mxu3  ;;  %1667 = vmatpush.msrb.mxu2 %v2567_v26  ;;  %1708 = vmatpush.msrb.mxu3 %v2568_v43  ;;  %v2528_v26 = vld [vmem:[%s4859_s0 + $0x438] sm:$0xff]  ;;  %v2529_v43 = vld [vmem:[%s4859_s0 + $0x440] sm:$0xff] }
  0xcd   :  { %v904_v17 = vadd.f32 %v903_v4, %v425_v5  ;;  %v1044_v22 = vmul.f32 %v425_v5, %v425_v5  ;;  %v1045_v23 = vmul.f32 %v466_v12, %v466_v12  ;;  %2492 = vmatmul.msk.f32.gmra.mxu0 %vm292_vm0, %v2997_v63  ;;  %2604 = vmatmul.msk.f32.gmra.mxu1 %vm292_vm0, %v2997_v63  ;;  %v2596_v5 = vld [vmem:[%s4859_s0 + $0x658] sm:$0xff] }
  0xce   :  { %1788 = vmatpush.msrb.mxu1 %v2596_v5  ;;  %1668 = vmatpush.msrb.mxu2 %v2554_v52  ;;  %v2557_v5 = vld [vmem:[%s4859_s0 + $0x520] sm:$0xff]  ;;  %v2530_v52 = vld [vmem:[%s4859_s0 + $0x448] sm:$0xff] }
  0xcf   :  { %v1153_v44 = vadd.f32 %v1152_v15, %v1044_v22  ;;  %v3521_v30 = vadd.f32 %v904_v17, %v466_v12 }
  0xd0   :  { %1669 = vmatpush.msrb.mxu2 %v2541_v2 }
  0xd1   :  { %v3526_v32 = vadd.f32 %v1153_v44, %v1045_v23  ;;  %2469 = vmatmul.msk.f32.gmra.mxu2 %vm292_vm0, %v2814_v16  ;;  %2477 = vmatmul.msk.f32.gmra.mxu3 %vm292_vm0, %v2814_v16  ;;  %v2582_v44 = vld [vmem:[%s4859_s0 + $0x5e8] sm:$0xff] }
  0xd2   :  { %v3532_v34 = vpop.f32.mrf.mxu0  ;;  %v3534_v37 = vpop.f32.mrf.mxu1  ;;  %1748 = vmatpush.msrb.mxu0 %v2582_v44  ;;  %v2543_v44 = vld [vmem:[%s4859_s0 + $0x4b0] sm:$0xff]  ;;  %1670 = vmatpush.msrb.mxu2 %v2528_v26 }
  0xd3   :  { %v2503_v26 = vld [vmem:[%s4859_s0 + $0x370] sm:$0xff] }
  0xd4   :  { %v428_v13 = vpop.f32.mrf.mxu2  ;;  %v469_v14 = vpop.f32.mrf.mxu3  ;;  %1749 = vmatpush.msrb.mxu0 %v2569_v55  ;;  %v2531_v55 = vld [vmem:[%s4859_s0 + $0x450] sm:$0xff] }
  0xd5   :  { %v919_v39 = vadd.f32 %v3297_v9, %v428_v13  ;;  %v1057_v41 = vmul.f32 %v428_v13, %v428_v13  ;;  %v1058_v45 = vmul.f32 %v469_v14, %v469_v14  ;;  %2493 = vmatmul.msk.f32.gmra.mxu0 %vm292_vm0, %v2814_v16  ;;  %2605 = vmatmul.msk.f32.gmra.mxu1 %vm292_vm0, %v2814_v16  ;;  %v2583_v13 = vld [vmem:[%s4859_s0 + $0x5f0] sm:$0xff] }
  0xd6   :  { %1789 = vmatpush.msrb.mxu1 %v2583_v13 }
  0xd7   :  { %v1168_v9 = vadd.f32 %v3303_v11, %v1057_v41  ;;  %v3551_v53 = vadd.f32 %v919_v39, %v469_v14 }
  0xd9   :  { %v3556_v57 = vadd.f32 %v1168_v9, %v1058_v45  ;;  %2470 = vmatmul.msk.f32.gmra.mxu2 %vm292_vm0, %v2862_v28  ;;  %2478 = vmatmul.msk.f32.gmra.mxu3 %vm292_vm0, %v2862_v28  ;;  %v2555_v9 = vld [vmem:[%s4859_s0 + $0x510] sm:$0xff] }
  0xda   :  { %v3562_v16 = vpop.f32.mrf.mxu0  ;;  %v3564_v11 = vpop.f32.mrf.mxu1  ;;  %1709 = vmatpush.msrb.mxu3 %v2555_v9  ;;  %v3740_v9 = vld [vmem:[%s4860_s1 + $0x10] sm:$0xff] }
  0xdc   :  { %v431_v58 = vpop.f32.mrf.mxu2  ;;  %v472_v61 = vpop.f32.mrf.mxu3  ;;  %1710 = vmatpush.msrb.mxu3 %v2542_v3 }
  0xdd   :  { %v934_v62 = vadd.f32 %v3316_v19, %v431_v58  ;;  %v1070_v27 = vmul.f32 %v431_v58, %v431_v58  ;;  %v1071_v29 = vmul.f32 %v472_v61, %v472_v61  ;;  %2494 = vmatmul.msk.f32.gmra.mxu0 %vm292_vm0, %v2862_v28  ;;  %2606 = vmatmul.msk.f32.gmra.mxu1 %vm292_vm0, %v2862_v28 }
  0xde   :  { %1711 = vmatpush.msrb.mxu3 %v2529_v43  ;;  %v2517_v43 = vld [vmem:[%s4859_s0 + $0x3e0] sm:$0xff] }
  0xdf   :  { %v1183_v19 = vadd.f32 %v3331_v25, %v1070_v27  ;;  %v3581_v4 = vadd.f32 %v934_v62, %v472_v61  ;;  %v2570_v61 = vld [vmem:[%s4859_s0 + $0x588] sm:$0xff]  ;;  %v3651_v27 = vld [vmem:[%s4860_s1] sm:$0xff] }
  0xe0   :  { %1790 = vmatpush.msrb.mxu1 %v2570_v61 }
  0xe1   :  { %v3586_v12 = vadd.f32 %v1183_v19, %v1071_v29  ;;  %2471 = vmatmul.msk.f32.gmra.mxu2 %vm292_vm0, %v2916_v42  ;;  %2479 = vmatmul.msk.f32.gmra.mxu3 %vm292_vm0, %v2916_v42  ;;  %v2556_v19 = vld [vmem:[%s4859_s0 + $0x518] sm:$0xff] }
  0xe2   :  { %v3592_v28 = vpop.f32.mrf.mxu0  ;;  %v3594_v25 = vpop.f32.mrf.mxu1  ;;  %1750 = vmatpush.msrb.mxu0 %v2556_v19  ;;  %1791 = vmatpush.msrb.mxu1 %v2557_v5  ;;  %v2502_v5 = vld [vmem:[%s4859_s0 + $0x368] sm:$0xff] }
  0xe4   :  { %v434_v15 = vpop.f32.mrf.mxu2  ;;  %v475_v17 = vpop.f32.mrf.mxu3  ;;  %1751 = vmatpush.msrb.mxu0 %v2543_v44 }
  0xe5   :  { %v949_v22 = vadd.f32 %v3344_v33, %v434_v15  ;;  %v1083_v23 = vmul.f32 %v434_v15, %v434_v15  ;;  %v1084_v24 = vmul.f32 %v475_v17, %v475_v17  ;;  %2495 = vmatmul.msk.f32.gmra.mxu0 %vm292_vm0, %v2916_v42  ;;  %2607 = vmatmul.msk.f32.gmra.mxu1 %vm292_vm0, %v2916_v42  ;;  %v3684_v15 = vld [vmem:[%s4860_s1 + $0x8] sm:$0xff] }
  0xe6   :  { %1752 = vmatpush.msrb.mxu0 %v2530_v52 }
  0xe7   :  { %v1198_v33 = vadd.f32 %v3359_v40, %v1083_v23  ;;  %v3611_v31 = vadd.f32 %v949_v22, %v475_v17 }
  0xe8   :  { %1753 = vmatpush.msrb.mxu0 %v2517_v43  ;;  %v2505_v43 = vld [vmem:[%s4859_s0 + $0x380] sm:$0xff] }
  0xe9   :  { %v3616_v14 = vadd.f32 %v1198_v33, %v1084_v24  ;;  %2472 = vmatmul.msk.f32.gmra.mxu2 %vm292_vm0, %v2970_v56  ;;  %2480 = vmatmul.msk.f32.gmra.mxu3 %vm292_vm0, %v2970_v56  ;;  %v2544_v33 = vld [vmem:[%s4859_s0 + $0x4b8] sm:$0xff] }
  0xea   :  { %v3622_v42 = vpop.f32.mrf.mxu0  ;;  %v3624_v40 = vpop.f32.mrf.mxu1  ;;  %1792 = vmatpush.msrb.mxu1 %v2544_v33  ;;  %v2518_v33 = vld [vmem:[%s4859_s0 + $0x3e8] sm:$0xff] }
  0xeb   :  { %4882 = vst [vmem:[#allocation2_spill] sm:$0xff] %v3622_v42 }
  0xec   :  { %4883 = vst [vmem:[#allocation3_spill] sm:$0xff] %v3624_v40  ;;  %v437_v39 = vpop.f32.mrf.mxu2  ;;  %v478_v41 = vpop.f32.mrf.mxu3  ;;  %1793 = vmatpush.msrb.mxu1 %v2531_v55 }
  0xed   :  { %v964_v45 = vadd.f32 %v3372_v48, %v437_v39  ;;  %v1096_v50 = vmul.f32 %v437_v39, %v437_v39  ;;  %v1097_v51 = vmul.f32 %v478_v41, %v478_v41  ;;  %2496 = vmatmul.msk.f32.gmra.mxu0 %vm292_vm0, %v2970_v56  ;;  %2608 = vmatmul.msk.f32.gmra.mxu1 %vm292_vm0, %v2970_v56 }
  0xee   :  { %1794 = vmatpush.msrb.mxu1 %v2518_v33  ;;  %v2584_v33 = vld [vmem:[%s4859_s0 + $0x5f8] sm:$0xff] }
  0xef   :  { %v1213_v48 = vadd.f32 %v3387_v54, %v1096_v50  ;;  %v3641_v58 = vadd.f32 %v964_v45, %v478_v41  ;;  %v2515_v50 = vld [vmem:[%s4859_s0 + $0x3d0] sm:$0xff] }
  0xf0   :  { %1671 = vmatpush.msrb.mxu2 %v2515_v50  ;;  %1795 = vmatpush.msrb.mxu1 %v2505_v43 }
  0xf1   :  { %4884 = vst [vmem:[#allocation4_spill] sm:$0xff] %v3641_v58  ;;  %v3646_v62 = vadd.f32 %v1213_v48, %v1097_v51  ;;  %2609 = vmatmul.msk.f32.vlgmr.msra.gmra.mxu2 %vm292_vm0, %v3651_v27  ;;  %2617 = vmatmul.msk.f32.vlgmr.msra.gmra.mxu3 %vm292_vm0, %v3651_v27  ;;  %v2516_v51 = vld [vmem:[%s4859_s0 + $0x3d8] sm:$0xff]  ;;  %v1008_v58 = vmul.f32 %v3402_v60, %v3402_v60 }
  0xf2   :  { %v3657_v56 = vpop.f32.mrf.mxu0  ;;  %v3659_v54 = vpop.f32.mrf.mxu1  ;;  %1712 = vmatpush.msrb.mxu3 %v2516_v51  ;;  %1672 = vmatpush.msrb.mxu2 %v2502_v5  ;;  %v3784_v51 = vld [vmem:[%s4860_s1 + $0x20] sm:$0xff]  ;;  %v2504_v5 = vld [vmem:[%s4859_s0 + $0x378] sm:$0xff] }
  0xf3   :  { %4885 = vst [vmem:[#allocation5_spill] sm:$0xff] %v3646_v62  ;;  %1754 = vmatpush.msrb.mxu0 %v2504_v5  ;;  %v2600_v62 = vld [vmem:[%s4859_s0 + $0x678] sm:$0xff] }
  0xf4   :  { %v3661_v29 = vpop.f32.mrf.mxu2  ;;  %v3663_v1 = vpop.f32.mrf.mxu3  ;;  %1713 = vmatpush.msrb.mxu3 %v2503_v26  ;;  %4886 = vst [vmem:[#allocation6_spill] sm:$0xff] %v3784_v51  ;;  %v2598_v26 = vld [vmem:[%s4859_s0 + $0x668] sm:$0xff] }
  0xf5   :  { %2625 = vmatmul.msk.f32.vlgmr.msra.gmra.mxu0 %vm292_vm0, %v3651_v27  ;;  %2633 = vmatmul.msk.f32.vlgmr.msra.gmra.mxu1 %vm292_vm0, %v3651_v27 }
  0xf6   :  { %1870 = vmatpush.msra.mxu3 %v2598_v26  ;;  %2697 = vmatpush.msk.msra.mxu1 %vm187_vm1, %v2600_v62  ;;  %v2572_v62 = vld [vmem:[%s4859_s0 + $0x598] sm:$0xff] }
  0xf9   :  { %2610 = vmatmul.msk.f32.gmra.mxu2 %vm292_vm0, %v3684_v15  ;;  %2618 = vmatmul.msk.f32.gmra.mxu3 %vm292_vm0, %v3684_v15 }
  0xfa   :  { %v3690_v17 = vpop.f32.mrf.mxu0  ;;  %v3692_v22 = vpop.f32.mrf.mxu1 }
  0xfc   :  { %v3694_v23 = vpop.f32.mrf.mxu2  ;;  %v3696_v24 = vpop.f32.mrf.mxu3 }
  0xfd   :  { %2626 = vmatmul.msk.f32.gmra.mxu0 %vm292_vm0, %v3684_v15  ;;  %2634 = vmatmul.msk.f32.gmra.mxu1 %vm292_vm0, %v3684_v15 }
 0x101   :  { %2611 = vmatmul.msk.f32.gmra.mxu2 %vm292_vm0, %v2943_v49  ;;  %2619 = vmatmul.msk.f32.gmra.mxu3 %vm292_vm0, %v2943_v49 }
 0x102   :  { %v3718_v13 = vpop.f32.mrf.mxu0  ;;  %v3720_v39 = vpop.f32.mrf.mxu1 }
 0x104   :  { %v3722_v41 = vpop.f32.mrf.mxu2  ;;  %v3724_v45 = vpop.f32.mrf.mxu3 }
 0x105   :  { %2627 = vmatmul.msk.f32.gmra.mxu0 %vm292_vm0, %v2943_v49  ;;  %2635 = vmatmul.msk.f32.gmra.mxu1 %vm292_vm0, %v3740_v9  ;;  %v906_v49 = vadd.f32 %v3521_v30, %v3502_v7 }
 0x107   :  { %v907_v2 = vadd.f32 %v906_v49, %v3504_v8 }
 0x109   :  { %2612 = vmatmul.msk.f32.gmra.mxu2 %vm292_vm0, %v2997_v63  ;;  %2620 = vmatmul.msk.f32.gmra.mxu3 %vm292_vm0, %v2997_v63 }
 0x10a   :  { %v3753_v48 = vpop.f32.mrf.mxu0  ;;  %v3755_v61 = vpop.f32.mrf.mxu1 }
 0x10c   :  { %v3758_v30 = vpop.f32.mrf.mxu2  ;;  %v3760_v3 = vpop.f32.mrf.mxu3 }
 0x10d   :  { %v908_v19 = vadd.f32 %v907_v2, %v3758_v30  ;;  %2628 = vmatmul.msk.f32.gmra.mxu0 %vm292_vm0, %v2997_v63  ;;  %2636 = vmatmul.msk.f32.gmra.mxu1 %vm292_vm0, %v2997_v63 }
 0x10f   :  { %v909_v44 = vadd.f32 %v908_v19, %v3760_v3  ;;  %v2597_v19 = vld [vmem:[%s4859_s0 + $0x660] sm:$0xff] }
 0x110   :  { %1829 = vmatpush.msra.mxu2 %v2597_v19  ;;  %v2599_v19 = vld [vmem:[%s4859_s0 + $0x670] sm:$0xff] }
 0x111   :  { %v910_v50 = vadd.f32 %v909_v44, %v3753_v48  ;;  %2613 = vmatmul.msk.f32.gmra.mxu2 %vm292_vm0, %v3784_v51  ;;  %2621 = vmatmul.msk.f32.gmra.mxu3 %vm292_vm0, %v3784_v51  ;;  %v3820_v44 = vld [vmem:[%s4860_s1 + $0x28] sm:$0xff] }
 0x112   :  { %v3790_v63 = vpop.f32.mrf.mxu0  ;;  %v3795_v49 = vpop.f32.mrf.mxu1  ;;  %4888 = vst [vmem:[#allocation8_spill] sm:$0xff] %v3820_v44  ;;  %1830 = vmatpush.msra.mxu2 %v2584_v33  ;;  %1911 = vmatpush.msra.mxu0 %v2599_v19  ;;  %v1007_v33 = vmul.f32 %v3400_v59, %v3400_v59  ;;  %v3859_v19 = vld [vmem:[%s4860_s1 + $0x30] sm:$0xff] }
 0x113   :  { %v3793_v52 = vadd.f32 %v910_v50, %v3755_v61  ;;  %v2585_v50 = vld [vmem:[%s4859_s0 + $0x600] sm:$0xff]  ;;  %4892 = vst [vmem:[#allocation12_spill] sm:$0xff] %v3859_v19 }
 0x114   :  { %v3797_v55 = vpop.f32.mrf.mxu2  ;;  %v3799_v2 = vpop.f32.mrf.mxu3  ;;  %1871 = vmatpush.msra.mxu3 %v2585_v50  ;;  %v861_v50 = vadd.f32 %v3419_v10, %v3400_v59  ;;  %v2586_v59 = vld [vmem:[%s4859_s0 + $0x608] sm:$0xff] }
 0x115   :  { %4887 = vst [vmem:[#allocation7_spill] sm:$0xff] %v3793_v52  ;;  %2629 = vmatmul.msk.f32.gmra.mxu0 %vm292_vm0, %v3784_v51  ;;  %2637 = vmatmul.msk.f32.gmra.mxu1 %vm292_vm0, %v3784_v51 }
 0x116   :  { %1872 = vmatpush.msra.mxu3 %v2572_v62  ;;  %1912 = vmatpush.msra.mxu0 %v2586_v59  ;;  %v862_v52 = vadd.f32 %v861_v50, %v3402_v60  ;;  %v1020_v60 = vmul.f32 %v3434_v21, %v3434_v21  ;;  %v876_v50 = vadd.f32 %v3453_v38, %v3434_v21  ;;  %v2559_v21 = vld [vmem:[%s4859_s0 + $0x530] sm:$0xff]  ;;  %v2573_v38 = vld [vmem:[%s4859_s0 + $0x5a0] sm:$0xff] }
 0x117   :  { %v1010_v59 = vmul.f32 %v3663_v1, %v3663_v1 }
 0x118   :  { %1873 = vmatpush.msra.mxu3 %v2559_v21  ;;  %1913 = vmatpush.msra.mxu0 %v2573_v38  ;;  %v1012_v21 = vmul.f32 %v3659_v54, %v3659_v54  ;;  %v1034_v38 = vmul.f32 %v3470_v47, %v3470_v47 }
 0x119   :  { %2614 = vmatmul.msk.f32.gmra.mxu2 %vm292_vm0, %v3820_v44  ;;  %2622 = vmatmul.msk.f32.gmra.mxu3 %vm292_vm0, %v3820_v44 }
 0x11a   :  { %v3835_v5 = vpop.f32.mrf.mxu0  ;;  %v3837_v26 = vpop.f32.mrf.mxu1 }
 0x11b   :  { %4889 = vst [vmem:[#allocation9_spill] sm:$0xff] %v3835_v5 }
 0x11c   :  { %4890 = vst [vmem:[#allocation10_spill] sm:$0xff] %v3837_v26  ;;  %v3839_v43 = vpop.f32.mrf.mxu2  ;;  %v3841_v40 = vpop.f32.mrf.mxu3  ;;  %v1110_v26 = vadd.f32 %v3428_v18, %v1007_v33  ;;  %v2587_v18 = vld [vmem:[%s4859_s0 + $0x610] sm:$0xff]  ;;  %v863_v33 = vadd.f32 %v862_v52, %v3661_v29 }
 0x11d   :  { %4891 = vst [vmem:[#allocation11_spill] sm:$0xff] %v3841_v40  ;;  %2630 = vmatmul.msk.f32.gmra.mxu0 %vm292_vm0, %v3820_v44  ;;  %2638 = vmatmul.msk.f32.gmra.mxu1 %vm292_vm0, %v3820_v44  ;;  %v2571_v44 = vld [vmem:[%s4859_s0 + $0x590] sm:$0xff]  ;;  %v1009_v40 = vmul.f32 %v3661_v29, %v3661_v29 }
 0x11e   :  { %1831 = vmatpush.msra.mxu2 %v2571_v44  ;;  %v1111_v44 = vadd.f32 %v1110_v26, %v1008_v58  ;;  %2698 = vmatpush.msk.msra.mxu1 %vm187_vm1, %v2587_v18  ;;  %v2558_v58 = vld [vmem:[%s4859_s0 + $0x528] sm:$0xff]  ;;  %v864_v29 = vadd.f32 %v863_v33, %v3663_v1  ;;  %v1125_v26 = vadd.f32 %v3462_v46, %v1020_v60 }
 0x11f   :  { %v1021_v18 = vmul.f32 %v3436_v20, %v3436_v20  ;;  %v2574_v46 = vld [vmem:[%s4859_s0 + $0x5a8] sm:$0xff]  ;;  %v1022_v1 = vmul.f32 %v3694_v23, %v3694_v23 }
 0x120   :  { %v1112_v62 = vadd.f32 %v1111_v44, %v1009_v40  ;;  %1832 = vmatpush.msra.mxu2 %v2558_v58  ;;  %v1011_v58 = vmul.f32 %v3657_v56, %v3657_v56  ;;  %v865_v33 = vadd.f32 %v864_v29, %v3657_v56  ;;  %2699 = vmatpush.msk.msra.mxu1 %vm187_vm1, %v2574_v46  ;;  %v2545_v56 = vld [vmem:[%s4859_s0 + $0x4c0] sm:$0xff] }
 0x121   :  { %2615 = vmatmul.msk.f32.gmra.mxu2 %vm292_vm0, %v3859_v19  ;;  %2623 = vmatmul.msk.f32.gmra.mxu3 %vm292_vm0, %v3859_v19  ;;  %v1126_v60 = vadd.f32 %v1125_v26, %v1021_v18 }
 0x122   :  { %v3874_v10 = vpop.f32.mrf.mxu0  ;;  %v3879_v5 = vpop.f32.mrf.mxu1  ;;  %1833 = vmatpush.msra.mxu2 %v2545_v56  ;;  %v866_v29 = vadd.f32 %v865_v33, %v3659_v54  ;;  %v2561_v54 = vld [vmem:[%s4859_s0 + $0x540] sm:$0xff] }
 0x123   :  { %4893 = vst [vmem:[#allocation13_spill] sm:$0xff] %v3874_v10  ;;  %v877_v10 = vadd.f32 %v876_v50, %v3436_v20  ;;  %v891_v50 = vadd.f32 %v3487_v0, %v3468_v35  ;;  %v2546_v0 = vld [vmem:[%s4859_s0 + $0x4c8] sm:$0xff]  ;;  %2700 = vmatpush.msk.msra.mxu1 %vm187_vm1, %v2561_v54 }
 0x124   :  { %4894 = vst [vmem:[#allocation14_spill] sm:$0xff] %v3879_v5  ;;  %v3881_v42 = vpop.f32.mrf.mxu2  ;;  %v3883_v51 = vpop.f32.mrf.mxu3  ;;  %1874 = vmatpush.msra.mxu3 %v2546_v0 }
 0x125   :  { %4895 = vst [vmem:[#allocation15_spill] sm:$0xff] %v3883_v51  ;;  %2631 = vmatmul.msk.f32.gmra.mxu0 %vm292_vm0, %v3859_v19  ;;  %2639 = vmatmul.msk.f32.gmra.mxu1 %vm292_vm0, %v3859_v19  ;;  %v3907_v19 = vld [vmem:[%s4860_s1 + $0x38] sm:$0xff]  ;;  %v1113_v51 = vadd.f32 %v1112_v62, %v1010_v59  ;;  %v878_v20 = vadd.f32 %v877_v10, %v3694_v23 }
 0x126   :  { %4896 = vst [vmem:[#allocation16_spill] sm:$0xff] %v3907_v19  ;;  %v1033_v62 = vmul.f32 %v3468_v35, %v3468_v35  ;;  %v2560_v35 = vld [vmem:[%s4859_s0 + $0x538] sm:$0xff]  ;;  %v1127_v23 = vadd.f32 %v1126_v60, %v1022_v1  ;;  %v892_v46 = vadd.f32 %v891_v50, %v3470_v47  ;;  %v1046_v1 = vmul.f32 %v3502_v7, %v3502_v7 }
 0x127   :  { %v1114_v59 = vadd.f32 %v1113_v51, %v1011_v58  ;;  %v1023_v51 = vmul.f32 %v3696_v24, %v3696_v24  ;;  %v879_v26 = vadd.f32 %v878_v20, %v3696_v24  ;;  %1914 = vmatpush.msra.mxu0 %v2560_v35  ;;  %v1024_v47 = vmul.f32 %v3690_v17, %v3690_v17 }
 0x128   :  { %v1140_v58 = vadd.f32 %v3496_v6, %v1033_v62  ;;  %v1035_v7 = vmul.f32 %v3722_v41, %v3722_v41  ;;  %v893_v20 = vadd.f32 %v892_v46, %v3722_v41  ;;  %v1047_v35 = vmul.f32 %v3504_v8, %v3504_v8  ;;  %v2533_v8 = vld [vmem:[%s4859_s0 + $0x460] sm:$0xff] }
 0x129   :  { %2616 = vmatmul.msk.f32.gmra.mxu2 %vm292_vm0, %v3907_v19  ;;  %2624 = vmatmul.msk.f32.gmra.mxu3 %vm292_vm0, %v3907_v19  ;;  %v1128_v6 = vadd.f32 %v1127_v23, %v1023_v51  ;;  %v880_v33 = vadd.f32 %v879_v26, %v3690_v17  ;;  %v1025_v51 = vmul.f32 %v3692_v22, %v3692_v22 }
 0x12a   :  { %v3922_v40 = vpop.f32.mrf.mxu0  ;;  %v3925_v52 = vpop.f32.mrf.mxu1  ;;  %1875 = vmatpush.msra.mxu3 %v2533_v8  ;;  %v1059_v46 = vmul.f32 %v3532_v34, %v3532_v34 }
 0x12b   :  { %4897 = vst [vmem:[#allocation17_spill] sm:$0xff] %v3922_v40 }
 0x12c   :  { %4898 = vst [vmem:[#allocation18_spill] sm:$0xff] %v3925_v52  ;;  %v3930_v44 = vpop.f32.mrf.mxu2  ;;  %v3932_v5 = vpop.f32.mrf.mxu3 }
 0x12d   :  { %4899 = vst [vmem:[#allocation19_spill] sm:$0xff] %v3932_v5  ;;  %2632 = vmatmul.msk.f32.gmra.mxu0 %vm292_vm0, %v3907_v19  ;;  %2640 = vmatmul.msk.f32.gmra.mxu1 %vm292_vm0, %v3907_v19  ;;  %v1115_v19 = vadd.f32 %v1114_v59, %v1012_v21  ;;  %v1141_v59 = vadd.f32 %v1140_v58, %v1034_v38 }
 0x12e   :  { %v1155_v21 = vadd.f32 %v3526_v32, %v1046_v1  ;;  %v2532_v32 = vld [vmem:[%s4859_s0 + $0x458] sm:$0xff]  ;;  %v1048_v1 = vmul.f32 %v3758_v30, %v3758_v30 }
 0x12f   :  { %1834 = vmatpush.msra.mxu2 %v2532_v32 }
 0x131   :  { %2641 = vmatmul.msk.f32.vlgmr.msrb.gmra.mxu2 %vm292_vm0, %v3651_v27  ;;  %2649 = vmatmul.msk.f32.vlgmr.msrb.gmra.mxu3 %vm292_vm0, %v3651_v27 }
 0x132   :  { %v826_v10 = vpop.f32.mrf.mxu0  ;;  %v3975_v18 = vpop.f32.mrf.mxu1 }
 0x133   :  { %v1015_v0 = vmul.f32 %v826_v10, %v826_v10  ;;  %v869_v24 = vsel %vm292_vm0, %v826_v10, 0.0  ;;  %v1036_v10 = vmul.f32 %v3724_v45, %v3724_v45 }
 0x134   :  { %v744_v60 = vpop.f32.mrf.mxu2  ;;  %v785_v56 = vpop.f32.mrf.mxu3 }
 0x135   :  { %v867_v52 = vadd.f32 %v866_v29, %v744_v60  ;;  %v1013_v40 = vmul.f32 %v744_v60, %v744_v60  ;;  %v1014_v5 = vmul.f32 %v785_v56, %v785_v56  ;;  %2657 = vmatmul.msk.f32.vlgmr.msrb.gmra.mxu0 %vm292_vm0, %v3651_v27  ;;  %2665 = vmatmul.msk.f32.vlgmr.msrb.gmra.mxu1 %vm292_vm0, %v3651_v27  ;;  %v1118_v23 = vsel %vm292_vm0, %v1015_v0, 0.0 }
 0x136   :  { %v894_v29 = vadd.f32 %v893_v20, %v3724_v45  ;;  %v1156_v0 = vadd.f32 %v1155_v21, %v1047_v35 }
 0x137   :  { %v868_v50 = vadd.f32 %v867_v52, %v785_v56  ;;  %v1116_v62 = vadd.f32 %v1115_v19, %v1013_v40  ;;  %v2547_v19 = vld [vmem:[%s4859_s0 + $0x4d0] sm:$0xff]  ;;  %v1129_v40 = vadd.f32 %v1128_v6, %v1024_v47  ;;  %v1142_v52 = vadd.f32 %v1141_v59, %v1035_v7 }
 0x138   :  { %1915 = vmatpush.msra.mxu0 %v2547_v19  ;;  %v1037_v7 = vmul.f32 %v3718_v13, %v3718_v13  ;;  %v895_v20 = vadd.f32 %v894_v29, %v3718_v13  ;;  %v1049_v59 = vmul.f32 %v3760_v3, %v3760_v3  ;;  %v2520_v13 = vld [vmem:[%s4859_s0 + $0x3f8] sm:$0xff]  ;;  %v1061_v19 = vmul.f32 %v3797_v55, %v3797_v55 }
 0x139   :  { %2642 = vmatmul.msk.f32.gmra.mxu2 %vm292_vm0, %v3684_v15  ;;  %2650 = vmatmul.msk.f32.gmra.mxu3 %vm292_vm0, %v3684_v15  ;;  %v870_v17 = vadd.f32 %v869_v24, %v868_v50  ;;  %v1117_v41 = vadd.f32 %v1116_v62, %v1014_v5  ;;  %v881_v5 = vadd.f32 %v880_v33, %v3692_v22  ;;  %v2548_v22 = vld [vmem:[%s4859_s0 + $0x4d8] sm:$0xff] }
 0x13a   :  { %v829_v38 = vpop.f32.mrf.mxu0  ;;  %v4020_v58 = vpop.f32.mrf.mxu1  ;;  %v1130_v45 = vadd.f32 %v1129_v40, %v1025_v51  ;;  %v1143_v47 = vadd.f32 %v1142_v52, %v1036_v10  ;;  %v921_v24 = vadd.f32 %v3551_v53, %v3532_v34  ;;  %v1060_v33 = vmul.f32 %v3534_v37, %v3534_v37  ;;  %2701 = vmatpush.msk.msra.mxu1 %vm187_vm1, %v2548_v22  ;;  %v2519_v53 = vld [vmem:[%s4859_s0 + $0x3f0] sm:$0xff] }
 0x13b   :  { %871 = vadd.xlane.f32.xlu0 %v870_v17  ;;  %v1119_v26 = vadd.f32 %v1118_v23, %v1117_v41  ;;  %v884_v30 = vsel %vm292_vm0, %v829_v38, 0.0  ;;  %v1157_v62 = vadd.f32 %v1156_v0, %v1048_v1  ;;  %v1170_v23 = vadd.f32 %v3556_v57, %v1059_v46  ;;  %v2534_v57 = vld [vmem:[%s4859_s0 + $0x468] sm:$0xff]  ;;  %1835 = vmatpush.msra.mxu2 %v2519_v53 }
 0x13c   :  { %v747_v60 = vpop.f32.mrf.mxu2  ;;  %v788_v56 = vpop.f32.mrf.mxu3  ;;  %v1028_v51 = vmul.f32 %v829_v38, %v829_v38  ;;  %v1144_v3 = vadd.f32 %v1143_v47, %v1037_v7  ;;  %v1038_v17 = vmul.f32 %v3720_v39, %v3720_v39  ;;  %1876 = vmatpush.msra.mxu3 %v2520_v13  ;;  %v922_v32 = vadd.f32 %v921_v24, %v3534_v37 }
 0x13d   :  { %v882_v54 = vadd.f32 %v881_v5, %v747_v60  ;;  %v1026_v6 = vmul.f32 %v747_v60, %v747_v60  ;;  %1120 = vadd.xlane.f32.xlu2 %v1119_v26  ;;  %2658 = vmatmul.msk.f32.gmra.mxu0 %vm292_vm0, %v3684_v15  ;;  %v1027_v21 = vmul.f32 %v788_v56, %v788_v56  ;;  %v2535_v60 = vld [vmem:[%s4859_s0 + $0x470] sm:$0xff] }
 0x13e   :  { %2666 = vmatmul.msk.f32.gmra.mxu1 %vm292_vm0, %v3684_v15  ;;  %v896_v8 = vadd.f32 %v895_v20, %v3720_v39  ;;  %1916 = vmatpush.msra.mxu0 %v2534_v57  ;;  %v1072_v52 = vmul.f32 %v3562_v16, %v3562_v16  ;;  %v1158_v10 = vadd.f32 %v1157_v62, %v1049_v59  ;;  %v1133_v1 = vsel %vm292_vm0, %v1028_v51, 0.0 }
 0x13f   :  { %v883_v50 = vadd.f32 %v882_v54, %v788_v56  ;;  %v1131_v35 = vadd.f32 %v1130_v45, %v1026_v6  ;;  %v1050_v38 = vmul.f32 %v3753_v48, %v3753_v48  ;;  %v1171_v37 = vadd.f32 %v1170_v23, %v1060_v33  ;;  %2702 = vmatpush.msk.msra.mxu1 %vm187_vm1, %v2535_v60 }
 0x140   :  { %v936_v56 = vadd.f32 %v3581_v4, %v3562_v16  ;;  %v1073_v48 = vmul.f32 %v3564_v11, %v3564_v11  ;;  %v1145_v0 = vadd.f32 %v1144_v3, %v1038_v17  ;;  %v923_v6 = vadd.f32 %v922_v32, %v3797_v55  ;;  %v4095_v55 = vld [vmem:[%s4860_s1 + $0x18] sm:$0xff] }
 0x141   :  { %2643 = vmatmul.msk.f32.gmra.mxu2 %vm292_vm0, %v3740_v9  ;;  %2651 = vmatmul.msk.f32.gmra.mxu3 %vm292_vm0, %v3740_v9  ;;  %v885_v34 = vadd.f32 %v884_v30, %v883_v50  ;;  %v1132_v26 = vadd.f32 %v1131_v35, %v1027_v21  ;;  %v1172_v22 = vadd.f32 %v1171_v37, %v1061_v19  ;;  %v2521_v50 = vld [vmem:[%s4859_s0 + $0x400] sm:$0xff] }
 0x142   :  { %v832_v41 = vpop.f32.mrf.mxu0  ;;  %v4065_v40 = vpop.f32.mrf.mxu1  ;;  %v1062_v45 = vmul.f32 %v3799_v2, %v3799_v2  ;;  %v1185_v16 = vadd.f32 %v3586_v12, %v1072_v52  ;;  %v1159_v4 = vadd.f32 %v1158_v10, %v1050_v38  ;;  %v1051_v7 = vmul.f32 %v3755_v61, %v3755_v61  ;;  %v2506_v12 = vld [vmem:[%s4859_s0 + $0x388] sm:$0xff]  ;;  %v2507_v61 = vld [vmem:[%s4859_s0 + $0x390] sm:$0xff]  ;;  %1917 = vmatpush.msra.mxu0 %v2521_v50 }
 0x143   :  { %886 = vadd.xlane.f32.xlu0 %v885_v34  ;;  %v899_v54 = vsel %vm292_vm0, %v832_v41, 0.0  ;;  %v1134_v30 = vadd.f32 %v1133_v1, %v1132_v26  ;;  %v937_v62 = vadd.f32 %v936_v56, %v3564_v11  ;;  %v1085_v59 = vmul.f32 %v3592_v28, %v3592_v28  ;;  %1836 = vmatpush.msra.mxu2 %v2506_v12  ;;  %v2522_v52 = vld [vmem:[%s4859_s0 + $0x408] sm:$0xff]  ;;  %v4902_v56 = vld [vmem:[#allocation6_spill] sm:$0xff] }
 0x144   :  { %v750_v5 = vpop.f32.mrf.mxu2  ;;  %v791_v29 = vpop.f32.mrf.mxu3  ;;  %v1041_v21 = vmul.f32 %v832_v41, %v832_v41  ;;  %1877 = vmatpush.msra.mxu3 %v2507_v61  ;;  %v924_v23 = vadd.f32 %v923_v6, %v3799_v2  ;;  %v1173_v51 = vadd.f32 %v1172_v22, %v1062_v45  ;;  %v1063_v34 = vmul.f32 %v3790_v63, %v3790_v63  ;;  %v4903_v22 = vld [vmem:[#allocation2_spill] sm:$0xff] }
 0x145   :  { %v897_v46 = vadd.f32 %v896_v8, %v750_v5  ;;  %v1039_v39 = vmul.f32 %v750_v5, %v750_v5  ;;  %2659 = vmatmul.msk.f32.gmra.mxu0 %vm292_vm0, %v3740_v9  ;;  %v1040_v24 = vmul.f32 %v791_v29, %v791_v29  ;;  %v1186_v13 = vadd.f32 %v1185_v16, %v1073_v48 }
 0x146   :  { %2667 = vmatmul.msk.f32.gmra.mxu1 %vm292_vm0, %v3740_v9  ;;  %v1086_v11 = vmul.f32 %v3594_v25, %v3594_v25  ;;  %v1074_v57 = vmul.f32 %v3839_v43, %v3839_v43  ;;  %v1160_v41 = vadd.f32 %v1159_v4, %v1051_v7  ;;  %v951_v10 = vadd.f32 %v3611_v31, %v3592_v28  ;;  %v4900_v31 = vld [vmem:[#allocation11_spill] sm:$0xff]  ;;  %v4904_v7 = vld [vmem:[#allocation9_spill] sm:$0xff] }
 0x147   :  { %v898_v47 = vadd.f32 %v897_v46, %v791_v29  ;;  %v1146_v20 = vadd.f32 %v1145_v0, %v1039_v39  ;;  %v1200_v38 = vadd.f32 %v3616_v14, %v1085_v59  ;;  %v938_v5 = vadd.f32 %v937_v62, %v3839_v43  ;;  %2703 = vmatpush.msk.msra.mxu1 %vm187_vm1, %v2522_v52  ;;  %v4901_v43 = vld [vmem:[#allocation7_spill] sm:$0xff]  ;;  %v2508_v0 = vld [vmem:[%s4859_s0 + $0x398] sm:$0xff]  ;;  %v4907_v52 = vld [vmem:[#allocation10_spill] sm:$0xff] }
 0x148   :  { %v1148_v29 = vsel %vm292_vm0, %v1041_v21, 0.0  ;;  %v925_v26 = vadd.f32 %v924_v23, %v3790_v63  ;;  %v1174_v37 = vadd.f32 %v1173_v51, %v1063_v34  ;;  %v1064_v46 = vmul.f32 %v3795_v49, %v3795_v49  ;;  %1918 = vmatpush.msra.mxu0 %v2508_v0  ;;  %v4905_v51 = vld [vmem:[#allocation4_spill] sm:$0xff] }
 0x149   :  { %2644 = vmatmul.msk.f32.gmra.mxu2 %vm292_vm0, %v4095_v55  ;;  %2652 = vmatmul.msk.f32.gmra.mxu3 %vm292_vm0, %v4095_v55  ;;  %v900_v33 = vadd.f32 %v899_v54, %v898_v47  ;;  %v1147_v19 = vadd.f32 %v1146_v20, %v1040_v24  ;;  %v1187_v28 = vadd.f32 %v1186_v13, %v1074_v57 }
 0x14a   :  { %v4113_v35 = vpop.f32.mrf.mxu0  ;;  %v4118_v53 = vpop.f32.mrf.mxu1  ;;  %v1075_v14 = vmul.f32 %v4900_v31, %v4900_v31  ;;  %v952_v54 = vadd.f32 %v951_v10, %v3594_v25  ;;  %v1201_v6 = vadd.f32 %v1200_v38, %v1086_v11  ;;  %v1098_v45 = vmul.f32 %v4903_v22, %v4903_v22  ;;  %v4908_v38 = vld [vmem:[#allocation8_spill] sm:$0xff] }
 0x14b   :  { %1135 = vadd.xlane.f32.xlu0 %v1134_v30  ;;  %901 = vadd.xlane.f32.xlu1 %v900_v33  ;;  %v1054_v2 = vmul.f32 %v4113_v35, %v4113_v35  ;;  %v1149_v63 = vadd.f32 %v1148_v29, %v1147_v19  ;;  %v939_v47 = vadd.f32 %v938_v5, %v4900_v31  ;;  %v914_v57 = vsel %vm292_vm0, %v4113_v35, 0.0 }
 0x14c   :  { %v753_v3 = vpop.f32.mrf.mxu2  ;;  %v794_v17 = vpop.f32.mrf.mxu3  ;;  %v926_v4 = vadd.f32 %v925_v26, %v3795_v49  ;;  %v1076_v30 = vmul.f32 %v4904_v7, %v4904_v7  ;;  %v1087_v24 = vmul.f32 %v3881_v42, %v3881_v42  ;;  %v1175_v25 = vadd.f32 %v1174_v37, %v1064_v46  ;;  %v4909_v26 = vld [vmem:[#allocation5_spill] sm:$0xff]  ;;  %v4910_v46 = vld [vmem:[#allocation3_spill] sm:$0xff] }
 0x14d   :  { %v1052_v32 = vmul.f32 %v753_v3, %v753_v3  ;;  %v1053_v8 = vmul.f32 %v794_v17, %v794_v17  ;;  %2660 = vmatmul.msk.f32.gmra.mxu0 %vm292_vm0, %v4095_v55  ;;  %v912_v1 = vadd.f32 %v4901_v43, %v753_v3  ;;  %v1163_v60 = vsel %vm292_vm0, %v1054_v2, 0.0  ;;  %v4911_v43 = vld [vmem:[#allocation13_spill] sm:$0xff] }
 0x14e   :  { %2668 = vmatmul.msk.f32.gmra.mxu1 %vm292_vm0, %v4095_v55  ;;  %v1188_v12 = vadd.f32 %v1187_v28, %v1075_v14  ;;  %v966_v34 = vadd.f32 %v4905_v51, %v4903_v22  ;;  %v940_v13 = vadd.f32 %v939_v47, %v4904_v7  ;;  %v953_v11 = vadd.f32 %v952_v54, %v3881_v42 }
 0x14f   :  { %v1161_v39 = vadd.f32 %v1160_v41, %v1052_v32  ;;  %v913_v59 = vadd.f32 %v912_v1, %v794_v17  ;;  %v1202_v3 = vadd.f32 %v1201_v6, %v1087_v24  ;;  %v4906_v17 = vld [vmem:[#allocation15_spill] sm:$0xff]  ;;  %v1077_v42 = vmul.f32 %v4907_v52, %v4907_v52 }
 0x150   :  { %v1088_v2 = vmul.f32 %v4906_v17, %v4906_v17  ;;  %v1189_v19 = vadd.f32 %v1188_v12, %v1076_v30  ;;  %v1215_v37 = vadd.f32 %v4909_v26, %v1098_v45  ;;  %v941_v28 = vadd.f32 %v940_v13, %v4907_v52 }
 0x151   :  { %2645 = vmatmul.msk.f32.gmra.mxu2 %vm292_vm0, %v4902_v56  ;;  %2653 = vmatmul.msk.f32.gmra.mxu3 %vm292_vm0, %v4902_v56  ;;  %v1162_v48 = vadd.f32 %v1161_v39, %v1053_v8  ;;  %v2509_v8 = vld [vmem:[%s4859_s0 + $0x3a0] sm:$0xff]  ;;  %v915_v5 = vadd.f32 %v914_v57, %v913_v59  ;;  %v1099_v39 = vmul.f32 %v4910_v46, %v4910_v46 }
 0x152   :  { %v838_v16 = vpop.f32.mrf.mxu0  ;;  %v4163_v20 = vpop.f32.mrf.mxu1  ;;  %2704 = vmatpush.msk.msra.mxu1 %vm187_vm1, %v2509_v8  ;;  %v954_v31 = vadd.f32 %v953_v11, %v4906_v17  ;;  %v1203_v36 = vadd.f32 %v1202_v3, %v1088_v2  ;;  %v1089_v1 = vmul.f32 %v4911_v43, %v4911_v43  ;;  %v967_v0 = vadd.f32 %v966_v34, %v4910_v46  ;;  %v4914_v34 = vld [vmem:[#allocation12_spill] sm:$0xff]  ;;  %v4915_v8 = vld [vmem:[#allocation17_spill] sm:$0xff] }
 0x153   :  { %1150 = vadd.xlane.f32.xlu1 %v1149_v63  ;;  %v1164_v33 = vadd.f32 %v1163_v60, %v1162_v48  ;;  %v1067_v62 = vmul.f32 %v838_v16, %v838_v16  ;;  %v929_v35 = vsel %vm292_vm0, %v838_v16, 0.0  ;;  %v1190_v54 = vadd.f32 %v1189_v19, %v1077_v42 }
 0x154   :  { %v756_v61 = vpop.f32.mrf.mxu2  ;;  %v797_v50 = vpop.f32.mrf.mxu3  ;;  %v1100_v6 = vmul.f32 %v3930_v44, %v3930_v44  ;;  %v1216_v30 = vadd.f32 %v1215_v37, %v1099_v39  ;;  %v955_v24 = vadd.f32 %v954_v31, %v4911_v43  ;;  %v1204_v12 = vadd.f32 %v1203_v36, %v1089_v1  ;;  %v4916_v39 = vld [vmem:[#allocation18_spill] sm:$0xff]  ;;  %v4917_v36 = vld [vmem:[#allocation16_spill] sm:$0xff] }
 0x155   :  { %v927_v21 = vadd.f32 %v926_v4, %v756_v61  ;;  %v1065_v23 = vmul.f32 %v756_v61, %v756_v61  ;;  %1165 = vadd.xlane.f32.xlu2 %v1164_v33  ;;  %v1066_v49 = vmul.f32 %v797_v50, %v797_v50  ;;  %2661 = vmatmul.msk.f32.gmra.mxu0 %vm292_vm0, %v4902_v56  ;;  %v1178_v10 = vsel %vm292_vm0, %v1067_v62, 0.0  ;;  %v4912_v33 = vld [vmem:[#allocation14_spill] sm:$0xff] }
 0x156   :  { %2669 = vmatmul.msk.f32.gmra.mxu1 %vm292_vm0, %v4902_v56  ;;  %v968_v61 = vadd.f32 %v967_v0, %v3930_v44  ;;  %v1217_v59 = vadd.f32 %v1216_v30, %v1100_v6  ;;  %v956_v44 = vadd.f32 %v955_v24, %v4912_v33  ;;  %v1102_v19 = vmul.f32 %v4915_v8, %v4915_v8 }
 0x157   :  { %v1176_v41 = vadd.f32 %v1175_v25, %v1065_v23  ;;  %v928_v32 = vadd.f32 %v927_v21, %v797_v50  ;;  %v1090_v25 = vmul.f32 %v4912_v33, %v4912_v33  ;;  %v4913_v21 = vld [vmem:[#allocation19_spill] sm:$0xff] }
 0x158   :  { %v1101_v23 = vmul.f32 %v4913_v21, %v4913_v21  ;;  %v969_v57 = vadd.f32 %v968_v61, %v4913_v21 }
 0x159   :  { %2646 = vmatmul.msk.f32.gmra.mxu2 %vm292_vm0, %v4908_v38  ;;  %2654 = vmatmul.msk.f32.gmra.mxu3 %vm292_vm0, %v4908_v38  ;;  %v1177_v29 = vadd.f32 %v1176_v41, %v1066_v49  ;;  %v930_v63 = vadd.f32 %v929_v35, %v928_v32  ;;  %v1205_v41 = vadd.f32 %v1204_v12, %v1090_v25 }
 0x15a   :  { %v841_v14 = vpop.f32.mrf.mxu0  ;;  %v4197_v48 = vpop.f32.mrf.mxu1  ;;  %v1218_v32 = vadd.f32 %v1217_v59, %v1101_v23  ;;  %v970_v26 = vadd.f32 %v969_v57, %v4915_v8 }
 0x15b   :  { %916 = vadd.xlane.f32.xlu1 %v915_v5  ;;  %v1179_v60 = vadd.f32 %v1178_v10, %v1177_v29  ;;  %v1080_v47 = vmul.f32 %v841_v14, %v841_v14  ;;  %v944_v51 = vsel %vm292_vm0, %v841_v14, 0.0 }
 0x15c   :  { %v759_v22 = vpop.f32.mrf.mxu2  ;;  %v800_v45 = vpop.f32.mrf.mxu3  ;;  %v1219_v14 = vadd.f32 %v1218_v32, %v1102_v19 }
 0x15d   :  { %v942_v16 = vadd.f32 %v941_v28, %v759_v22  ;;  %v1078_v4 = vmul.f32 %v759_v22, %v759_v22  ;;  %1180 = vadd.xlane.f32.xlu0 %v1179_v60  ;;  %931 = vadd.xlane.f32.xlu2 %v930_v63  ;;  %v1079_v7 = vmul.f32 %v800_v45, %v800_v45  ;;  %v1193_v49 = vsel %vm292_vm0, %v1080_v47, 0.0 }
 0x15e   :  { %2662 = vmatmul.msk.f32.gmra.mxu0 %vm292_vm0, %v4908_v38  ;;  %2670 = vmatmul.msk.f32.gmra.mxu1 %vm292_vm0, %v4908_v38  ;;  %v1103_v28 = vmul.f32 %v4916_v39, %v4916_v39  ;;  %v971_v63 = vadd.f32 %v970_v26, %v4916_v39 }
 0x15f   :  { %v1191_v50 = vadd.f32 %v1190_v54, %v1078_v4  ;;  %v943_v62 = vadd.f32 %v942_v16, %v800_v45 }
 0x160   :  { %v1220_v47 = vadd.f32 %v1219_v14, %v1103_v28 }
 0x161   :  { %2647 = vmatmul.msk.f32.gmra.mxu2 %vm292_vm0, %v4914_v34  ;;  %2655 = vmatmul.msk.f32.gmra.mxu3 %vm292_vm0, %v4914_v34  ;;  %v1192_v13 = vadd.f32 %v1191_v50, %v1079_v7  ;;  %v945_v17 = vadd.f32 %v944_v51, %v943_v62 }
 0x162   :  { %v844_v11 = vpop.f32.mrf.mxu0  ;;  %v4220_v2 = vpop.f32.mrf.mxu1 }
 0x163   :  { %v1194_v3 = vadd.f32 %v1193_v49, %v1192_v13  ;;  %v1093_v10 = vmul.f32 %v844_v11, %v844_v11  ;;  %v959_v29 = vsel %vm292_vm0, %v844_v11, 0.0  ;;  %v2137_v49 = vmul.f32 %v3975_v18, %v3975_v18 }
 0x164   :  { %v762_v52 = vpop.f32.mrf.mxu2  ;;  %v803_v42 = vpop.f32.mrf.mxu3 }
 0x165   :  { %v957_v35 = vadd.f32 %v956_v44, %v762_v52  ;;  %v1091_v38 = vmul.f32 %v762_v52, %v762_v52  ;;  %1195 = vadd.xlane.f32.xlu1 %v1194_v3  ;;  %946 = vadd.xlane.f32.xlu2 %v945_v17  ;;  %v1092_v5 = vmul.f32 %v803_v42, %v803_v42  ;;  %v1208_v31 = vsel %vm292_vm0, %v1093_v10, 0.0 }
 0x166   :  { %2663 = vmatmul.msk.f32.gmra.mxu0 %vm292_vm0, %v4914_v34  ;;  %2671 = vmatmul.msk.f32.gmra.mxu1 %vm292_vm0, %v4914_v34 }
 0x167   :  { %v958_v37 = vadd.f32 %v957_v35, %v803_v42  ;;  %v1206_v46 = vadd.f32 %v1205_v41, %v1091_v38 }
 0x169   :  { %2648 = vmatmul.msk.f32.gmra.mxu2 %vm292_vm0, %v4917_v36  ;;  %2656 = vmatmul.msk.f32.gmra.mxu3 %vm292_vm0, %v4917_v36  ;;  %v960_v43 = vadd.f32 %v959_v29, %v958_v37  ;;  %v1207_v1 = vadd.f32 %v1206_v46, %v1092_v5 }
 0x16a   :  { %v847_v60 = vpop.f32.mrf.mxu0  ;;  %v4238_v54 = vpop.f32.mrf.mxu1 }
 0x16b   :  { %961 = vadd.xlane.f32.xlu0 %v960_v43  ;;  %v1209_v0 = vadd.f32 %v1208_v31, %v1207_v1  ;;  %v1106_v45 = vmul.f32 %v847_v60, %v847_v60  ;;  %v974_v30 = vsel %vm292_vm0, %v847_v60, 0.0 }
 0x16c   :  { %v765_v6 = vpop.f32.mrf.mxu2  ;;  %v806_v22 = vpop.f32.mrf.mxu3 }
 0x16d   :  { %v972_v16 = vadd.f32 %v971_v63, %v765_v6  ;;  %v1104_v4 = vmul.f32 %v765_v6, %v765_v6  ;;  %1210 = vadd.xlane.f32.xlu2 %v1209_v0  ;;  %v1105_v7 = vmul.f32 %v806_v22, %v806_v22  ;;  %v1223_v25 = vsel %vm292_vm0, %v1106_v45, 0.0 }
 0x16e   :  { %2664 = vmatmul.msk.f32.gmra.mxu0 %vm292_vm0, %v4917_v36  ;;  %2672 = vmatmul.msk.f32.gmra.mxu1 %vm292_vm0, %v4917_v36 }
 0x16f   :  { %v973_v24 = vadd.f32 %v972_v16, %v806_v22  ;;  %v1221_v33 = vadd.f32 %v1220_v47, %v1104_v4  ;;  %v2742_v4 = vmov 0.0  }
 0x170   :  { %18 = vst.msk [vmem:[%s4861_s2] sm:$0xff] %vm17_vm2, %v2742_v4 }
 0x171   :  { %2673 = vmatmul.msk.f32.vlgmr.msra.gmra.mxu2 %vm292_vm0, %v3651_v27  ;;  %2681 = vmatmul.msk.f32.vlgmr.msra.gmra.mxu3 %vm292_vm0, %v3651_v27  ;;  %v975_v12 = vadd.f32 %v974_v30, %v973_v24  ;;  %v1222_v61 = vadd.f32 %v1221_v33, %v1105_v7  ;;  %19 = vst.msk [vmem:[%s4861_s2 + $0x8] sm:$0xff] %vm17_vm2, %v2742_v4 }
 0x172   :  { %v1592_v50 = vpop.f32.mrf.mxu0  ;;  %v1633_v59 = vpop.f32.mrf.mxu1  ;;  %20 = vst.msk [vmem:[%s4861_s2 + $0x10] sm:$0xff] %vm17_vm2, %v2742_v4 }
 0x173   :  { %976 = vadd.xlane.f32.xlu1 %v975_v12  ;;  %v1224_v62 = vadd.f32 %v1223_v25, %v1222_v61  ;;  %v2140_v57 = vmul.f32 %v1592_v50, %v1592_v50  ;;  %v2141_v41 = vmul.f32 %v1633_v59, %v1633_v59  ;;  %21 = vst.msk [vmem:[%s4861_s2 + $0x18] sm:$0xff] %vm17_vm2, %v2742_v4 }
 0x174   :  { %v1510_v21 = vpop.f32.mrf.mxu2  ;;  %v1551_v23 = vpop.f32.mrf.mxu3  ;;  %22 = vst.msk [vmem:[%s4861_s2 + $0x20] sm:$0xff] %vm17_vm2, %v2742_v4  ;;  %v2176_v12 = vmul.f32 %v4118_v53, %v4118_v53 }
 0x175   :  { %v1993_v51 = vadd.f32 %v1510_v21, %v3975_v18  ;;  %v2138_v34 = vmul.f32 %v1510_v21, %v1510_v21  ;;  %1225 = vadd.xlane.f32.xlu0 %v1224_v62  ;;  %v2139_v13 = vmul.f32 %v1551_v23, %v1551_v23  ;;  %23 = vst.msk [vmem:[%s4861_s2 + $0x28] sm:$0xff] %vm17_vm2, %v2742_v4 }
 0x176   :  { %2689 = vmatmul.msk.f32.vlgmr.msra.gmra.mxu0 %vm292_vm0, %v3651_v27  ;;  %2705 = vmatmul.msk.f32.vlgmr.msra.gmra.mxu1 %vm292_vm0, %v3651_v27  ;;  %v2150_v27 = vmul.f32 %v4020_v58, %v4020_v58  ;;  %24 = vst.msk [vmem:[%s4861_s2 + $0x30] sm:$0xff] %vm17_vm2, %v2742_v4 }
 0x177   :  { %v2241_v11 = vadd.f32 %v2138_v34, %v2137_v49  ;;  %v1994_v44 = vadd.f32 %v1993_v51, %v1551_v23  ;;  %25 = vst.msk [vmem:[%s4861_s2 + $0x38] sm:$0xff] %vm17_vm2, %v2742_v4 }
 0x178   :  { %26 = vst.msk [vmem:[%s4862_s3] sm:$0xff] %vm17_vm2, %v2742_v4 }
 0x179   :  { %v2242_v3 = vadd.f32 %v2241_v11, %v2139_v13  ;;  %v1995_v17 = vadd.f32 %v1994_v44, %v1592_v50  ;;  %2674 = vmatmul.msk.f32.gmra.mxu2 %vm292_vm0, %v3684_v15  ;;  %2682 = vmatmul.msk.f32.gmra.mxu3 %vm292_vm0, %v3684_v15  ;;  %27 = vst.msk [vmem:[%s4862_s3 + $0x8] sm:$0xff] %vm17_vm2, %v2742_v4 }
 0x17a   :  { %v1595_v18 = vpop.f32.mrf.mxu0  ;;  %v1636_v19 = vpop.f32.mrf.mxu1  ;;  %28 = vst.msk [vmem:[%s4862_s3 + $0x10] sm:$0xff] %vm17_vm2, %v2742_v4 }
 0x17b   :  { %v2243_v32 = vadd.f32 %v2242_v3, %v2140_v57  ;;  %v4261_v8 = vadd.f32 %v1995_v17, %v1633_v59  ;;  %v2153_v37 = vmul.f32 %v1595_v18, %v1595_v18  ;;  %v2154_v28 = vmul.f32 %v1636_v19, %v1636_v19  ;;  %29 = vst.msk [vmem:[%s4862_s3 + $0x18] sm:$0xff] %vm17_vm2, %v2742_v4 }
 0x17c   :  { %v1513_v52 = vpop.f32.mrf.mxu2  ;;  %v1554_v42 = vpop.f32.mrf.mxu3  ;;  %30 = vst.msk [vmem:[%s4862_s3 + $0x20] sm:$0xff] %vm17_vm2, %v2742_v4 }
 0x17d   :  { %v4265_v10 = vadd.f32 %v2243_v32, %v2141_v41  ;;  %v2008_v35 = vadd.f32 %v1513_v52, %v4020_v58  ;;  %v2151_v38 = vmul.f32 %v1513_v52, %v1513_v52  ;;  %v2152_v5 = vmul.f32 %v1554_v42, %v1554_v42  ;;  %31 = vst.msk [vmem:[%s4862_s3 + $0x28] sm:$0xff] %vm17_vm2, %v2742_v4  ;;  %v2738_v52 = vld [vmem:[%s4860_s1 + $0x20] sm:$0xff] }
 0x17e   :  { %2690 = vmatmul.msk.f32.gmra.mxu0 %vm292_vm0, %v3684_v15  ;;  %2706 = vmatmul.msk.f32.gmra.mxu1 %vm292_vm0, %v3684_v15  ;;  %v2163_v15 = vmul.f32 %v4065_v40, %v4065_v40  ;;  %32 = vst.msk [vmem:[%s4862_s3 + $0x30] sm:$0xff] %vm17_vm2, %v2742_v4 }
 0x17f   :  { %v2256_v29 = vadd.f32 %v2151_v38, %v2150_v27  ;;  %v2009_v26 = vadd.f32 %v2008_v35, %v1554_v42  ;;  %33 = vst.msk [vmem:[%s4862_s3 + $0x38] sm:$0xff] %vm17_vm2, %v2742_v4 }
 0x181   :  { %v2257_v46 = vadd.f32 %v2256_v29, %v2152_v5  ;;  %v2010_v39 = vadd.f32 %v2009_v26, %v1595_v18  ;;  %2675 = vmatmul.msk.f32.gmra.mxu2 %vm292_vm0, %v3740_v9  ;;  %2683 = vmatmul.msk.f32.gmra.mxu3 %vm292_vm0, %v3740_v9  ;;  %v2739_v26 = vld [vmem:[%s4860_s1 + $0x28] sm:$0xff] }
 0x182   :  { %v1598_v58 = vpop.f32.mrf.mxu0  ;;  %v1639_v43 = vpop.f32.mrf.mxu1 }
 0x183   :  { %v2258_v31 = vadd.f32 %v2257_v46, %v2153_v37  ;;  %v4276_v14 = vadd.f32 %v2010_v39, %v1636_v19  ;;  %v2166_v16 = vmul.f32 %v1598_v58, %v1598_v58  ;;  %v2167_v30 = vmul.f32 %v1639_v43, %v1639_v43 }
 0x184   :  { %v1516_v1 = vpop.f32.mrf.mxu2  ;;  %v1557_v60 = vpop.f32.mrf.mxu3 }
 0x185   :  { %v4280_v63 = vadd.f32 %v2258_v31, %v2154_v28  ;;  %v2023_v0 = vadd.f32 %v1516_v1, %v4065_v40  ;;  %v2164_v6 = vmul.f32 %v1516_v1, %v1516_v1  ;;  %v2165_v22 = vmul.f32 %v1557_v60, %v1557_v60 }
 0x186   :  { %2691 = vmatmul.msk.f32.gmra.mxu0 %vm292_vm0, %v3740_v9  ;;  %2707 = vmatmul.msk.f32.gmra.mxu1 %vm292_vm0, %v3740_v9 }
 0x187   :  { %v2271_v45 = vadd.f32 %v2164_v6, %v2163_v15  ;;  %v2024_v47 = vadd.f32 %v2023_v0, %v1557_v60 }
 0x189   :  { %v2272_v40 = vadd.f32 %v2271_v45, %v2165_v22  ;;  %v2025_v7 = vadd.f32 %v2024_v47, %v1598_v58  ;;  %2676 = vmatmul.msk.f32.gmra.mxu2 %vm292_vm0, %v4095_v55  ;;  %2684 = vmatmul.msk.f32.gmra.mxu3 %vm292_vm0, %v4095_v55  ;;  %v2202_v58 = vmul.f32 %v4197_v48, %v4197_v48 }
 0x18a   :  { %v1601_v9 = vpop.f32.mrf.mxu0  ;;  %v1642_v25 = vpop.f32.mrf.mxu1 }
 0x18b   :  { %v2273_v24 = vadd.f32 %v2272_v40, %v2166_v16  ;;  %v4307_v33 = vadd.f32 %v2025_v7, %v1639_v43  ;;  %v2179_v51 = vmul.f32 %v1601_v9, %v1601_v9  ;;  %v2180_v13 = vmul.f32 %v1642_v25, %v1642_v25  ;;  %v2740_v40 = vld [vmem:[%s4860_s1 + $0x30] sm:$0xff] }
 0x18c   :  { %v1519_v61 = vpop.f32.mrf.mxu2  ;;  %v1560_v50 = vpop.f32.mrf.mxu3 }
 0x18d   :  { %v4319_v62 = vadd.f32 %v2273_v24, %v2167_v30  ;;  %v2038_v59 = vadd.f32 %v1519_v61, %v4118_v53  ;;  %v2177_v21 = vmul.f32 %v1519_v61, %v1519_v61  ;;  %v2178_v23 = vmul.f32 %v1560_v50, %v1560_v50 }
 0x18e   :  { %2692 = vmatmul.msk.f32.gmra.mxu0 %vm292_vm0, %v4095_v55  ;;  %2708 = vmatmul.msk.f32.gmra.mxu1 %vm292_vm0, %v4095_v55  ;;  %v2215_v24 = vmul.f32 %v4220_v2, %v4220_v2 }
 0x18f   :  { %v2286_v49 = vadd.f32 %v2177_v21, %v2176_v12  ;;  %v2039_v53 = vadd.f32 %v2038_v59, %v1560_v50 }
 0x191   :  { %v2287_v34 = vadd.f32 %v2286_v49, %v2178_v23  ;;  %v2040_v55 = vadd.f32 %v2039_v53, %v1601_v9  ;;  %2677 = vmatmul.msk.f32.gmra.mxu2 %vm292_vm0, %v4902_v56  ;;  %2685 = vmatmul.msk.f32.gmra.mxu3 %vm292_vm0, %v4902_v56  ;;  %v2189_v56 = vmul.f32 %v4163_v20, %v4163_v20 }
 0x192   :  { %v1604_v11 = vpop.f32.mrf.mxu0  ;;  %v1645_v3 = vpop.f32.mrf.mxu1 }
 0x193   :  { %v2288_v44 = vadd.f32 %v2287_v34, %v2179_v51  ;;  %v4354_v57 = vadd.f32 %v2040_v55, %v1642_v25  ;;  %v2192_v35 = vmul.f32 %v1604_v11, %v1604_v11  ;;  %v2193_v29 = vmul.f32 %v1645_v3, %v1645_v3 }
 0x194   :  { %v1522_v17 = vpop.f32.mrf.mxu2  ;;  %v1563_v41 = vpop.f32.mrf.mxu3 }
 0x195   :  { %v4366_v18 = vadd.f32 %v2288_v44, %v2180_v13  ;;  %v2053_v32 = vadd.f32 %v1522_v17, %v4163_v20  ;;  %v2190_v19 = vmul.f32 %v1522_v17, %v1522_v17  ;;  %v2191_v27 = vmul.f32 %v1563_v41, %v1563_v41 }
 0x196   :  { %2693 = vmatmul.msk.f32.gmra.mxu0 %vm292_vm0, %v2738_v52  ;;  %2709 = vmatmul.msk.f32.gmra.mxu1 %vm292_vm0, %v2738_v52 }
 0x197   :  { %v2301_v20 = vadd.f32 %v2190_v19, %v2189_v56  ;;  %v2054_v42 = vadd.f32 %v2053_v32, %v1563_v41  ;;  %v850_v41 = vld [vmem:[%s4861_s2] sm:$0xff] }
 0x199   :  { %v2302_v38 = vadd.f32 %v2301_v20, %v2191_v27  ;;  %v2055_v5 = vadd.f32 %v2054_v42, %v1604_v11  ;;  %2678 = vmatmul.msk.f32.gmra.mxu2 %vm292_vm0, %v2739_v26  ;;  %2686 = vmatmul.msk.f32.gmra.mxu3 %vm292_vm0, %v2739_v26  ;;  %v995_v20 = vld [vmem:[%s4862_s3] sm:$0xff]  ;;  %v2741_v42 = vld [vmem:[%s4860_s1 + $0x38] sm:$0xff] }
 0x19a   :  { %v1607_v37 = vpop.f32.mrf.mxu0  ;;  %v1648_v28 = vpop.f32.mrf.mxu1 }
 0x19b   :  { %v2303_v46 = vadd.f32 %v2302_v38, %v2192_v35  ;;  %v4387_v39 = vadd.f32 %v2055_v5, %v1645_v3  ;;  %v2205_v45 = vmul.f32 %v1607_v37, %v1607_v37  ;;  %v2206_v4 = vmul.f32 %v1648_v28, %v1648_v28 }
 0x19c   :  { %v1525_v31 = vpop.f32.mrf.mxu2  ;;  %v1566_v43 = vpop.f32.mrf.mxu3  ;;  %v2228_v3 = vmul.f32 %v4238_v54, %v4238_v54 }
 0x19d   :  { %v4391_v15 = vadd.f32 %v2303_v46, %v2193_v29  ;;  %v2068_v1 = vadd.f32 %v1525_v31, %v4197_v48  ;;  %v2203_v60 = vmul.f32 %v1525_v31, %v1525_v31  ;;  %v2204_v0 = vmul.f32 %v1566_v43, %v1566_v43 }
 0x19e   :  { %2694 = vmatmul.msk.f32.gmra.mxu0 %vm292_vm0, %v2739_v26  ;;  %2710 = vmatmul.msk.f32.gmra.mxu1 %vm292_vm0, %v2739_v26 }
 0x19f   :  { %v2316_v6 = vadd.f32 %v2203_v60, %v2202_v58  ;;  %v2069_v22 = vadd.f32 %v2068_v1, %v1566_v43 }
 0x1a1   :  { %v2317_v47 = vadd.f32 %v2316_v6, %v2204_v0  ;;  %v2070_v16 = vadd.f32 %v2069_v22, %v1607_v37  ;;  %2679 = vmatmul.msk.f32.gmra.mxu2 %vm292_vm0, %v2740_v40  ;;  %2687 = vmatmul.msk.f32.gmra.mxu3 %vm292_vm0, %v2740_v40  ;;  %v851_v6 = vld [vmem:[%s4861_s2 + $0x8] sm:$0xff] }
 0x1a2   :  { %v1610_v48 = vpop.f32.mrf.mxu0  ;;  %v1651_v9 = vpop.f32.mrf.mxu1 }
 0x1a3   :  { %v2318_v7 = vadd.f32 %v2317_v47, %v2205_v45  ;;  %v4401_v30 = vadd.f32 %v2070_v16, %v1648_v28  ;;  %v2218_v53 = vmul.f32 %v1610_v48, %v1610_v48  ;;  %v2219_v55 = vmul.f32 %v1651_v9, %v1651_v9 }
 0x1a4   :  { %v1528_v25 = vpop.f32.mrf.mxu2  ;;  %v1569_v12 = vpop.f32.mrf.mxu3 }
 0x1a5   :  { %v4405_v61 = vadd.f32 %v2318_v7, %v2206_v4  ;;  %v2083_v50 = vadd.f32 %v1528_v25, %v4220_v2  ;;  %v2216_v59 = vmul.f32 %v1528_v25, %v1528_v25  ;;  %v2217_v21 = vmul.f32 %v1569_v12, %v1569_v12  ;;  %v996_v7 = vld [vmem:[%s4862_s3 + $0x8] sm:$0xff] }
 0x1a6   :  { %2695 = vmatmul.msk.f32.gmra.mxu0 %vm292_vm0, %v2740_v40  ;;  %2711 = vmatmul.msk.f32.gmra.mxu1 %vm292_vm0, %v2740_v40 }
 0x1a7   :  { %v2331_v23 = vadd.f32 %v2216_v59, %v2215_v24  ;;  %v2084_v49 = vadd.f32 %v2083_v50, %v1569_v12 }
 0x1a9   :  { %v2332_v51 = vadd.f32 %v2331_v23, %v2217_v21  ;;  %v2085_v34 = vadd.f32 %v2084_v49, %v1610_v48  ;;  %2680 = vmatmul.msk.f32.gmra.mxu2 %vm292_vm0, %v4917_v36  ;;  %2688 = vmatmul.msk.f32.gmra.mxu3 %vm292_vm0, %v4917_v36 }
 0x1aa   :  { %v1613_v13 = vpop.f32.mrf.mxu0  ;;  %v1654_v44 = vpop.f32.mrf.mxu1 }
 0x1ab   :  { %v2333_v2 = vadd.f32 %v2332_v51, %v2218_v53  ;;  %v4414_v11 = vadd.f32 %v2085_v34, %v1651_v9  ;;  %v2231_v29 = vmul.f32 %v1613_v13, %v1613_v13  ;;  %v2232_v28 = vmul.f32 %v1654_v44, %v1654_v44  ;;  %v852_v9 = vld [vmem:[%s4861_s2 + $0x10] sm:$0xff]  ;;  %v998_v34 = vld [vmem:[%s4862_s3 + $0x18] sm:$0xff] }
 0x1ac   :  { %v1531_v56 = vpop.f32.mrf.mxu2  ;;  %v1572_v17 = vpop.f32.mrf.mxu3  ;;  %v997_v53 = vld [vmem:[%s4862_s3 + $0x10] sm:$0xff] }
 0x1ad   :  { %v4421_v32 = vadd.f32 %v2333_v2, %v2219_v55  ;;  %v2098_v19 = vadd.f32 %v1531_v56, %v4238_v54  ;;  %v2229_v27 = vmul.f32 %v1531_v56, %v1531_v56  ;;  %v2230_v36 = vmul.f32 %v1572_v17, %v1572_v17 }
 0x1ae   :  { %v872_v52 = vpop.xlane.xlu0 %871  ;;  %2696 = vmatmul.msk.f32.gmra.mxu0 %vm292_vm0, %v2741_v42  ;;  %2712 = vmatmul.msk.f32.gmra.mxu1 %vm292_vm0, %v2741_v42 }
 0x1af   :  { %v2346_v35 = vadd.f32 %v2229_v27, %v2228_v3  ;;  %v2099_v38 = vadd.f32 %v2098_v19, %v1572_v17  ;;  %v978_v5 = vadd.f32 %v872_v52, %v850_v41  ;;  %v853_v41 = vld [vmem:[%s4861_s2 + $0x18] sm:$0xff]  ;;  %v999_v27 = vld [vmem:[%s4862_s3 + $0x20] sm:$0xff] }
 0x1b0   :  { %v1121_v54 = vpop.xlane.xlu2 %1120 }
 0x1b1   :  { %v2347_v26 = vadd.f32 %v2346_v35, %v2230_v36  ;;  %987 = vst.msk [vmem:[%s4861_s2] sm:$0xff] %vm17_vm2, %v978_v5  ;;  %v1227_v37 = vadd.f32 %v1121_v54, %v995_v20  ;;  %v2100_v46 = vadd.f32 %v2099_v38, %v1613_v13  ;;  %v854_v36 = vld [vmem:[%s4861_s2 + $0x20] sm:$0xff] }
 0x1b2   :  { %v4436_v58 = vpop.f32.mrf.mxu0  ;;  %v4444_v1 = vpop.f32.mrf.mxu1 }
 0x1b3   :  { %1235 = vst.msk [vmem:[%s4862_s3] sm:$0xff] %vm17_vm2, %v1227_v37  ;;  %v2348_v31 = vadd.f32 %v2347_v26, %v2231_v29  ;;  %v4442_v43 = vadd.f32 %v2100_v46, %v1654_v44  ;;  %v1000_v37 = vld [vmem:[%s4862_s3 + $0x28] sm:$0xff] }
 0x1b4   :  { %v4446_v60 = vpop.f32.mrf.mxu2  ;;  %v4448_v0 = vpop.f32.mrf.mxu3  ;;  %v855_v46 = vld [vmem:[%s4861_s2 + $0x28] sm:$0xff] }
 0x1b5   :  { %v4453_v22 = vadd.f32 %v2348_v31, %v2232_v28 }
 0x1b6   :  { %v887_v45 = vpop.xlane.xlu0 %886 }
 0x1b7   :  { %v979_v47 = vadd.f32 %v887_v45, %v851_v6 }
 0x1b9   :  { %988 = vst.msk [vmem:[%s4861_s2 + $0x8] sm:$0xff] %vm17_vm2, %v979_v47 }
 0x1ba   :  { %v4459_v16 = vpop.f32.mrf.mxu0 }
 0x1bb   :  { %v4461_v4 = vpop.f32.mrf.mxu1 }
 0x1bc   :  { %v4463_v40 = vpop.f32.mrf.mxu2  ;;  %v4465_v48 = vpop.f32.mrf.mxu3 }
 0x1be   :  { %v1136_v24 = vpop.xlane.xlu0 %1135  ;;  %v902_v25 = vpop.xlane.xlu1 %901 }
 0x1bf   :  { %v1228_v12 = vadd.f32 %v1136_v24, %v996_v7  ;;  %v980_v50 = vadd.f32 %v902_v25, %v852_v9  ;;  %v856_v25 = vld [vmem:[%s4861_s2 + $0x30] sm:$0xff] }
 0x1c1   :  { %1236 = vst.msk [vmem:[%s4862_s3 + $0x8] sm:$0xff] %vm17_vm2, %v1228_v12 }
 0x1c2   :  { %989 = vst.msk [vmem:[%s4861_s2 + $0x10] sm:$0xff] %vm17_vm2, %v980_v50  ;;  %v4481_v59 = vpop.f32.mrf.mxu0 }
 0x1c3   :  { %v4483_v21 = vpop.f32.mrf.mxu1 }
 0x1c4   :  { %v4485_v23 = vpop.f32.mrf.mxu2  ;;  %v4487_v49 = vpop.f32.mrf.mxu3 }
 0x1c6   :  { %v1151_v51 = vpop.xlane.xlu1 %1150 }
 0x1c7   :  { %v1229_v55 = vadd.f32 %v1151_v51, %v997_v53  ;;  %v1001_v51 = vld [vmem:[%s4862_s3 + $0x30] sm:$0xff] }
 0x1c8   :  { %v1166_v13 = vpop.xlane.xlu2 %1165 }
 0x1c9   :  { %1237 = vst.msk [vmem:[%s4862_s3 + $0x10] sm:$0xff] %vm17_vm2, %v1229_v55  ;;  %v1230_v2 = vadd.f32 %v1166_v13, %v998_v34 }
 0x1ca   :  { %v4499_v44 = vpop.f32.mrf.mxu0 }
 0x1cb   :  { %1238 = vst.msk [vmem:[%s4862_s3 + $0x18] sm:$0xff] %vm17_vm2, %v1230_v2  ;;  %v4505_v3 = vpop.f32.mrf.mxu1 }
 0x1cc   :  { %v4507_v56 = vpop.f32.mrf.mxu2  ;;  %v4509_v17 = vpop.f32.mrf.mxu3 }
 0x1ce   :  { %v917_v19 = vpop.xlane.xlu1 %916 }
 0x1cf   :  { %v981_v52 = vadd.f32 %v917_v19, %v853_v41 }
 0x1d0   :  { %v1181_v20 = vpop.xlane.xlu0 %1180  ;;  %v932_v42 = vpop.xlane.xlu2 %931 }
 0x1d1   :  { %990 = vst.msk [vmem:[%s4861_s2 + $0x18] sm:$0xff] %vm17_vm2, %v981_v52  ;;  %v1231_v35 = vadd.f32 %v1181_v20, %v999_v27  ;;  %v982_v38 = vadd.f32 %v932_v42, %v854_v36 }
 0x1d2   :  { %v4524_v5 = vpop.f32.mrf.mxu0 }
 0x1d3   :  { %1239 = vst.msk [vmem:[%s4862_s3 + $0x20] sm:$0xff] %vm17_vm2, %v1231_v35  ;;  %v4530_v29 = vpop.f32.mrf.mxu1  ;;  %v857_v35 = vld [vmem:[%s4861_s2 + $0x38] sm:$0xff] }
 0x1d4   :  { %991 = vst.msk [vmem:[%s4861_s2 + $0x20] sm:$0xff] %vm17_vm2, %v982_v38  ;;  %v4536_v54 = vpop.f32.mrf.mxu2  ;;  %v4538_v26 = vpop.f32.mrf.mxu3  ;;  %v2142_v38 = vmul.f32 %v4446_v60, %v4446_v60 }
 0x1d8   :  { %v1196_v28 = vpop.xlane.xlu1 %1195  ;;  %v947_v31 = vpop.xlane.xlu2 %946 }
 0x1d9   :  { %v1232_v6 = vadd.f32 %v1196_v28, %v1000_v37  ;;  %v983_v45 = vadd.f32 %v947_v31, %v855_v46  ;;  %v1002_v28 = vld [vmem:[%s4862_s3 + $0x38] sm:$0xff]  ;;  %v1997_v31 = vadd.f32 %v4261_v8, %v4446_v60 }
 0x1db   :  { %1240 = vst.msk [vmem:[%s4862_s3 + $0x28] sm:$0xff] %vm17_vm2, %v1232_v6  ;;  %v4550_v47 = vpop.f32.mrf.mxu0  ;;  %v4552_v7 = vpop.f32.mrf.mxu1 }
 0x1dc   :  { %992 = vst.msk [vmem:[%s4861_s2 + $0x28] sm:$0xff] %vm17_vm2, %v983_v45  ;;  %v4558_v9 = vpop.f32.mrf.mxu2  ;;  %v4560_v24 = vpop.f32.mrf.mxu3  ;;  %v2209_v13 = vmul.f32 %v4550_v47, %v4550_v47  ;;  %v2210_v27 = vmul.f32 %v4552_v7, %v4552_v7 }
 0x1dd   :  { %v2207_v12 = vmul.f32 %v4558_v9, %v4558_v9  ;;  %v2208_v50 = vmul.f32 %v4560_v24, %v4560_v24 }
 0x1de   :  { %v962_v53 = vpop.xlane.xlu0 %961 }
 0x1df   :  { %v2320_v34 = vadd.f32 %v4405_v61, %v2207_v12  ;;  %v984_v55 = vadd.f32 %v962_v53, %v856_v25  ;;  %v2245_v25 = vadd.f32 %v4265_v10, %v2142_v38  ;;  %v2143_v12 = vmul.f32 %v4448_v0, %v4448_v0 }
 0x1e0   :  { %v1211_v2 = vpop.xlane.xlu2 %1210  ;;  %v1998_v53 = vadd.f32 %v1997_v31, %v4448_v0  ;;  %v2155_v10 = vmul.f32 %v4463_v40, %v4463_v40  ;;  %v2144_v0 = vmul.f32 %v4436_v58, %v4436_v58 }
 0x1e1   :  { %v2321_v41 = vadd.f32 %v2320_v34, %v2208_v50  ;;  %993 = vst.msk [vmem:[%s4861_s2 + $0x30] sm:$0xff] %vm17_vm2, %v984_v55  ;;  %v1233_v19 = vadd.f32 %v1211_v2, %v1001_v51  ;;  %v2246_v55 = vadd.f32 %v2245_v25, %v2143_v12 }
 0x1e2   :  { %v1999_v2 = vadd.f32 %v1998_v53, %v4436_v58  ;;  %v2027_v53 = vadd.f32 %v4307_v33, %v4485_v23 }
 0x1e3   :  { %1241 = vst.msk [vmem:[%s4862_s3 + $0x30] sm:$0xff] %vm17_vm2, %v1233_v19  ;;  %v2322_v61 = vadd.f32 %v2321_v41, %v2209_v13  ;;  %v4585_v36 = vpop.f32.mrf.mxu0  ;;  %v4587_v52 = vpop.f32.mrf.mxu1  ;;  %v2012_v13 = vadd.f32 %v4276_v14, %v4463_v40  ;;  %v2260_v41 = vadd.f32 %v4280_v63, %v2155_v10  ;;  %v2156_v19 = vmul.f32 %v4465_v48, %v4465_v48 }
 0x1e4   :  { %v4589_v20 = vpop.f32.mrf.mxu2  ;;  %v4591_v42 = vpop.f32.mrf.mxu3  ;;  %v2000_v38 = vadd.f32 %v1999_v2, %v4444_v1  ;;  %v2157_v14 = vmul.f32 %v4459_v16, %v4459_v16  ;;  %v2168_v63 = vmul.f32 %v4485_v23, %v4485_v23 }
 0x1e5   :  { %v4598_v37 = vadd.f32 %v2322_v61, %v2210_v27  ;;  %v2247_v27 = vadd.f32 %v2246_v55, %v2144_v0  ;;  %v2145_v61 = vmul.f32 %v4444_v1, %v4444_v1  ;;  %v2261_v31 = vadd.f32 %v2260_v41, %v2156_v19 }
 0x1e6   :  { %v977_v46 = vpop.xlane.xlu1 %976  ;;  %v2158_v1 = vmul.f32 %v4461_v4, %v4461_v4  ;;  %v2275_v2 = vadd.f32 %v4319_v62, %v2168_v63  ;;  %v2169_v41 = vmul.f32 %v4487_v49, %v4487_v49  ;;  %v2170_v62 = vmul.f32 %v4481_v59, %v4481_v59 }
 0x1e7   :  { %v985_v6 = vadd.f32 %v977_v46, %v857_v35  ;;  %v2013_v35 = vadd.f32 %v2012_v13, %v4465_v48  ;;  %v2262_v13 = vadd.f32 %v2261_v31, %v2157_v14 }
 0x1e8   :  { %v1226_v45 = vpop.xlane.xlu0 %1225  ;;  %v2276_v14 = vadd.f32 %v2275_v2, %v2169_v41 }
 0x1e9   :  { %994 = vst.msk [vmem:[%s4861_s2 + $0x38] sm:$0xff] %vm17_vm2, %v985_v6  ;;  %v1234_v50 = vadd.f32 %v1226_v45, %v1002_v28  ;;  %v2248_v6 = vadd.f32 %v2247_v27, %v2145_v61  ;;  %v2263_v31 = vadd.f32 %v2262_v13, %v2158_v1  ;;  %v2182_v13 = vmul.f32 %v4509_v17, %v4509_v17 }
 0x1eb   :  { %1242 = vst.msk [vmem:[%s4862_s3 + $0x38] sm:$0xff] %vm17_vm2, %v1234_v50  ;;  %v4617_v8 = vpop.f32.mrf.mxu0  ;;  %v4619_v60 = vpop.f32.mrf.mxu1  ;;  %v2014_v50 = vadd.f32 %v2013_v35, %v4459_v16 }
 0x1ec   :  { %v4623_v51 = vpop.f32.mrf.mxu2  ;;  %v4625_v34 = vpop.f32.mrf.mxu3 }
 0x1ed   :  { %v2015_v35 = vadd.f32 %v2014_v50, %v4461_v4 }
 0x1f3   :  { %v1920_v46 = vpop.f32.mrf.mxu0  ;;  %v1961_v28 = vpop.f32.mrf.mxu1 }
 0x1f4   :  { %v1838_v58 = vpop.f32.mrf.mxu2  ;;  %v1879_v40 = vpop.f32.mrf.mxu3  ;;  %v2149_v48 = vmul.f32 %v1961_v28, %v1961_v28  ;;  %v2148_v0 = vmul.f32 %v1920_v46, %v1920_v46  ;;  %v2004_v19 = vsel %vm292_vm0, %v1961_v28, 0.0  ;;  %v2181_v28 = vmul.f32 %v4507_v56, %v4507_v56 }
 0x1f5   :  { %v2001_v45 = vadd.f32 %v2000_v38, %v1838_v58  ;;  %v2146_v25 = vmul.f32 %v1838_v58, %v1838_v58  ;;  %v2147_v12 = vmul.f32 %v1879_v40, %v1879_v40  ;;  %v2028_v38 = vadd.f32 %v2027_v53, %v4487_v49 }
 0x1f6   :  { %v2252_v61 = vsel %vm292_vm0, %v2149_v48, 0.0  ;;  %v2171_v49 = vmul.f32 %v4483_v21, %v4483_v21 }
 0x1f7   :  { %v2249_v10 = vadd.f32 %v2248_v6, %v2146_v25  ;;  %v2002_v55 = vadd.f32 %v2001_v45, %v1879_v40  ;;  %v2029_v1 = vadd.f32 %v2028_v38, %v4481_v59 }
 0x1f9   :  { %v2250_v27 = vadd.f32 %v2249_v10, %v2147_v12  ;;  %v2003_v16 = vadd.f32 %v2002_v55, %v1920_v46  ;;  %v2042_v12 = vadd.f32 %v4354_v57, %v4507_v56  ;;  %v2277_v55 = vadd.f32 %v2276_v14, %v2170_v62 }
 0x1fa   :  { %v2030_v59 = vadd.f32 %v2029_v1, %v4483_v21 }
 0x1fb   :  { %v2005_v33 = vadd.f32 %v2004_v19, %v2003_v16  ;;  %v2251_v23 = vadd.f32 %v2250_v27, %v2148_v0  ;;  %v1923_v58 = vpop.f32.mrf.mxu0  ;;  %v1964_v40 = vpop.f32.mrf.mxu1  ;;  %v2290_v0 = vadd.f32 %v4366_v18, %v2181_v28  ;;  %v2043_v27 = vadd.f32 %v2042_v12, %v4509_v17 }
 0x1fc   :  { %v1841_v63 = vpop.f32.mrf.mxu2  ;;  %v1882_v46 = vpop.f32.mrf.mxu3  ;;  %v2162_v50 = vmul.f32 %v1964_v40, %v1964_v40  ;;  %v2161_v10 = vmul.f32 %v1923_v58, %v1923_v58  ;;  %v2019_v2 = vsel %vm292_vm0, %v1964_v40, 0.0  ;;  %v2278_v38 = vadd.f32 %v2277_v55, %v2171_v49 }
 0x1fd   :  { %v2016_v6 = vadd.f32 %v2015_v35, %v1841_v63  ;;  %v2159_v45 = vmul.f32 %v1841_v63, %v1841_v63  ;;  %2006 = vadd.xlane.f32.xlu1 %v2005_v33  ;;  %v2160_v4 = vmul.f32 %v1882_v46, %v1882_v46  ;;  %v2253_v25 = vadd.f32 %v2252_v61, %v2251_v23 }
 0x1fe   :  { %v2267_v57 = vsel %vm292_vm0, %v2162_v50, 0.0  ;;  %v2291_v33 = vadd.f32 %v2290_v0, %v2182_v13  ;;  %v2183_v18 = vmul.f32 %v4499_v44, %v4499_v44  ;;  %v2194_v23 = vmul.f32 %v4536_v54, %v4536_v54 }
 0x1ff   :  { %v2264_v48 = vadd.f32 %v2263_v31, %v2159_v45  ;;  %v2017_v53 = vadd.f32 %v2016_v6, %v1882_v46  ;;  %2254 = vadd.xlane.f32.xlu0 %v2253_v25  ;;  %v2044_v21 = vadd.f32 %v2043_v27, %v4499_v44  ;;  %v2184_v28 = vmul.f32 %v4505_v3, %v4505_v3 }
 0x200   :  { %v2057_v46 = vadd.f32 %v4387_v39, %v4536_v54  ;;  %v2292_v25 = vadd.f32 %v2291_v33, %v2183_v18  ;;  %v2305_v49 = vadd.f32 %v4391_v15, %v2194_v23  ;;  %v2195_v12 = vmul.f32 %v4538_v26, %v4538_v26 }
 0x201   :  { %v2265_v41 = vadd.f32 %v2264_v48, %v2160_v4  ;;  %v2018_v19 = vadd.f32 %v2017_v53, %v1923_v58  ;;  %v2045_v53 = vadd.f32 %v2044_v21, %v4505_v3  ;;  %v2196_v15 = vmul.f32 %v4524_v5, %v4524_v5 }
 0x202   :  { %v2058_v39 = vadd.f32 %v2057_v46, %v4538_v26  ;;  %v2293_v13 = vadd.f32 %v2292_v25, %v2184_v28  ;;  %v2072_v3 = vadd.f32 %v4401_v30, %v4558_v9  ;;  %v2197_v18 = vmul.f32 %v4530_v29, %v4530_v29 }
 0x203   :  { %v2020_v56 = vadd.f32 %v2019_v2, %v2018_v19  ;;  %v2266_v16 = vadd.f32 %v2265_v41, %v2161_v10  ;;  %v1926_v61 = vpop.f32.mrf.mxu0  ;;  %v1967_v35 = vpop.f32.mrf.mxu1  ;;  %v2306_v2 = vadd.f32 %v2305_v49, %v2195_v12  ;;  %v2220_v28 = vmul.f32 %v4589_v20, %v4589_v20 }
 0x204   :  { %v1844_v40 = vpop.f32.mrf.mxu2  ;;  %v1885_v58 = vpop.f32.mrf.mxu3  ;;  %v2175_v63 = vmul.f32 %v1967_v35, %v1967_v35  ;;  %v2174_v4 = vmul.f32 %v1926_v61, %v1926_v61  ;;  %v2034_v50 = vsel %vm292_vm0, %v1967_v35, 0.0 }
 0x205   :  { %v2031_v31 = vadd.f32 %v2030_v59, %v1844_v40  ;;  %v2172_v17 = vmul.f32 %v1844_v40, %v1844_v40  ;;  %2021 = vadd.xlane.f32.xlu2 %v2020_v56  ;;  %v2173_v14 = vmul.f32 %v1885_v58, %v1885_v58  ;;  %v2268_v62 = vadd.f32 %v2267_v57, %v2266_v16 }
 0x206   :  { %v2282_v48 = vsel %vm292_vm0, %v2175_v63, 0.0  ;;  %v2059_v16 = vadd.f32 %v2058_v39, %v4524_v5  ;;  %v2307_v33 = vadd.f32 %v2306_v2, %v2196_v15 }
 0x207   :  { %v2279_v6 = vadd.f32 %v2278_v38, %v2172_v17  ;;  %v2032_v45 = vadd.f32 %v2031_v31, %v1885_v58  ;;  %2269 = vadd.xlane.f32.xlu1 %v2268_v62  ;;  %v2073_v31 = vadd.f32 %v2072_v3, %v4560_v24  ;;  %v2234_v3 = vmul.f32 %v4625_v34, %v4625_v34 }
 0x208   :  { %v2060_v30 = vadd.f32 %v2059_v16, %v4530_v29  ;;  %v2308_v21 = vadd.f32 %v2307_v33, %v2197_v18  ;;  %v2087_v29 = vadd.f32 %v4414_v11, %v4589_v20  ;;  %v2235_v18 = vmul.f32 %v4617_v8, %v4617_v8 }
 0x209   :  { %v2280_v44 = vadd.f32 %v2279_v6, %v2173_v14  ;;  %v2033_v1 = vadd.f32 %v2032_v45, %v1926_v61  ;;  %v2074_v24 = vadd.f32 %v2073_v31, %v4550_v47 }
 0x20b   :  { %v2035_v54 = vadd.f32 %v2034_v50, %v2033_v1  ;;  %v2281_v10 = vadd.f32 %v2280_v44, %v2174_v4  ;;  %v1929_v55 = vpop.f32.mrf.mxu0  ;;  %v1970_v0 = vpop.f32.mrf.mxu1  ;;  %v2075_v47 = vadd.f32 %v2074_v24, %v4552_v7 }
 0x20c   :  { %v1847_v41 = vpop.f32.mrf.mxu2  ;;  %v1888_v19 = vpop.f32.mrf.mxu3  ;;  %v2188_v26 = vmul.f32 %v1970_v0, %v1970_v0  ;;  %v2187_v38 = vmul.f32 %v1929_v55, %v1929_v55  ;;  %v2049_v23 = vsel %vm292_vm0, %v1970_v0, 0.0 }
 0x20d   :  { %v2046_v27 = vadd.f32 %v2045_v53, %v1847_v41  ;;  %v2185_v57 = vmul.f32 %v1847_v41, %v1847_v41  ;;  %2036 = vadd.xlane.f32.xlu0 %v2035_v54  ;;  %v2186_v59 = vmul.f32 %v1888_v19, %v1888_v19  ;;  %v2283_v56 = vadd.f32 %v2282_v48, %v2281_v10 }
 0x20e   :  { %v2297_v17 = vsel %vm292_vm0, %v2188_v26, 0.0  ;;  %v2335_v48 = vadd.f32 %v4421_v32, %v2220_v28  ;;  %v2221_v53 = vmul.f32 %v4591_v42, %v4591_v42  ;;  %v2233_v32 = vmul.f32 %v4623_v51, %v4623_v51 }
 0x20f   :  { %v2294_v61 = vadd.f32 %v2293_v13, %v2185_v57  ;;  %v2047_v35 = vadd.f32 %v2046_v27, %v1888_v19  ;;  %2284 = vadd.xlane.f32.xlu2 %v2283_v56  ;;  %v2222_v19 = vmul.f32 %v4585_v36, %v4585_v36  ;;  %v2102_v57 = vadd.f32 %v4442_v43, %v4623_v51 }
 0x210   :  { %v2336_v41 = vadd.f32 %v2335_v48, %v2221_v53  ;;  %v2350_v56 = vadd.f32 %v4453_v22, %v2233_v32 }
 0x211   :  { %v2295_v40 = vadd.f32 %v2294_v61, %v2186_v59  ;;  %v2048_v58 = vadd.f32 %v2047_v35, %v1929_v55  ;;  %v2088_v55 = vadd.f32 %v2087_v29, %v4591_v42  ;;  %v2223_v61 = vmul.f32 %v4587_v52, %v4587_v52 }
 0x212   :  { %v2337_v16 = vadd.f32 %v2336_v41, %v2222_v19  ;;  %v2103_v43 = vadd.f32 %v2102_v57, %v4625_v34  ;;  %v2351_v22 = vadd.f32 %v2350_v56, %v2234_v3  ;;  %v1985_v56 = vld [vmem:[%s4861_s2] sm:$0xff] }
 0x213   :  { %v2050_v9 = vadd.f32 %v2049_v23, %v2048_v58  ;;  %v2296_v5 = vadd.f32 %v2295_v40, %v2187_v38  ;;  %v1932_v14 = vpop.f32.mrf.mxu0  ;;  %v1973_v62 = vpop.f32.mrf.mxu1  ;;  %v2089_v42 = vadd.f32 %v2088_v55, %v4585_v36 }
 0x214   :  { %v1850_v63 = vpop.f32.mrf.mxu2  ;;  %v1891_v46 = vpop.f32.mrf.mxu3  ;;  %v2201_v49 = vmul.f32 %v1973_v62, %v1973_v62  ;;  %v2200_v44 = vmul.f32 %v1932_v14, %v1932_v14  ;;  %v2064_v1 = vsel %vm292_vm0, %v1973_v62, 0.0  ;;  %v2338_v58 = vadd.f32 %v2337_v16, %v2223_v61  ;;  %v1986_v61 = vld [vmem:[%s4861_s2 + $0x8] sm:$0xff] }
 0x215   :  { %v2061_v6 = vadd.f32 %v2060_v30, %v1850_v63  ;;  %v2198_v45 = vmul.f32 %v1850_v63, %v1850_v63  ;;  %2051 = vadd.xlane.f32.xlu1 %v2050_v9  ;;  %v2199_v4 = vmul.f32 %v1891_v46, %v1891_v46  ;;  %v2298_v25 = vadd.f32 %v2297_v17, %v2296_v5 }
 0x216   :  { %v2312_v10 = vsel %vm292_vm0, %v2201_v49, 0.0  ;;  %v2090_v36 = vadd.f32 %v2089_v42, %v4587_v52  ;;  %v2104_v5 = vadd.f32 %v2103_v43, %v4617_v8  ;;  %v2352_v62 = vadd.f32 %v2351_v22, %v2235_v18  ;;  %v2130_v43 = vld [vmem:[%s4862_s3 + $0x8] sm:$0xff] }
 0x217   :  { %v2309_v12 = vadd.f32 %v2308_v21, %v2198_v45  ;;  %v2062_v50 = vadd.f32 %v2061_v6, %v1891_v46  ;;  %2299 = vadd.xlane.f32.xlu0 %v2298_v25  ;;  %v2236_v21 = vmul.f32 %v4619_v60, %v4619_v60 }
 0x218   :  { %v2105_v45 = vadd.f32 %v2104_v5, %v4619_v60 }
 0x219   :  { %v2310_v39 = vadd.f32 %v2309_v12, %v2199_v4  ;;  %v2063_v54 = vadd.f32 %v2062_v50, %v1932_v14  ;;  %v2353_v29 = vadd.f32 %v2352_v62, %v2236_v21  ;;  %v2133_v21 = vld [vmem:[%s4862_s3 + $0x20] sm:$0xff] }
 0x21b   :  { %v2065_v11 = vadd.f32 %v2064_v1, %v2063_v54  ;;  %v2311_v20 = vadd.f32 %v2310_v39, %v2200_v44  ;;  %v4710_v0 = vpop.f32.mrf.mxu0  ;;  %v4712_v13 = vpop.f32.mrf.mxu1 }
 0x21c   :  { %v1853_v2 = vpop.f32.mrf.mxu2  ;;  %v1894_v15 = vpop.f32.mrf.mxu3  ;;  %v2079_v26 = vsel %vm292_vm0, %v4712_v13, 0.0  ;;  %v2213_v19 = vmul.f32 %v4710_v0, %v4710_v0 }
 0x21d   :  { %v2076_v27 = vadd.f32 %v2075_v47, %v1853_v2  ;;  %2066 = vadd.xlane.f32.xlu2 %v2065_v11  ;;  %v2313_v7 = vadd.f32 %v2312_v10, %v2311_v20  ;;  %v2211_v4 = vmul.f32 %v1853_v2, %v1853_v2  ;;  %v2212_v39 = vmul.f32 %v1894_v15, %v1894_v15 }
 0x21f   :  { %v2077_v59 = vadd.f32 %v2076_v27, %v1894_v15  ;;  %2314 = vadd.xlane.f32.xlu1 %v2313_v7  ;;  %v2324_v10 = vadd.f32 %v4598_v37, %v2211_v4  ;;  %v2214_v15 = vmul.f32 %v4712_v13, %v4712_v13  ;;  %v1991_v4 = vld [vmem:[%s4861_s2 + $0x30] sm:$0xff] }
 0x221   :  { %v2078_v35 = vadd.f32 %v2077_v59, %v4710_v0  ;;  %v2325_v41 = vadd.f32 %v2324_v10, %v2212_v39  ;;  %v2327_v57 = vsel %vm292_vm0, %v2214_v15, 0.0  ;;  %v2129_v0 = vld [vmem:[%s4862_s3] sm:$0xff]  ;;  %v2134_v39 = vld [vmem:[%s4862_s3 + $0x28] sm:$0xff] }
 0x223   :  { %v2080_v51 = vadd.f32 %v2079_v26, %v2078_v35  ;;  %v1938_v38 = vpop.f32.mrf.mxu0  ;;  %v1979_v33 = vpop.f32.mrf.mxu1  ;;  %v2326_v42 = vadd.f32 %v2325_v41, %v2213_v19 }
 0x224   :  { %v1856_v23 = vpop.f32.mrf.mxu2  ;;  %v1897_v40 = vpop.f32.mrf.mxu3  ;;  %v2227_v9 = vmul.f32 %v1979_v33, %v1979_v33  ;;  %v2226_v34 = vmul.f32 %v1938_v38, %v1938_v38  ;;  %v2094_v28 = vsel %vm292_vm0, %v1979_v33, 0.0  ;;  %v1987_v33 = vld [vmem:[%s4861_s2 + $0x10] sm:$0xff] }
 0x225   :  { %v2091_v31 = vadd.f32 %v2090_v36, %v1856_v23  ;;  %v2224_v17 = vmul.f32 %v1856_v23, %v1856_v23  ;;  %2081 = vadd.xlane.f32.xlu0 %v2080_v51  ;;  %v2225_v30 = vmul.f32 %v1897_v40, %v1897_v40  ;;  %v2328_v59 = vadd.f32 %v2327_v57, %v2326_v42  ;;  %v2131_v23 = vld [vmem:[%s4862_s3 + $0x10] sm:$0xff] }
 0x226   :  { %v2342_v6 = vsel %vm292_vm0, %v2227_v9, 0.0  ;;  %v2132_v9 = vld [vmem:[%s4862_s3 + $0x18] sm:$0xff] }
 0x227   :  { %v2339_v52 = vadd.f32 %v2338_v58, %v2224_v17  ;;  %v2092_v14 = vadd.f32 %v2091_v31, %v1897_v40  ;;  %v1988_v31 = vld [vmem:[%s4861_s2 + $0x18] sm:$0xff] }
 0x229   :  { %v2340_v63 = vadd.f32 %v2339_v52, %v2225_v30  ;;  %v2093_v46 = vadd.f32 %v2092_v14, %v1938_v38  ;;  %v1989_v14 = vld [vmem:[%s4861_s2 + $0x20] sm:$0xff] }
 0x22b   :  { %v2095_v25 = vadd.f32 %v2094_v28, %v2093_v46  ;;  %v2341_v24 = vadd.f32 %v2340_v63, %v2226_v34  ;;  %v1941_v49 = vpop.f32.mrf.mxu0  ;;  %v1982_v8 = vpop.f32.mrf.mxu1  ;;  %v1990_v46 = vld [vmem:[%s4861_s2 + $0x28] sm:$0xff] }
 0x22c   :  { %v1859_v12 = vpop.f32.mrf.mxu2  ;;  %v1900_v50 = vpop.f32.mrf.mxu3  ;;  %v2240_v54 = vmul.f32 %v1982_v8, %v1982_v8  ;;  %v2239_v60 = vmul.f32 %v1941_v49, %v1941_v49  ;;  %v2109_v11 = vsel %vm292_vm0, %v1982_v8, 0.0 }
 0x22d   :  { %v2106_v44 = vadd.f32 %v2105_v45, %v1859_v12  ;;  %v2237_v1 = vmul.f32 %v1859_v12, %v1859_v12  ;;  %2096 = vadd.xlane.f32.xlu1 %v2095_v25  ;;  %v2238_v48 = vmul.f32 %v1900_v50, %v1900_v50  ;;  %v2343_v53 = vadd.f32 %v2342_v6, %v2341_v24 }
 0x22e   :  { %v2357_v2 = vsel %vm292_vm0, %v2240_v54, 0.0 }
 0x22f   :  { %v2354_v47 = vadd.f32 %v2353_v29, %v2237_v1  ;;  %v2107_v55 = vadd.f32 %v2106_v44, %v1900_v50  ;;  %2344 = vadd.xlane.f32.xlu0 %v2343_v53  ;;  %v1992_v50 = vld [vmem:[%s4861_s2 + $0x38] sm:$0xff] }
 0x230   :  { %v2136_v1 = vld [vmem:[%s4862_s3 + $0x38] sm:$0xff] }
 0x231   :  { %v2355_v20 = vadd.f32 %v2354_v47, %v2238_v48  ;;  %v2108_v32 = vadd.f32 %v2107_v55, %v1941_v49  ;;  %v2135_v49 = vld [vmem:[%s4862_s3 + $0x30] sm:$0xff] }
 0x233   :  { %v2356_v27 = vadd.f32 %v2355_v20, %v2239_v60  ;;  %v2110_v7 = vadd.f32 %v2109_v11, %v2108_v32 }
 0x235   :  { %2111 = vadd.xlane.f32.xlu2 %v2110_v7  ;;  %v2358_v37 = vadd.f32 %v2357_v2, %v2356_v27 }
 0x237   :  { %2359 = vadd.xlane.f32.xlu1 %v2358_v37 }
 0x23d   :  { %2329 = vadd.xlane.f32.xlu2 %v2328_v59 }
 0x270   :  { %v2007_v3 = vpop.xlane.xlu1 %2006 }
 0x271   :  { %v2113_v26 = vadd.f32 %v2007_v3, %v1985_v56 }
 0x272   :  { %v2255_v16 = vpop.xlane.xlu0 %2254 }
 0x273   :  { %2121 = vst.msk [vmem:[%s4861_s2] sm:$0xff] %vm17_vm2, %v2113_v26  ;;  %v2361_v13 = vadd.f32 %v2255_v16, %v2129_v0 }
 0x275   :  { %2369 = vst.msk [vmem:[%s4862_s3] sm:$0xff] %vm17_vm2, %v2361_v13 }
 0x278   :  { %v2022_v35 = vpop.xlane.xlu2 %2021 }
 0x279   :  { %v2114_v36 = vadd.f32 %v2022_v35, %v1986_v61 }
 0x27a   :  { %v2270_v51 = vpop.xlane.xlu1 %2269 }
 0x27b   :  { %2122 = vst.msk [vmem:[%s4861_s2 + $0x8] sm:$0xff] %vm17_vm2, %v2114_v36  ;;  %v2362_v38 = vadd.f32 %v2270_v51, %v2130_v43 }
 0x27d   :  { %2370 = vst.msk [vmem:[%s4862_s3 + $0x8] sm:$0xff] %vm17_vm2, %v2362_v38 }
 0x280   :  { %v2037_v22 = vpop.xlane.xlu0 %2036 }
 0x281   :  { %v2115_v18 = vadd.f32 %v2037_v22, %v1987_v33 }
 0x282   :  { %v2285_v40 = vpop.xlane.xlu2 %2284 }
 0x283   :  { %2123 = vst.msk [vmem:[%s4861_s2 + $0x10] sm:$0xff] %vm17_vm2, %v2115_v18  ;;  %v2363_v58 = vadd.f32 %v2285_v40, %v2131_v23 }
 0x285   :  { %2371 = vst.msk [vmem:[%s4862_s3 + $0x10] sm:$0xff] %vm17_vm2, %v2363_v58 }
 0x288   :  { %v2052_v17 = vpop.xlane.xlu1 %2051 }
 0x289   :  { %v2116_v30 = vadd.f32 %v2052_v17, %v1988_v31 }
 0x28a   :  { %v2300_v5 = vpop.xlane.xlu0 %2299 }
 0x28b   :  { %2124 = vst.msk [vmem:[%s4861_s2 + $0x18] sm:$0xff] %vm17_vm2, %v2116_v30  ;;  %v2364_v52 = vadd.f32 %v2300_v5, %v2132_v9 }
 0x28d   :  { %2372 = vst.msk [vmem:[%s4862_s3 + $0x18] sm:$0xff] %vm17_vm2, %v2364_v52 }
 0x290   :  { %v2067_v34 = vpop.xlane.xlu2 %2066 }
 0x291   :  { %v2117_v62 = vadd.f32 %v2067_v34, %v1989_v14 }
 0x292   :  { %v2315_v28 = vpop.xlane.xlu1 %2314 }
 0x293   :  { %2125 = vst.msk [vmem:[%s4861_s2 + $0x20] sm:$0xff] %vm17_vm2, %v2117_v62  ;;  %v2365_v63 = vadd.f32 %v2315_v28, %v2133_v21 }
 0x295   :  { %2373 = vst.msk [vmem:[%s4862_s3 + $0x20] sm:$0xff] %vm17_vm2, %v2365_v63 }
 0x298   :  { %v2082_v6 = vpop.xlane.xlu0 %2081 }
 0x299   :  { %v2118_v45 = vadd.f32 %v2082_v6, %v1990_v46 }
 0x29b   :  { %2126 = vst.msk [vmem:[%s4861_s2 + $0x28] sm:$0xff] %vm17_vm2, %v2118_v45 }
 0x2a0   :  { %v2097_v25 = vpop.xlane.xlu1 %2096 }
 0x2a1   :  { %v2119_v24 = vadd.f32 %v2097_v25, %v1991_v4 }
 0x2a2   :  { %v2345_v8 = vpop.xlane.xlu0 %2344 }
 0x2a3   :  { %2127 = vst.msk [vmem:[%s4861_s2 + $0x30] sm:$0xff] %vm17_vm2, %v2119_v24  ;;  %v2367_v29 = vadd.f32 %v2345_v8, %v2135_v49 }
 0x2a5   :  { %2375 = vst.msk [vmem:[%s4862_s3 + $0x30] sm:$0xff] %vm17_vm2, %v2367_v29 }
 0x2a8   :  { %v2112_v12 = vpop.xlane.xlu2 %2111 }
 0x2a9   :  { %v2120_v44 = vadd.f32 %v2112_v12, %v1992_v50 }
 0x2aa   :  { %v2360_v48 = vpop.xlane.xlu1 %2359 }
 0x2ab   :  { %2128 = vst.msk [vmem:[%s4861_s2 + $0x38] sm:$0xff] %vm17_vm2, %v2120_v44  ;;  %v2368_v53 = vadd.f32 %v2360_v48, %v2136_v1 }
 0x2ad   :  { %2376 = vst.msk [vmem:[%s4862_s3 + $0x38] sm:$0xff] %vm17_vm2, %v2368_v53 }
 0x2b0   :  { %v2330_v54 = vpop.xlane.xlu2 %2329 }
 0x2b1   :  { %v2366_v10 = vadd.f32 %v2330_v54, %v2134_v39 }
 0x2b3   :  { %2374 = vst.msk [vmem:[%s4862_s3 + $0x28] sm:$0xff] %vm17_vm2, %v2366_v10 }

// kernel: model_forward.3
= control target key start
LH: loop header
LB: loop body
LE: loop exit
PB: predicated region body
PF: predicated region fallthrough
CT: control target
= control target key end

     0   :  { %s5068_s13 = smov 0   ;;  %s5070_s14 = smov 0   ;;  %s7944_s0 = inlined_call_operand.vmem [shape: f32[2,64,400], index: 0, kind: input, shape index: {}]   ;;  %s7945_s1 = inlined_call_operand.vmem [shape: f32[2,64,400], index: 1, kind: input, shape index: {}]   ;;  %s7946_s2 = inlined_call_operand.vmem [shape: f32[64,64], index: 2, kind: input, shape index: {}]   ;;  %s7947_s3 = inlined_call_operand.vmem [shape: f32[64,1], index: 3, kind: input, shape index: {}]   ;;  %s7948_s4 = inlined_call_operand.vmem [shape: f32[64,1], index: 4, kind: input, shape index: {}]   ;;  %s7949_s5 = inlined_call_operand.vmem [shape: f32[64,1], index: 5, kind: input, shape index: {}]   ;;  %s7950_s6 = inlined_call_operand.vmem [shape: f32[64,1], index: 6, kind: input, shape index: {}]   ;;  %s7951_s7 = inlined_call_operand.vmem [shape: f32[144,64], index: 7, kind: input, shape index: {}]   ;;  %s7952_s8 = inlined_call_operand.vmem [shape: f32[144,1], index: 8, kind: input, shape index: {}]   ;;  %s7953_s9 = inlined_call_operand.vmem [shape: f32[144,1], index: 9, kind: input, shape index: {}]   ;;  %s7954_s10 = inlined_call_operand.vmem [shape: f32[2,144,400], index: 10, kind: output, shape index: {}]  }
   0x1   :  { %s5072_s15 = smov 0  }
   0x2 LB: > { %s32_s16 = sadd.s32 1, %s5002_s14  ;;  %p4362_p0 = scmp.ge.s32.totalorder %s5006_s15, 1  ;;  %s5006_s15 = sphi %s5072_s15, %s20_s15   ;;  %s5002_s14 = sphi %s5070_s14, %s8026_s14   ;;  %s4998_s13 = sphi %s5068_s13, %s8025_s13  }
   0x3   : > { %p34_p1 = scmp.ge.s32.totalorder %s32_s16, 2  ;;  %p354_p2 = scmp.lt.s32.totalorder %s5006_s15, 3 }
   0x5   : > { %s8028_s16 = smov (%p34_p1, %s32_s16), 0  ;;  %p355_p3 = pnand %p4362_p0, %p354_p2 }
   0x6   : > { %p430_p4 = scmp.eq.s32.totalorder (!%p355_p3), %s4998_s13, 0 }
   0x7   : > { %358 = sbr.rel (%p355_p3) target bundleno = 1521 (0x5f1), region = 60 }
   0xc   : > { %435 = sbr.rel (!%p430_p4) target bundleno = 49 (0x31), region = 64  ;;  %vm436_vm0 = vcmask (%p430_p4), 7168   ;;  %v5008_v0 = vmov (%p430_p4), 0.0  }
   0xd   : > { %437 = vst.msk [vmem:[#allocation3] sm:$0xff] (%p430_p4), %vm436_vm0, %v5008_v0 }
   0xe   : > { %438 = vst.msk [vmem:[#allocation3 + $0x8] sm:$0xff] (%p430_p4), %vm436_vm0, %v5008_v0 }
   0xf   : > { %439 = vst.msk [vmem:[#allocation3 + $0x10] sm:$0xff] (%p430_p4), %vm436_vm0, %v5008_v0 }
  0x10   : > { %440 = vst.msk [vmem:[#allocation3 + $0x18] sm:$0xff] (%p430_p4), %vm436_vm0, %v5008_v0 }
  0x11   : > { %441 = vst.msk [vmem:[#allocation3 + $0x20] sm:$0xff] %vm436_vm0, %v5008_v0 }
  0x12   : > { %442 = vst.msk [vmem:[#allocation3 + $0x28] sm:$0xff] %vm436_vm0, %v5008_v0 }
  0x13   : > { %443 = vst.msk [vmem:[#allocation3 + $0x30] sm:$0xff] %vm436_vm0, %v5008_v0 }
  0x14   : > { %444 = vst.msk [vmem:[#allocation3 + $0x38] sm:$0xff] %vm436_vm0, %v5008_v0 }
  0x15   : > { %445 = vst.msk [vmem:[#allocation3 + $0x40] sm:$0xff] %vm436_vm0, %v5008_v0 }
  0x16   : > { %446 = vst.msk [vmem:[#allocation3 + $0x48] sm:$0xff] %vm436_vm0, %v5008_v0 }
  0x17   : > { %447 = vst.msk [vmem:[#allocation3 + $0x50] sm:$0xff] %vm436_vm0, %v5008_v0 }
  0x18   : > { %448 = vst.msk [vmem:[#allocation3 + $0x58] sm:$0xff] %vm436_vm0, %v5008_v0 }
  0x19   : > { %449 = vst.msk [vmem:[#allocation3 + $0x60] sm:$0xff] %vm436_vm0, %v5008_v0 }
  0x1a   : > { %450 = vst.msk [vmem:[#allocation3 + $0x68] sm:$0xff] %vm436_vm0, %v5008_v0 }
  0x1b   : > { %451 = vst.msk [vmem:[#allocation3 + $0x70] sm:$0xff] %vm436_vm0, %v5008_v0 }
  0x1c   : > { %452 = vst.msk [vmem:[#allocation3 + $0x78] sm:$0xff] %vm436_vm0, %v5008_v0 }
  0x1d   : > { %453 = vst.msk [vmem:[#allocation3 + $0x80] sm:$0xff] %vm436_vm0, %v5008_v0 }
  0x1e   : > { %454 = vst.msk [vmem:[#allocation3 + $0x88] sm:$0xff] %vm436_vm0, %v5008_v0 }
  0x1f   : > { %455 = vst.msk [vmem:[#allocation4] sm:$0xff] %vm436_vm0, %v5008_v0 }
  0x20   : > { %456 = vst.msk [vmem:[#allocation4 + $0x8] sm:$0xff] %vm436_vm0, %v5008_v0 }
  0x21   : > { %457 = vst.msk [vmem:[#allocation4 + $0x10] sm:$0xff] %vm436_vm0, %v5008_v0 }
  0x22   : > { %458 = vst.msk [vmem:[#allocation4 + $0x18] sm:$0xff] %vm436_vm0, %v5008_v0 }
  0x23   : > { %459 = vst.msk [vmem:[#allocation4 + $0x20] sm:$0xff] %vm436_vm0, %v5008_v0 }
  0x24   : > { %460 = vst.msk [vmem:[#allocation4 + $0x28] sm:$0xff] %vm436_vm0, %v5008_v0 }
  0x25   : > { %461 = vst.msk [vmem:[#allocation4 + $0x30] sm:$0xff] %vm436_vm0, %v5008_v0 }
  0x26   : > { %462 = vst.msk [vmem:[#allocation4 + $0x38] sm:$0xff] %vm436_vm0, %v5008_v0 }
  0x27   : > { %463 = vst.msk [vmem:[#allocation4 + $0x40] sm:$0xff] %vm436_vm0, %v5008_v0 }
  0x28   : > { %464 = vst.msk [vmem:[#allocation4 + $0x48] sm:$0xff] %vm436_vm0, %v5008_v0 }
  0x29   : > { %465 = vst.msk [vmem:[#allocation4 + $0x50] sm:$0xff] %vm436_vm0, %v5008_v0 }
  0x2a   : > { %466 = vst.msk [vmem:[#allocation4 + $0x58] sm:$0xff] %vm436_vm0, %v5008_v0 }
  0x2b   : > { %467 = vst.msk [vmem:[#allocation4 + $0x60] sm:$0xff] %vm436_vm0, %v5008_v0 }
  0x2c   : > { %468 = vst.msk [vmem:[#allocation4 + $0x68] sm:$0xff] %vm436_vm0, %v5008_v0 }
  0x2d   : > { %469 = vst.msk [vmem:[#allocation4 + $0x70] sm:$0xff] %vm436_vm0, %v5008_v0 }
  0x2e   : > { %470 = vst.msk [vmem:[#allocation4 + $0x78] sm:$0xff] %vm436_vm0, %v5008_v0 }
  0x2f   : > { %471 = vst.msk [vmem:[#allocation4 + $0x80] sm:$0xff] %vm436_vm0, %v5008_v0 }
  0x30   : > { %472 = vst.msk [vmem:[#allocation4 + $0x88] sm:$0xff] %vm436_vm0, %v5008_v0 }
  0x31 PF: > { %p4364_p5 = scmp.ne.s32.totalorder %s4998_s13, 0 }
  0x33   : > { %475 = sbr.rel (%p4364_p5) target bundleno = 1182 (0x49e), region = 68 }
  0x38   : > { %v5009_v1 = vmov 0   ;;  %v5010_v2 = vmov 3200.0   ;;  %v478_v7 = vld [vmem:[%s7949_s5 + $0x10] sm:$0xff]  ;;  %v476_v10 = vld [vmem:[%s7949_s5] sm:$0xff]  ;;  %v479_v12 = vld [vmem:[%s7949_s5 + $0x18] sm:$0xff] }
  0x39   : > { %4905 = vset.pattern.permute.xlu1 %v5009_v1  ;;  %4904 = vset.pattern.permute.xlu0 %v5009_v1  ;;  %4907 = vrcp.f32 %v5010_v2  ;;  %v501_v8 = vld [vmem:[%s7950_s6 + $0x10] sm:$0xff]  ;;  %v499_v11 = vld [vmem:[%s7950_s6] sm:$0xff]  ;;  %v502_v13 = vld [vmem:[%s7950_s6 + $0x18] sm:$0xff] }
  0x3a   : > { %4906 = vset.pattern.permute.xlu2 %v5009_v1  ;;  %v477_v14 = vld [vmem:[%s7949_s5 + $0x8] sm:$0xff]  ;;  %v483_v17 = vld [vmem:[%s7949_s5 + $0x38] sm:$0xff]  ;;  %v482_v23 = vld [vmem:[%s7949_s5 + $0x30] sm:$0xff] }
  0x3b   : > { %v500_v15 = vld [vmem:[%s7950_s6 + $0x8] sm:$0xff]  ;;  %v506_v18 = vld [vmem:[%s7950_s6 + $0x38] sm:$0xff]  ;;  %v505_v24 = vld [vmem:[%s7950_s6 + $0x30] sm:$0xff] }
  0x3c   : > { %v480_v29 = vld [vmem:[%s7949_s5 + $0x20] sm:$0xff]  ;;  %v481_v43 = vld [vmem:[%s7949_s5 + $0x28] sm:$0xff] }
  0x3d   : > { %v503_v34 = vld [vmem:[%s7950_s6 + $0x20] sm:$0xff]  ;;  %v504_v56 = vld [vmem:[%s7950_s6 + $0x28] sm:$0xff] }
  0x3f   : > { %v4908_v3 = vpop.eup %4907 }
  0x40   : > { %v485_v4 = vmul.f32 3200.0, %v4908_v3  ;;  %vm489_vm1 = vweird.f32 %v4908_v3 }
  0x42   : > { %v486_v5 = vsub.f32 1.0, %v485_v4 }
  0x44   : > { %v487_v6 = vmul.f32 %v4908_v3, %v486_v5 }
  0x46   : > { %v488_v9 = vadd.f32 %v4908_v3, %v487_v6 }
  0x48   : > { %v490_v16 = vsel %vm489_vm1, %v4908_v3, %v488_v9 }
  0x49   : > { %v5156_v19 = vmul.f32 %v490_v16, %v478_v7  ;;  %v509_v20 = vmul.f32 %v501_v8, %v490_v16  ;;  %v5158_v21 = vmul.f32 %v490_v16, %v476_v10  ;;  %v507_v22 = vmul.f32 %v499_v11, %v490_v16 }
  0x4a   : > { %v5166_v25 = vmul.f32 %v490_v16, %v479_v12  ;;  %v510_v26 = vmul.f32 %v502_v13, %v490_v16  ;;  %v5168_v27 = vmul.f32 %v490_v16, %v477_v14  ;;  %v508_v28 = vmul.f32 %v500_v15, %v490_v16 }
  0x4b   : > { %v517_v30 = vmul.f32 %v5156_v19, %v5156_v19  ;;  %v515_v31 = vmul.f32 %v5158_v21, %v5158_v21  ;;  %v5177_v32 = vmul.f32 %v490_v16, %v483_v17  ;;  %v514_v33 = vmul.f32 %v506_v18, %v490_v16 }
  0x4c   : > { %v518_v35 = vmul.f32 %v5166_v25, %v5166_v25  ;;  %v516_v36 = vmul.f32 %v5168_v27, %v5168_v27  ;;  %v5186_v37 = vmul.f32 %v490_v16, %v482_v23  ;;  %v513_v38 = vmul.f32 %v505_v24, %v490_v16 }
  0x4d   : > { %v525_v39 = vsub.f32 %v509_v20, %v517_v30  ;;  %v523_v40 = vsub.f32 %v507_v22, %v515_v31  ;;  %v522_v41 = vmul.f32 %v5177_v32, %v5177_v32  ;;  %v5190_v42 = vmul.f32 %v490_v16, %v480_v29 }
  0x4e   : > { %v526_v44 = vsub.f32 %v510_v26, %v518_v35  ;;  %v524_v45 = vsub.f32 %v508_v28, %v516_v36  ;;  %v521_v46 = vmul.f32 %v5186_v37, %v5186_v37  ;;  %v511_v47 = vmul.f32 %v503_v34, %v490_v16  ;;  %v533_v34 = vld [vmem:[%s7947_s3 + $0x10] sm:$0xff]  ;;  %v762_v28 = vld [vmem:[%s7944_s0 + $0xe8] sm:$0xff]  ;;  %v760_v36 = vld [vmem:[%s7944_s0 + $0xd8] sm:$0xff] }
  0x4f   : > { %v541_v48 = vadd.f32 1e-05, %v525_v39  ;;  %v539_v49 = vadd.f32 1e-05, %v523_v40  ;;  %v530_v50 = vsub.f32 %v514_v33, %v522_v41  ;;  %v519_v51 = vmul.f32 %v5190_v42, %v5190_v42  ;;  %v531_v40 = vld [vmem:[%s7947_s3] sm:$0xff]  ;;  %839 = vmatpush.msra.mxu1 %v762_v28  ;;  %v661_v28 = vld [vmem:[%s7946_s2 + $0x10] sm:$0xff] }
  0x50   : > { %v5199_v52 = vadd.f32 1e-05, %v526_v44  ;;  %v5201_v53 = vadd.f32 1e-05, %v524_v45  ;;  %v529_v54 = vsub.f32 %v513_v38, %v521_v46  ;;  %v5203_v55 = vmul.f32 %v490_v16, %v481_v43 }
  0x51   : > { %4909 = vrsqrt.f32 %v541_v48  ;;  %v5208_v57 = vadd.f32 1e-05, %v530_v50  ;;  %v527_v59 = vsub.f32 %v511_v47, %v519_v51  ;;  %v512_v60 = vmul.f32 %v504_v56, %v490_v16  ;;  %v640_v51 = vld [vmem:[%s7948_s4 + $0x28] sm:$0xff] }
  0x52   : > { %4911 = vrsqrt.f32 %v539_v49  ;;  %v5210_v58 = vadd.f32 1e-05, %v529_v54  ;;  %v520_v61 = vmul.f32 %v5203_v55, %v5203_v55  ;;  %vm573_vm2 = vweird.f32 %v541_v48 }
  0x53   : > { %4913 = vrsqrt.f32 %v5199_v52  ;;  %v5217_v62 = vadd.f32 1e-05, %v527_v59  ;;  %vm553_vm3 = vweird.f32 %v539_v49  ;;  %vm583_vm4 = vweird.f32 %v5199_v52 }
  0x54   : > { %4915 = vrsqrt.f32 %v5201_v53  ;;  %v528_v63 = vsub.f32 %v512_v60, %v520_v61  ;;  %vm563_vm5 = vweird.f32 %v5201_v53  ;;  %vm623_vm1 = vweird.f32 %v5208_v57  ;;  %v641_v60 = vld [vmem:[%s7948_s4 + $0x30] sm:$0xff]  ;;  %v748_v61 = vld [vmem:[%s7944_s0 + $0x78] sm:$0xff] }
  0x55   : > { %4917 = vrsqrt.f32 %v5208_v57  ;;  %vm593_vm6 = vweird.f32 %v5217_v62 }
  0x56   : > { %4919 = vrsqrt.f32 %v5210_v58  ;;  %v5221_v3 = vadd.f32 1e-05, %v528_v63  ;;  %v534_v63 = vld [vmem:[%s7947_s3 + $0x18] sm:$0xff] }
  0x57   : > { %v4910_v0 = vpop.eup %4909  ;;  %4921 = vrsqrt.f32 %v5217_v62 }
  0x58   : > { %v4912_v1 = vpop.eup %4911  ;;  %v568_v2 = vmul.f32 %v4910_v0, %v541_v48  ;;  %4923 = vrsqrt.f32 %v5221_v3  ;;  %vm574_vm7 = vweird.f32 %v4910_v0 }
  0x59   : > { %v5223_v4 = vpop.eup %4913  ;;  %v548_v5 = vmul.f32 %v4912_v1, %v539_v49  ;;  %vm554_vm8 = vweird.f32 %v4912_v1  ;;  %vm5248_vm9 = vmor %vm573_vm2, %vm574_vm7 }
  0x5a   : > { %v5225_v6 = vpop.eup %4915  ;;  %v569_v7 = vmul.f32 %v4910_v0, %v568_v2  ;;  %v578_v8 = vmul.f32 %v5223_v4, %v5199_v52  ;;  %vm584_vm10 = vweird.f32 %v5223_v4  ;;  %vm5261_vm11 = vmor %vm553_vm3, %vm554_vm8  ;;  %v532_v2 = vld [vmem:[%s7947_s3 + $0x8] sm:$0xff]  ;;  %vm613_vm3 = vweird.f32 %v5210_v58 }
  0x5b   : > { %v5231_v9 = vpop.eup %4917  ;;  %v549_v10 = vmul.f32 %v4912_v1, %v548_v5  ;;  %v558_v11 = vmul.f32 %v5225_v6, %v5201_v53  ;;  %vm564_vm12 = vweird.f32 %v5225_v6  ;;  %vm5280_vm14 = vmor %vm583_vm4, %vm584_vm10  ;;  %vm765_vm10 = vcmask 523264  }
  0x5c   : > { %v5237_v12 = vpop.eup %4919  ;;  %v570_v13 = vmul.f32 0.5, %v569_v7  ;;  %v579_v14 = vmul.f32 %v5223_v4, %v578_v8  ;;  %v618_v15 = vmul.f32 %v5231_v9, %v5208_v57  ;;  %vm5293_vm15 = vmor %vm563_vm5, %vm564_vm12  ;;  %vm624_vm2 = vweird.f32 %v5231_v9  ;;  %v538_v57 = vld [vmem:[%s7947_s3 + $0x38] sm:$0xff] }
  0x5d   : > { %v4922_v16 = vpop.eup %4921  ;;  %v550_v17 = vmul.f32 0.5, %v549_v10  ;;  %v559_v18 = vmul.f32 %v5225_v6, %v558_v11  ;;  %v608_v20 = vmul.f32 %v5237_v12, %v5210_v58  ;;  %vm614_vm4 = vweird.f32 %v5237_v12  ;;  %vm5338_vm7 = vmor %vm623_vm1, %vm624_vm2 }
  0x5e   : > { %v571_v22 = vsub.f32 1.5, %v570_v13  ;;  %v580_v23 = vmul.f32 0.5, %v579_v14  ;;  %v619_v24 = vmul.f32 %v5231_v9, %v618_v15  ;;  %v588_v26 = vmul.f32 %v4922_v16, %v5217_v62  ;;  %v5254_v33 = vpop.eup %4923  ;;  %v535_v62 = vld [vmem:[%s7947_s3 + $0x20] sm:$0xff]  ;;  %vm5343_vm8 = vmor %vm613_vm3, %vm614_vm4 }
  0x5f   : > { %v551_v29 = vsub.f32 1.5, %v550_v17  ;;  %v560_v30 = vmul.f32 0.5, %v559_v18  ;;  %v609_v31 = vmul.f32 %v5237_v12, %v608_v20  ;;  %vm594_vm13 = vweird.f32 %v4922_v16  ;;  %v636_v17 = vld [vmem:[%s7948_s4 + $0x8] sm:$0xff] }
  0x60   : > { %v572_v35 = vmul.f32 %v4910_v0, %v571_v22  ;;  %v581_v38 = vsub.f32 1.5, %v580_v23  ;;  %v589_v39 = vmul.f32 %v4922_v16, %v588_v26  ;;  %v620_v44 = vmul.f32 0.5, %v619_v24  ;;  %vm5300_vm0 = vmor %vm593_vm6, %vm594_vm13  ;;  %v537_v22 = vld [vmem:[%s7947_s3 + $0x30] sm:$0xff]  ;;  %v536_v23 = vld [vmem:[%s7947_s3 + $0x28] sm:$0xff] }
  0x61   : > { %v552_v41 = vmul.f32 %v4912_v1, %v551_v29  ;;  %v561_v43 = vsub.f32 1.5, %v560_v30  ;;  %v610_v47 = vmul.f32 0.5, %v609_v31  ;;  %v598_v56 = vmul.f32 %v5254_v33, %v5221_v3  ;;  %v761_v24 = vld [vmem:[%s7944_s0 + $0xe0] sm:$0xff]  ;;  %v763_v29 = vld [vmem:[%s7944_s0 + $0xf0] sm:$0xff]  ;;  %v764_v30 = vld [vmem:[%s7944_s0 + $0xf8] sm:$0xff] }
  0x62   : > { %v576_v45 = vsel %vm5248_vm9, %v4910_v0, %v572_v35  ;;  %v582_v46 = vmul.f32 %v5223_v4, %v581_v38  ;;  %v590_v48 = vmul.f32 0.5, %v589_v39  ;;  %v621_v0 = vsub.f32 1.5, %v620_v44  ;;  %798 = vmatpush.msra.mxu0 %v761_v24  ;;  %880 = vmatpush.msra.mxu2 %v763_v29  ;;  %v758_v31 = vld [vmem:[%s7944_s0 + $0xc8] sm:$0xff]  ;;  %v753_v38 = vld [vmem:[%s7944_s0 + $0xa0] sm:$0xff]  ;;  %v756_v44 = vld [vmem:[%s7944_s0 + $0xb8] sm:$0xff] }
  0x63   : > { %v5272_v49 = vmul.f32 %v576_v45, %v533_v34  ;;  %v556_v50 = vsel %vm5261_vm11, %v4912_v1, %v552_v41  ;;  %v562_v54 = vmul.f32 %v5225_v6, %v561_v43  ;;  %v611_v7 = vsub.f32 1.5, %v610_v47  ;;  %921 = vmatpush.msra.mxu3 %v764_v30  ;;  %v754_v39 = vld [vmem:[%s7944_s0 + $0xa8] sm:$0xff]  ;;  %840 = vmatpush.msra.mxu1 %v758_v31  ;;  %v755_v41 = vld [vmem:[%s7944_s0 + $0xb0] sm:$0xff]  ;;  %v642_v45 = vld [vmem:[%s7948_s4 + $0x38] sm:$0xff] }
  0x64   : > { %v5287_v59 = vmul.f32 %v556_v50, %v531_v40  ;;  %v591_v52 = vsub.f32 1.5, %v590_v48  ;;  %v586_v53 = vsel %vm5280_vm14, %v5223_v4, %v582_v46  ;;  %v599_v4 = vmul.f32 %v5254_v33, %v598_v56  ;;  %v749_v46 = vld [vmem:[%s7944_s0 + $0x80] sm:$0xff]  ;;  %v750_v47 = vld [vmem:[%s7944_s0 + $0x88] sm:$0xff]  ;;  %v751_v48 = vld [vmem:[%s7944_s0 + $0x90] sm:$0xff] }
  0x65   : > { %679 = vperm.xlu1 %4905, %v5272_v49   ;;  %v566_v5 = vsel %vm5293_vm15, %v5225_v6, %v562_v54  ;;  %vm603_vm5 = vweird.f32 %v5221_v3  ;;  %v5328_v10 = vmul.f32 %v586_v53, %v534_v63  ;;  %vm604_vm6 = vweird.f32 %v5254_v33  ;;  %922 = vmatpush.msra.mxu3 %v760_v36  ;;  %v752_v50 = vld [vmem:[%s7944_s0 + $0x98] sm:$0xff]  ;;  %v746_v56 = vld [vmem:[%s7944_s0 + $0x68] sm:$0xff]  ;;  %v741_v63 = vld [vmem:[%s7944_s0 + $0x40] sm:$0xff] }
  0x66   : > { %669 = vperm.xlu0 %4904, %v5287_v59   ;;  %v592_v1 = vmul.f32 %v4922_v16, %v591_v52  ;;  %v600_v13 = vmul.f32 0.5, %v599_v4  ;;  %v5333_v6 = vmul.f32 %v566_v5, %v532_v2  ;;  %v622_v14 = vmul.f32 %v5231_v9, %v621_v0  ;;  %vm5348_vm9 = vmor %vm603_vm5, %vm604_vm6  ;;  %841 = vmatpush.msra.mxu1 %v754_v39  ;;  %v742_v0 = vld [vmem:[%s7944_s0 + $0x48] sm:$0xff]  ;;  %v744_v2 = vld [vmem:[%s7944_s0 + $0x58] sm:$0xff] }
  0x67   : > { %v612_v15 = vmul.f32 %v5237_v12, %v611_v7  ;;  %923 = vmatpush.msra.mxu3 %v756_v44  ;;  %v737_v7 = vld [vmem:[%s7944_s0 + $0x20] sm:$0xff]  ;;  %v646_v58 = vmul.f32 %v5328_v10, %v5166_v25  ;;  %v643_v25 = vmul.f32 %v5287_v59, %v5158_v21  ;;  %v735_v21 = vld [vmem:[%s7944_s0 + $0x10] sm:$0xff]  ;;  %v736_v59 = vld [vmem:[%s7944_s0 + $0x18] sm:$0xff]  ;;  %vm1513_vm12 = vcmask 130048  }
  0x68   : > { %v596_v8 = vsel %vm5300_vm0, %v4922_v16, %v592_v1  ;;  %v601_v16 = vsub.f32 1.5, %v600_v13  ;;  %v626_v20 = vsel %vm5338_vm7, %v5231_v9, %v622_v14  ;;  %842 = vmatpush.msra.mxu1 %v750_v47  ;;  %v639_v4 = vld [vmem:[%s7948_s4 + $0x20] sm:$0xff]  ;;  %v740_v13 = vld [vmem:[%s7944_s0 + $0x38] sm:$0xff]  ;;  %v637_v14 = vld [vmem:[%s7948_s4 + $0x10] sm:$0xff]  ;;  %vm1727_vm13 = vcmask 7168  }
  0x69   : > { %v5330_v11 = vmul.f32 %v596_v8, %v535_v62  ;;  %v616_v26 = vsel %vm5343_vm8, %v5237_v12, %v612_v15  ;;  %v757_v12 = vld [vmem:[%s7944_s0 + $0xc0] sm:$0xff]  ;;  %v634_v34 = vmul.f32 %v626_v20, %v538_v57  ;;  %924 = vmatpush.msra.mxu3 %v752_v50  ;;  %v743_v62 = vld [vmem:[%s7944_s0 + $0x50] sm:$0xff]  ;;  %v738_v8 = vld [vmem:[%s7944_s0 + $0x28] sm:$0xff] }
  0x6a   : > { %v602_v18 = vmul.f32 %v5254_v33, %v601_v16  ;;  %799 = vmatpush.msra.mxu0 %v757_v12  ;;  %v633_v40 = vmul.f32 %v616_v26, %v537_v22  ;;  %843 = vmatpush.msra.mxu1 %v746_v56  ;;  %v638_v15 = vld [vmem:[%s7948_s4 + $0x18] sm:$0xff]  ;;  %v644_v16 = vmul.f32 %v5333_v6, %v5168_v27  ;;  %v733_v27 = vld [vmem:[%s7944_s0] sm:$0xff]  ;;  %v660_v24 = vld [vmem:[%s7946_s2 + $0x8] sm:$0xff] }
  0x6b   : > { %689 = vperm.xlu2 %4906, %v5330_v11   ;;  %v650_v43 = vmul.f32 %v634_v34, %v5177_v32  ;;  %925 = vmatpush.msra.mxu3 %v748_v61  ;;  %v647_v5 = vmul.f32 %v5330_v11, %v5190_v42  ;;  %v739_v42 = vld [vmem:[%s7944_s0 + $0x30] sm:$0xff]  ;;  %v645_v11 = vmul.f32 %v5272_v49, %v5156_v19  ;;  %v659_v20 = vld [vmem:[%s7946_s2] sm:$0xff]  ;;  %v662_v12 = vld [vmem:[%s7946_s2 + $0x18] sm:$0xff] }
  0x6c   : > { %v606_v9 = vsel %vm5348_vm9, %v5254_v33, %v602_v18  ;;  %v759_v33 = vld [vmem:[%s7944_s0 + $0xd0] sm:$0xff]  ;;  %800 = vmatpush.msra.mxu0 %v753_v38  ;;  %v649_v54 = vmul.f32 %v633_v40, %v5186_v37  ;;  %844 = vmatpush.msra.mxu1 %v742_v0  ;;  %v654_v3 = vsub.f32 %v638_v15, %v646_v58  ;;  %v664_v38 = vld [vmem:[%s7946_s2 + $0x28] sm:$0xff]  ;;  %v954_v15 = vld [vmem:[%s7945_s1] sm:$0xff] }
  0x6d   : > { %684 = vperm.xlu1 %4905, %v5328_v10   ;;  %v632_v35 = vmul.f32 %v606_v9, %v536_v23  ;;  %881 = vmatpush.msra.mxu2 %v759_v33  ;;  %v658_v52 = vsub.f32 %v642_v45, %v650_v43  ;;  %v747_v37 = vld [vmem:[%s7944_s0 + $0x70] sm:$0xff]  ;;  %v655_v19 = vsub.f32 %v639_v4, %v647_v5  ;;  %v635_v10 = vld [vmem:[%s7948_s4] sm:$0xff]  ;;  %v666_v45 = vld [vmem:[%s7946_s2 + $0x38] sm:$0xff] }
  0x6e   : > { %674 = vperm.xlu0 %4904, %v5333_v6   ;;  %801 = vmatpush.msra.mxu0 %v749_v46  ;;  %v657_v1 = vsub.f32 %v641_v60, %v649_v54  ;;  %v653_v49 = vsub.f32 %v637_v14, %v645_v11  ;;  %v652_v57 = vsub.f32 %v636_v17, %v644_v16  ;;  %v734_v6 = vld [vmem:[%s7944_s0 + $0x8] sm:$0xff]  ;;  %v958_v16 = vld [vmem:[%s7945_s1 + $0x20] sm:$0xff] }
  0x6f   : > { %v648_v32 = vmul.f32 %v632_v35, %v5203_v55  ;;  %882 = vmatpush.msra.mxu2 %v755_v41  ;;  %v745_v55 = vld [vmem:[%s7944_s0 + $0x60] sm:$0xff]  ;;  %926 = vmatpush.msra.mxu3 %v744_v2  ;;  %v651_v18 = vsub.f32 %v635_v10, %v643_v25  ;;  %v665_v41 = vld [vmem:[%s7946_s2 + $0x30] sm:$0xff] }
  0x70   : > { %802 = vmatpush.msra.mxu0 %v745_v55  ;;  %845 = vmatpush.msra.mxu1 %v738_v8 }
  0x71   : > { %883 = vmatpush.msra.mxu2 %v751_v48  ;;  %v656_v53 = vsub.f32 %v640_v51, %v648_v32  ;;  %927 = vmatpush.msra.mxu3 %v740_v13 }
  0x72   : > { %803 = vmatpush.msra.mxu0 %v741_v63  ;;  %846 = vmatpush.msra.mxu1 %v734_v6  ;;  %v959_v6 = vld [vmem:[%s7945_s1 + $0x28] sm:$0xff] }
  0x73   : > { %694 = vperm.xlu2 %4906, %v632_v35   ;;  %884 = vmatpush.msra.mxu2 %v747_v37 }
  0x74   : > { %804 = vmatpush.msra.mxu0 %v737_v7  ;;  %928 = vmatpush.msra.mxu3 %v736_v59  ;;  %v963_v59 = vld [vmem:[%s7945_s1 + $0x48] sm:$0xff] }
  0x75   : > { %704 = vperm.xlu1 %4905, %v634_v34   ;;  %885 = vmatpush.msra.mxu2 %v743_v62  ;;  %v663_v34 = vld [vmem:[%s7946_s2 + $0x20] sm:$0xff] }
  0x76   : > { %699 = vperm.xlu0 %4904, %v633_v40   ;;  %805 = vmatpush.msra.mxu0 %v733_v27 }
  0x77   : > { %886 = vmatpush.msra.mxu2 %v739_v42 }
  0x79   : > { %887 = vmatpush.msra.mxu2 %v735_v21  ;;  %v962_v21 = vld [vmem:[%s7945_s1 + $0x40] sm:$0xff] }
  0x7b   : > { %1055 = vperm.xlu2 %4906, %v658_v52  }
  0x7d   : > { %1045 = vperm.xlu1 %4905, %v656_v53  }
  0x7e   : > { %1050 = vperm.xlu0 %4904, %v657_v1  }
  0x83   : > { %1040 = vperm.xlu2 %4906, %v655_v19  }
  0x85   : > { %1030 = vperm.xlu1 %4905, %v653_v49  }
  0x86   : > { %1035 = vperm.xlu0 %4904, %v654_v3   ;;  %v955_v3 = vld [vmem:[%s7945_s1 + $0x8] sm:$0xff] }
  0x8b   : > { %1025 = vperm.xlu2 %4906, %v652_v57  }
  0x8e   : > { %1020 = vperm.xlu0 %4904, %v651_v18  }
  0xc5   : > { %v690_v35 = vpop.permute.xlu2 %689 }
  0xc6   : > { %v5561_v36 = vmul.f32 %v690_v35, %v663_v34  ;;  %v975_v34 = vld [vmem:[%s7945_s1 + $0xa8] sm:$0xff]  ;;  %v982_v35 = vld [vmem:[%s7945_s1 + $0xe0] sm:$0xff] }
  0xc8   : > { %7985 = vst [vmem:[#allocation7_spill] sm:$0xff] %v5561_v36 }
  0xcd   : > { %v695_v39 = vpop.permute.xlu2 %694 }
  0xce   : > { %v5574_v40 = vmul.f32 %v695_v39, %v664_v38  ;;  %v983_v38 = vld [vmem:[%s7945_s1 + $0xe8] sm:$0xff]  ;;  %v1122_v39 = vlaneseq }
  0xd0   : > { %7986 = vst [vmem:[#allocation8_spill] sm:$0xff] %v5574_v40 }
  0xd5   : > { %v5628_v4 = vpop.permute.xlu2 %1055 }
  0xd7   : > { %v680_v29 = vpop.permute.xlu1 %679 }
  0xd8   : > { %v670_v22 = vpop.permute.xlu0 %669  ;;  %v5535_v30 = vmul.f32 %v680_v29, %v661_v28  ;;  %v967_v28 = vld [vmem:[%s7945_s1 + $0x68] sm:$0xff]  ;;  %v974_v29 = vld [vmem:[%s7945_s1 + $0xa0] sm:$0xff] }
  0xd9   : > { %v5509_v23 = vmul.f32 %v670_v22, %v659_v20  ;;  %v978_v20 = vld [vmem:[%s7945_s1 + $0xc0] sm:$0xff]  ;;  %v979_v22 = vld [vmem:[%s7945_s1 + $0xc8] sm:$0xff] }
  0xda   : > { %7983 = vst [vmem:[#allocation5_spill] sm:$0xff] %v5535_v30 }
  0xdb   : > { %4365 = vmatmul.msk.f32.vlgmr.msra.gmra.mxu0 %vm765_vm10, %v5509_v23  ;;  %4373 = vmatmul.msk.f32.vlgmr.msra.gmra.mxu1 %vm765_vm10, %v5509_v23 }
  0xdc   : > { %4381 = vmatmul.msk.f32.vlgmr.msra.gmra.mxu2 %vm765_vm10, %v5509_v23  ;;  %4389 = vmatmul.msk.f32.vlgmr.msra.gmra.mxu3 %vm765_vm10, %v5509_v23 }
  0xdd   : > { %v5636_v58 = vpop.permute.xlu2 %1040 }
  0xdf   : > { %v685_v31 = vpop.permute.xlu1 %684 }
  0xe0   : > { %v675_v26 = vpop.permute.xlu0 %674  ;;  %v5548_v33 = vmul.f32 %v685_v31, %v662_v12 }
  0xe1   : > { %v5522_v9 = vmul.f32 %v675_v26, %v660_v24  ;;  %v966_v26 = vld [vmem:[%s7945_s1 + $0x60] sm:$0xff] }
  0xe2   : > { %7984 = vst [vmem:[#allocation6_spill] sm:$0xff] %v5548_v33 }
  0xe3   : > { %4366 = vmatmul.msk.f32.gmra.mxu0 %vm765_vm10, %v5522_v9  ;;  %4374 = vmatmul.msk.f32.gmra.mxu1 %vm765_vm10, %v5522_v9 }
  0xe4   : > { %4382 = vmatmul.msk.f32.gmra.mxu2 %vm765_vm10, %v5522_v9  ;;  %4390 = vmatmul.msk.f32.gmra.mxu3 %vm765_vm10, %v5522_v9 }
  0xe5   : > { %v5679_v12 = vpop.permute.xlu2 %1025 }
  0xe7   : > { %v705_v46 = vpop.permute.xlu1 %704 }
  0xe8   : > { %v700_v43 = vpop.permute.xlu0 %699  ;;  %v5600_v47 = vmul.f32 %v705_v46, %v666_v45  ;;  %v971_v45 = vld [vmem:[%s7945_s1 + $0x88] sm:$0xff] }
  0xe9   : > { %v5587_v44 = vmul.f32 %v700_v43, %v665_v41  ;;  %v970_v43 = vld [vmem:[%s7945_s1 + $0x80] sm:$0xff] }
  0xea   : > { %7988 = vst [vmem:[#allocation10_spill] sm:$0xff] %v5600_v47 }
  0xeb   : > { %4367 = vmatmul.msk.f32.gmra.mxu0 %vm765_vm10, %v5535_v30  ;;  %4375 = vmatmul.msk.f32.gmra.mxu1 %vm765_vm10, %v5535_v30  ;;  %7987 = vst [vmem:[#allocation9_spill] sm:$0xff] %v5587_v44 }
  0xec   : > { %4383 = vmatmul.msk.f32.gmra.mxu2 %vm765_vm10, %v5535_v30  ;;  %4391 = vmatmul.msk.f32.gmra.mxu3 %vm765_vm10, %v5535_v30 }
  0xef   : > { %v5651_v10 = vpop.permute.xlu1 %1045 }
  0xf0   : > { %v5626_v7 = vpop.permute.xlu0 %1050 }
  0xf3   : > { %4368 = vmatmul.msk.f32.gmra.mxu0 %vm765_vm10, %v5548_v33  ;;  %4376 = vmatmul.msk.f32.gmra.mxu1 %vm765_vm10, %v5548_v33 }
  0xf4   : > { %4384 = vmatmul.msk.f32.gmra.mxu2 %vm765_vm10, %v5548_v33  ;;  %4392 = vmatmul.msk.f32.gmra.mxu3 %vm765_vm10, %v5548_v33 }
  0xf8   : > { %v5634_v14 = vpop.permute.xlu0 %1035 }
  0xfb   : > { %4369 = vmatmul.msk.f32.gmra.mxu0 %vm765_vm10, %v5561_v36  ;;  %4377 = vmatmul.msk.f32.gmra.mxu1 %vm765_vm10, %v5561_v36 }
  0xfc   : > { %4385 = vmatmul.msk.f32.gmra.mxu2 %vm765_vm10, %v5561_v36  ;;  %4393 = vmatmul.msk.f32.gmra.mxu3 %vm765_vm10, %v5561_v36 }
 0x100   : > { %v5668_v24 = vpop.permute.xlu0 %1020 }
 0x103   : > { %4370 = vmatmul.msk.f32.gmra.mxu0 %vm765_vm10, %v5574_v40  ;;  %4378 = vmatmul.msk.f32.gmra.mxu1 %vm765_vm10, %v5574_v40 }
 0x104   : > { %4386 = vmatmul.msk.f32.gmra.mxu2 %vm765_vm10, %v5574_v40  ;;  %4394 = vmatmul.msk.f32.gmra.mxu3 %vm765_vm10, %v5574_v40 }
 0x10b   : > { %4371 = vmatmul.msk.f32.gmra.mxu0 %vm765_vm10, %v5587_v44  ;;  %4379 = vmatmul.msk.f32.gmra.mxu1 %vm765_vm10, %v5587_v44 }
 0x10c   : > { %4387 = vmatmul.msk.f32.gmra.mxu2 %vm765_vm10, %v5587_v44  ;;  %4395 = vmatmul.msk.f32.gmra.mxu3 %vm765_vm10, %v5587_v44 }
 0x113   : > { %4372 = vmatmul.msk.f32.gmra.mxu0 %vm765_vm10, %v5600_v47  ;;  %4380 = vmatmul.msk.f32.gmra.mxu1 %vm765_vm10, %v5600_v47 }
 0x114   : > { %4388 = vmatmul.msk.f32.gmra.mxu2 %vm765_vm10, %v5600_v47  ;;  %4396 = vmatmul.msk.f32.gmra.mxu3 %vm765_vm10, %v5600_v47 }
 0x158   : > { %v807_v32 = vpop.f32.mrf.mxu0  ;;  %v848_v48 = vpop.f32.mrf.mxu1 }
 0x159   : > { %v986_v57 = vadd.f32 %v954_v15, %v807_v32  ;;  %v987_v18 = vadd.f32 %v955_v3, %v848_v48 }
 0x15b   : > { %v5691_v41 = vadd.f32 %v5668_v24, %v986_v57  ;;  %v5703_v15 = vadd.f32 %v5668_v24, %v987_v18 }
 0x15f   : > { %v5610_v50 = vpop.f32.mrf.mxu2  ;;  %v5612_v51 = vpop.f32.mrf.mxu3 }
 0x160   : > { %v810_v54 = vpop.f32.mrf.mxu0  ;;  %v851_v55 = vpop.f32.mrf.mxu1 }
 0x161   : > { %v990_v27 = vadd.f32 %v958_v16, %v810_v54  ;;  %v991_v31 = vadd.f32 %v959_v6, %v851_v55 }
 0x163   : > { %v5700_v55 = vadd.f32 %v5679_v12, %v990_v27  ;;  %v5708_v27 = vpop.permute.xlu1 %1030 }
 0x167   : > { %v5614_v56 = vpop.f32.mrf.mxu2  ;;  %v5616_v60 = vpop.f32.mrf.mxu3 }
 0x168   : > { %v813_v52 = vpop.f32.mrf.mxu0  ;;  %v854_v37 = vpop.f32.mrf.mxu1 }
 0x169   : > { %v994_v3 = vadd.f32 %v962_v21, %v813_v52  ;;  %v995_v16 = vadd.f32 %v963_v59, %v854_v37  ;;  %v968_v52 = vld [vmem:[%s7945_s1 + $0x70] sm:$0xff]  ;;  %v985_v59 = vld [vmem:[%s7945_s1 + $0xf8] sm:$0xff] }
 0x16a   : > { %v980_v37 = vld [vmem:[%s7945_s1 + $0xd0] sm:$0xff] }
 0x16b   : > { %v5733_v18 = vadd.f32 %v5708_v27, %v994_v3  ;;  %v984_v21 = vld [vmem:[%s7945_s1 + $0xf0] sm:$0xff] }
 0x16f   : > { %v5618_v61 = vpop.f32.mrf.mxu2  ;;  %v5620_v63 = vpop.f32.mrf.mxu3 }
 0x170   : > { %v816_v53 = vpop.f32.mrf.mxu0  ;;  %v857_v0 = vpop.f32.mrf.mxu1 }
 0x171   : > { %v998_v57 = vadd.f32 %v966_v26, %v816_v53  ;;  %v999_v6 = vadd.f32 %v967_v28, %v857_v0 }
 0x177   : > { %v5622_v62 = vpop.f32.mrf.mxu2  ;;  %v5624_v1 = vpop.f32.mrf.mxu3 }
 0x178   : > { %v819_v2 = vpop.f32.mrf.mxu0  ;;  %v860_v5 = vpop.f32.mrf.mxu1 }
 0x17f   : > { %v5630_v8 = vpop.f32.mrf.mxu2  ;;  %v5632_v42 = vpop.f32.mrf.mxu3 }
 0x180   : > { %v822_v11 = vpop.f32.mrf.mxu0  ;;  %v863_v13 = vpop.f32.mrf.mxu1 }
 0x181   : > { %v1006_v40 = vadd.f32 %v974_v29, %v822_v11  ;;  %v1007_v36 = vadd.f32 %v975_v34, %v863_v13  ;;  %v5727_v11 = vadd.f32 %v5634_v14, %v998_v57  ;;  %v5730_v13 = vadd.f32 %v5634_v14, %v999_v6 }
 0x182   : > { %v5750_v34 = vadd.f32 %v968_v52, %v5622_v62 }
 0x183   : > { %v1078_v29 = vadd.f32 %v5651_v10, %v1006_v40 }
 0x187   : > { %v5641_v19 = vpop.f32.mrf.mxu2  ;;  %v5643_v49 = vpop.f32.mrf.mxu3 }
 0x188   : > { %v825_v17 = vpop.f32.mrf.mxu0  ;;  %v866_v25 = vpop.f32.mrf.mxu1 }
 0x189   : > { %v1010_v46 = vadd.f32 %v978_v20, %v825_v17  ;;  %v1011_v32 = vadd.f32 %v979_v22, %v866_v25  ;;  %v1002_v17 = vadd.f32 %v970_v43, %v819_v2  ;;  %v1003_v25 = vadd.f32 %v971_v45, %v860_v5  ;;  %v976_v5 = vld [vmem:[%s7945_s1 + $0xb0] sm:$0xff] }
 0x18a   : > { %v1123_v20 = vand.u32 127, %v1122_v39  ;;  %v5706_v22 = vadd.f32 %v5679_v12, %v991_v31  ;;  %v1079_v31 = vadd.f32 %v5651_v10, %v1007_v36  ;;  %v1008_v57 = vadd.f32 %v976_v5, %v5641_v19  ;;  %v965_v19 = vld [vmem:[%s7945_s1 + $0x58] sm:$0xff] }
 0x18b   : > { %v1082_v0 = vadd.f32 %v5626_v7, %v1010_v46  ;;  %v1083_v2 = vadd.f32 %v5626_v7, %v1011_v32  ;;  %v1074_v45 = vadd.f32 %v5636_v58, %v1002_v17  ;;  %v1075_v62 = vadd.f32 %v5636_v58, %v1003_v25  ;;  %v961_v5 = vld [vmem:[%s7945_s1 + $0x38] sm:$0xff] }
 0x18c   : > { %v5760_v3 = vadd.s32 384, %v1123_v20  ;;  %v1111_v25 = vmax.f32 %v1079_v31, 0.0  ;;  %v964_v20 = vld [vmem:[%s7945_s1 + $0x50] sm:$0xff]  ;;  %v1103_v31 = vmax.f32 %v5730_v13, 0.0 }
 0x18d   : > { %v1114_v36 = vmax.f32 %v1082_v0, 0.0  ;;  %v1115_v40 = vmax.f32 %v1083_v2, 0.0  ;;  %v1107_v0 = vmax.f32 %v1075_v62, 0.0  ;;  %v960_v2 = vld [vmem:[%s7945_s1 + $0x30] sm:$0xff]  ;;  %v1072_v62 = vadd.f32 %v5634_v14, %v5750_v34 }
 0x18e   : > { %vm1136_vm11 = vcmp.lt.s32.totalorder %v5760_v3, 400  ;;  %v992_v13 = vadd.f32 %v960_v2, %v5614_v56  ;;  %v4505_v2 = vld [vmem:[%s7944_s0 + $0x1e0] sm:$0xff]  ;;  %v1759_v3 = vld [vmem:[#allocation4 + $0x68] sm:$0xff] }
 0x18f   : > { %v907_v48 = vpop.f32.mrf.mxu2  ;;  %v948_v54 = vpop.f32.mrf.mxu3 }
 0x190   : > { %v828_v47 = vpop.f32.mrf.mxu0  ;;  %v869_v44 = vpop.f32.mrf.mxu1  ;;  %v1012_v39 = vadd.f32 %v980_v37, %v907_v48  ;;  %v1110_v37 = vmax.f32 %v1078_v29, 0.0  ;;  %v1102_v29 = vmax.f32 %v5727_v11, 0.0 }
 0x191   : > { %v1014_v33 = vadd.f32 %v982_v35, %v828_v47  ;;  %v1015_v30 = vadd.f32 %v983_v38, %v869_v44  ;;  %v981_v44 = vld [vmem:[%s7945_s1 + $0xd8] sm:$0xff]  ;;  %v972_v35 = vld [vmem:[%s7945_s1 + $0x90] sm:$0xff] }
 0x192   : > { %v973_v38 = vld [vmem:[%s7945_s1 + $0x98] sm:$0xff]  ;;  %v1013_v43 = vadd.f32 %v981_v44, %v948_v54  ;;  %v1004_v17 = vadd.f32 %v972_v35, %v5630_v8  ;;  %v956_v35 = vld [vmem:[%s7945_s1 + $0x10] sm:$0xff] }
 0x193   : > { %v1086_v47 = vadd.f32 %v5628_v4, %v1014_v33  ;;  %v1087_v53 = vadd.f32 %v5628_v4, %v1015_v30  ;;  %v5736_v33 = vadd.f32 %v5708_v27, %v995_v16  ;;  %v977_v30 = vld [vmem:[%s7945_s1 + $0xb8] sm:$0xff]  ;;  %v1005_v52 = vadd.f32 %v973_v38, %v5632_v42 }
 0x194   : > { %v969_v16 = vld [vmem:[%s7945_s1 + $0x78] sm:$0xff]  ;;  %v1009_v48 = vadd.f32 %v977_v30, %v5643_v49  ;;  %v1085_v49 = vadd.f32 %v5626_v7, %v1013_v43  ;;  %v1084_v42 = vadd.f32 %v5626_v7, %v1012_v39  ;;  %v1076_v11 = vadd.f32 %v5636_v58, %v1004_v17 }
 0x195   : > { %v1118_v26 = vmax.f32 %v1086_v47, 0.0  ;;  %v1119_v28 = vmax.f32 %v1087_v53, 0.0  ;;  %v1001_v47 = vadd.f32 %v969_v16, %v5624_v1  ;;  %v1106_v53 = vmax.f32 %v1074_v45, 0.0  ;;  %v957_v38 = vld [vmem:[%s7945_s1 + $0x18] sm:$0xff] }
 0x196   : > { %v1081_v30 = vadd.f32 %v5651_v10, %v1009_v48  ;;  %v1080_v1 = vadd.f32 %v5651_v10, %v1008_v57  ;;  %v1077_v39 = vadd.f32 %v5636_v58, %v1005_v52  ;;  %v993_v43 = vadd.f32 %v961_v5, %v5616_v60  ;;  %v4506_v5 = vld [vmem:[%s7944_s0 + $0x1e8] sm:$0xff] }
 0x197   : > { %v910_v46 = vpop.f32.mrf.mxu2  ;;  %v951_v32 = vpop.f32.mrf.mxu3  ;;  %1231 = vmatpush.msrb.mxu0 %v1118_v26  ;;  %1302 = vmatpush.msrb.mxu1 %v1119_v28  ;;  %v996_v26 = vadd.f32 %v964_v20, %v5618_v61  ;;  %v997_v28 = vadd.f32 %v965_v19, %v5620_v63  ;;  %v1116_v61 = vmax.f32 %v1084_v42, 0.0  ;;  %v1117_v63 = vmax.f32 %v1085_v49, 0.0  ;;  %v718_v42 = vld [vmem:[%s7951_s7 + $0x18] sm:$0xff] }
 0x198   : > { %v1016_v54 = vadd.f32 %v984_v21, %v910_v46  ;;  %v1017_v6 = vadd.f32 %v985_v59, %v951_v32  ;;  %v1098_v45 = vmax.f32 %v5733_v18, 0.0  ;;  %v1099_v46 = vmax.f32 %v5736_v33, 0.0 }
 0x199   : > { %1232 = vmatpush.msrb.mxu0 %v1114_v36  ;;  %1303 = vmatpush.msrb.mxu1 %v1115_v40  ;;  %v1073_v32 = vadd.f32 %v5634_v14, %v1001_v47  ;;  %v1112_v36 = vmax.f32 %v1080_v1, 0.0  ;;  %v1113_v40 = vmax.f32 %v1081_v30, 0.0  ;;  %v988_v56 = vadd.f32 %v956_v35, %v5610_v50  ;;  %v4507_v47 = vld [vmem:[%s7944_s0 + $0x1f0] sm:$0xff]  ;;  %v720_v30 = vld [vmem:[%s7951_s7 + $0x28] sm:$0xff]  ;;  %v4500_v35 = vld [vmem:[%s7944_s0 + $0x1b8] sm:$0xff] }
 0x19a   : > { %v1089_v44 = vadd.f32 %v5628_v4, %v1017_v6  ;;  %v1088_v8 = vadd.f32 %v5628_v4, %v1016_v54  ;;  %v989_v60 = vadd.f32 %v957_v38, %v5612_v51  ;;  %v1094_v18 = vmax.f32 %v5700_v55, 0.0  ;;  %v715_v6 = vld [vmem:[%s7951_s7] sm:$0xff]  ;;  %v721_v1 = vld [vmem:[%s7951_s7 + $0x30] sm:$0xff] }
 0x19b   : > { %1233 = vmatpush.msrb.mxu0 %v1110_v37  ;;  %1304 = vmatpush.msrb.mxu1 %v1111_v25  ;;  %v1095_v33 = vmax.f32 %v5706_v22, 0.0  ;;  %v1069_v16 = vadd.f32 %v5708_v27, %v997_v28  ;;  %v1108_v57 = vmax.f32 %v1076_v11, 0.0  ;;  %v1109_v48 = vmax.f32 %v1077_v39, 0.0  ;;  %v4502_v28 = vld [vmem:[%s7944_s0 + $0x1c8] sm:$0xff]  ;;  %v723_v38 = vld [vmem:[%s7951_s7 + $0x40] sm:$0xff]  ;;  %v4495_v11 = vld [vmem:[%s7944_s0 + $0x190] sm:$0xff] }
 0x19c   : > { %v1120_v21 = vmax.f32 %v1088_v8, 0.0  ;;  %v1121_v59 = vmax.f32 %v1089_v44, 0.0  ;;  %v1068_v34 = vadd.f32 %v5708_v27, %v996_v26  ;;  %v1090_v50 = vmax.f32 %v5691_v41, 0.0  ;;  %v716_v44 = vld [vmem:[%s7951_s7 + $0x8] sm:$0xff]  ;;  %v717_v8 = vld [vmem:[%s7951_s7 + $0x10] sm:$0xff]  ;;  %v4501_v26 = vld [vmem:[%s7944_s0 + $0x1c0] sm:$0xff] }
 0x19d   : > { %1234 = vmatpush.msrb.mxu0 %v1106_v53  ;;  %1305 = vmatpush.msrb.mxu1 %v1107_v0  ;;  %v1091_v51 = vmax.f32 %v5703_v15, 0.0  ;;  %v1065_v55 = vadd.f32 %v5679_v12, %v993_v43  ;;  %v1104_v22 = vmax.f32 %v1072_v62, 0.0  ;;  %v1105_v54 = vmax.f32 %v1073_v32, 0.0  ;;  %v4508_v53 = vld [vmem:[%s7944_s0 + $0x1f8] sm:$0xff]  ;;  %v719_v0 = vld [vmem:[%s7951_s7 + $0x20] sm:$0xff]  ;;  %v4494_v32 = vld [vmem:[%s7944_s0 + $0x188] sm:$0xff] }
 0x19e   : > { %1373 = vmatpush.msrb.mxu2 %v1120_v21  ;;  %4451 = vmatpush.msk.msrb.mxu3 %vm1136_vm11, %v1121_v59  ;;  %v1064_v17 = vadd.f32 %v5679_v12, %v992_v13  ;;  %v1061_v41 = vadd.f32 %v5668_v24, %v989_v60  ;;  %v1100_v15 = vmax.f32 %v1068_v34, 0.0  ;;  %v1101_v52 = vmax.f32 %v1069_v16, 0.0  ;;  %v4503_v21 = vld [vmem:[%s7944_s0 + $0x1d0] sm:$0xff]  ;;  %v4504_v59 = vld [vmem:[%s7944_s0 + $0x1d8] sm:$0xff]  ;;  %v4497_v39 = vld [vmem:[%s7944_s0 + $0x1a0] sm:$0xff] }
 0x19f   : > { %1235 = vmatpush.msrb.mxu0 %v1102_v29  ;;  %1306 = vmatpush.msrb.mxu1 %v1103_v31  ;;  %v1060_v37 = vadd.f32 %v5668_v24, %v988_v56  ;;  %v1097_v20 = vmax.f32 %v1065_v55, 0.0  ;;  %v722_v29 = vld [vmem:[%s7951_s7 + $0x38] sm:$0xff]  ;;  %v4499_v31 = vld [vmem:[%s7944_s0 + $0x1b0] sm:$0xff]  ;;  %v728_v56 = vld [vmem:[%s7951_s7 + $0x68] sm:$0xff] }
 0x1a0   : > { %1374 = vmatpush.msrb.mxu2 %v1116_v61  ;;  %4452 = vmatpush.msk.msrb.mxu3 %vm1136_vm11, %v1117_v63  ;;  %v1096_v25 = vmax.f32 %v1064_v17, 0.0  ;;  %v1093_v49 = vmax.f32 %v1061_v41, 0.0  ;;  %v4498_v61 = vld [vmem:[%s7944_s0 + $0x1a8] sm:$0xff]  ;;  %v725_v13 = vld [vmem:[%s7951_s7 + $0x50] sm:$0xff]  ;;  %v4496_v43 = vld [vmem:[%s7944_s0 + $0x198] sm:$0xff] }
 0x1a1   : > { %1236 = vmatpush.msrb.mxu0 %v1098_v45  ;;  %1307 = vmatpush.msrb.mxu1 %v1099_v46  ;;  %v1092_v19 = vmax.f32 %v1060_v37, 0.0  ;;  %v724_v63 = vld [vmem:[%s7951_s7 + $0x48] sm:$0xff]  ;;  %v726_v45 = vld [vmem:[%s7951_s7 + $0x58] sm:$0xff]  ;;  %v4493_v46 = vld [vmem:[%s7944_s0 + $0x180] sm:$0xff] }
 0x1a2   : > { %1375 = vmatpush.msrb.mxu2 %v1112_v36  ;;  %4453 = vmatpush.msk.msrb.mxu3 %vm1136_vm11, %v1113_v40  ;;  %v727_v36 = vld [vmem:[%s7951_s7 + $0x60] sm:$0xff]  ;;  %v4491_v40 = vld [vmem:[%s7944_s0 + $0x170] sm:$0xff]  ;;  %v4492_v62 = vld [vmem:[%s7944_s0 + $0x178] sm:$0xff] }
 0x1a3   : > { %1237 = vmatpush.msrb.mxu0 %v1094_v18  ;;  %1308 = vmatpush.msrb.mxu1 %v1095_v33  ;;  %v4489_v60 = vld [vmem:[%s7944_s0 + $0x160] sm:$0xff]  ;;  %v4490_v18 = vld [vmem:[%s7944_s0 + $0x168] sm:$0xff]  ;;  %v729_v34 = vld [vmem:[%s7951_s7 + $0x70] sm:$0xff] }
 0x1a4   : > { %1376 = vmatpush.msrb.mxu2 %v1108_v57  ;;  %4454 = vmatpush.msk.msrb.mxu3 %vm1136_vm11, %v1109_v48  ;;  %v4485_v33 = vld [vmem:[%s7944_s0 + $0x140] sm:$0xff]  ;;  %v4486_v16 = vld [vmem:[%s7944_s0 + $0x148] sm:$0xff]  ;;  %v4487_v55 = vld [vmem:[%s7944_s0 + $0x150] sm:$0xff] }
 0x1a5   : > { %1238 = vmatpush.msrb.mxu0 %v1090_v50  ;;  %1309 = vmatpush.msrb.mxu1 %v1091_v51  ;;  %v4481_v57 = vld [vmem:[%s7944_s0 + $0x120] sm:$0xff]  ;;  %v4482_v48 = vld [vmem:[%s7944_s0 + $0x128] sm:$0xff]  ;;  %v730_v17 = vld [vmem:[%s7951_s7 + $0x78] sm:$0xff] }
 0x1a6   : > { %1377 = vmatpush.msrb.mxu2 %v1104_v22  ;;  %4455 = vmatpush.msk.msrb.mxu3 %vm1136_vm11, %v1105_v54  ;;  %v4477_v50 = vld [vmem:[%s7944_s0 + $0x100] sm:$0xff]  ;;  %v4478_v51 = vld [vmem:[%s7944_s0 + $0x108] sm:$0xff]  ;;  %v4488_v22 = vld [vmem:[%s7944_s0 + $0x158] sm:$0xff] }
 0x1a7   : > { %4397 = vmatmul.msk.f32.vlgmr.msrb.gmra.mxu0 %vm765_vm10, %v715_v6  ;;  %4415 = vmatmul.msk.f32.vlgmr.msrb.gmra.mxu1 %vm765_vm10, %v715_v6  ;;  %v4483_v54 = vld [vmem:[%s7944_s0 + $0x130] sm:$0xff] }
 0x1a8   : > { %1378 = vmatpush.msrb.mxu2 %v1100_v15  ;;  %4456 = vmatpush.msk.msrb.mxu3 %vm1136_vm11, %v1101_v52  ;;  %v4479_v41 = vld [vmem:[%s7944_s0 + $0x110] sm:$0xff]  ;;  %v4480_v15 = vld [vmem:[%s7944_s0 + $0x118] sm:$0xff] }
 0x1a9   : > { %2021 = vmatpush.msra.mxu0 %v4505_v2  ;;  %2062 = vmatpush.msra.mxu1 %v4506_v5 }
 0x1aa   : > { %1379 = vmatpush.msrb.mxu2 %v1096_v25  ;;  %4457 = vmatpush.msk.msrb.mxu3 %vm1136_vm11, %v1097_v20  ;;  %v731_v25 = vld [vmem:[%s7951_s7 + $0x80] sm:$0xff] }
 0x1ab   : > { %2022 = vmatpush.msra.mxu0 %v4501_v26  ;;  %2063 = vmatpush.msra.mxu1 %v4502_v28 }
 0x1ac   : > { %1380 = vmatpush.msrb.mxu2 %v1092_v19  ;;  %4458 = vmatpush.msk.msrb.mxu3 %vm1136_vm11, %v1093_v49 }
 0x1ad   : > { %4433 = vmatmul.msk.f32.vlgmr.msrb.gmra.mxu2 %vm765_vm10, %v715_v6  ;;  %4459 = vmatmul.msk.f32.vlgmr.msrb.gmra.mxu3 %vm765_vm10, %v715_v6  ;;  %v4484_v6 = vld [vmem:[%s7944_s0 + $0x138] sm:$0xff] }
 0x1ae   : > { %2103 = vmatpush.msra.mxu2 %v4507_v47  ;;  %2144 = vmatpush.msra.mxu3 %v4508_v53 }
 0x1af   : > { %4398 = vmatmul.msk.f32.gmra.mxu0 %vm765_vm10, %v716_v44  ;;  %4416 = vmatmul.msk.f32.gmra.mxu1 %vm765_vm10, %v716_v44 }
 0x1b0   : > { %2104 = vmatpush.msra.mxu2 %v4503_v21  ;;  %2145 = vmatpush.msra.mxu3 %v4504_v59 }
 0x1b1   : > { %2023 = vmatpush.msra.mxu0 %v4497_v39  ;;  %2064 = vmatpush.msra.mxu1 %v4498_v61 }
 0x1b2   : > { %2105 = vmatpush.msra.mxu2 %v4499_v31  ;;  %2146 = vmatpush.msra.mxu3 %v4500_v35 }
 0x1b3   : > { %2024 = vmatpush.msra.mxu0 %v4493_v46  ;;  %2065 = vmatpush.msra.mxu1 %v4494_v32 }
 0x1b4   : > { %2106 = vmatpush.msra.mxu2 %v4495_v11  ;;  %2147 = vmatpush.msra.mxu3 %v4496_v43 }
 0x1b5   : > { %4434 = vmatmul.msk.f32.gmra.mxu2 %vm765_vm10, %v716_v44  ;;  %4460 = vmatmul.msk.f32.gmra.mxu3 %vm765_vm10, %v716_v44 }
 0x1b6   : > { %2107 = vmatpush.msra.mxu2 %v4491_v40  ;;  %2148 = vmatpush.msra.mxu3 %v4492_v62 }
 0x1b7   : > { %4399 = vmatmul.msk.f32.gmra.mxu0 %vm765_vm10, %v717_v8  ;;  %4417 = vmatmul.msk.f32.gmra.mxu1 %vm765_vm10, %v717_v8 }
 0x1b8   : > { %2025 = vmatpush.msra.mxu0 %v4489_v60  ;;  %2066 = vmatpush.msra.mxu1 %v4490_v18 }
 0x1b9   : > { %2108 = vmatpush.msra.mxu2 %v4487_v55  ;;  %2149 = vmatpush.msra.mxu3 %v4488_v22 }
 0x1ba   : > { %2026 = vmatpush.msra.mxu0 %v4485_v33  ;;  %2067 = vmatpush.msra.mxu1 %v4486_v16 }
 0x1bb   : > { %2109 = vmatpush.msra.mxu2 %v4483_v54  ;;  %2150 = vmatpush.msra.mxu3 %v4484_v6 }
 0x1bc   : > { %2027 = vmatpush.msra.mxu0 %v4481_v57  ;;  %2068 = vmatpush.msra.mxu1 %v4482_v48 }
 0x1bd   : > { %4435 = vmatmul.msk.f32.gmra.mxu2 %vm765_vm10, %v717_v8  ;;  %4461 = vmatmul.msk.f32.gmra.mxu3 %vm765_vm10, %v717_v8  ;;  %v732_v8 = vld [vmem:[%s7951_s7 + $0x88] sm:$0xff] }
 0x1be   : > { %2028 = vmatpush.msra.mxu0 %v4477_v50  ;;  %2069 = vmatpush.msra.mxu1 %v4478_v51 }
 0x1bf   : > { %4400 = vmatmul.msk.f32.gmra.mxu0 %vm765_vm10, %v718_v42  ;;  %4418 = vmatmul.msk.f32.gmra.mxu1 %vm765_vm10, %v718_v42 }
 0x1c0   : > { %2110 = vmatpush.msra.mxu2 %v4479_v41  ;;  %2151 = vmatpush.msra.mxu3 %v4480_v15 }
 0x1c5   : > { %4436 = vmatmul.msk.f32.gmra.mxu2 %vm765_vm10, %v718_v42  ;;  %4462 = vmatmul.msk.f32.gmra.mxu3 %vm765_vm10, %v718_v42 }
 0x1c7   : > { %4401 = vmatmul.msk.f32.gmra.mxu0 %vm765_vm10, %v719_v0  ;;  %4419 = vmatmul.msk.f32.gmra.mxu1 %vm765_vm10, %v719_v0 }
 0x1cd   : > { %4437 = vmatmul.msk.f32.gmra.mxu2 %vm765_vm10, %v719_v0  ;;  %4463 = vmatmul.msk.f32.gmra.mxu3 %vm765_vm10, %v719_v0 }
 0x1cf   : > { %4402 = vmatmul.msk.f32.gmra.mxu0 %vm765_vm10, %v720_v30  ;;  %4420 = vmatmul.msk.f32.gmra.mxu1 %vm765_vm10, %v720_v30 }
 0x1d5   : > { %4438 = vmatmul.msk.f32.gmra.mxu2 %vm765_vm10, %v720_v30  ;;  %4464 = vmatmul.msk.f32.gmra.mxu3 %vm765_vm10, %v720_v30 }
 0x1d7   : > { %4403 = vmatmul.msk.f32.gmra.mxu0 %vm765_vm10, %v721_v1  ;;  %4421 = vmatmul.msk.f32.gmra.mxu1 %vm765_vm10, %v721_v1 }
 0x1dd   : > { %4439 = vmatmul.msk.f32.gmra.mxu2 %vm765_vm10, %v721_v1  ;;  %4465 = vmatmul.msk.f32.gmra.mxu3 %vm765_vm10, %v721_v1 }
 0x1df   : > { %4404 = vmatmul.msk.f32.gmra.mxu0 %vm765_vm10, %v722_v29  ;;  %4422 = vmatmul.msk.f32.gmra.mxu1 %vm765_vm10, %v722_v29 }
 0x1e5   : > { %4440 = vmatmul.msk.f32.gmra.mxu2 %vm765_vm10, %v722_v29  ;;  %4466 = vmatmul.msk.f32.gmra.mxu3 %vm765_vm10, %v722_v29 }
 0x1e7   : > { %4405 = vmatmul.msk.f32.gmra.mxu0 %vm765_vm10, %v723_v38  ;;  %4423 = vmatmul.msk.f32.gmra.mxu1 %vm765_vm10, %v723_v38 }
 0x1ed   : > { %4441 = vmatmul.msk.f32.gmra.mxu2 %vm765_vm10, %v723_v38  ;;  %4467 = vmatmul.msk.f32.gmra.mxu3 %vm765_vm10, %v723_v38 }
 0x1ef   : > { %4406 = vmatmul.msk.f32.gmra.mxu0 %vm765_vm10, %v724_v63  ;;  %4424 = vmatmul.msk.f32.gmra.mxu1 %vm765_vm10, %v724_v63 }
 0x1f5   : > { %4442 = vmatmul.msk.f32.gmra.mxu2 %vm765_vm10, %v724_v63  ;;  %4468 = vmatmul.msk.f32.gmra.mxu3 %vm765_vm10, %v724_v63 }
 0x1f7   : > { %4407 = vmatmul.msk.f32.gmra.mxu0 %vm765_vm10, %v725_v13  ;;  %4425 = vmatmul.msk.f32.gmra.mxu1 %vm765_vm10, %v725_v13 }
 0x1fd   : > { %4443 = vmatmul.msk.f32.gmra.mxu2 %vm765_vm10, %v725_v13  ;;  %4469 = vmatmul.msk.f32.gmra.mxu3 %vm765_vm10, %v725_v13 }
 0x1ff   : > { %4408 = vmatmul.msk.f32.gmra.mxu0 %vm765_vm10, %v726_v45  ;;  %4426 = vmatmul.msk.f32.gmra.mxu1 %vm765_vm10, %v726_v45 }
 0x205   : > { %4444 = vmatmul.msk.f32.gmra.mxu2 %vm765_vm10, %v726_v45  ;;  %4470 = vmatmul.msk.f32.gmra.mxu3 %vm765_vm10, %v726_v45 }
 0x207   : > { %4409 = vmatmul.msk.f32.gmra.mxu0 %vm765_vm10, %v727_v36  ;;  %4427 = vmatmul.msk.f32.gmra.mxu1 %vm765_vm10, %v727_v36 }
 0x20d   : > { %4445 = vmatmul.msk.f32.gmra.mxu2 %vm765_vm10, %v727_v36  ;;  %4471 = vmatmul.msk.f32.gmra.mxu3 %vm765_vm10, %v727_v36 }
 0x20f   : > { %4410 = vmatmul.msk.f32.gmra.mxu0 %vm765_vm10, %v728_v56  ;;  %4428 = vmatmul.msk.f32.gmra.mxu1 %vm765_vm10, %v728_v56 }
 0x215   : > { %4446 = vmatmul.msk.f32.gmra.mxu2 %vm765_vm10, %v728_v56  ;;  %4472 = vmatmul.msk.f32.gmra.mxu3 %vm765_vm10, %v728_v56 }
 0x217   : > { %4411 = vmatmul.msk.f32.gmra.mxu0 %vm765_vm10, %v729_v34  ;;  %4429 = vmatmul.msk.f32.gmra.mxu1 %vm765_vm10, %v729_v34 }
 0x21d   : > { %4447 = vmatmul.msk.f32.gmra.mxu2 %vm765_vm10, %v729_v34  ;;  %4473 = vmatmul.msk.f32.gmra.mxu3 %vm765_vm10, %v729_v34 }
 0x21f   : > { %4412 = vmatmul.msk.f32.gmra.mxu0 %vm765_vm10, %v730_v17  ;;  %4430 = vmatmul.msk.f32.gmra.mxu1 %vm765_vm10, %v730_v17 }
 0x224   : > { %v1240_v52 = vpop.f32.mrf.mxu0  ;;  %v1311_v37 = vpop.f32.mrf.mxu1 }
 0x225   : > { %1510 = vst [vmem:[#allocation2] sm:$0xff] %v1240_v52  ;;  %4448 = vmatmul.msk.f32.gmra.mxu2 %vm765_vm10, %v730_v17  ;;  %4474 = vmatmul.msk.f32.gmra.mxu3 %vm765_vm10, %v730_v17  ;;  %v1764_v20 = vmul.f32 %v1240_v52, %v1240_v52  ;;  %v1765_v19 = vmul.f32 %v1311_v37, %v1311_v37 }
 0x226   : > { %1511 = vst [vmem:[#allocation2 + $0x8] sm:$0xff] %v1311_v37  ;;  %v1601_v42 = vadd.f32 %v1311_v37, %v1240_v52 }
 0x227   : > { %4413 = vmatmul.msk.f32.gmra.mxu0 %vm765_vm10, %v731_v25  ;;  %4431 = vmatmul.msk.f32.gmra.mxu1 %vm765_vm10, %v731_v25  ;;  %v1836_v47 = vadd.f32 %v1765_v19, %v1764_v20  ;;  %v7989_v20 = vld [vmem:[#allocation5_spill] sm:$0xff] }
 0x22c   : > { %v1243_v49 = vpop.f32.mrf.mxu0  ;;  %v1314_v44 = vpop.f32.mrf.mxu1 }
 0x22d   : > { %1515 = vst [vmem:[#allocation2 + $0x20] sm:$0xff] %v1243_v49  ;;  %4449 = vmatmul.msk.f32.gmra.mxu2 %vm765_vm10, %v731_v25  ;;  %4475 = vmatmul.msk.f32.gmra.mxu3 %vm765_vm10, %v731_v25  ;;  %v1768_v59 = vmul.f32 %v1243_v49, %v1243_v49  ;;  %v1769_v1 = vmul.f32 %v1314_v44, %v1314_v44 }
 0x22e   : > { %1516 = vst [vmem:[#allocation2 + $0x28] sm:$0xff] %v1314_v44  ;;  %v1607_v39 = vadd.f32 %v1314_v44, %v1243_v49 }
 0x22f   : > { %4414 = vmatmul.msk.f32.gmra.mxu0 %vm765_vm10, %v732_v8  ;;  %4432 = vmatmul.msk.f32.gmra.mxu1 %vm765_vm10, %v732_v8  ;;  %v1842_v61 = vadd.f32 %v1769_v1, %v1768_v59  ;;  %v7990_v1 = vld [vmem:[#allocation6_spill] sm:$0xff] }
 0x230   : > { %v1382_v53 = vpop.f32.mrf.mxu2  ;;  %v1453_v0 = vpop.f32.mrf.mxu3 }
 0x231   : > { %1512 = vst [vmem:[#allocation2 + $0x10] sm:$0xff] %v1382_v53  ;;  %v1602_v2 = vadd.f32 %v1601_v42, %v1382_v53  ;;  %v1603_v5 = vsel %vm1513_vm12, %v1453_v0, 0.0  ;;  %v1766_v30 = vmul.f32 %v1382_v53, %v1382_v53  ;;  %v1767_v21 = vmul.f32 %v1453_v0, %v1453_v0 }
 0x232   : > { %1514 = vst.msk [vmem:[#allocation2 + $0x18] sm:$0xff] %vm1513_vm12, %v1453_v0 }
 0x233   : > { %v1604_v26 = vadd.f32 %v1603_v5, %v1602_v2  ;;  %v1837_v28 = vadd.f32 %v1836_v47, %v1766_v30  ;;  %v1838_v29 = vsel %vm1513_vm12, %v1767_v21, 0.0 }
 0x234   : > { %v1246_v31 = vpop.f32.mrf.mxu0  ;;  %v1317_v35 = vpop.f32.mrf.mxu1 }
 0x235   : > { %1519 = vst [vmem:[#allocation2 + $0x40] sm:$0xff] %v1246_v31  ;;  %4450 = vmatmul.msk.f32.gmra.mxu2 %vm765_vm10, %v732_v8  ;;  %4476 = vmatmul.msk.f32.gmra.mxu3 %vm765_vm10, %v732_v8  ;;  %v1839_v38 = vadd.f32 %v1838_v29, %v1837_v28  ;;  %v1772_v32 = vmul.f32 %v1246_v31, %v1246_v31 }
 0x236   : > { %1520 = vst [vmem:[#allocation2 + $0x48] sm:$0xff] %v1317_v35  ;;  %1605 = vadd.xlane.f32.xlu1 %v1604_v26  ;;  %v1773_v36 = vmul.f32 %v1317_v35, %v1317_v35  ;;  %v1613_v16 = vadd.f32 %v1317_v35, %v1246_v31 }
 0x237   : > { %4509 = vmatmul.msk.f32.vlgmr.msra.gmra.mxu0 %vm765_vm10, %v5509_v23  ;;  %4517 = vmatmul.msk.f32.vlgmr.msra.gmra.mxu1 %vm765_vm10, %v5509_v23 }
 0x238   : > { %1840 = vadd.xlane.f32.xlu0 %v1839_v38  ;;  %v1385_v63 = vpop.f32.mrf.mxu2  ;;  %v1456_v11 = vpop.f32.mrf.mxu3  ;;  %v1848_v57 = vadd.f32 %v1773_v36, %v1772_v32 }
 0x239   : > { %1517 = vst [vmem:[#allocation2 + $0x30] sm:$0xff] %v1385_v63  ;;  %v1608_v13 = vadd.f32 %v1607_v39, %v1385_v63  ;;  %v1609_v43 = vsel %vm1513_vm12, %v1456_v11, 0.0  ;;  %v1770_v45 = vmul.f32 %v1385_v63, %v1385_v63  ;;  %v1771_v46 = vmul.f32 %v1456_v11, %v1456_v11 }
 0x23a   : > { %1518 = vst.msk [vmem:[#allocation2 + $0x38] sm:$0xff] %vm1513_vm12, %v1456_v11 }
 0x23b   : > { %v1610_v40 = vadd.f32 %v1609_v43, %v1608_v13  ;;  %v1843_v62 = vadd.f32 %v1842_v61, %v1770_v45  ;;  %v1844_v56 = vsel %vm1513_vm12, %v1771_v46, 0.0  ;;  %v7991_v46 = vld [vmem:[#allocation7_spill] sm:$0xff] }
 0x23c   : > { %v1249_v60 = vpop.f32.mrf.mxu0  ;;  %v1320_v18 = vpop.f32.mrf.mxu1 }
 0x23d   : > { %1523 = vst [vmem:[#allocation2 + $0x60] sm:$0xff] %v1249_v60  ;;  %4525 = vmatmul.msk.f32.vlgmr.msra.gmra.mxu2 %vm765_vm10, %v5509_v23  ;;  %4533 = vmatmul.msk.f32.vlgmr.msra.gmra.mxu3 %vm765_vm10, %v5509_v23  ;;  %v1845_v33 = vadd.f32 %v1844_v56, %v1843_v62  ;;  %v1776_v22 = vmul.f32 %v1249_v60, %v1249_v60 }
 0x23e   : > { %1524 = vst [vmem:[#allocation2 + $0x68] sm:$0xff] %v1320_v18  ;;  %1611 = vadd.xlane.f32.xlu2 %v1610_v40  ;;  %v1777_v54 = vmul.f32 %v1320_v18, %v1320_v18  ;;  %v1619_v25 = vadd.f32 %v1320_v18, %v1249_v60 }
 0x23f   : > { %4510 = vmatmul.msk.f32.gmra.mxu0 %vm765_vm10, %v5522_v9  ;;  %4518 = vmatmul.msk.f32.gmra.mxu1 %vm765_vm10, %v5522_v9 }
 0x240   : > { %1846 = vadd.xlane.f32.xlu1 %v1845_v33  ;;  %v1388_v48 = vpop.f32.mrf.mxu2  ;;  %v1459_v34 = vpop.f32.mrf.mxu3  ;;  %v1854_v19 = vadd.f32 %v1777_v54, %v1776_v22  ;;  %v7992_v22 = vld [vmem:[#allocation8_spill] sm:$0xff] }
 0x241   : > { %1521 = vst [vmem:[#allocation2 + $0x50] sm:$0xff] %v1388_v48  ;;  %v1614_v50 = vadd.f32 %v1613_v16, %v1388_v48  ;;  %v1615_v51 = vsel %vm1513_vm12, %v1459_v34, 0.0  ;;  %v1774_v55 = vmul.f32 %v1388_v48, %v1388_v48  ;;  %v1775_v23 = vmul.f32 %v1459_v34, %v1459_v34 }
 0x242   : > { %1522 = vst.msk [vmem:[#allocation2 + $0x58] sm:$0xff] %vm1513_vm12, %v1459_v34 }
 0x243   : > { %v1616_v6 = vadd.f32 %v1615_v51, %v1614_v50  ;;  %v1849_v17 = vadd.f32 %v1848_v57, %v1774_v55  ;;  %v1850_v41 = vsel %vm1513_vm12, %v1775_v23, 0.0 }
 0x244   : > { %v1252_v15 = vpop.f32.mrf.mxu0  ;;  %v1323_v52 = vpop.f32.mrf.mxu1 }
 0x245   : > { %1527 = vst [vmem:[#allocation2 + $0x80] sm:$0xff] %v1252_v15  ;;  %4526 = vmatmul.msk.f32.gmra.mxu2 %vm765_vm10, %v5522_v9  ;;  %4534 = vmatmul.msk.f32.gmra.mxu3 %vm765_vm10, %v5522_v9  ;;  %v1851_v37 = vadd.f32 %v1850_v41, %v1849_v17  ;;  %v1625_v21 = vadd.f32 %v1323_v52, %v1252_v15 }
 0x246   : > { %1528 = vst [vmem:[#allocation2 + $0x88] sm:$0xff] %v1323_v52  ;;  %1617 = vadd.xlane.f32.xlu0 %v1616_v6  ;;  %v1780_v26 = vmul.f32 %v1252_v15, %v1252_v15  ;;  %v1781_v28 = vmul.f32 %v1323_v52, %v1323_v52 }
 0x247   : > { %4511 = vmatmul.msk.f32.gmra.mxu0 %vm765_vm10, %v7989_v20  ;;  %4519 = vmatmul.msk.f32.gmra.mxu1 %vm765_vm10, %v7989_v20 }
 0x248   : > { %1852 = vadd.xlane.f32.xlu2 %v1851_v37  ;;  %v1391_v49 = vpop.f32.mrf.mxu2  ;;  %v1462_v44 = vpop.f32.mrf.mxu3  ;;  %v1860_v13 = vadd.f32 %v1781_v28, %v1780_v26 }
 0x249   : > { %1525 = vst [vmem:[#allocation2 + $0x70] sm:$0xff] %v1391_v49  ;;  %v1778_v8 = vmul.f32 %v1391_v49, %v1391_v49  ;;  %v1779_v42 = vmul.f32 %v1462_v44, %v1462_v44  ;;  %v1620_v9 = vadd.f32 %v1619_v25, %v1391_v49  ;;  %v1621_v0 = vsel %vm1513_vm12, %v1462_v44, 0.0 }
 0x24a   : > { %1526 = vst.msk [vmem:[#allocation2 + $0x78] sm:$0xff] %vm1513_vm12, %v1462_v44 }
 0x24b   : > { %v1855_v47 = vadd.f32 %v1854_v19, %v1778_v8  ;;  %v1856_v53 = vsel %vm1513_vm12, %v1779_v42, 0.0  ;;  %v1622_v59 = vadd.f32 %v1621_v0, %v1620_v9 }
 0x24c   : > { %v1255_v2 = vpop.f32.mrf.mxu0  ;;  %v1326_v5 = vpop.f32.mrf.mxu1 }
 0x24d   : > { %1531 = vst [vmem:[#allocation2 + $0xa0] sm:$0xff] %v1255_v2  ;;  %4527 = vmatmul.msk.f32.gmra.mxu2 %vm765_vm10, %v7989_v20  ;;  %4535 = vmatmul.msk.f32.gmra.mxu3 %vm765_vm10, %v7989_v20  ;;  %v1857_v30 = vadd.f32 %v1856_v53, %v1855_v47  ;;  %v1631_v45 = vadd.f32 %v1326_v5, %v1255_v2  ;;  %v7993_v53 = vld [vmem:[#allocation9_spill] sm:$0xff] }
 0x24e   : > { %1532 = vst [vmem:[#allocation2 + $0xa8] sm:$0xff] %v1326_v5  ;;  %v1784_v32 = vmul.f32 %v1255_v2, %v1255_v2  ;;  %v1785_v36 = vmul.f32 %v1326_v5, %v1326_v5 }
 0x24f   : > { %4512 = vmatmul.msk.f32.gmra.mxu0 %vm765_vm10, %v7990_v1  ;;  %4520 = vmatmul.msk.f32.gmra.mxu1 %vm765_vm10, %v7990_v1 }
 0x250   : > { %1858 = vadd.xlane.f32.xlu0 %v1857_v30  ;;  %1623 = vadd.xlane.f32.xlu2 %v1622_v59  ;;  %v1394_v29 = vpop.f32.mrf.mxu2  ;;  %v1465_v31 = vpop.f32.mrf.mxu3  ;;  %v1866_v51 = vadd.f32 %v1785_v36, %v1784_v32 }
 0x251   : > { %1529 = vst [vmem:[#allocation2 + $0x90] sm:$0xff] %v1394_v29  ;;  %v1626_v35 = vadd.f32 %v1625_v21, %v1394_v29  ;;  %v1627_v38 = vsel %vm1513_vm12, %v1465_v31, 0.0  ;;  %v1782_v11 = vmul.f32 %v1394_v29, %v1394_v29  ;;  %v1783_v43 = vmul.f32 %v1465_v31, %v1465_v31 }
 0x252   : > { %1530 = vst.msk [vmem:[#allocation2 + $0x98] sm:$0xff] %vm1513_vm12, %v1465_v31 }
 0x253   : > { %v1628_v39 = vadd.f32 %v1627_v38, %v1626_v35  ;;  %v1861_v56 = vadd.f32 %v1860_v13, %v1782_v11  ;;  %v1862_v60 = vsel %vm1513_vm12, %v1783_v43, 0.0  ;;  %v7994_v11 = vld [vmem:[#allocation10_spill] sm:$0xff] }
 0x254   : > { %v1258_v61 = vpop.f32.mrf.mxu0  ;;  %v1329_v63 = vpop.f32.mrf.mxu1 }
 0x255   : > { %1535 = vst [vmem:[#allocation2 + $0xc0] sm:$0xff] %v1258_v61  ;;  %4528 = vmatmul.msk.f32.gmra.mxu2 %vm765_vm10, %v7990_v1  ;;  %4536 = vmatmul.msk.f32.gmra.mxu3 %vm765_vm10, %v7990_v1  ;;  %v1863_v34 = vadd.f32 %v1862_v60, %v1861_v56  ;;  %v1637_v23 = vadd.f32 %v1329_v63, %v1258_v61 }
 0x256   : > { %1536 = vst [vmem:[#allocation2 + $0xc8] sm:$0xff] %v1329_v63  ;;  %1629 = vadd.xlane.f32.xlu1 %v1628_v39  ;;  %v1788_v54 = vmul.f32 %v1258_v61, %v1258_v61  ;;  %v1789_v6 = vmul.f32 %v1329_v63, %v1329_v63 }
 0x257   : > { %4513 = vmatmul.msk.f32.gmra.mxu0 %vm765_vm10, %v7991_v46  ;;  %4521 = vmatmul.msk.f32.gmra.mxu1 %vm765_vm10, %v7991_v46 }
 0x258   : > { %v1397_v40 = vpop.f32.mrf.mxu2  ;;  %v1468_v62 = vpop.f32.mrf.mxu3  ;;  %v1872_v42 = vadd.f32 %v1789_v6, %v1788_v54 }
 0x259   : > { %1533 = vst [vmem:[#allocation2 + $0xb0] sm:$0xff] %v1397_v40  ;;  %v1632_v18 = vadd.f32 %v1631_v45, %v1397_v40  ;;  %v1633_v33 = vsel %vm1513_vm12, %v1468_v62, 0.0  ;;  %v1786_v50 = vmul.f32 %v1397_v40, %v1397_v40  ;;  %v1787_v55 = vmul.f32 %v1468_v62, %v1468_v62 }
 0x25a   : > { %1534 = vst.msk [vmem:[#allocation2 + $0xb8] sm:$0xff] %vm1513_vm12, %v1468_v62 }
 0x25b   : > { %v1634_v16 = vadd.f32 %v1633_v33, %v1632_v18  ;;  %v1867_v15 = vadd.f32 %v1866_v51, %v1786_v50  ;;  %v1868_v52 = vsel %vm1513_vm12, %v1787_v55, 0.0 }
 0x25c   : > { %v1261_v57 = vpop.f32.mrf.mxu0  ;;  %v1332_v48 = vpop.f32.mrf.mxu1 }
 0x25d   : > { %1539 = vst [vmem:[#allocation2 + $0xe0] sm:$0xff] %v1261_v57  ;;  %4529 = vmatmul.msk.f32.gmra.mxu2 %vm765_vm10, %v7991_v46  ;;  %4537 = vmatmul.msk.f32.gmra.mxu3 %vm765_vm10, %v7991_v46  ;;  %v1869_v44 = vadd.f32 %v1868_v52, %v1867_v15  ;;  %v1643_v47 = vadd.f32 %v1332_v48, %v1261_v57 }
 0x25e   : > { %1540 = vst [vmem:[#allocation2 + $0xe8] sm:$0xff] %v1332_v48  ;;  %1864 = vadd.xlane.f32.xlu1 %v1863_v34  ;;  %1635 = vadd.xlane.f32.xlu2 %v1634_v16  ;;  %v1792_v0 = vmul.f32 %v1261_v57, %v1261_v57  ;;  %v1793_v2 = vmul.f32 %v1332_v48, %v1332_v48 }
 0x25f   : > { %4514 = vmatmul.msk.f32.gmra.mxu0 %vm765_vm10, %v7992_v22  ;;  %4522 = vmatmul.msk.f32.gmra.mxu1 %vm765_vm10, %v7992_v22 }
 0x260   : > { %v1400_v17 = vpop.f32.mrf.mxu2  ;;  %v1471_v41 = vpop.f32.mrf.mxu3  ;;  %v1878_v39 = vadd.f32 %v1793_v2, %v1792_v0 }
 0x261   : > { %1537 = vst [vmem:[#allocation2 + $0xd0] sm:$0xff] %v1400_v17  ;;  %v1638_v37 = vadd.f32 %v1637_v23, %v1400_v17  ;;  %v1639_v25 = vsel %vm1513_vm12, %v1471_v41, 0.0  ;;  %v1790_v8 = vmul.f32 %v1400_v17, %v1400_v17  ;;  %v1791_v9 = vmul.f32 %v1471_v41, %v1471_v41 }
 0x262   : > { %1538 = vst.msk [vmem:[#allocation2 + $0xd8] sm:$0xff] %vm1513_vm12, %v1471_v41 }
 0x263   : > { %v1640_v20 = vadd.f32 %v1639_v25, %v1638_v37  ;;  %v1873_v21 = vadd.f32 %v1872_v42, %v1790_v8  ;;  %v1874_v59 = vsel %vm1513_vm12, %v1791_v9, 0.0 }
 0x264   : > { %v1264_v19 = vpop.f32.mrf.mxu0  ;;  %v1335_v49 = vpop.f32.mrf.mxu1 }
 0x265   : > { %1543 = vst [vmem:[#allocation2 + $0x100] sm:$0xff] %v1264_v19  ;;  %4530 = vmatmul.msk.f32.gmra.mxu2 %vm765_vm10, %v7992_v22  ;;  %4538 = vmatmul.msk.f32.gmra.mxu3 %vm765_vm10, %v7992_v22  ;;  %v1875_v35 = vadd.f32 %v1874_v59, %v1873_v21  ;;  %v1649_v63 = vadd.f32 %v1335_v49, %v1264_v19 }
 0x266   : > { %1544 = vst [vmem:[#allocation2 + $0x108] sm:$0xff] %v1335_v49  ;;  %1870 = vadd.xlane.f32.xlu2 %v1869_v44  ;;  %1641 = vadd.xlane.f32.xlu0 %v1640_v20  ;;  %v1796_v13 = vmul.f32 %v1264_v19, %v1264_v19  ;;  %v1797_v43 = vmul.f32 %v1335_v49, %v1335_v49 }
 0x267   : > { %4515 = vmatmul.msk.f32.gmra.mxu0 %vm765_vm10, %v7993_v53  ;;  %4523 = vmatmul.msk.f32.gmra.mxu1 %vm765_vm10, %v7993_v53 }
 0x268   : > { %v1403_v5 = vpop.f32.mrf.mxu2  ;;  %v1474_v30 = vpop.f32.mrf.mxu3  ;;  %v1884_v57 = vadd.f32 %v1797_v43, %v1796_v13 }
 0x269   : > { %1541 = vst [vmem:[#allocation2 + $0xf0] sm:$0xff] %v1403_v5  ;;  %v1644_v1 = vadd.f32 %v1643_v47, %v1403_v5  ;;  %v1645_v26 = vsel %vm1513_vm12, %v1474_v30, 0.0  ;;  %v1794_v38 = vmul.f32 %v1403_v5, %v1403_v5  ;;  %v1795_v61 = vmul.f32 %v1474_v30, %v1474_v30 }
 0x26a   : > { %1542 = vst.msk [vmem:[#allocation2 + $0xf8] sm:$0xff] %vm1513_vm12, %v1474_v30 }
 0x26b   : > { %v1646_v28 = vadd.f32 %v1645_v26, %v1644_v1  ;;  %v1879_v32 = vadd.f32 %v1878_v39, %v1794_v38  ;;  %v1880_v36 = vsel %vm1513_vm12, %v1795_v61, 0.0 }
 0x26c   : > { %v1267_v29 = vpop.f32.mrf.mxu0  ;;  %v1338_v31 = vpop.f32.mrf.mxu1 }
 0x26d   : > { %1547 = vst [vmem:[#allocation2 + $0x120] sm:$0xff] %v1267_v29  ;;  %4531 = vmatmul.msk.f32.gmra.mxu2 %vm765_vm10, %v7993_v53  ;;  %4539 = vmatmul.msk.f32.gmra.mxu3 %vm765_vm10, %v7993_v53  ;;  %v1881_v33 = vadd.f32 %v1880_v36, %v1879_v32  ;;  %v1655_v34 = vadd.f32 %v1338_v31, %v1267_v29 }
 0x26e   : > { %1548 = vst [vmem:[#allocation2 + $0x128] sm:$0xff] %v1338_v31  ;;  %1876 = vadd.xlane.f32.xlu0 %v1875_v35  ;;  %1647 = vadd.xlane.f32.xlu1 %v1646_v28  ;;  %v1800_v50 = vmul.f32 %v1267_v29, %v1267_v29  ;;  %v1801_v51 = vmul.f32 %v1338_v31, %v1338_v31 }
 0x26f   : > { %4516 = vmatmul.msk.f32.gmra.mxu0 %vm765_vm10, %v7994_v11  ;;  %4524 = vmatmul.msk.f32.gmra.mxu1 %vm765_vm10, %v7994_v11 }
 0x270   : > { %v1406_v45 = vpop.f32.mrf.mxu2  ;;  %v1477_v46 = vpop.f32.mrf.mxu3  ;;  %v1890_v52 = vadd.f32 %v1801_v51, %v1800_v50 }
 0x271   : > { %1545 = vst [vmem:[#allocation2 + $0x110] sm:$0xff] %v1406_v45  ;;  %v1650_v40 = vadd.f32 %v1649_v63, %v1406_v45  ;;  %v1651_v62 = vsel %vm1513_vm12, %v1477_v46, 0.0  ;;  %v1798_v16 = vmul.f32 %v1406_v45, %v1406_v45  ;;  %v1799_v48 = vmul.f32 %v1477_v46, %v1477_v46 }
 0x272   : > { %1546 = vst.msk [vmem:[#allocation2 + $0x118] sm:$0xff] %vm1513_vm12, %v1477_v46 }
 0x273   : > { %v1652_v56 = vadd.f32 %v1651_v62, %v1650_v40  ;;  %v1885_v22 = vadd.f32 %v1884_v57, %v1798_v16  ;;  %v1886_v54 = vsel %vm1513_vm12, %v1799_v48, 0.0 }
 0x274   : > { %v1270_v60 = vpop.f32.mrf.mxu0  ;;  %v1341_v18 = vpop.f32.mrf.mxu1 }
 0x275   : > { %1551 = vst [vmem:[#allocation2 + $0x140] sm:$0xff] %v1270_v60  ;;  %4532 = vmatmul.msk.f32.gmra.mxu2 %vm765_vm10, %v7994_v11  ;;  %4540 = vmatmul.msk.f32.gmra.mxu3 %vm765_vm10, %v7994_v11  ;;  %v1887_v20 = vadd.f32 %v1886_v54, %v1885_v22  ;;  %v1661_v49 = vadd.f32 %v1341_v18, %v1270_v60 }
 0x276   : > { %1552 = vst [vmem:[#allocation2 + $0x148] sm:$0xff] %v1341_v18  ;;  %1882 = vadd.xlane.f32.xlu1 %v1881_v33  ;;  %1653 = vadd.xlane.f32.xlu2 %v1652_v56  ;;  %v1804_v44 = vmul.f32 %v1270_v60, %v1270_v60  ;;  %v1805_v8 = vmul.f32 %v1341_v18, %v1341_v18 }
 0x278   : > { %v1409_v55 = vpop.f32.mrf.mxu2  ;;  %v1480_v23 = vpop.f32.mrf.mxu3  ;;  %v1896_v59 = vadd.f32 %v1805_v8, %v1804_v44 }
 0x279   : > { %1549 = vst [vmem:[#allocation2 + $0x130] sm:$0xff] %v1409_v55  ;;  %v1656_v6 = vadd.f32 %v1655_v34, %v1409_v55  ;;  %v1657_v17 = vsel %vm1513_vm12, %v1480_v23, 0.0  ;;  %v1802_v15 = vmul.f32 %v1409_v55, %v1409_v55  ;;  %v1803_v19 = vmul.f32 %v1480_v23, %v1480_v23 }
 0x27a   : > { %1550 = vst.msk [vmem:[#allocation2 + $0x138] sm:$0xff] %vm1513_vm12, %v1480_v23 }
 0x27b   : > { %v1658_v41 = vadd.f32 %v1657_v17, %v1656_v6  ;;  %v1891_v42 = vadd.f32 %v1890_v52, %v1802_v15  ;;  %v1892_v53 = vsel %vm1513_vm12, %v1803_v19, 0.0 }
 0x27c   : > { %v1273_v37 = vpop.f32.mrf.mxu0  ;;  %v1344_v25 = vpop.f32.mrf.mxu1 }
 0x27d   : > { %1555 = vst [vmem:[#allocation2 + $0x160] sm:$0xff] %v1273_v37  ;;  %1659 = vadd.xlane.f32.xlu0 %v1658_v41  ;;  %v1893_v5 = vadd.f32 %v1892_v53, %v1891_v42  ;;  %v1667_v29 = vadd.f32 %v1344_v25, %v1273_v37  ;;  %v1808_v31 = vmul.f32 %v1273_v37, %v1273_v37 }
 0x27e   : > { %1556 = vst [vmem:[#allocation2 + $0x168] sm:$0xff] %v1344_v25  ;;  %1888 = vadd.xlane.f32.xlu2 %v1887_v20  ;;  %v1809_v35 = vmul.f32 %v1344_v25, %v1344_v25 }
 0x280   : > { %v1412_v9 = vpop.f32.mrf.mxu2  ;;  %v1483_v47 = vpop.f32.mrf.mxu3  ;;  %v1902_v32 = vadd.f32 %v1809_v35, %v1808_v31 }
 0x281   : > { %1553 = vst [vmem:[#allocation2 + $0x150] sm:$0xff] %v1412_v9  ;;  %v1662_v0 = vadd.f32 %v1661_v49, %v1412_v9  ;;  %v1663_v2 = vsel %vm1513_vm12, %v1483_v47, 0.0  ;;  %v1806_v21 = vmul.f32 %v1412_v9, %v1412_v9  ;;  %v1807_v28 = vmul.f32 %v1483_v47, %v1483_v47 }
 0x282   : > { %1554 = vst.msk [vmem:[#allocation2 + $0x158] sm:$0xff] %vm1513_vm12, %v1483_v47 }
 0x283   : > { %v1664_v30 = vadd.f32 %v1663_v2, %v1662_v0  ;;  %v1897_v38 = vadd.f32 %v1896_v59, %v1806_v21  ;;  %v1898_v63 = vsel %vm1513_vm12, %v1807_v28, 0.0 }
 0x284   : > { %v1276_v1 = vpop.f32.mrf.mxu0  ;;  %v1347_v26 = vpop.f32.mrf.mxu1 }
 0x285   : > { %1559 = vst [vmem:[#allocation2 + $0x180] sm:$0xff] %v1276_v1  ;;  %1894 = vadd.xlane.f32.xlu0 %v1893_v5  ;;  %1665 = vadd.xlane.f32.xlu1 %v1664_v30  ;;  %v1899_v43 = vadd.f32 %v1898_v63, %v1897_v38  ;;  %v1673_v56 = vadd.f32 %v1347_v26, %v1276_v1 }
 0x286   : > { %1560 = vst [vmem:[#allocation2 + $0x188] sm:$0xff] %v1347_v26  ;;  %v1812_v60 = vmul.f32 %v1276_v1, %v1276_v1  ;;  %v1813_v18 = vmul.f32 %v1347_v26, %v1347_v26 }
 0x288   : > { %v1415_v39 = vpop.f32.mrf.mxu2  ;;  %v1486_v61 = vpop.f32.mrf.mxu3  ;;  %v1908_v22 = vadd.f32 %v1813_v18, %v1812_v60  ;;  %v1746_v18 = vld [vmem:[#allocation4] sm:$0xff] }
 0x289   : > { %1557 = vst [vmem:[#allocation2 + $0x170] sm:$0xff] %v1415_v39  ;;  %v1668_v11 = vadd.f32 %v1667_v29, %v1415_v39  ;;  %v1669_v13 = vsel %vm1513_vm12, %v1486_v61, 0.0  ;;  %v1810_v46 = vmul.f32 %v1415_v39, %v1415_v39  ;;  %v1811_v62 = vmul.f32 %v1486_v61, %v1486_v61 }
 0x28a   : > { %1558 = vst.msk [vmem:[#allocation2 + $0x178] sm:$0xff] %vm1513_vm12, %v1486_v61 }
 0x28b   : > { %v1670_v45 = vadd.f32 %v1669_v13, %v1668_v11  ;;  %v1903_v33 = vadd.f32 %v1902_v32, %v1810_v46  ;;  %v1904_v48 = vsel %vm1513_vm12, %v1811_v62, 0.0  ;;  %v1583_v32 = vld [vmem:[#allocation3] sm:$0xff] }
 0x28c   : > { %v1279_v36 = vpop.f32.mrf.mxu0  ;;  %v1350_v40 = vpop.f32.mrf.mxu1 }
 0x28d   : > { %1563 = vst [vmem:[#allocation2 + $0x1a0] sm:$0xff] %v1279_v36  ;;  %1900 = vadd.xlane.f32.xlu1 %v1899_v43  ;;  %1671 = vadd.xlane.f32.xlu2 %v1670_v45  ;;  %v1905_v51 = vadd.f32 %v1904_v48, %v1903_v33  ;;  %v1679_v41 = vadd.f32 %v1350_v40, %v1279_v36 }
 0x28e   : > { %1564 = vst [vmem:[#allocation2 + $0x1a8] sm:$0xff] %v1350_v40  ;;  %v1816_v15 = vmul.f32 %v1279_v36, %v1279_v36  ;;  %v1817_v52 = vmul.f32 %v1350_v40, %v1350_v40 }
 0x290   : > { %v1418_v16 = vpop.f32.mrf.mxu2  ;;  %v1489_v57 = vpop.f32.mrf.mxu3  ;;  %v1914_v47 = vadd.f32 %v1817_v52, %v1816_v15  ;;  %v1584_v52 = vld [vmem:[#allocation3 + $0x8] sm:$0xff] }
 0x291   : > { %1561 = vst [vmem:[#allocation2 + $0x190] sm:$0xff] %v1418_v16  ;;  %v1674_v34 = vadd.f32 %v1673_v56, %v1418_v16  ;;  %v1675_v50 = vsel %vm1513_vm12, %v1489_v57, 0.0  ;;  %v1814_v23 = vmul.f32 %v1418_v16, %v1418_v16  ;;  %v1815_v17 = vmul.f32 %v1489_v57, %v1489_v57 }
 0x292   : > { %1562 = vst.msk [vmem:[#allocation2 + $0x198] sm:$0xff] %vm1513_vm12, %v1489_v57 }
 0x293   : > { %v1676_v55 = vadd.f32 %v1675_v50, %v1674_v34  ;;  %v1909_v37 = vadd.f32 %v1908_v22, %v1814_v23  ;;  %v1910_v19 = vsel %vm1513_vm12, %v1815_v17, 0.0 }
 0x294   : > { %v1282_v54 = vpop.f32.mrf.mxu0  ;;  %v1353_v6 = vpop.f32.mrf.mxu1 }
 0x295   : > { %1567 = vst [vmem:[#allocation2 + $0x1c0] sm:$0xff] %v1282_v54  ;;  %1906 = vadd.xlane.f32.xlu2 %v1905_v51  ;;  %1677 = vadd.xlane.f32.xlu0 %v1676_v55  ;;  %v1911_v8 = vadd.f32 %v1910_v19, %v1909_v37  ;;  %v1685_v5 = vadd.f32 %v1353_v6, %v1282_v54 }
 0x296   : > { %1568 = vst [vmem:[#allocation2 + $0x1c8] sm:$0xff] %v1353_v6  ;;  %v1820_v30 = vmul.f32 %v1282_v54, %v1282_v54  ;;  %v1821_v21 = vmul.f32 %v1353_v6, %v1353_v6 }
 0x298   : > { %v1421_v25 = vpop.f32.mrf.mxu2  ;;  %v1492_v20 = vpop.f32.mrf.mxu3  ;;  %v1920_v61 = vadd.f32 %v1821_v21, %v1820_v30 }
 0x299   : > { %1565 = vst [vmem:[#allocation2 + $0x1b0] sm:$0xff] %v1421_v25  ;;  %v1680_v49 = vadd.f32 %v1679_v41, %v1421_v25  ;;  %v1681_v44 = vsel %vm1513_vm12, %v1492_v20, 0.0  ;;  %v1818_v9 = vmul.f32 %v1421_v25, %v1421_v25  ;;  %v1819_v2 = vmul.f32 %v1492_v20, %v1492_v20 }
 0x29a   : > { %1566 = vst.msk [vmem:[#allocation2 + $0x1b8] sm:$0xff] %vm1513_vm12, %v1492_v20 }
 0x29b   : > { %v1682_v42 = vadd.f32 %v1681_v44, %v1680_v49  ;;  %v1915_v59 = vadd.f32 %v1914_v47, %v1818_v9  ;;  %v1916_v28 = vsel %vm1513_vm12, %v1819_v2, 0.0  ;;  %v1747_v44 = vld [vmem:[#allocation4 + $0x8] sm:$0xff] }
 0x29c   : > { %v1285_v53 = vpop.f32.mrf.mxu0  ;;  %v1356_v0 = vpop.f32.mrf.mxu1 }
 0x29d   : > { %1571 = vst [vmem:[#allocation2 + $0x1e0] sm:$0xff] %v1285_v53  ;;  %1912 = vadd.xlane.f32.xlu0 %v1911_v8  ;;  %1683 = vadd.xlane.f32.xlu1 %v1682_v42  ;;  %v1917_v35 = vadd.f32 %v1916_v28, %v1915_v59  ;;  %v1691_v43 = vadd.f32 %v1356_v0, %v1285_v53 }
 0x29e   : > { %1572 = vst [vmem:[#allocation2 + $0x1e8] sm:$0xff] %v1356_v0  ;;  %v1824_v45 = vmul.f32 %v1285_v53, %v1285_v53  ;;  %v1825_v46 = vmul.f32 %v1356_v0, %v1356_v0 }
 0x2a0   : > { %v1424_v1 = vpop.f32.mrf.mxu2  ;;  %v1495_v26 = vpop.f32.mrf.mxu3  ;;  %v1926_v55 = vadd.f32 %v1825_v46, %v1824_v45 }
 0x2a1   : > { %1569 = vst [vmem:[#allocation2 + $0x1d0] sm:$0xff] %v1424_v1  ;;  %v1686_v29 = vadd.f32 %v1685_v5, %v1424_v1  ;;  %v1687_v31 = vsel %vm1513_vm12, %v1495_v26, 0.0  ;;  %v1822_v39 = vmul.f32 %v1424_v1, %v1424_v1  ;;  %v1823_v13 = vmul.f32 %v1495_v26, %v1495_v26 }
 0x2a2   : > { %1570 = vst.msk [vmem:[#allocation2 + $0x1d8] sm:$0xff] %vm1513_vm12, %v1495_v26 }
 0x2a3   : > { %v1688_v38 = vadd.f32 %v1687_v31, %v1686_v29  ;;  %v1921_v36 = vadd.f32 %v1920_v61, %v1822_v39  ;;  %v1922_v56 = vsel %vm1513_vm12, %v1823_v13, 0.0  ;;  %v1585_v31 = vld [vmem:[#allocation3 + $0x10] sm:$0xff] }
 0x2a4   : > { %v1288_v63 = vpop.f32.mrf.mxu0  ;;  %v1359_v11 = vpop.f32.mrf.mxu1 }
 0x2a5   : > { %1575 = vst [vmem:[#allocation2 + $0x200] sm:$0xff] %v1288_v63  ;;  %1918 = vadd.xlane.f32.xlu1 %v1917_v35  ;;  %1689 = vadd.xlane.f32.xlu2 %v1688_v38  ;;  %v1923_v34 = vadd.f32 %v1922_v56, %v1921_v36  ;;  %v1697_v17 = vadd.f32 %v1359_v11, %v1288_v63 }
 0x2a6   : > { %1576 = vst [vmem:[#allocation2 + $0x208] sm:$0xff] %v1359_v11  ;;  %v1828_v41 = vmul.f32 %v1288_v63, %v1288_v63  ;;  %v1829_v15 = vmul.f32 %v1359_v11, %v1359_v11  ;;  %v1748_v11 = vld [vmem:[#allocation4 + $0x10] sm:$0xff] }
 0x2a8   : > { %v1427_v40 = vpop.f32.mrf.mxu2  ;;  %v1498_v62 = vpop.f32.mrf.mxu3  ;;  %v1932_v5 = vadd.f32 %v1829_v15, %v1828_v41  ;;  %v1587_v15 = vld [vmem:[#allocation3 + $0x20] sm:$0xff] }
 0x2a9   : > { %1573 = vst [vmem:[#allocation2 + $0x1f0] sm:$0xff] %v1427_v40  ;;  %v1606_v60 = vpop.xlane.xlu1 %1605  ;;  %v1692_v33 = vadd.f32 %v1691_v43, %v1427_v40  ;;  %v1693_v16 = vsel %vm1513_vm12, %v1498_v62, 0.0  ;;  %v1826_v51 = vmul.f32 %v1427_v40, %v1427_v40  ;;  %v1827_v6 = vmul.f32 %v1498_v62, %v1498_v62 }
 0x2aa   : > { %1574 = vst.msk [vmem:[#allocation2 + $0x1f8] sm:$0xff] %vm1513_vm12, %v1498_v62  ;;  %v1709_v57 = vadd.f32 %v1606_v60, %v1583_v32 }
 0x2ab   : > { %v1841_v48 = vpop.xlane.xlu0 %1840  ;;  %v1694_v50 = vadd.f32 %v1693_v16, %v1692_v33  ;;  %v1927_v37 = vadd.f32 %v1926_v55, %v1826_v51  ;;  %v1928_v19 = vsel %vm1513_vm12, %v1827_v6, 0.0  ;;  %v1586_v51 = vld [vmem:[#allocation3 + $0x18] sm:$0xff] }
 0x2ac   : > { %1728 = vst.msk [vmem:[#allocation3] sm:$0xff] %vm1727_vm13, %v1709_v57  ;;  %v1944_v23 = vadd.f32 %v1841_v48, %v1746_v18  ;;  %v1291_v22 = vpop.f32.mrf.mxu0  ;;  %v1362_v54 = vpop.f32.mrf.mxu1 }
 0x2ad   : > { %1579 = vst [vmem:[#allocation2 + $0x220] sm:$0xff] %v1291_v22  ;;  %1924 = vadd.xlane.f32.xlu2 %v1923_v34  ;;  %1695 = vadd.xlane.f32.xlu0 %v1694_v50  ;;  %v1929_v53 = vadd.f32 %v1928_v19, %v1927_v37  ;;  %v1703_v26 = vadd.f32 %v1362_v54, %v1291_v22  ;;  %v1749_v50 = vld [vmem:[#allocation4 + $0x18] sm:$0xff] }
 0x2ae   : > { %1962 = vst.msk [vmem:[#allocation4] sm:$0xff] %vm1727_vm13, %v1944_v23  ;;  %v1832_v28 = vmul.f32 %v1291_v22, %v1291_v22  ;;  %v1833_v29 = vmul.f32 %v1362_v54, %v1362_v54 }
 0x2af   : > { %1580 = vst [vmem:[#allocation2 + $0x228] sm:$0xff] %v1362_v54 }
 0x2b0   : > { %v1430_v25 = vpop.f32.mrf.mxu2  ;;  %v1501_v20 = vpop.f32.mrf.mxu3  ;;  %v1938_v62 = vadd.f32 %v1833_v29, %v1832_v28 }
 0x2b1   : > { %1577 = vst [vmem:[#allocation2 + $0x210] sm:$0xff] %v1430_v25  ;;  %v1612_v49 = vpop.xlane.xlu2 %1611  ;;  %v1698_v8 = vadd.f32 %v1697_v17, %v1430_v25  ;;  %v1699_v42 = vsel %vm1513_vm12, %v1501_v20, 0.0  ;;  %v1830_v2 = vmul.f32 %v1430_v25, %v1430_v25  ;;  %v1831_v1 = vmul.f32 %v1501_v20, %v1501_v20 }
 0x2b2   : > { %1578 = vst.msk [vmem:[#allocation2 + $0x218] sm:$0xff] %vm1513_vm12, %v1501_v20  ;;  %v1710_v9 = vadd.f32 %v1612_v49, %v1584_v52 }
 0x2b3   : > { %v1847_v47 = vpop.xlane.xlu1 %1846  ;;  %v1700_v0 = vadd.f32 %v1699_v42, %v1698_v8  ;;  %v1933_v35 = vadd.f32 %v1932_v5, %v1830_v2  ;;  %v1934_v61 = vsel %vm1513_vm12, %v1831_v1, 0.0  ;;  %v1588_v8 = vld [vmem:[#allocation3 + $0x28] sm:$0xff]  ;;  %v1751_v1 = vld [vmem:[#allocation4 + $0x28] sm:$0xff] }
 0x2b4   : > { %1729 = vst.msk [vmem:[#allocation3 + $0x8] sm:$0xff] %vm1727_vm13, %v1710_v9  ;;  %v1945_v30 = vadd.f32 %v1847_v47, %v1747_v44  ;;  %v6175_v21 = vpop.f32.mrf.mxu0  ;;  %v6177_v59 = vpop.f32.mrf.mxu1  ;;  %v1750_v44 = vld [vmem:[#allocation4 + $0x20] sm:$0xff] }
 0x2b5   : > { %1930 = vadd.xlane.f32.xlu0 %v1929_v53  ;;  %1701 = vadd.xlane.f32.xlu1 %v1700_v0  ;;  %v1935_v32 = vadd.f32 %v1934_v61, %v1933_v35 }
 0x2b6   : > { %1963 = vst.msk [vmem:[#allocation4 + $0x8] sm:$0xff] %vm1727_vm13, %v1945_v30 }
 0x2b8   : > { %v1433_v38 = vpop.f32.mrf.mxu2  ;;  %v1504_v39 = vpop.f32.mrf.mxu3 }
 0x2b9   : > { %1581 = vst [vmem:[#allocation2 + $0x230] sm:$0xff] %v1433_v38  ;;  %v1618_v63 = vpop.xlane.xlu0 %1617  ;;  %v1704_v13 = vadd.f32 %v1703_v26, %v1433_v38  ;;  %v1705_v43 = vsel %vm1513_vm12, %v1504_v39, 0.0  ;;  %v1834_v40 = vmul.f32 %v1433_v38, %v1433_v38  ;;  %v1835_v33 = vmul.f32 %v1504_v39, %v1504_v39  ;;  %v1589_v26 = vld [vmem:[#allocation3 + $0x30] sm:$0xff] }
 0x2ba   : > { %1582 = vst.msk [vmem:[#allocation2 + $0x238] sm:$0xff] %vm1513_vm12, %v1504_v39  ;;  %v1711_v45 = vadd.f32 %v1618_v63, %v1585_v31 }
 0x2bb   : > { %v1853_v46 = vpop.xlane.xlu2 %1852  ;;  %v1706_v36 = vadd.f32 %v1705_v43, %v1704_v13  ;;  %v1939_v16 = vadd.f32 %v1938_v62, %v1834_v40  ;;  %v1940_v34 = vsel %vm1513_vm12, %v1835_v33, 0.0  ;;  %v1590_v13 = vld [vmem:[#allocation3 + $0x38] sm:$0xff]  ;;  %v1753_v33 = vld [vmem:[#allocation4 + $0x38] sm:$0xff] }
 0x2bc   : > { %1730 = vst.msk [vmem:[#allocation3 + $0x10] sm:$0xff] %vm1727_vm13, %v1711_v45  ;;  %v1946_v56 = vadd.f32 %v1853_v46, %v1748_v11  ;;  %v6184_v60 = vpop.f32.mrf.mxu0  ;;  %v6186_v18 = vpop.f32.mrf.mxu1  ;;  %v1752_v11 = vld [vmem:[#allocation4 + $0x30] sm:$0xff] }
 0x2bd   : > { %1936 = vadd.xlane.f32.xlu1 %v1935_v32  ;;  %1707 = vadd.xlane.f32.xlu2 %v1706_v36  ;;  %v1941_v22 = vadd.f32 %v1940_v34, %v1939_v16  ;;  %v1591_v16 = vld [vmem:[#allocation3 + $0x40] sm:$0xff] }
 0x2be   : > { %1964 = vst.msk [vmem:[#allocation4 + $0x10] sm:$0xff] %vm1727_vm13, %v1946_v56  ;;  %v4565_v34 = vld [vmem:[%s7945_s1 + $0x1c0] sm:$0xff] }
 0x2c0   : > { %v6189_v57 = vpop.f32.mrf.mxu2  ;;  %v6191_v48 = vpop.f32.mrf.mxu3 }
 0x2c3   : > { %v1859_v55 = vpop.xlane.xlu0 %1858  ;;  %v1624_v23 = vpop.xlane.xlu2 %1623 }
 0x2c4   : > { %v1947_v54 = vadd.f32 %v1859_v55, %v1749_v50  ;;  %v1712_v6 = vadd.f32 %v1624_v23, %v1586_v51  ;;  %v6194_v17 = vpop.f32.mrf.mxu0  ;;  %v6196_v41 = vpop.f32.mrf.mxu1  ;;  %v4566_v50 = vld [vmem:[%s7945_s1 + $0x1c8] sm:$0xff]  ;;  %v4561_v23 = vld [vmem:[%s7945_s1 + $0x1a0] sm:$0xff] }
 0x2c5   : > { %1942 = vadd.xlane.f32.xlu2 %v1941_v22 }
 0x2c6   : > { %1965 = vst.msk [vmem:[#allocation4 + $0x18] sm:$0xff] %vm1727_vm13, %v1947_v54 }
 0x2c7   : > { %1731 = vst.msk [vmem:[#allocation3 + $0x18] sm:$0xff] %vm1727_vm13, %v1712_v6  ;;  %v4562_v6 = vld [vmem:[%s7945_s1 + $0x1a8] sm:$0xff] }
 0x2c8   : > { %v6200_v52 = vpop.f32.mrf.mxu2  ;;  %v6202_v37 = vpop.f32.mrf.mxu3 }
 0x2c9   : > { %v1630_v25 = vpop.xlane.xlu1 %1629 }
 0x2ca   : > { %v1713_v20 = vadd.f32 %v1630_v25, %v1587_v15 }
 0x2cc   : > { %1732 = vst.msk [vmem:[#allocation3 + $0x20] sm:$0xff] %vm1727_vm13, %v1713_v20  ;;  %v6205_v19 = vpop.f32.mrf.mxu0  ;;  %v6207_v49 = vpop.f32.mrf.mxu1  ;;  %v4569_v20 = vld [vmem:[%s7945_s1 + $0x1e0] sm:$0xff] }
 0x2d0   : > { %v6209_v42 = vpop.f32.mrf.mxu2  ;;  %v6211_v9 = vpop.f32.mrf.mxu3 }
 0x2d1   : > { %v1865_v47 = vpop.xlane.xlu1 %1864  ;;  %v1636_v53 = vpop.xlane.xlu2 %1635 }
 0x2d2   : > { %v1948_v0 = vadd.f32 %v1865_v47, %v1750_v44  ;;  %v1714_v2 = vadd.f32 %v1636_v53, %v1588_v8  ;;  %v4570_v44 = vld [vmem:[%s7945_s1 + $0x1e8] sm:$0xff]  ;;  %v4541_v8 = vld [vmem:[%s7945_s1 + $0x100] sm:$0xff] }
 0x2d3   : > { %v4557_v47 = vld [vmem:[%s7945_s1 + $0x180] sm:$0xff]  ;;  %v4558_v53 = vld [vmem:[%s7945_s1 + $0x188] sm:$0xff] }
 0x2d4   : > { %1966 = vst.msk [vmem:[#allocation4 + $0x20] sm:$0xff] %vm1727_vm13, %v1948_v0  ;;  %v2042_v5 = vpop.f32.mrf.mxu0  ;;  %v2083_v30 = vpop.f32.mrf.mxu1 }
 0x2d5   : > { %1733 = vst.msk [vmem:[#allocation3 + $0x28] sm:$0xff] %vm1727_vm13, %v1714_v2 }
 0x2d8   : > { %v6215_v28 = vpop.f32.mrf.mxu2  ;;  %v6217_v29 = vpop.f32.mrf.mxu3 }
 0x2d9   : > { %v1871_v31 = vpop.xlane.xlu2 %1870  ;;  %v1642_v35 = vpop.xlane.xlu0 %1641 }
 0x2da   : > { %v1949_v38 = vadd.f32 %v1871_v31, %v1751_v1  ;;  %v1715_v39 = vadd.f32 %v1642_v35, %v1589_v26  ;;  %v4542_v1 = vld [vmem:[%s7945_s1 + $0x108] sm:$0xff]  ;;  %v4545_v35 = vld [vmem:[%s7945_s1 + $0x120] sm:$0xff] }
 0x2dc   : > { %1967 = vst.msk [vmem:[#allocation4 + $0x28] sm:$0xff] %vm1727_vm13, %v1949_v38  ;;  %v2045_v61 = vpop.f32.mrf.mxu0  ;;  %v2086_v63 = vpop.f32.mrf.mxu1  ;;  %v4553_v38 = vld [vmem:[%s7945_s1 + $0x160] sm:$0xff] }
 0x2dd   : > { %1734 = vst.msk [vmem:[#allocation3 + $0x30] sm:$0xff] %vm1727_vm13, %v1715_v39  ;;  %v4554_v39 = vld [vmem:[%s7945_s1 + $0x168] sm:$0xff] }
 0x2e0   : > { %v6221_v43 = vpop.f32.mrf.mxu2  ;;  %v6223_v45 = vpop.f32.mrf.mxu3 }
 0x2e1   : > { %v1877_v46 = vpop.xlane.xlu0 %1876  ;;  %v1648_v32 = vpop.xlane.xlu1 %1647 }
 0x2e2   : > { %v1950_v36 = vadd.f32 %v1877_v46, %v1752_v11  ;;  %v1716_v40 = vadd.f32 %v1648_v32, %v1590_v13  ;;  %v2230_v11 = vadd.f32 %v4561_v23, %v2045_v61  ;;  %v2231_v13 = vadd.f32 %v4562_v6, %v2086_v63 }
 0x2e3   : > { %v2211_v23 = vadd.f32 %v4542_v1, %v6177_v59 }
 0x2e4   : > { %1968 = vst.msk [vmem:[#allocation4 + $0x30] sm:$0xff] %vm1727_vm13, %v1950_v36  ;;  %v2048_v62 = vpop.f32.mrf.mxu0  ;;  %v2089_v56 = vpop.f32.mrf.mxu1  ;;  %v2210_v36 = vadd.f32 %v4541_v8, %v6175_v21  ;;  %v1592_v21 = vld [vmem:[#allocation3 + $0x48] sm:$0xff] }
 0x2e5   : > { %1735 = vst.msk [vmem:[#allocation3 + $0x38] sm:$0xff] %vm1727_vm13, %v1716_v40  ;;  %v2234_v0 = vadd.f32 %v4565_v34, %v2048_v62  ;;  %v2235_v2 = vadd.f32 %v4566_v50, %v2089_v56  ;;  %v4549_v40 = vld [vmem:[%s7945_s1 + $0x140] sm:$0xff]  ;;  %v2226_v62 = vadd.f32 %v4557_v47, %v2042_v5  ;;  %v2227_v56 = vadd.f32 %v4558_v53, %v2083_v30  ;;  %v1754_v50 = vld [vmem:[#allocation4 + $0x40] sm:$0xff] }
 0x2e6   : > { %v2222_v5 = vadd.f32 %v4553_v38, %v6205_v19  ;;  %v2223_v30 = vadd.f32 %v4554_v39, %v6207_v49 }
 0x2e7   : > { %v2267_v61 = vadd.f32 %v2235_v2, %v5626_v7  ;;  %v2259_v2 = vadd.f32 %v2227_v56, %v5636_v58 }
 0x2e8   : > { %v6233_v51 = vpop.f32.mrf.mxu2  ;;  %v6235_v55 = vpop.f32.mrf.mxu3 }
 0x2e9   : > { %v1883_v22 = vpop.xlane.xlu1 %1882  ;;  %v1654_v54 = vpop.xlane.xlu2 %1653 }
 0x2ea   : > { %v1951_v15 = vadd.f32 %v1883_v22, %v1753_v33  ;;  %v1717_v25 = vadd.f32 %v1654_v54, %v1591_v16  ;;  %v4550_v33 = vld [vmem:[%s7945_s1 + $0x148] sm:$0xff]  ;;  %v2266_v16 = vadd.f32 %v2234_v0, %v5626_v7  ;;  %v2214_v22 = vadd.f32 %v4545_v35, %v6184_v60 }
 0x2eb   : > { %v2218_v60 = vadd.f32 %v4549_v40, %v6194_v17  ;;  %v2219_v19 = vadd.f32 %v4550_v33, %v6196_v41  ;;  %v2258_v0 = vadd.f32 %v2226_v62, %v5636_v58  ;;  %v2254_v17 = vadd.f32 %v2222_v5, %v5634_v14  ;;  %v4571_v40 = vld [vmem:[%s7945_s1 + $0x1f0] sm:$0xff]  ;;  %v4572_v62 = vld [vmem:[%s7945_s1 + $0x1f8] sm:$0xff] }
 0x2ec   : > { %1969 = vst.msk [vmem:[#allocation4 + $0x38] sm:$0xff] %vm1727_vm13, %v1951_v15  ;;  %v2051_v26 = vpop.f32.mrf.mxu0  ;;  %v2092_v31 = vpop.f32.mrf.mxu1  ;;  %v4546_v15 = vld [vmem:[%s7945_s1 + $0x128] sm:$0xff]  ;;  %v2298_v1 = vmax.f32 %v2266_v16, 0.0  ;;  %v2255_v41 = vadd.f32 %v2223_v30, %v5634_v14  ;;  %v2291_v16 = vmax.f32 %v2259_v2, 0.0 }
 0x2ed   : > { %1736 = vst.msk [vmem:[#allocation3 + $0x40] sm:$0xff] %vm1727_vm13, %v1717_v25  ;;  %v2238_v46 = vadd.f32 %v4569_v20, %v2051_v26  ;;  %v2239_v32 = vadd.f32 %v4570_v44, %v2092_v31  ;;  %v2262_v25 = vadd.f32 %v2230_v11, %v5651_v10  ;;  %v2263_v20 = vadd.f32 %v2231_v13, %v5651_v10  ;;  %v4567_v11 = vld [vmem:[%s7945_s1 + $0x1d0] sm:$0xff]  ;;  %v4568_v13 = vld [vmem:[%s7945_s1 + $0x1d8] sm:$0xff] }
 0x2ee   : > { %v2299_v26 = vmax.f32 %v2267_v61, 0.0  ;;  %v6297_v31 = vadd.f32 %v2214_v22, %v5679_v12  ;;  %v2215_v35 = vadd.f32 %v4546_v15, %v6186_v18  ;;  %v6311_v18 = vadd.f32 %v2210_v36, %v5668_v24  ;;  %v4564_v61 = vld [vmem:[%s7945_s1 + $0x1b8] sm:$0xff] }
 0x2ef   : > { %v2270_v63 = vadd.f32 %v2238_v46, %v5628_v4  ;;  %v2271_v34 = vadd.f32 %v2239_v32, %v5628_v4  ;;  %v2294_v38 = vmax.f32 %v2262_v25, 0.0  ;;  %v2295_v39 = vmax.f32 %v2263_v20, 0.0  ;;  %v4563_v32 = vld [vmem:[%s7945_s1 + $0x1b0] sm:$0xff] }
 0x2f0   : > { %v2130_v54 = vpop.f32.mrf.mxu2  ;;  %v2171_v6 = vpop.f32.mrf.mxu3  ;;  %v6314_v46 = vadd.f32 %v2211_v23, %v5668_v24  ;;  %v2250_v56 = vadd.f32 %v2218_v60, %v5708_v27  ;;  %v2251_v36 = vadd.f32 %v2219_v19, %v5708_v27  ;;  %v2290_v33 = vmax.f32 %v2258_v0, 0.0  ;;  %v4559_v20 = vld [vmem:[%s7945_s1 + $0x190] sm:$0xff] }
 0x2f1   : > { %v2302_v44 = vmax.f32 %v2270_v63, 0.0  ;;  %v2303_v8 = vmax.f32 %v2271_v34, 0.0  ;;  %v1889_v47 = vpop.xlane.xlu2 %1888  ;;  %v1660_v59 = vpop.xlane.xlu0 %1659  ;;  %v1755_v63 = vld [vmem:[#allocation4 + $0x48] sm:$0xff]  ;;  %v1593_v34 = vld [vmem:[#allocation3 + $0x50] sm:$0xff]  ;;  %v2237_v23 = vadd.f32 %v4568_v13, %v2171_v6  ;;  %v2278_v30 = vmax.f32 %v6297_v31, 0.0 }
 0x2f2   : > { %v1952_v53 = vadd.f32 %v1889_v47, %v1754_v50  ;;  %v1718_v49 = vadd.f32 %v1660_v59, %v1592_v21  ;;  %v2247_v50 = vadd.f32 %v2215_v35, %v5679_v12  ;;  %v2236_v21 = vadd.f32 %v4567_v11, %v2130_v54  ;;  %v4555_v54 = vld [vmem:[%s7945_s1 + $0x170] sm:$0xff]  ;;  %v4552_v35 = vld [vmem:[%s7945_s1 + $0x158] sm:$0xff] }
 0x2f3   : > { %2346 = vmatpush.msrb.mxu0 %v2302_v44  ;;  %2417 = vmatpush.msrb.mxu1 %v2303_v8  ;;  %v2286_v15 = vmax.f32 %v2254_v17, 0.0  ;;  %v2287_v25 = vmax.f32 %v2255_v41, 0.0  ;;  %v4560_v44 = vld [vmem:[%s7945_s1 + $0x198] sm:$0xff]  ;;  %v2232_v6 = vadd.f32 %v4563_v32, %v6233_v51  ;;  %v2233_v19 = vadd.f32 %v4564_v61, %v6235_v55  ;;  %v4547_v51 = vld [vmem:[%s7945_s1 + $0x130] sm:$0xff] }
 0x2f4   : > { %1970 = vst.msk [vmem:[#allocation4 + $0x40] sm:$0xff] %vm1727_vm13, %v1952_v53  ;;  %v2282_v0 = vmax.f32 %v2250_v56, 0.0  ;;  %v2283_v2 = vmax.f32 %v2251_v36, 0.0  ;;  %v4551_v55 = vld [vmem:[%s7945_s1 + $0x150] sm:$0xff]  ;;  %v2228_v17 = vadd.f32 %v4559_v20, %v6221_v43  ;;  %v2229_v41 = vadd.f32 %v4560_v44, %v6223_v45  ;;  %v4548_v43 = vld [vmem:[%s7945_s1 + $0x138] sm:$0xff] }
 0x2f5   : > { %1737 = vst.msk [vmem:[#allocation3 + $0x48] sm:$0xff] %vm1727_vm13, %v1718_v49  ;;  %2347 = vmatpush.msrb.mxu0 %v2298_v1  ;;  %2418 = vmatpush.msrb.mxu1 %v2299_v26  ;;  %v4556_v1 = vld [vmem:[%s7945_s1 + $0x178] sm:$0xff]  ;;  %v2279_v32 = vmax.f32 %v2247_v50, 0.0  ;;  %v2216_v56 = vadd.f32 %v4547_v51, %v6200_v52  ;;  %v2220_v36 = vadd.f32 %v4551_v55, %v6209_v42  ;;  %v2275_v61 = vmax.f32 %v6314_v46, 0.0  ;;  %v1758_v51 = vld [vmem:[#allocation4 + $0x60] sm:$0xff]  ;;  %v1596_v55 = vld [vmem:[#allocation3 + $0x68] sm:$0xff] }
 0x2f6   : > { %v2225_v45 = vadd.f32 %v4556_v1, %v6217_v29  ;;  %v4543_v29 = vld [vmem:[%s7945_s1 + $0x110] sm:$0xff]  ;;  %v2261_v52 = vadd.f32 %v2229_v41, %v5636_v58  ;;  %v2217_v46 = vadd.f32 %v4548_v43, %v6202_v37  ;;  %v4925_v37 = vld [vmem:[%s7951_s7] sm:$0xff] }
 0x2f7   : > { %2348 = vmatpush.msrb.mxu0 %v2294_v38  ;;  %2419 = vmatpush.msrb.mxu1 %v2295_v39  ;;  %v2269_v38 = vadd.f32 %v2237_v23, %v5626_v7  ;;  %v2224_v39 = vadd.f32 %v4555_v54, %v6215_v28  ;;  %v2274_v28 = vmax.f32 %v6311_v18, 0.0  ;;  %v2260_v18 = vadd.f32 %v2228_v17, %v5636_v58 }
 0x2f8   : > { %v2133_v22 = vpop.f32.mrf.mxu2  ;;  %v2174_v5 = vpop.f32.mrf.mxu3  ;;  %v2257_v23 = vadd.f32 %v2225_v45, %v5634_v14  ;;  %v2293_v44 = vmax.f32 %v2261_v52, 0.0  ;;  %v4928_v45 = vld [vmem:[%s7951_s7 + $0x18] sm:$0xff] }
 0x2f9   : > { %v2240_v8 = vadd.f32 %v4571_v40, %v2133_v22  ;;  %v2241_v47 = vadd.f32 %v4572_v62, %v2174_v5  ;;  %v1895_v59 = vpop.xlane.xlu0 %1894  ;;  %v1666_v60 = vpop.xlane.xlu1 %1665  ;;  %2349 = vmatpush.msrb.mxu0 %v2290_v33  ;;  %2420 = vmatpush.msrb.mxu1 %v2291_v16  ;;  %v2264_v40 = vadd.f32 %v2232_v6, %v5651_v10  ;;  %v1594_v62 = vld [vmem:[#allocation3 + $0x58] sm:$0xff]  ;;  %v1756_v16 = vld [vmem:[#allocation4 + $0x50] sm:$0xff]  ;;  %v2292_v20 = vmax.f32 %v2260_v18, 0.0 }
 0x2fa   : > { %v1953_v53 = vadd.f32 %v1895_v59, %v1755_v63  ;;  %v1719_v49 = vadd.f32 %v1666_v60, %v1593_v34  ;;  %v2221_v33 = vadd.f32 %v4552_v35, %v6211_v9  ;;  %v2301_v63 = vmax.f32 %v2269_v38, 0.0  ;;  %v1757_v59 = vld [vmem:[#allocation4 + $0x58] sm:$0xff]  ;;  %v4927_v38 = vld [vmem:[%s7951_s7 + $0x10] sm:$0xff] }
 0x2fb   : > { %v2272_v26 = vadd.f32 %v2240_v8, %v5628_v4  ;;  %v2273_v31 = vadd.f32 %v2241_v47, %v5628_v4  ;;  %2350 = vmatpush.msrb.mxu0 %v2286_v15  ;;  %2421 = vmatpush.msrb.mxu1 %v2287_v25  ;;  %v2268_v4 = vadd.f32 %v2236_v21, %v5626_v7  ;;  %v2296_v22 = vmax.f32 %v2264_v40, 0.0  ;;  %v1760_v40 = vld [vmem:[#allocation4 + $0x70] sm:$0xff] }
 0x2fc   : > { %1971 = vst.msk [vmem:[#allocation4 + $0x48] sm:$0xff] %vm1727_vm13, %v1953_v53  ;;  %v2265_v7 = vadd.f32 %v2233_v19, %v5651_v10  ;;  %v4544_v10 = vld [vmem:[%s7945_s1 + $0x118] sm:$0xff]  ;;  %v2256_v34 = vadd.f32 %v2224_v39, %v5634_v14  ;;  %v2252_v14 = vadd.f32 %v2220_v36, %v5708_v27  ;;  %v2253_v25 = vadd.f32 %v2221_v33, %v5708_v27  ;;  %v1595_v27 = vld [vmem:[#allocation3 + $0x60] sm:$0xff]  ;;  %v1597_v39 = vld [vmem:[#allocation3 + $0x70] sm:$0xff] }
 0x2fd   : > { %v2304_v11 = vmax.f32 %v2272_v26, 0.0  ;;  %v2305_v13 = vmax.f32 %v2273_v31, 0.0  ;;  %1738 = vst.msk [vmem:[#allocation3 + $0x50] sm:$0xff] %vm1727_vm13, %v1719_v49  ;;  %2351 = vmatpush.msrb.mxu0 %v2282_v0  ;;  %2422 = vmatpush.msrb.mxu1 %v2283_v2  ;;  %v2300_v42 = vmax.f32 %v2268_v4, 0.0  ;;  %v2213_v15 = vadd.f32 %v4544_v10, %v6191_v48  ;;  %v4929_v33 = vld [vmem:[%s7951_s7 + $0x20] sm:$0xff] }
 0x2fe   : > { %v2297_v5 = vmax.f32 %v2265_v7, 0.0  ;;  %v2249_v48 = vadd.f32 %v2217_v46, %v5679_v12  ;;  %v2288_v8 = vmax.f32 %v2256_v34, 0.0  ;;  %v2289_v47 = vmax.f32 %v2257_v23, 0.0  ;;  %v1598_v7 = vld [vmem:[#allocation3 + $0x78] sm:$0xff]  ;;  %v4931_v23 = vld [vmem:[%s7951_s7 + $0x30] sm:$0xff] }
 0x2ff   : > { %2352 = vmatpush.msrb.mxu0 %v2278_v30  ;;  %2423 = vmatpush.msrb.mxu1 %v2279_v32  ;;  %v2212_v30 = vadd.f32 %v4543_v29, %v6189_v57  ;;  %v2248_v57 = vadd.f32 %v2216_v56, %v5679_v12  ;;  %v2245_v54 = vadd.f32 %v2213_v15, %v5668_v24  ;;  %v2284_v6 = vmax.f32 %v2252_v14, 0.0  ;;  %v4933_v15 = vld [vmem:[%s7951_s7 + $0x40] sm:$0xff]  ;;  %v4935_v14 = vld [vmem:[%s7951_s7 + $0x50] sm:$0xff] }
 0x300   : > { %2488 = vmatpush.msrb.mxu2 %v2304_v11  ;;  %4627 = vmatpush.msk.msrb.mxu3 %vm1136_vm11, %v2305_v13  ;;  %v1672_v9 = vpop.xlane.xlu2 %1671  ;;  %v2285_v19 = vmax.f32 %v2253_v25, 0.0  ;;  %v2281_v2 = vmax.f32 %v2249_v48, 0.0  ;;  %v4936_v25 = vld [vmem:[%s7951_s7 + $0x58] sm:$0xff] }
 0x301   : > { %v1901_v50 = vpop.xlane.xlu1 %1900  ;;  %v1720_v21 = vadd.f32 %v1672_v9, %v1594_v62  ;;  %2353 = vmatpush.msrb.mxu0 %v2274_v28  ;;  %2424 = vmatpush.msrb.mxu1 %v2275_v61  ;;  %v2244_v60 = vadd.f32 %v2212_v30, %v5668_v24  ;;  %v2280_v1 = vmax.f32 %v2248_v57, 0.0  ;;  %v4926_v24 = vld [vmem:[%s7951_s7 + $0x8] sm:$0xff]  ;;  %v2277_v26 = vmax.f32 %v2245_v54, 0.0  ;;  %v1599_v61 = vld [vmem:[#allocation3 + $0x80] sm:$0xff]  ;;  %v4932_v30 = vld [vmem:[%s7951_s7 + $0x38] sm:$0xff] }
 0x302   : > { %v1954_v58 = vadd.f32 %v1901_v50, %v1756_v16  ;;  %2489 = vmatpush.msrb.mxu2 %v2300_v42  ;;  %4628 = vmatpush.msk.msrb.mxu3 %vm1136_vm11, %v2301_v63  ;;  %v1761_v16 = vld [vmem:[#allocation4 + $0x78] sm:$0xff]  ;;  %v1762_v63 = vld [vmem:[#allocation4 + $0x80] sm:$0xff]  ;;  %v4940_v48 = vld [vmem:[%s7951_s7 + $0x78] sm:$0xff] }
 0x303   : > { %1739 = vst.msk [vmem:[#allocation3 + $0x58] sm:$0xff] %vm1727_vm13, %v1720_v21  ;;  %4573 = vmatmul.msk.f32.vlgmr.msrb.gmra.mxu0 %vm765_vm10, %v4925_v37  ;;  %4591 = vmatmul.msk.f32.vlgmr.msrb.gmra.mxu1 %vm765_vm10, %v4925_v37  ;;  %v2276_v31 = vmax.f32 %v2244_v60, 0.0  ;;  %v4930_v42 = vld [vmem:[%s7951_s7 + $0x28] sm:$0xff]  ;;  %v4939_v57 = vld [vmem:[%s7951_s7 + $0x70] sm:$0xff] }
 0x304   : > { %1972 = vst.msk [vmem:[#allocation4 + $0x50] sm:$0xff] %vm1727_vm13, %v1954_v58  ;;  %2490 = vmatpush.msrb.mxu2 %v2296_v22  ;;  %4629 = vmatpush.msk.msrb.mxu3 %vm1136_vm11, %v2297_v5  ;;  %v1600_v9 = vld [vmem:[#allocation3 + $0x88] sm:$0xff]  ;;  %v1763_v22 = vld [vmem:[#allocation4 + $0x88] sm:$0xff] }
 0x305   : > { %v4942_v54 = vld [vmem:[%s7951_s7 + $0x88] sm:$0xff] }
 0x306   : > { %2491 = vmatpush.msrb.mxu2 %v2292_v20  ;;  %4630 = vmatpush.msk.msrb.mxu3 %vm1136_vm11, %v2293_v44  ;;  %v4937_v20 = vld [vmem:[%s7951_s7 + $0x60] sm:$0xff]  ;;  %v4938_v44 = vld [vmem:[%s7951_s7 + $0x68] sm:$0xff] }
 0x308   : > { %2492 = vmatpush.msrb.mxu2 %v2288_v8  ;;  %4631 = vmatpush.msk.msrb.mxu3 %vm1136_vm11, %v2289_v47  ;;  %v1907_v53 = vpop.xlane.xlu2 %1906  ;;  %v1678_v12 = vpop.xlane.xlu0 %1677 }
 0x309   : > { %v1955_v49 = vadd.f32 %v1907_v53, %v1757_v59  ;;  %v1721_v0 = vadd.f32 %v1678_v12, %v1595_v27  ;;  %v4941_v59 = vld [vmem:[%s7951_s7 + $0x80] sm:$0xff] }
 0x30a   : > { %2493 = vmatpush.msrb.mxu2 %v2284_v6  ;;  %4632 = vmatpush.msk.msrb.mxu3 %vm1136_vm11, %v2285_v19 }
 0x30b   : > { %1973 = vst.msk [vmem:[#allocation4 + $0x58] sm:$0xff] %vm1727_vm13, %v1955_v49  ;;  %4574 = vmatmul.msk.f32.gmra.mxu0 %vm765_vm10, %v4926_v24  ;;  %4592 = vmatmul.msk.f32.gmra.mxu1 %vm765_vm10, %v4926_v24 }
 0x30c   : > { %1740 = vst.msk [vmem:[#allocation3 + $0x60] sm:$0xff] %vm1727_vm13, %v1721_v0  ;;  %2494 = vmatpush.msrb.mxu2 %v2280_v1  ;;  %4633 = vmatpush.msk.msrb.mxu3 %vm1136_vm11, %v2281_v2 }
 0x30e   : > { %2495 = vmatpush.msrb.mxu2 %v2276_v31  ;;  %4634 = vmatpush.msk.msrb.mxu3 %vm1136_vm11, %v2277_v26 }
 0x30f   : > { %4609 = vmatmul.msk.f32.vlgmr.msrb.gmra.mxu2 %vm765_vm10, %v4925_v37  ;;  %4635 = vmatmul.msk.f32.vlgmr.msrb.gmra.mxu3 %vm765_vm10, %v4925_v37  ;;  %v4934_v37 = vld [vmem:[%s7951_s7 + $0x48] sm:$0xff] }
 0x310   : > { %v1913_v35 = vpop.xlane.xlu0 %1912  ;;  %v1684_v17 = vpop.xlane.xlu1 %1683 }
 0x311   : > { %v1956_v41 = vadd.f32 %v1913_v35, %v1758_v51  ;;  %v1722_v4 = vadd.f32 %v1684_v17, %v1596_v55 }
 0x313   : > { %1974 = vst.msk [vmem:[#allocation4 + $0x60] sm:$0xff] %vm1727_vm13, %v1956_v41  ;;  %4575 = vmatmul.msk.f32.gmra.mxu0 %vm765_vm10, %v4927_v38  ;;  %4593 = vmatmul.msk.f32.gmra.mxu1 %vm765_vm10, %v4927_v38 }
 0x314   : > { %1741 = vst.msk [vmem:[#allocation3 + $0x68] sm:$0xff] %vm1727_vm13, %v1722_v4 }
 0x317   : > { %4610 = vmatmul.msk.f32.gmra.mxu2 %vm765_vm10, %v4926_v24  ;;  %4636 = vmatmul.msk.f32.gmra.mxu3 %vm765_vm10, %v4926_v24 }
 0x318   : > { %v1919_v11 = vpop.xlane.xlu1 %1918  ;;  %v1690_v13 = vpop.xlane.xlu2 %1689 }
 0x319   : > { %v1957_v32 = vadd.f32 %v1919_v11, %v1759_v3  ;;  %v1723_v43 = vadd.f32 %v1690_v13, %v1597_v39 }
 0x31b   : > { %1975 = vst.msk [vmem:[#allocation4 + $0x68] sm:$0xff] %vm1727_vm13, %v1957_v32  ;;  %4576 = vmatmul.msk.f32.gmra.mxu0 %vm765_vm10, %v4928_v45  ;;  %4594 = vmatmul.msk.f32.gmra.mxu1 %vm765_vm10, %v4928_v45 }
 0x31c   : > { %1742 = vst.msk [vmem:[#allocation3 + $0x70] sm:$0xff] %vm1727_vm13, %v1723_v43 }
 0x31f   : > { %4611 = vmatmul.msk.f32.gmra.mxu2 %vm765_vm10, %v4927_v38  ;;  %4637 = vmatmul.msk.f32.gmra.mxu3 %vm765_vm10, %v4927_v38 }
 0x320   : > { %v1925_v62 = vpop.xlane.xlu2 %1924  ;;  %v1696_v28 = vpop.xlane.xlu0 %1695 }
 0x321   : > { %v1958_v56 = vadd.f32 %v1925_v62, %v1760_v40  ;;  %v1724_v36 = vadd.f32 %v1696_v28, %v1598_v7 }
 0x323   : > { %1976 = vst.msk [vmem:[#allocation4 + $0x70] sm:$0xff] %vm1727_vm13, %v1958_v56  ;;  %4577 = vmatmul.msk.f32.gmra.mxu0 %vm765_vm10, %v4929_v33  ;;  %4595 = vmatmul.msk.f32.gmra.mxu1 %vm765_vm10, %v4929_v33 }
 0x324   : > { %1743 = vst.msk [vmem:[#allocation3 + $0x78] sm:$0xff] %vm1727_vm13, %v1724_v36 }
 0x327   : > { %4612 = vmatmul.msk.f32.gmra.mxu2 %vm765_vm10, %v4928_v45  ;;  %4638 = vmatmul.msk.f32.gmra.mxu3 %vm765_vm10, %v4928_v45 }
 0x328   : > { %v1931_v29 = vpop.xlane.xlu0 %1930  ;;  %v1702_v10 = vpop.xlane.xlu1 %1701 }
 0x329   : > { %v1959_v18 = vadd.f32 %v1931_v29, %v1761_v16  ;;  %v1725_v52 = vadd.f32 %v1702_v10, %v1599_v61 }
 0x32b   : > { %1977 = vst.msk [vmem:[#allocation4 + $0x78] sm:$0xff] %vm1727_vm13, %v1959_v18  ;;  %4578 = vmatmul.msk.f32.gmra.mxu0 %vm765_vm10, %v4930_v42  ;;  %4596 = vmatmul.msk.f32.gmra.mxu1 %vm765_vm10, %v4930_v42 }
 0x32c   : > { %1744 = vst.msk [vmem:[#allocation3 + $0x80] sm:$0xff] %vm1727_vm13, %v1725_v52 }
 0x32f   : > { %4613 = vmatmul.msk.f32.gmra.mxu2 %vm765_vm10, %v4929_v33  ;;  %4639 = vmatmul.msk.f32.gmra.mxu3 %vm765_vm10, %v4929_v33 }
 0x330   : > { %v1937_v46 = vpop.xlane.xlu1 %1936  ;;  %v1708_v34 = vpop.xlane.xlu2 %1707 }
 0x331   : > { %v1960_v50 = vadd.f32 %v1937_v46, %v1762_v63  ;;  %v1726_v21 = vadd.f32 %v1708_v34, %v1600_v9 }
 0x333   : > { %1978 = vst.msk [vmem:[#allocation4 + $0x80] sm:$0xff] %vm1727_vm13, %v1960_v50  ;;  %4579 = vmatmul.msk.f32.gmra.mxu0 %vm765_vm10, %v4931_v23  ;;  %4597 = vmatmul.msk.f32.gmra.mxu1 %vm765_vm10, %v4931_v23 }
 0x334   : > { %1745 = vst.msk [vmem:[#allocation3 + $0x88] sm:$0xff] %vm1727_vm13, %v1726_v21 }
 0x337   : > { %4614 = vmatmul.msk.f32.gmra.mxu2 %vm765_vm10, %v4930_v42  ;;  %4640 = vmatmul.msk.f32.gmra.mxu3 %vm765_vm10, %v4930_v42 }
 0x338   : > { %v1943_v5 = vpop.xlane.xlu2 %1942 }
 0x339   : > { %v1961_v58 = vadd.f32 %v1943_v5, %v1763_v22 }
 0x33b   : > { %1979 = vst.msk [vmem:[#allocation4 + $0x88] sm:$0xff] %vm1727_vm13, %v1961_v58  ;;  %4580 = vmatmul.msk.f32.gmra.mxu0 %vm765_vm10, %v4932_v30  ;;  %4598 = vmatmul.msk.f32.gmra.mxu1 %vm765_vm10, %v4932_v30 }
 0x33f   : > { %4615 = vmatmul.msk.f32.gmra.mxu2 %vm765_vm10, %v4931_v23  ;;  %4641 = vmatmul.msk.f32.gmra.mxu3 %vm765_vm10, %v4931_v23 }
 0x343   : > { %4581 = vmatmul.msk.f32.gmra.mxu0 %vm765_vm10, %v4933_v15  ;;  %4599 = vmatmul.msk.f32.gmra.mxu1 %vm765_vm10, %v4933_v15 }
 0x347   : > { %4616 = vmatmul.msk.f32.gmra.mxu2 %vm765_vm10, %v4932_v30  ;;  %4642 = vmatmul.msk.f32.gmra.mxu3 %vm765_vm10, %v4932_v30 }
 0x34b   : > { %4582 = vmatmul.msk.f32.gmra.mxu0 %vm765_vm10, %v4934_v37  ;;  %4600 = vmatmul.msk.f32.gmra.mxu1 %vm765_vm10, %v4934_v37 }
 0x34f   : > { %4617 = vmatmul.msk.f32.gmra.mxu2 %vm765_vm10, %v4933_v15  ;;  %4643 = vmatmul.msk.f32.gmra.mxu3 %vm765_vm10, %v4933_v15 }
 0x353   : > { %4583 = vmatmul.msk.f32.gmra.mxu0 %vm765_vm10, %v4935_v14  ;;  %4601 = vmatmul.msk.f32.gmra.mxu1 %vm765_vm10, %v4935_v14 }
 0x357   : > { %4618 = vmatmul.msk.f32.gmra.mxu2 %vm765_vm10, %v4934_v37  ;;  %4644 = vmatmul.msk.f32.gmra.mxu3 %vm765_vm10, %v4934_v37 }
 0x35b   : > { %4584 = vmatmul.msk.f32.gmra.mxu0 %vm765_vm10, %v4936_v25  ;;  %4602 = vmatmul.msk.f32.gmra.mxu1 %vm765_vm10, %v4936_v25 }
 0x35f   : > { %4619 = vmatmul.msk.f32.gmra.mxu2 %vm765_vm10, %v4935_v14  ;;  %4645 = vmatmul.msk.f32.gmra.mxu3 %vm765_vm10, %v4935_v14 }
 0x363   : > { %4585 = vmatmul.msk.f32.gmra.mxu0 %vm765_vm10, %v4937_v20  ;;  %4603 = vmatmul.msk.f32.gmra.mxu1 %vm765_vm10, %v4937_v20 }
 0x367   : > { %4620 = vmatmul.msk.f32.gmra.mxu2 %vm765_vm10, %v4936_v25  ;;  %4646 = vmatmul.msk.f32.gmra.mxu3 %vm765_vm10, %v4936_v25 }
 0x36b   : > { %4586 = vmatmul.msk.f32.gmra.mxu0 %vm765_vm10, %v4938_v44  ;;  %4604 = vmatmul.msk.f32.gmra.mxu1 %vm765_vm10, %v4938_v44 }
 0x36f   : > { %4621 = vmatmul.msk.f32.gmra.mxu2 %vm765_vm10, %v4937_v20  ;;  %4647 = vmatmul.msk.f32.gmra.mxu3 %vm765_vm10, %v4937_v20 }
 0x373   : > { %4587 = vmatmul.msk.f32.gmra.mxu0 %vm765_vm10, %v4939_v57  ;;  %4605 = vmatmul.msk.f32.gmra.mxu1 %vm765_vm10, %v4939_v57 }
 0x377   : > { %4622 = vmatmul.msk.f32.gmra.mxu2 %vm765_vm10, %v4938_v44  ;;  %4648 = vmatmul.msk.f32.gmra.mxu3 %vm765_vm10, %v4938_v44 }
 0x37b   : > { %4588 = vmatmul.msk.f32.gmra.mxu0 %vm765_vm10, %v4940_v48  ;;  %4606 = vmatmul.msk.f32.gmra.mxu1 %vm765_vm10, %v4940_v48 }
 0x37f   : > { %4623 = vmatmul.msk.f32.gmra.mxu2 %vm765_vm10, %v4939_v57  ;;  %4649 = vmatmul.msk.f32.gmra.mxu3 %vm765_vm10, %v4939_v57 }
 0x380   : > { %v2355_v8 = vpop.f32.mrf.mxu0  ;;  %v2426_v47 = vpop.f32.mrf.mxu1 }
 0x381   : > { %4653 = vst [vmem:[#allocation2 + $0x240] sm:$0xff] %v2355_v8  ;;  %v2715_v6 = vadd.f32 %v2426_v47, %v2355_v8  ;;  %v2877_v12 = vmul.f32 %v2355_v8, %v2355_v8  ;;  %v2878_v49 = vmul.f32 %v2426_v47, %v2426_v47 }
 0x382   : > { %4654 = vst [vmem:[#allocation2 + $0x248] sm:$0xff] %v2426_v47 }
 0x383   : > { %4589 = vmatmul.msk.f32.gmra.mxu0 %vm765_vm10, %v4941_v59  ;;  %4607 = vmatmul.msk.f32.gmra.mxu1 %vm765_vm10, %v4941_v59  ;;  %v2949_v51 = vadd.f32 %v2878_v49, %v2877_v12 }
 0x387   : > { %4624 = vmatmul.msk.f32.gmra.mxu2 %vm765_vm10, %v4940_v48  ;;  %4650 = vmatmul.msk.f32.gmra.mxu3 %vm765_vm10, %v4940_v48 }
 0x388   : > { %v2358_v27 = vpop.f32.mrf.mxu0  ;;  %v2429_v60 = vpop.f32.mrf.mxu1 }
 0x389   : > { %4657 = vst [vmem:[#allocation2 + $0x260] sm:$0xff] %v2358_v27  ;;  %v2721_v35 = vadd.f32 %v2429_v60, %v2358_v27  ;;  %v2881_v4 = vmul.f32 %v2358_v27, %v2358_v27  ;;  %v2882_v38 = vmul.f32 %v2429_v60, %v2429_v60 }
 0x38a   : > { %4658 = vst [vmem:[#allocation2 + $0x268] sm:$0xff] %v2429_v60 }
 0x38b   : > { %4590 = vmatmul.msk.f32.gmra.mxu0 %vm765_vm10, %v4942_v54  ;;  %4608 = vmatmul.msk.f32.gmra.mxu1 %vm765_vm10, %v4942_v54  ;;  %v2955_v62 = vadd.f32 %v2882_v38, %v2881_v4 }
 0x38f   : > { %4625 = vmatmul.msk.f32.gmra.mxu2 %vm765_vm10, %v4941_v59  ;;  %4651 = vmatmul.msk.f32.gmra.mxu3 %vm765_vm10, %v4941_v59 }
 0x390   : > { %v2361_v19 = vpop.f32.mrf.mxu0  ;;  %v2432_v53 = vpop.f32.mrf.mxu1 }
 0x391   : > { %4661 = vst [vmem:[#allocation2 + $0x280] sm:$0xff] %v2361_v19  ;;  %v2727_v56 = vadd.f32 %v2432_v53, %v2361_v19  ;;  %v2885_v16 = vmul.f32 %v2361_v19, %v2361_v19  ;;  %v2886_v61 = vmul.f32 %v2432_v53, %v2432_v53 }
 0x392   : > { %v2497_v0 = vpop.f32.mrf.mxu2  ;;  %v2568_v2 = vpop.f32.mrf.mxu3  ;;  %4662 = vst [vmem:[#allocation2 + $0x288] sm:$0xff] %v2432_v53 }
 0x393   : > { %4655 = vst [vmem:[#allocation2 + $0x250] sm:$0xff] %v2497_v0  ;;  %v2716_v1 = vadd.f32 %v2715_v6, %v2497_v0  ;;  %v2717_v24 = vsel %vm1513_vm12, %v2568_v2, 0.0  ;;  %v2879_v26 = vmul.f32 %v2497_v0, %v2497_v0  ;;  %v2880_v55 = vmul.f32 %v2568_v2, %v2568_v2 }
 0x394   : > { %4656 = vst.msk [vmem:[#allocation2 + $0x258] sm:$0xff] %vm1513_vm12, %v2568_v2  ;;  %v2961_v50 = vadd.f32 %v2886_v61, %v2885_v16 }
 0x395   : > { %v2718_v31 = vadd.f32 %v2717_v24, %v2716_v1  ;;  %v2950_v3 = vadd.f32 %v2949_v51, %v2879_v26  ;;  %v2951_v13 = vsel %vm1513_vm12, %v2880_v55, 0.0 }
 0x397   : > { %4626 = vmatmul.msk.f32.gmra.mxu2 %vm765_vm10, %v4942_v54  ;;  %2719 = vadd.xlane.f32.xlu0 %v2718_v31  ;;  %v2952_v40 = vadd.f32 %v2951_v13, %v2950_v3 }
 0x398   : > { %4652 = vmatmul.msk.f32.gmra.mxu3 %vm765_vm10, %v4942_v54  ;;  %v2364_v17 = vpop.f32.mrf.mxu0  ;;  %v2435_v41 = vpop.f32.mrf.mxu1 }
 0x399   : > { %4665 = vst [vmem:[#allocation2 + $0x2a0] sm:$0xff] %v2364_v17  ;;  %v2733_v23 = vadd.f32 %v2435_v41, %v2364_v17  ;;  %v2889_v58 = vmul.f32 %v2364_v17, %v2364_v17  ;;  %v2890_v30 = vmul.f32 %v2435_v41, %v2435_v41 }
 0x39a   : > { %v2500_v39 = vpop.f32.mrf.mxu2  ;;  %v2571_v11 = vpop.f32.mrf.mxu3  ;;  %4666 = vst [vmem:[#allocation2 + $0x2a8] sm:$0xff] %v2435_v41 }
 0x39b   : > { %4659 = vst [vmem:[#allocation2 + $0x270] sm:$0xff] %v2500_v39  ;;  %v2722_v32 = vadd.f32 %v2721_v35, %v2500_v39  ;;  %v2723_v43 = vsel %vm1513_vm12, %v2571_v11, 0.0  ;;  %v2883_v45 = vmul.f32 %v2500_v39, %v2500_v39  ;;  %v2884_v28 = vmul.f32 %v2571_v11, %v2571_v11 }
 0x39c   : > { %4660 = vst.msk [vmem:[#allocation2 + $0x278] sm:$0xff] %vm1513_vm12, %v2571_v11  ;;  %v2967_v47 = vadd.f32 %v2890_v30, %v2889_v58 }
 0x39d   : > { %v2724_v7 = vadd.f32 %v2723_v43, %v2722_v32  ;;  %v2956_v29 = vadd.f32 %v2955_v62, %v2883_v45  ;;  %v2957_v52 = vsel %vm1513_vm12, %v2884_v28, 0.0 }
 0x39f   : > { %2953 = vadd.xlane.f32.xlu0 %v2952_v40  ;;  %2725 = vadd.xlane.f32.xlu1 %v2724_v7  ;;  %v2958_v46 = vadd.f32 %v2957_v52, %v2956_v29 }
 0x3a0   : > { %v2367_v36 = vpop.f32.mrf.mxu0  ;;  %v2438_v33 = vpop.f32.mrf.mxu1 }
 0x3a1   : > { %4669 = vst [vmem:[#allocation2 + $0x2c0] sm:$0xff] %v2367_v36  ;;  %v2739_v27 = vadd.f32 %v2438_v33, %v2367_v36  ;;  %v2893_v6 = vmul.f32 %v2367_v36, %v2367_v36  ;;  %v2894_v19 = vmul.f32 %v2438_v33, %v2438_v33 }
 0x3a2   : > { %v2503_v10 = vpop.f32.mrf.mxu2  ;;  %v2574_v18 = vpop.f32.mrf.mxu3  ;;  %4670 = vst [vmem:[#allocation2 + $0x2c8] sm:$0xff] %v2438_v33 }
 0x3a3   : > { %4663 = vst [vmem:[#allocation2 + $0x290] sm:$0xff] %v2503_v10  ;;  %v2728_v42 = vadd.f32 %v2727_v56, %v2503_v10  ;;  %v2729_v63 = vsel %vm1513_vm12, %v2574_v18, 0.0  ;;  %v2887_v9 = vmul.f32 %v2503_v10, %v2503_v10  ;;  %v2888_v21 = vmul.f32 %v2574_v18, %v2574_v18 }
 0x3a4   : > { %4664 = vst.msk [vmem:[#allocation2 + $0x298] sm:$0xff] %vm1513_vm12, %v2574_v18  ;;  %v2973_v51 = vadd.f32 %v2894_v19, %v2893_v6 }
 0x3a5   : > { %v2730_v34 = vadd.f32 %v2729_v63, %v2728_v42  ;;  %v2962_v15 = vadd.f32 %v2961_v50, %v2887_v9  ;;  %v2963_v25 = vsel %vm1513_vm12, %v2888_v21, 0.0 }
 0x3a7   : > { %2959 = vadd.xlane.f32.xlu1 %v2958_v46  ;;  %2731 = vadd.xlane.f32.xlu2 %v2730_v34  ;;  %v2964_v8 = vadd.f32 %v2963_v25, %v2962_v15 }
 0x3a8   : > { %v2370_v22 = vpop.f32.mrf.mxu0  ;;  %v2441_v5 = vpop.f32.mrf.mxu1 }
 0x3a9   : > { %4673 = vst [vmem:[#allocation2 + $0x2e0] sm:$0xff] %v2370_v22  ;;  %v2745_v35 = vadd.f32 %v2441_v5, %v2370_v22  ;;  %v2897_v4 = vmul.f32 %v2370_v22, %v2370_v22  ;;  %v2898_v38 = vmul.f32 %v2441_v5, %v2441_v5 }
 0x3aa   : > { %v2506_v37 = vpop.f32.mrf.mxu2  ;;  %v2577_v14 = vpop.f32.mrf.mxu3  ;;  %4674 = vst [vmem:[#allocation2 + $0x2e8] sm:$0xff] %v2441_v5 }
 0x3ab   : > { %4667 = vst [vmem:[#allocation2 + $0x2b0] sm:$0xff] %v2506_v37  ;;  %v2734_v20 = vadd.f32 %v2733_v23, %v2506_v37  ;;  %v2735_v44 = vsel %vm1513_vm12, %v2577_v14, 0.0  ;;  %v2891_v57 = vmul.f32 %v2506_v37, %v2506_v37  ;;  %v2892_v59 = vmul.f32 %v2577_v14, %v2577_v14 }
 0x3ac   : > { %4668 = vst.msk [vmem:[#allocation2 + $0x2b8] sm:$0xff] %vm1513_vm12, %v2577_v14  ;;  %v2979_v62 = vadd.f32 %v2898_v38, %v2897_v4 }
 0x3ad   : > { %v2736_v48 = vadd.f32 %v2735_v44, %v2734_v20  ;;  %v2968_v53 = vadd.f32 %v2967_v47, %v2891_v57  ;;  %v2969_v0 = vsel %vm1513_vm12, %v2892_v59, 0.0 }
 0x3af   : > { %2737 = vadd.xlane.f32.xlu0 %v2736_v48  ;;  %2965 = vadd.xlane.f32.xlu2 %v2964_v8  ;;  %v2970_v26 = vadd.f32 %v2969_v0, %v2968_v53 }
 0x3b0   : > { %v2373_v60 = vpop.f32.mrf.mxu0  ;;  %v2444_v54 = vpop.f32.mrf.mxu1 }
 0x3b1   : > { %4677 = vst [vmem:[#allocation2 + $0x300] sm:$0xff] %v2373_v60  ;;  %v2751_v56 = vadd.f32 %v2444_v54, %v2373_v60  ;;  %v2901_v16 = vmul.f32 %v2373_v60, %v2373_v60  ;;  %v2902_v61 = vmul.f32 %v2444_v54, %v2444_v54 }
 0x3b2   : > { %v2509_v12 = vpop.f32.mrf.mxu2  ;;  %v2580_v49 = vpop.f32.mrf.mxu3  ;;  %4678 = vst [vmem:[#allocation2 + $0x308] sm:$0xff] %v2444_v54 }
 0x3b3   : > { %4671 = vst [vmem:[#allocation2 + $0x2d0] sm:$0xff] %v2509_v12  ;;  %v2740_v2 = vadd.f32 %v2739_v27, %v2509_v12  ;;  %v2741_v1 = vsel %vm1513_vm12, %v2580_v49, 0.0  ;;  %v2895_v24 = vmul.f32 %v2509_v12, %v2509_v12  ;;  %v2896_v55 = vmul.f32 %v2580_v49, %v2580_v49 }
 0x3b4   : > { %4672 = vst.msk [vmem:[#allocation2 + $0x2d8] sm:$0xff] %vm1513_vm12, %v2580_v49  ;;  %v2985_v50 = vadd.f32 %v2902_v61, %v2901_v16 }
 0x3b5   : > { %v2742_v31 = vadd.f32 %v2741_v1, %v2740_v2  ;;  %v2974_v3 = vadd.f32 %v2973_v51, %v2895_v24  ;;  %v2975_v13 = vsel %vm1513_vm12, %v2896_v55, 0.0 }
 0x3b7   : > { %2971 = vadd.xlane.f32.xlu0 %v2970_v26  ;;  %2743 = vadd.xlane.f32.xlu1 %v2742_v31  ;;  %v2976_v40 = vadd.f32 %v2975_v13, %v2974_v3 }
 0x3b8   : > { %v2376_v17 = vpop.f32.mrf.mxu0  ;;  %v2447_v41 = vpop.f32.mrf.mxu1 }
 0x3b9   : > { %4681 = vst [vmem:[#allocation2 + $0x320] sm:$0xff] %v2376_v17  ;;  %v2757_v23 = vadd.f32 %v2447_v41, %v2376_v17  ;;  %v2905_v58 = vmul.f32 %v2376_v17, %v2376_v17  ;;  %v2906_v30 = vmul.f32 %v2447_v41, %v2447_v41 }
 0x3ba   : > { %v2512_v39 = vpop.f32.mrf.mxu2  ;;  %v2583_v11 = vpop.f32.mrf.mxu3  ;;  %4682 = vst [vmem:[#allocation2 + $0x328] sm:$0xff] %v2447_v41 }
 0x3bb   : > { %4675 = vst [vmem:[#allocation2 + $0x2f0] sm:$0xff] %v2512_v39  ;;  %v2746_v32 = vadd.f32 %v2745_v35, %v2512_v39  ;;  %v2747_v43 = vsel %vm1513_vm12, %v2583_v11, 0.0  ;;  %v2899_v45 = vmul.f32 %v2512_v39, %v2512_v39  ;;  %v2900_v28 = vmul.f32 %v2583_v11, %v2583_v11 }
 0x3bc   : > { %4676 = vst.msk [vmem:[#allocation2 + $0x2f8] sm:$0xff] %vm1513_vm12, %v2583_v11  ;;  %v2991_v47 = vadd.f32 %v2906_v30, %v2905_v58 }
 0x3bd   : > { %v2748_v7 = vadd.f32 %v2747_v43, %v2746_v32  ;;  %v2980_v29 = vadd.f32 %v2979_v62, %v2899_v45  ;;  %v2981_v52 = vsel %vm1513_vm12, %v2900_v28, 0.0 }
 0x3bf   : > { %2977 = vadd.xlane.f32.xlu1 %v2976_v40  ;;  %2749 = vadd.xlane.f32.xlu2 %v2748_v7  ;;  %v2982_v34 = vadd.f32 %v2981_v52, %v2980_v29 }
 0x3c0   : > { %v2379_v36 = vpop.f32.mrf.mxu0  ;;  %v2450_v33 = vpop.f32.mrf.mxu1 }
 0x3c1   : > { %4685 = vst [vmem:[#allocation2 + $0x340] sm:$0xff] %v2379_v36  ;;  %v2763_v27 = vadd.f32 %v2450_v33, %v2379_v36  ;;  %v2909_v6 = vmul.f32 %v2379_v36, %v2379_v36  ;;  %v2910_v19 = vmul.f32 %v2450_v33, %v2450_v33 }
 0x3c2   : > { %v2515_v10 = vpop.f32.mrf.mxu2  ;;  %v2586_v18 = vpop.f32.mrf.mxu3  ;;  %4686 = vst [vmem:[#allocation2 + $0x348] sm:$0xff] %v2450_v33 }
 0x3c3   : > { %4679 = vst [vmem:[#allocation2 + $0x310] sm:$0xff] %v2515_v10  ;;  %v2752_v42 = vadd.f32 %v2751_v56, %v2515_v10  ;;  %v2753_v63 = vsel %vm1513_vm12, %v2586_v18, 0.0  ;;  %v2903_v9 = vmul.f32 %v2515_v10, %v2515_v10  ;;  %v2904_v21 = vmul.f32 %v2586_v18, %v2586_v18 }
 0x3c4   : > { %4680 = vst.msk [vmem:[#allocation2 + $0x318] sm:$0xff] %vm1513_vm12, %v2586_v18  ;;  %v2997_v51 = vadd.f32 %v2910_v19, %v2909_v6 }
 0x3c5   : > { %v2754_v46 = vadd.f32 %v2753_v63, %v2752_v42  ;;  %v2986_v15 = vadd.f32 %v2985_v50, %v2903_v9  ;;  %v2987_v25 = vsel %vm1513_vm12, %v2904_v21, 0.0 }
 0x3c7   : > { %2755 = vadd.xlane.f32.xlu0 %v2754_v46  ;;  %2983 = vadd.xlane.f32.xlu2 %v2982_v34  ;;  %v2988_v48 = vadd.f32 %v2987_v25, %v2986_v15 }
 0x3c8   : > { %v2382_v22 = vpop.f32.mrf.mxu0  ;;  %v2453_v5 = vpop.f32.mrf.mxu1 }
 0x3c9   : > { %4689 = vst [vmem:[#allocation2 + $0x360] sm:$0xff] %v2382_v22  ;;  %v2769_v35 = vadd.f32 %v2453_v5, %v2382_v22  ;;  %v2913_v4 = vmul.f32 %v2382_v22, %v2382_v22  ;;  %v2914_v38 = vmul.f32 %v2453_v5, %v2453_v5 }
 0x3ca   : > { %v2518_v37 = vpop.f32.mrf.mxu2  ;;  %v2589_v14 = vpop.f32.mrf.mxu3  ;;  %4690 = vst [vmem:[#allocation2 + $0x368] sm:$0xff] %v2453_v5 }
 0x3cb   : > { %4683 = vst [vmem:[#allocation2 + $0x330] sm:$0xff] %v2518_v37  ;;  %v2758_v20 = vadd.f32 %v2757_v23, %v2518_v37  ;;  %v2759_v44 = vsel %vm1513_vm12, %v2589_v14, 0.0  ;;  %v2907_v57 = vmul.f32 %v2518_v37, %v2518_v37  ;;  %v2908_v59 = vmul.f32 %v2589_v14, %v2589_v14 }
 0x3cc   : > { %4684 = vst.msk [vmem:[#allocation2 + $0x338] sm:$0xff] %vm1513_vm12, %v2589_v14  ;;  %v3003_v62 = vadd.f32 %v2914_v38, %v2913_v4 }
 0x3cd   : > { %v2760_v8 = vadd.f32 %v2759_v44, %v2758_v20  ;;  %v2992_v53 = vadd.f32 %v2991_v47, %v2907_v57  ;;  %v2993_v0 = vsel %vm1513_vm12, %v2908_v59, 0.0 }
 0x3cf   : > { %2989 = vadd.xlane.f32.xlu0 %v2988_v48  ;;  %2761 = vadd.xlane.f32.xlu1 %v2760_v8  ;;  %v2994_v26 = vadd.f32 %v2993_v0, %v2992_v53 }
 0x3d0   : > { %v2385_v60 = vpop.f32.mrf.mxu0  ;;  %v2456_v54 = vpop.f32.mrf.mxu1 }
 0x3d1   : > { %4693 = vst [vmem:[#allocation2 + $0x380] sm:$0xff] %v2385_v60  ;;  %v2775_v56 = vadd.f32 %v2456_v54, %v2385_v60  ;;  %v2917_v16 = vmul.f32 %v2385_v60, %v2385_v60  ;;  %v2918_v61 = vmul.f32 %v2456_v54, %v2456_v54 }
 0x3d2   : > { %v2521_v12 = vpop.f32.mrf.mxu2  ;;  %v2592_v49 = vpop.f32.mrf.mxu3  ;;  %4694 = vst [vmem:[#allocation2 + $0x388] sm:$0xff] %v2456_v54 }
 0x3d3   : > { %4687 = vst [vmem:[#allocation2 + $0x350] sm:$0xff] %v2521_v12  ;;  %v2764_v2 = vadd.f32 %v2763_v27, %v2521_v12  ;;  %v2765_v1 = vsel %vm1513_vm12, %v2592_v49, 0.0  ;;  %v2911_v24 = vmul.f32 %v2521_v12, %v2521_v12  ;;  %v2912_v55 = vmul.f32 %v2592_v49, %v2592_v49 }
 0x3d4   : > { %4688 = vst.msk [vmem:[#allocation2 + $0x358] sm:$0xff] %vm1513_vm12, %v2592_v49  ;;  %v3009_v50 = vadd.f32 %v2918_v61, %v2917_v16 }
 0x3d5   : > { %v2766_v31 = vadd.f32 %v2765_v1, %v2764_v2  ;;  %v2998_v3 = vadd.f32 %v2997_v51, %v2911_v24  ;;  %v2999_v13 = vsel %vm1513_vm12, %v2912_v55, 0.0 }
 0x3d7   : > { %2995 = vadd.xlane.f32.xlu1 %v2994_v26  ;;  %2767 = vadd.xlane.f32.xlu2 %v2766_v31  ;;  %v3000_v7 = vadd.f32 %v2999_v13, %v2998_v3 }
 0x3d8   : > { %v2388_v17 = vpop.f32.mrf.mxu0  ;;  %v2459_v41 = vpop.f32.mrf.mxu1 }
 0x3d9   : > { %4697 = vst [vmem:[#allocation2 + $0x3a0] sm:$0xff] %v2388_v17  ;;  %v2781_v23 = vadd.f32 %v2459_v41, %v2388_v17  ;;  %v2921_v58 = vmul.f32 %v2388_v17, %v2388_v17  ;;  %v2922_v30 = vmul.f32 %v2459_v41, %v2459_v41 }
 0x3da   : > { %v2524_v39 = vpop.f32.mrf.mxu2  ;;  %v2595_v11 = vpop.f32.mrf.mxu3  ;;  %4698 = vst [vmem:[#allocation2 + $0x3a8] sm:$0xff] %v2459_v41 }
 0x3db   : > { %4691 = vst [vmem:[#allocation2 + $0x370] sm:$0xff] %v2524_v39  ;;  %v2770_v32 = vadd.f32 %v2769_v35, %v2524_v39  ;;  %v2771_v43 = vsel %vm1513_vm12, %v2595_v11, 0.0  ;;  %v2915_v45 = vmul.f32 %v2524_v39, %v2524_v39  ;;  %v2916_v28 = vmul.f32 %v2595_v11, %v2595_v11 }
 0x3dc   : > { %4692 = vst.msk [vmem:[#allocation2 + $0x378] sm:$0xff] %vm1513_vm12, %v2595_v11  ;;  %v3015_v47 = vadd.f32 %v2922_v30, %v2921_v58 }
 0x3dd   : > { %v2772_v40 = vadd.f32 %v2771_v43, %v2770_v32  ;;  %v3004_v29 = vadd.f32 %v3003_v62, %v2915_v45  ;;  %v3005_v52 = vsel %vm1513_vm12, %v2916_v28, 0.0 }
 0x3df   : > { %2773 = vadd.xlane.f32.xlu0 %v2772_v40  ;;  %3001 = vadd.xlane.f32.xlu2 %v3000_v7  ;;  %v3006_v46 = vadd.f32 %v3005_v52, %v3004_v29 }
 0x3e0   : > { %v2391_v36 = vpop.f32.mrf.mxu0  ;;  %v2462_v33 = vpop.f32.mrf.mxu1 }
 0x3e1   : > { %4701 = vst [vmem:[#allocation2 + $0x3c0] sm:$0xff] %v2391_v36  ;;  %v2787_v27 = vadd.f32 %v2462_v33, %v2391_v36  ;;  %v2925_v6 = vmul.f32 %v2391_v36, %v2391_v36  ;;  %v2926_v19 = vmul.f32 %v2462_v33, %v2462_v33 }
 0x3e2   : > { %v2527_v10 = vpop.f32.mrf.mxu2  ;;  %v2598_v18 = vpop.f32.mrf.mxu3  ;;  %4702 = vst [vmem:[#allocation2 + $0x3c8] sm:$0xff] %v2462_v33 }
 0x3e3   : > { %4695 = vst [vmem:[#allocation2 + $0x390] sm:$0xff] %v2527_v10  ;;  %v2776_v42 = vadd.f32 %v2775_v56, %v2527_v10  ;;  %v2777_v63 = vsel %vm1513_vm12, %v2598_v18, 0.0  ;;  %v2919_v9 = vmul.f32 %v2527_v10, %v2527_v10  ;;  %v2920_v21 = vmul.f32 %v2598_v18, %v2598_v18 }
 0x3e4   : > { %4696 = vst.msk [vmem:[#allocation2 + $0x398] sm:$0xff] %vm1513_vm12, %v2598_v18  ;;  %v3021_v51 = vadd.f32 %v2926_v19, %v2925_v6 }
 0x3e5   : > { %v2778_v34 = vadd.f32 %v2777_v63, %v2776_v42  ;;  %v3010_v15 = vadd.f32 %v3009_v50, %v2919_v9  ;;  %v3011_v25 = vsel %vm1513_vm12, %v2920_v21, 0.0 }
 0x3e7   : > { %3007 = vadd.xlane.f32.xlu0 %v3006_v46  ;;  %2779 = vadd.xlane.f32.xlu1 %v2778_v34  ;;  %v3012_v48 = vadd.f32 %v3011_v25, %v3010_v15 }
 0x3e8   : > { %v2394_v22 = vpop.f32.mrf.mxu0  ;;  %v2465_v5 = vpop.f32.mrf.mxu1 }
 0x3e9   : > { %4705 = vst [vmem:[#allocation2 + $0x3e0] sm:$0xff] %v2394_v22  ;;  %v2793_v35 = vadd.f32 %v2465_v5, %v2394_v22  ;;  %v2929_v4 = vmul.f32 %v2394_v22, %v2394_v22  ;;  %v2930_v38 = vmul.f32 %v2465_v5, %v2465_v5 }
 0x3ea   : > { %v2530_v37 = vpop.f32.mrf.mxu2  ;;  %v2601_v14 = vpop.f32.mrf.mxu3  ;;  %4706 = vst [vmem:[#allocation2 + $0x3e8] sm:$0xff] %v2465_v5 }
 0x3eb   : > { %4699 = vst [vmem:[#allocation2 + $0x3b0] sm:$0xff] %v2530_v37  ;;  %v2782_v20 = vadd.f32 %v2781_v23, %v2530_v37  ;;  %v2783_v44 = vsel %vm1513_vm12, %v2601_v14, 0.0  ;;  %v2923_v57 = vmul.f32 %v2530_v37, %v2530_v37  ;;  %v2924_v59 = vmul.f32 %v2601_v14, %v2601_v14 }
 0x3ec   : > { %4700 = vst.msk [vmem:[#allocation2 + $0x3b8] sm:$0xff] %vm1513_vm12, %v2601_v14  ;;  %v3027_v62 = vadd.f32 %v2930_v38, %v2929_v4  ;;  %v2697_v14 = vld [vmem:[#allocation3] sm:$0xff] }
 0x3ed   : > { %v2784_v8 = vadd.f32 %v2783_v44, %v2782_v20  ;;  %v3016_v53 = vadd.f32 %v3015_v47, %v2923_v57  ;;  %v3017_v0 = vsel %vm1513_vm12, %v2924_v59, 0.0 }
 0x3ef   : > { %3013 = vadd.xlane.f32.xlu1 %v3012_v48  ;;  %2785 = vadd.xlane.f32.xlu2 %v2784_v8  ;;  %v3018_v31 = vadd.f32 %v3017_v0, %v3016_v53  ;;  %v2859_v0 = vld [vmem:[#allocation4] sm:$0xff] }
 0x3f0   : > { %v2397_v60 = vpop.f32.mrf.mxu0  ;;  %v2468_v54 = vpop.f32.mrf.mxu1 }
 0x3f1   : > { %4709 = vst [vmem:[#allocation2 + $0x400] sm:$0xff] %v2397_v60  ;;  %v2799_v56 = vadd.f32 %v2468_v54, %v2397_v60  ;;  %v2933_v16 = vmul.f32 %v2397_v60, %v2397_v60  ;;  %v2934_v61 = vmul.f32 %v2468_v54, %v2468_v54 }
 0x3f2   : > { %v2533_v12 = vpop.f32.mrf.mxu2  ;;  %v2604_v49 = vpop.f32.mrf.mxu3  ;;  %4710 = vst [vmem:[#allocation2 + $0x408] sm:$0xff] %v2468_v54 }
 0x3f3   : > { %4703 = vst [vmem:[#allocation2 + $0x3d0] sm:$0xff] %v2533_v12  ;;  %v2788_v2 = vadd.f32 %v2787_v27, %v2533_v12  ;;  %v2789_v1 = vsel %vm1513_vm12, %v2604_v49, 0.0  ;;  %v2927_v24 = vmul.f32 %v2533_v12, %v2533_v12  ;;  %v2928_v55 = vmul.f32 %v2604_v49, %v2604_v49 }
 0x3f4   : > { %4704 = vst.msk [vmem:[#allocation2 + $0x3d8] sm:$0xff] %vm1513_vm12, %v2604_v49  ;;  %v3033_v50 = vadd.f32 %v2934_v61, %v2933_v16 }
 0x3f5   : > { %v2790_v26 = vadd.f32 %v2789_v1, %v2788_v2  ;;  %v3022_v3 = vadd.f32 %v3021_v51, %v2927_v24  ;;  %v3023_v13 = vsel %vm1513_vm12, %v2928_v55, 0.0 }
 0x3f7   : > { %2791 = vadd.xlane.f32.xlu0 %v2790_v26  ;;  %3019 = vadd.xlane.f32.xlu2 %v3018_v31  ;;  %v3024_v40 = vadd.f32 %v3023_v13, %v3022_v3  ;;  %v2698_v26 = vld [vmem:[#allocation3 + $0x8] sm:$0xff] }
 0x3f8   : > { %v2400_v17 = vpop.f32.mrf.mxu0  ;;  %v2471_v41 = vpop.f32.mrf.mxu1 }
 0x3f9   : > { %4713 = vst [vmem:[#allocation2 + $0x420] sm:$0xff] %v2400_v17  ;;  %v2805_v23 = vadd.f32 %v2471_v41, %v2400_v17  ;;  %v2937_v58 = vmul.f32 %v2400_v17, %v2400_v17  ;;  %v2938_v30 = vmul.f32 %v2471_v41, %v2471_v41 }
 0x3fa   : > { %v2536_v39 = vpop.f32.mrf.mxu2  ;;  %v2607_v11 = vpop.f32.mrf.mxu3  ;;  %4714 = vst [vmem:[#allocation2 + $0x428] sm:$0xff] %v2471_v41 }
 0x3fb   : > { %4707 = vst [vmem:[#allocation2 + $0x3f0] sm:$0xff] %v2536_v39  ;;  %v2794_v32 = vadd.f32 %v2793_v35, %v2536_v39  ;;  %v2795_v43 = vsel %vm1513_vm12, %v2607_v11, 0.0  ;;  %v2931_v45 = vmul.f32 %v2536_v39, %v2536_v39  ;;  %v2932_v28 = vmul.f32 %v2607_v11, %v2607_v11 }
 0x3fc   : > { %4708 = vst.msk [vmem:[#allocation2 + $0x3f8] sm:$0xff] %vm1513_vm12, %v2607_v11  ;;  %v3039_v60 = vadd.f32 %v2938_v30, %v2937_v58  ;;  %v2862_v30 = vld [vmem:[#allocation4 + $0x18] sm:$0xff] }
 0x3fd   : > { %v2796_v7 = vadd.f32 %v2795_v43, %v2794_v32  ;;  %v3028_v29 = vadd.f32 %v3027_v62, %v2931_v45  ;;  %v3029_v52 = vsel %vm1513_vm12, %v2932_v28, 0.0 }
 0x3ff   : > { %3025 = vadd.xlane.f32.xlu0 %v3024_v40  ;;  %2797 = vadd.xlane.f32.xlu1 %v2796_v7  ;;  %v3030_v46 = vadd.f32 %v3029_v52, %v3028_v29  ;;  %v2699_v40 = vld [vmem:[#allocation3 + $0x10] sm:$0xff] }
 0x400   : > { %v2403_v36 = vpop.f32.mrf.mxu0  ;;  %v2474_v33 = vpop.f32.mrf.mxu1 }
 0x401   : > { %4717 = vst [vmem:[#allocation2 + $0x440] sm:$0xff] %v2403_v36  ;;  %v2811_v6 = vadd.f32 %v2474_v33, %v2403_v36  ;;  %v2941_v19 = vmul.f32 %v2403_v36, %v2403_v36  ;;  %v2942_v53 = vmul.f32 %v2474_v33, %v2474_v33 }
 0x402   : > { %v2539_v10 = vpop.f32.mrf.mxu2  ;;  %v2610_v18 = vpop.f32.mrf.mxu3  ;;  %4718 = vst [vmem:[#allocation2 + $0x448] sm:$0xff] %v2474_v33 }
 0x403   : > { %4711 = vst [vmem:[#allocation2 + $0x410] sm:$0xff] %v2539_v10  ;;  %v2800_v42 = vadd.f32 %v2799_v56, %v2539_v10  ;;  %v2801_v63 = vsel %vm1513_vm12, %v2610_v18, 0.0  ;;  %v2935_v9 = vmul.f32 %v2539_v10, %v2539_v10  ;;  %v2936_v21 = vmul.f32 %v2610_v18, %v2610_v18  ;;  %v2860_v56 = vld [vmem:[#allocation4 + $0x8] sm:$0xff] }
 0x404   : > { %4712 = vst.msk [vmem:[#allocation2 + $0x418] sm:$0xff] %vm1513_vm12, %v2610_v18  ;;  %v3045_v3 = vadd.f32 %v2942_v53, %v2941_v19 }
 0x405   : > { %v2802_v34 = vadd.f32 %v2801_v63, %v2800_v42  ;;  %v3034_v15 = vadd.f32 %v3033_v50, %v2935_v9  ;;  %v3035_v20 = vsel %vm1513_vm12, %v2936_v21, 0.0  ;;  %v2861_v50 = vld [vmem:[#allocation4 + $0x10] sm:$0xff] }
 0x407   : > { %3031 = vadd.xlane.f32.xlu1 %v3030_v46  ;;  %2803 = vadd.xlane.f32.xlu2 %v2802_v34  ;;  %v3036_v27 = vadd.f32 %v3035_v20, %v3034_v15  ;;  %v2700_v46 = vld [vmem:[#allocation3 + $0x18] sm:$0xff] }
 0x408   : > { %v2406_v22 = vpop.f32.mrf.mxu0  ;;  %v2477_v5 = vpop.f32.mrf.mxu1 }
 0x409   : > { %4721 = vst [vmem:[#allocation2 + $0x460] sm:$0xff] %v2406_v22  ;;  %v2817_v11 = vadd.f32 %v2477_v5, %v2406_v22  ;;  %v2945_v13 = vmul.f32 %v2406_v22, %v2406_v22  ;;  %v2946_v32 = vmul.f32 %v2477_v5, %v2477_v5 }
 0x40a   : > { %v2542_v37 = vpop.f32.mrf.mxu2  ;;  %v2720_v25 = vpop.xlane.xlu0 %2719  ;;  %4722 = vst [vmem:[#allocation2 + $0x468] sm:$0xff] %v2477_v5 }
 0x40b   : > { %4715 = vst [vmem:[#allocation2 + $0x430] sm:$0xff] %v2542_v37  ;;  %v2823_v44 = vadd.f32 %v2720_v25, %v2697_v14  ;;  %v2613_v57 = vpop.f32.mrf.mxu3  ;;  %v2806_v48 = vadd.f32 %v2805_v23, %v2542_v37  ;;  %v2939_v47 = vmul.f32 %v2542_v37, %v2542_v37  ;;  %v3051_v10 = vadd.f32 %v2946_v32, %v2945_v13  ;;  %v2701_v37 = vld [vmem:[#allocation3 + $0x20] sm:$0xff]  ;;  %v2868_v13 = vld [vmem:[#allocation4 + $0x48] sm:$0xff] }
 0x40c   : > { %4716 = vst.msk [vmem:[#allocation2 + $0x438] sm:$0xff] %vm1513_vm12, %v2613_v57  ;;  %v2807_v8 = vsel %vm1513_vm12, %v2613_v57, 0.0  ;;  %v2940_v54 = vmul.f32 %v2613_v57, %v2613_v57 }
 0x40d   : > { %2841 = vst.msk [vmem:[#allocation3] sm:$0xff] %vm1727_vm13, %v2823_v44  ;;  %v2808_v59 = vadd.f32 %v2807_v8, %v2806_v48  ;;  %v3040_v12 = vadd.f32 %v3039_v60, %v2939_v47  ;;  %v2863_v44 = vld [vmem:[#allocation4 + $0x20] sm:$0xff]  ;;  %v2702_v48 = vld [vmem:[#allocation3 + $0x28] sm:$0xff] }
 0x40e   : > { %v3041_v1 = vsel %vm1513_vm12, %v2940_v54, 0.0  ;;  %v2864_v54 = vld [vmem:[#allocation4 + $0x28] sm:$0xff] }
 0x40f   : > { %2809 = vadd.xlane.f32.xlu0 %v2808_v59  ;;  %3037 = vadd.xlane.f32.xlu2 %v3036_v27  ;;  %v3042_v4 = vadd.f32 %v3041_v1, %v3040_v12  ;;  %v2703_v27 = vld [vmem:[#allocation3 + $0x30] sm:$0xff]  ;;  %v2865_v12 = vld [vmem:[#allocation4 + $0x30] sm:$0xff] }
 0x412   : > { %v2545_v49 = vpop.f32.mrf.mxu2  ;;  %v2954_v2 = vpop.xlane.xlu0 %2953 }
 0x413   : > { %4719 = vst [vmem:[#allocation2 + $0x450] sm:$0xff] %v2545_v49  ;;  %v3057_v24 = vadd.f32 %v2954_v2, %v2859_v0  ;;  %v2726_v31 = vpop.xlane.xlu1 %2725  ;;  %v2616_v51 = vpop.f32.mrf.mxu3  ;;  %v2812_v55 = vadd.f32 %v2811_v6, %v2545_v49  ;;  %v2943_v41 = vmul.f32 %v2545_v49, %v2545_v49  ;;  %v2704_v0 = vld [vmem:[#allocation3 + $0x38] sm:$0xff] }
 0x414   : > { %v2824_v35 = vadd.f32 %v2726_v31, %v2698_v26  ;;  %4720 = vst.msk [vmem:[#allocation2 + $0x458] sm:$0xff] %vm1513_vm12, %v2616_v51  ;;  %v2813_v17 = vsel %vm1513_vm12, %v2616_v51, 0.0  ;;  %v2944_v39 = vmul.f32 %v2616_v51, %v2616_v51  ;;  %v2866_v26 = vld [vmem:[#allocation4 + $0x38] sm:$0xff]  ;;  %v2705_v51 = vld [vmem:[#allocation3 + $0x40] sm:$0xff] }
 0x415   : > { %3075 = vst.msk [vmem:[#allocation4] sm:$0xff] %vm1727_vm13, %v3057_v24  ;;  %v2814_v38 = vadd.f32 %v2813_v17, %v2812_v55  ;;  %v3046_v43 = vadd.f32 %v3045_v3, %v2943_v41  ;;  %v2706_v41 = vld [vmem:[#allocation3 + $0x48] sm:$0xff] }
 0x416   : > { %2842 = vst.msk [vmem:[#allocation3 + $0x8] sm:$0xff] %vm1727_vm13, %v2824_v35  ;;  %v3047_v62 = vsel %vm1513_vm12, %v2944_v39, 0.0 }
 0x417   : > { %3043 = vadd.xlane.f32.xlu0 %v3042_v4  ;;  %2815 = vadd.xlane.f32.xlu1 %v2814_v38  ;;  %v3048_v52 = vadd.f32 %v3047_v62, %v3046_v43  ;;  %v2867_v38 = vld [vmem:[#allocation4 + $0x40] sm:$0xff]  ;;  %v2869_v62 = vld [vmem:[#allocation4 + $0x50] sm:$0xff] }
 0x418   : > { %v2707_v43 = vld [vmem:[#allocation3 + $0x50] sm:$0xff] }
 0x41a   : > { %v2548_v45 = vpop.f32.mrf.mxu2  ;;  %v2732_v7 = vpop.xlane.xlu2 %2731 }
 0x41b   : > { %4723 = vst [vmem:[#allocation2 + $0x470] sm:$0xff] %v2548_v45  ;;  %v2818_v28 = vadd.f32 %v2817_v11, %v2548_v45  ;;  %v2960_v36 = vpop.xlane.xlu1 %2959  ;;  %v2825_v33 = vadd.f32 %v2732_v7, %v2699_v40  ;;  %v2619_v16 = vpop.f32.mrf.mxu3  ;;  %v2947_v18 = vmul.f32 %v2548_v45, %v2548_v45 }
 0x41c   : > { %v3058_v61 = vadd.f32 %v2960_v36, %v2860_v56  ;;  %4724 = vst.msk [vmem:[#allocation2 + $0x478] sm:$0xff] %vm1513_vm12, %v2619_v16  ;;  %v2819_v29 = vsel %vm1513_vm12, %v2619_v16, 0.0  ;;  %v2948_v63 = vmul.f32 %v2619_v16, %v2619_v16  ;;  %v2708_v56 = vld [vmem:[#allocation3 + $0x58] sm:$0xff] }
 0x41d   : > { %2843 = vst.msk [vmem:[#allocation3 + $0x10] sm:$0xff] %vm1727_vm13, %v2825_v33  ;;  %v2820_v42 = vadd.f32 %v2819_v29, %v2818_v28  ;;  %v3052_v9 = vadd.f32 %v3051_v10, %v2947_v18  ;;  %v2870_v10 = vld [vmem:[#allocation4 + $0x58] sm:$0xff] }
 0x41e   : > { %3076 = vst.msk [vmem:[#allocation4 + $0x8] sm:$0xff] %vm1727_vm13, %v3058_v61  ;;  %v3053_v23 = vsel %vm1513_vm12, %v2948_v63, 0.0  ;;  %v2709_v61 = vld [vmem:[#allocation3 + $0x60] sm:$0xff]  ;;  %v2871_v63 = vld [vmem:[#allocation4 + $0x60] sm:$0xff] }
 0x41f   : > { %3049 = vadd.xlane.f32.xlu1 %v3048_v52  ;;  %2821 = vadd.xlane.f32.xlu2 %v2820_v42  ;;  %v3054_v58 = vadd.f32 %v3053_v23, %v3052_v9  ;;  %v2872_v23 = vld [vmem:[#allocation4 + $0x68] sm:$0xff] }
 0x422   : > { %v2738_v34 = vpop.xlane.xlu0 %2737  ;;  %v2966_v21 = vpop.xlane.xlu2 %2965 }
 0x423   : > { %v2826_v22 = vadd.f32 %v2738_v34, %v2700_v46  ;;  %v3059_v5 = vadd.f32 %v2966_v21, %v2861_v50  ;;  %v2710_v46 = vld [vmem:[#allocation3 + $0x68] sm:$0xff] }
 0x425   : > { %2844 = vst.msk [vmem:[#allocation3 + $0x18] sm:$0xff] %vm1727_vm13, %v2826_v22 }
 0x426   : > { %3077 = vst.msk [vmem:[#allocation4 + $0x10] sm:$0xff] %vm1727_vm13, %v3059_v5  ;;  %v2711_v5 = vld [vmem:[#allocation3 + $0x70] sm:$0xff] }
 0x427   : > { %3055 = vadd.xlane.f32.xlu2 %v3054_v58 }
 0x42a   : > { %v2972_v15 = vpop.xlane.xlu0 %2971  ;;  %v2744_v14 = vpop.xlane.xlu1 %2743 }
 0x42b   : > { %v3060_v25 = vadd.f32 %v2972_v15, %v2862_v30  ;;  %v2827_v20 = vadd.f32 %v2744_v14, %v2701_v37  ;;  %v2712_v37 = vld [vmem:[#allocation3 + $0x78] sm:$0xff] }
 0x42d   : > { %3078 = vst.msk [vmem:[#allocation4 + $0x18] sm:$0xff] %vm1727_vm13, %v3060_v25  ;;  %v2873_v25 = vld [vmem:[#allocation4 + $0x70] sm:$0xff] }
 0x42e   : > { %2845 = vst.msk [vmem:[#allocation3 + $0x20] sm:$0xff] %vm1727_vm13, %v2827_v20 }
 0x432   : > { %v2978_v57 = vpop.xlane.xlu1 %2977  ;;  %v2750_v8 = vpop.xlane.xlu2 %2749 }
 0x433   : > { %v3061_v47 = vadd.f32 %v2978_v57, %v2863_v44  ;;  %v2828_v59 = vadd.f32 %v2750_v8, %v2702_v48  ;;  %v2874_v48 = vld [vmem:[#allocation4 + $0x78] sm:$0xff] }
 0x435   : > { %3079 = vst.msk [vmem:[#allocation4 + $0x20] sm:$0xff] %vm1727_vm13, %v3061_v47  ;;  %v2713_v47 = vld [vmem:[#allocation3 + $0x80] sm:$0xff] }
 0x436   : > { %2846 = vst.msk [vmem:[#allocation3 + $0x28] sm:$0xff] %vm1727_vm13, %v2828_v59 }
 0x43a   : > { %v2756_v60 = vpop.xlane.xlu0 %2755  ;;  %v2984_v6 = vpop.xlane.xlu2 %2983 }
 0x43b   : > { %v2829_v19 = vadd.f32 %v2756_v60, %v2703_v27  ;;  %v3062_v53 = vadd.f32 %v2984_v6, %v2864_v54  ;;  %v2875_v54 = vld [vmem:[#allocation4 + $0x80] sm:$0xff] }
 0x43d   : > { %2847 = vst.msk [vmem:[#allocation3 + $0x30] sm:$0xff] %vm1727_vm13, %v2829_v19  ;;  %v2714_v19 = vld [vmem:[#allocation3 + $0x88] sm:$0xff] }
 0x43e   : > { %3080 = vst.msk [vmem:[#allocation4 + $0x28] sm:$0xff] %vm1727_vm13, %v3062_v53 }
 0x442   : > { %v2990_v49 = vpop.xlane.xlu0 %2989  ;;  %v2762_v2 = vpop.xlane.xlu1 %2761 }
 0x443   : > { %v3063_v1 = vadd.f32 %v2990_v49, %v2865_v12  ;;  %v2830_v24 = vadd.f32 %v2762_v2, %v2704_v0  ;;  %v2876_v0 = vld [vmem:[#allocation4 + $0x88] sm:$0xff] }
 0x445   : > { %3081 = vst.msk [vmem:[#allocation4 + $0x30] sm:$0xff] %vm1727_vm13, %v3063_v1 }
 0x446   : > { %2848 = vst.msk [vmem:[#allocation3 + $0x38] sm:$0xff] %vm1727_vm13, %v2830_v24 }
 0x44a   : > { %v2996_v31 = vpop.xlane.xlu1 %2995  ;;  %v2768_v55 = vpop.xlane.xlu2 %2767 }
 0x44b   : > { %v3064_v35 = vadd.f32 %v2996_v31, %v2866_v26  ;;  %v2831_v17 = vadd.f32 %v2768_v55, %v2705_v51 }
 0x44d   : > { %3082 = vst.msk [vmem:[#allocation4 + $0x38] sm:$0xff] %vm1727_vm13, %v3064_v35 }
 0x44e   : > { %2849 = vst.msk [vmem:[#allocation3 + $0x40] sm:$0xff] %vm1727_vm13, %v2831_v17 }
 0x452   : > { %v2774_v4 = vpop.xlane.xlu0 %2773  ;;  %v3002_v3 = vpop.xlane.xlu2 %3001 }
 0x453   : > { %v2832_v39 = vadd.f32 %v2774_v4, %v2706_v41  ;;  %v3065_v11 = vadd.f32 %v3002_v3, %v2867_v38 }
 0x455   : > { %2850 = vst.msk [vmem:[#allocation3 + $0x48] sm:$0xff] %vm1727_vm13, %v2832_v39 }
 0x456   : > { %3083 = vst.msk [vmem:[#allocation4 + $0x40] sm:$0xff] %vm1727_vm13, %v3065_v11 }
 0x45a   : > { %v3008_v32 = vpop.xlane.xlu0 %3007  ;;  %v2780_v45 = vpop.xlane.xlu1 %2779 }
 0x45b   : > { %v3066_v40 = vadd.f32 %v3008_v32, %v2868_v13  ;;  %v2833_v7 = vadd.f32 %v2780_v45, %v2707_v43 }
 0x45d   : > { %3084 = vst.msk [vmem:[#allocation4 + $0x48] sm:$0xff] %vm1727_vm13, %v3066_v40 }
 0x45e   : > { %2851 = vst.msk [vmem:[#allocation3 + $0x50] sm:$0xff] %vm1727_vm13, %v2833_v7 }
 0x462   : > { %v3014_v28 = vpop.xlane.xlu1 %3013  ;;  %v2786_v36 = vpop.xlane.xlu2 %2785 }
 0x463   : > { %v3067_v33 = vadd.f32 %v3014_v28, %v2869_v62  ;;  %v2834_v16 = vadd.f32 %v2786_v36, %v2708_v56 }
 0x465   : > { %3085 = vst.msk [vmem:[#allocation4 + $0x50] sm:$0xff] %vm1727_vm13, %v3067_v33 }
 0x466   : > { %2852 = vst.msk [vmem:[#allocation3 + $0x58] sm:$0xff] %vm1727_vm13, %v2834_v16 }
 0x46a   : > { %v2792_v29 = vpop.xlane.xlu0 %2791  ;;  %v3020_v18 = vpop.xlane.xlu2 %3019 }
 0x46b   : > { %v2835_v52 = vadd.f32 %v2792_v29, %v2709_v61  ;;  %v3068_v42 = vadd.f32 %v3020_v18, %v2870_v10 }
 0x46d   : > { %2853 = vst.msk [vmem:[#allocation3 + $0x60] sm:$0xff] %vm1727_vm13, %v2835_v52 }
 0x46e   : > { %3086 = vst.msk [vmem:[#allocation4 + $0x58] sm:$0xff] %vm1727_vm13, %v3068_v42 }
 0x472   : > { %v3026_v9 = vpop.xlane.xlu0 %3025  ;;  %v2798_v34 = vpop.xlane.xlu1 %2797 }
 0x473   : > { %v3069_v50 = vadd.f32 %v3026_v9, %v2871_v63  ;;  %v2836_v21 = vadd.f32 %v2798_v34, %v2710_v46 }
 0x475   : > { %3087 = vst.msk [vmem:[#allocation4 + $0x60] sm:$0xff] %vm1727_vm13, %v3069_v50 }
 0x476   : > { %2854 = vst.msk [vmem:[#allocation3 + $0x68] sm:$0xff] %vm1727_vm13, %v2836_v21 }
 0x47a   : > { %v3032_v22 = vpop.xlane.xlu1 %3031  ;;  %v2804_v58 = vpop.xlane.xlu2 %2803 }
 0x47b   : > { %v3070_v30 = vadd.f32 %v3032_v22, %v2872_v23  ;;  %v2837_v15 = vadd.f32 %v2804_v58, %v2711_v5 }
 0x47d   : > { %3088 = vst.msk [vmem:[#allocation4 + $0x68] sm:$0xff] %vm1727_vm13, %v3070_v30 }
 0x47e   : > { %2855 = vst.msk [vmem:[#allocation3 + $0x70] sm:$0xff] %vm1727_vm13, %v2837_v15 }
 0x482   : > { %v2810_v14 = vpop.xlane.xlu0 %2809  ;;  %v3038_v20 = vpop.xlane.xlu2 %3037 }
 0x483   : > { %v2838_v44 = vadd.f32 %v2810_v14, %v2712_v37  ;;  %v3071_v57 = vadd.f32 %v3038_v20, %v2873_v25 }
 0x485   : > { %2856 = vst.msk [vmem:[#allocation3 + $0x78] sm:$0xff] %vm1727_vm13, %v2838_v44 }
 0x486   : > { %3089 = vst.msk [vmem:[#allocation4 + $0x70] sm:$0xff] %vm1727_vm13, %v3071_v57 }
 0x48a   : > { %v3044_v8 = vpop.xlane.xlu0 %3043  ;;  %v2816_v59 = vpop.xlane.xlu1 %2815 }
 0x48b   : > { %v3072_v27 = vadd.f32 %v3044_v8, %v2874_v48  ;;  %v2839_v60 = vadd.f32 %v2816_v59, %v2713_v47 }
 0x48d   : > { %3090 = vst.msk [vmem:[#allocation4 + $0x78] sm:$0xff] %vm1727_vm13, %v3072_v27 }
 0x48e   : > { %2857 = vst.msk [vmem:[#allocation3 + $0x80] sm:$0xff] %vm1727_vm13, %v2839_v60 }
 0x492   : > { %v3050_v6 = vpop.xlane.xlu1 %3049  ;;  %v2822_v53 = vpop.xlane.xlu2 %2821 }
 0x493   : > { %v3073_v12 = vadd.f32 %v3050_v6, %v2875_v54  ;;  %v2840_v49 = vadd.f32 %v2822_v53, %v2714_v19 }
 0x495   : > { %3091 = vst.msk [vmem:[#allocation4 + $0x80] sm:$0xff] %vm1727_vm13, %v3073_v12 }
 0x496   : > { %2858 = vst.msk [vmem:[#allocation3 + $0x88] sm:$0xff] %vm1727_vm13, %v2840_v49 }
 0x49a   : > { %v3056_v2 = vpop.xlane.xlu2 %3055 }
 0x49b   : > { %v3074_v1 = vadd.f32 %v3056_v2, %v2876_v0 }
 0x49d   : > { %3092 = vst.msk [vmem:[#allocation4 + $0x88] sm:$0xff] %vm1727_vm13, %v3074_v1 }
 0x49e PF: > { %p4725_p6 = scmp.ne.s32.totalorder %s4998_s13, 1 }
 0x4a0   : > { %3096 = sbr.rel (%p4725_p6) target bundleno = 1521 (0x5f1), region = 72 }
 0x4a5   : > { %v5011_v24 = vmov 0   ;;  %v5012_v26 = vmov 800.0   ;;  %v3101_v17 = vld [vmem:[#allocation3 + $0x20] sm:$0xff]  ;;  %v3144_v41 = vld [vmem:[#allocation4 + $0x20] sm:$0xff]  ;;  %v3102_v13 = vld [vmem:[#allocation3 + $0x28] sm:$0xff] }
 0x4a6   : > { %4945 = vset.pattern.permute.xlu2 %v5011_v24  ;;  %4944 = vset.pattern.permute.xlu1 %v5011_v24  ;;  %4946 = vrcp.f32 %v5012_v26  ;;  %v3099_v38 = vld [vmem:[#allocation3 + $0x10] sm:$0xff]  ;;  %v3142_v3 = vld [vmem:[#allocation4 + $0x10] sm:$0xff]  ;;  %v3145_v32 = vld [vmem:[#allocation4 + $0x28] sm:$0xff] }
 0x4a7   : > { %4943 = vset.pattern.permute.xlu0 %v5011_v24  ;;  %v3097_v39 = vld [vmem:[#allocation3] sm:$0xff]  ;;  %v3140_v11 = vld [vmem:[#allocation4] sm:$0xff]  ;;  %v3100_v45 = vld [vmem:[#allocation3 + $0x18] sm:$0xff] }
 0x4a8   : > { %v3143_v40 = vld [vmem:[#allocation4 + $0x18] sm:$0xff]  ;;  %v3141_v33 = vld [vmem:[#allocation4 + $0x8] sm:$0xff]  ;;  %v3105_v18 = vld [vmem:[#allocation3 + $0x40] sm:$0xff] }
 0x4a9   : > { %v3098_v36 = vld [vmem:[#allocation3 + $0x8] sm:$0xff]  ;;  %v3148_v46 = vld [vmem:[#allocation4 + $0x40] sm:$0xff]  ;;  %v3104_v15 = vld [vmem:[#allocation3 + $0x38] sm:$0xff] }
 0x4aa   : > { %v3147_v54 = vld [vmem:[#allocation4 + $0x38] sm:$0xff]  ;;  %v3103_v19 = vld [vmem:[#allocation3 + $0x30] sm:$0xff]  ;;  %v3146_v12 = vld [vmem:[#allocation4 + $0x30] sm:$0xff] }
 0x4ab   : > { %v3108_v49 = vld [vmem:[#allocation3 + $0x58] sm:$0xff]  ;;  %v3151_v26 = vld [vmem:[#allocation4 + $0x58] sm:$0xff] }
 0x4ac   : > { %v4947_v31 = vpop.eup %4946 }
 0x4ad   : > { %v3116_v51 = vmul.f32 800.0, %v4947_v31  ;;  %vm3120_vm14 = vweird.f32 %v4947_v31 }
 0x4af   : > { %v3117_v55 = vsub.f32 1.0, %v3116_v51 }
 0x4b1   : > { %v3118_v35 = vmul.f32 %v4947_v31, %v3117_v55 }
 0x4b3   : > { %v3119_v4 = vadd.f32 %v4947_v31, %v3118_v35 }
 0x4b5   : > { %v6642_v43 = vsel %vm3120_vm14, %v4947_v31, %v3119_v4 }
 0x4b6   : > { %v6645_v7 = vmul.f32 %v6642_v43, %v3101_v17  ;;  %v3162_v62 = vmul.f32 %v3144_v41, %v6642_v43  ;;  %v6649_v28 = vmul.f32 %v6642_v43, %v3099_v38  ;;  %v3160_v56 = vmul.f32 %v3142_v3, %v6642_v43  ;;  %v3107_v41 = vld [vmem:[#allocation3 + $0x50] sm:$0xff] }
 0x4b7   : > { %v6653_v16 = vmul.f32 %v6642_v43, %v3097_v39  ;;  %v3158_v61 = vmul.f32 %v3140_v11, %v6642_v43  ;;  %v6657_v29 = vmul.f32 %v6642_v43, %v3102_v13  ;;  %v3163_v10 = vmul.f32 %v3145_v32, %v6642_v43 }
 0x4b8   : > { %v3180_v52 = vmul.f32 %v6645_v7, %v6645_v7  ;;  %v3178_v42 = vmul.f32 %v6649_v28, %v6649_v28  ;;  %v6665_v63 = vmul.f32 %v6642_v43, %v3100_v45  ;;  %v3161_v9 = vmul.f32 %v3143_v40, %v6642_v43 }
 0x4b9   : > { %v3176_v34 = vmul.f32 %v6653_v16, %v6653_v16  ;;  %v3181_v50 = vmul.f32 %v6657_v29, %v6657_v29  ;;  %v6673_v21 = vmul.f32 %v6642_v43, %v3098_v36  ;;  %v3159_v23 = vmul.f32 %v3141_v33, %v6642_v43 }
 0x4ba   : > { %v3198_v22 = vsub.f32 %v3162_v62, %v3180_v52  ;;  %v3196_v5 = vsub.f32 %v3160_v56, %v3178_v42  ;;  %v3179_v58 = vmul.f32 %v6665_v63, %v6665_v63  ;;  %v6679_v30 = vmul.f32 %v6642_v43, %v3105_v18 }
 0x4bb   : > { %v3194_v37 = vsub.f32 %v3158_v61, %v3176_v34  ;;  %v3199_v14 = vsub.f32 %v3163_v10, %v3181_v50  ;;  %v3177_v25 = vmul.f32 %v6673_v21, %v6673_v21  ;;  %v3166_v20 = vmul.f32 %v3148_v46, %v6642_v43 }
 0x4bc   : > { %v6684_v44 = vadd.f32 1e-05, %v3198_v22  ;;  %v6686_v57 = vadd.f32 1e-05, %v3196_v5  ;;  %v3197_v48 = vsub.f32 %v3161_v9, %v3179_v58  ;;  %v3184_v8 = vmul.f32 %v6679_v30, %v6679_v30 }
 0x4bd   : > { %v6690_v47 = vadd.f32 1e-05, %v3194_v37  ;;  %v6692_v59 = vadd.f32 1e-05, %v3199_v14  ;;  %v3195_v27 = vsub.f32 %v3159_v23, %v3177_v25  ;;  %v6695_v60 = vmul.f32 %v6642_v43, %v3104_v15 }
 0x4be   : > { %4948 = vrsqrt.f32 %v6684_v44  ;;  %v6698_v6 = vadd.f32 1e-05, %v3197_v48  ;;  %v3202_v0 = vsub.f32 %v3166_v20, %v3184_v8  ;;  %v3165_v2 = vmul.f32 %v3147_v54, %v6642_v43  ;;  %v3216_v54 = vld [vmem:[%s7952_s8 + $0x20] sm:$0xff] }
 0x4bf   : > { %4950 = vrsqrt.f32 %v6686_v57  ;;  %v6701_v53 = vadd.f32 1e-05, %v3195_v27  ;;  %vm3294_vm15 = vweird.f32 %v6684_v44  ;;  %v3183_v1 = vmul.f32 %v6695_v60, %v6695_v60 }
 0x4c0   : > { %4952 = vrsqrt.f32 %v6690_v47  ;;  %v6710_v24 = vmul.f32 %v6642_v43, %v3103_v19  ;;  %v6713_v31 = vadd.f32 1e-05, %v3202_v0  ;;  %v6716_v51 = vmul.f32 %v3146_v12, %v6642_v43 }
 0x4c1   : > { %4954 = vrsqrt.f32 %v6692_v59  ;;  %v6719_v55 = vmul.f32 %v6642_v43, %v3108_v49  ;;  %vm3274_vm0 = vweird.f32 %v6686_v57  ;;  %v3201_v35 = vsub.f32 %v3165_v2, %v3183_v1  ;;  %v3214_v2 = vld [vmem:[%s7952_s8 + $0x10] sm:$0xff] }
 0x4c2   : > { %4956 = vrsqrt.f32 %v6698_v6  ;;  %v6725_v17 = vmul.f32 %v6710_v24, %v6710_v24  ;;  %vm3254_vm1 = vweird.f32 %v6690_v47  ;;  %v6732_v38 = vmul.f32 %v3151_v26, %v6642_v43 }
 0x4c3   : > { %4958 = vrsqrt.f32 %v6701_v53  ;;  %v6736_v3 = vmul.f32 %v6719_v55, %v6719_v55  ;;  %vm3304_vm2 = vweird.f32 %v6692_v59  ;;  %vm3284_vm3 = vweird.f32 %v6698_v6 }
 0x4c4   : > { %v6727_v4 = vpop.eup %4948  ;;  %4960 = vrsqrt.f32 %v6713_v31  ;;  %v6744_v13 = vadd.f32 1e-05, %v3201_v35  ;;  %vm3264_vm5 = vweird.f32 %v6701_v53  ;;  %v3200_v40 = vsub.f32 %v6716_v51, %v6725_v17 }
 0x4c5   : > { %v6738_v39 = vpop.eup %4950  ;;  %v3289_v11 = vmul.f32 %v6727_v4, %v6684_v44  ;;  %vm3295_vm4 = vweird.f32 %v6727_v4  ;;  %v6755_v62 = vmul.f32 %v6642_v43, %v3107_v41  ;;  %v3205_v52 = vsub.f32 %v6732_v38, %v6736_v3 }
 0x4c6   : > { %v6746_v32 = vpop.eup %4952  ;;  %v3269_v45 = vmul.f32 %v6738_v39, %v6686_v57  ;;  %vm3275_vm6 = vweird.f32 %v6738_v39  ;;  %4962 = vrsqrt.f32 %v6744_v13  ;;  %vm3334_vm10 = vweird.f32 %v6713_v31  ;;  %vm6792_vm11 = vmor %vm3294_vm15, %vm3295_vm4  ;;  %v3110_v57 = vld [vmem:[#allocation3 + $0x68] sm:$0xff] }
 0x4c7   : > { %v6757_v56 = vpop.eup %4954  ;;  %v3290_v36 = vmul.f32 %v6727_v4, %v3289_v11  ;;  %v3249_v33 = vmul.f32 %v6746_v32, %v6690_v47  ;;  %vm3255_vm7 = vweird.f32 %v6746_v32  ;;  %vm6808_vm13 = vmor %vm3274_vm0, %vm3275_vm6  ;;  %vm3324_vm4 = vweird.f32 %v6744_v13 }
 0x4c8   : > { %v6764_v61 = vpop.eup %4956  ;;  %v3270_v10 = vmul.f32 %v6738_v39, %v3269_v45  ;;  %v3299_v18 = vmul.f32 %v6757_v56, %v6692_v59  ;;  %vm3305_vm8 = vweird.f32 %v6757_v56  ;;  %vm6821_vm14 = vmor %vm3254_vm1, %vm3255_vm7  ;;  %v3212_v45 = vld [vmem:[%s7952_s8] sm:$0xff]  ;;  %v6948_v47 = vmul.f32 %v6642_v43, %v3110_v57 }
 0x4c9   : > { %v6772_v42 = vpop.eup %4958  ;;  %v3291_v9 = vmul.f32 0.5, %v3290_v36  ;;  %v3250_v46 = vmul.f32 %v6746_v32, %v3249_v33  ;;  %v3279_v34 = vmul.f32 %v6764_v61, %v6698_v6  ;;  %vm3285_vm9 = vweird.f32 %v6764_v61  ;;  %vm6838_vm15 = vmor %vm3304_vm2, %vm3305_vm8 }
 0x4ca   : > { %v6778_v50 = vpop.eup %4960  ;;  %v3271_v23 = vmul.f32 0.5, %v3270_v10  ;;  %v3300_v22 = vmul.f32 %v6757_v56, %v3299_v18  ;;  %v3259_v5 = vmul.f32 %v6772_v42, %v6701_v53  ;;  %vm3265_vm12 = vweird.f32 %v6772_v42  ;;  %vm6852_vm0 = vmor %vm3284_vm3, %vm3285_vm9  ;;  %v3215_v53 = vld [vmem:[%s7952_s8 + $0x18] sm:$0xff] }
 0x4cb   : > { %v3292_v58 = vsub.f32 1.5, %v3291_v9  ;;  %v3251_v15 = vmul.f32 0.5, %v3250_v46  ;;  %v3280_v37 = vmul.f32 %v6764_v61, %v3279_v34  ;;  %v3329_v14 = vmul.f32 %v6778_v50, %v6713_v31  ;;  %vm6866_vm1 = vmor %vm3264_vm5, %vm3265_vm12 }
 0x4cc   : > { %v3272_v20 = vsub.f32 1.5, %v3271_v23  ;;  %v3301_v48 = vmul.f32 0.5, %v3300_v22  ;;  %v3260_v8 = vmul.f32 %v6772_v42, %v3259_v5  ;;  %v6798_v27 = vpop.eup %4962  ;;  %v3150_v5 = vld [vmem:[#allocation4 + $0x50] sm:$0xff]  ;;  %vm3335_vm2 = vweird.f32 %v6778_v50 }
 0x4cd   : > { %v3293_v19 = vmul.f32 %v6727_v4, %v3292_v58  ;;  %v3252_v12 = vsub.f32 1.5, %v3251_v15  ;;  %v3281_v49 = vmul.f32 0.5, %v3280_v37  ;;  %v3330_v0 = vmul.f32 %v6778_v50, %v3329_v14  ;;  %vm6904_vm3 = vmor %vm3334_vm10, %vm3335_vm2 }
 0x4ce   : > { %v3273_v1 = vmul.f32 %v6738_v39, %v3272_v20  ;;  %v3302_v26 = vsub.f32 1.5, %v3301_v48  ;;  %v3261_v35 = vmul.f32 0.5, %v3260_v8  ;;  %v3319_v41 = vmul.f32 %v6798_v27, %v6744_v13  ;;  %v3220_v13 = vld [vmem:[%s7952_s8 + $0x40] sm:$0xff] }
 0x4cf   : > { %v3297_v11 = vsel %vm6792_vm11, %v6727_v4, %v3293_v19  ;;  %v3253_v36 = vmul.f32 %v6746_v32, %v3252_v12  ;;  %v3282_v33 = vsub.f32 1.5, %v3281_v49  ;;  %v3331_v10 = vmul.f32 0.5, %v3330_v0  ;;  %v3149_v19 = vld [vmem:[#allocation4 + $0x48] sm:$0xff] }
 0x4d0   : > { %v6842_v18 = vmul.f32 %v3297_v11, %v3216_v54  ;;  %v3277_v4 = vsel %vm6808_vm13, %v6738_v39, %v3273_v1  ;;  %v3303_v9 = vmul.f32 %v6757_v56, %v3302_v26  ;;  %v3262_v46 = vsub.f32 1.5, %v3261_v35  ;;  %v3106_v54 = vld [vmem:[#allocation3 + $0x48] sm:$0xff]  ;;  %v3154_v1 = vld [vmem:[#allocation4 + $0x70] sm:$0xff] }
 0x4d1   : > { %v6856_v34 = vmul.f32 %v3277_v4, %v3214_v2  ;;  %v3257_v23 = vsel %vm6821_vm14, %v6746_v32, %v3253_v36  ;;  %v3283_v22 = vmul.f32 %v6764_v61, %v3282_v33  ;;  %v3332_v6 = vsub.f32 1.5, %v3331_v10  ;;  %v3217_v32 = vld [vmem:[%s7952_s8 + $0x28] sm:$0xff]  ;;  %v3111_v2 = vld [vmem:[#allocation3 + $0x70] sm:$0xff]  ;;  %v3109_v35 = vld [vmem:[#allocation3 + $0x60] sm:$0xff] }
 0x4d2   : > { %3597 = vperm.xlu2 %4945, %v6842_v18   ;;  %v6871_v58 = vmul.f32 %v3257_v23, %v3212_v45  ;;  %v3307_v15 = vsel %vm6838_vm15, %v6757_v56, %v3303_v9  ;;  %v3263_v37 = vmul.f32 %v6772_v42, %v3262_v46  ;;  %v3213_v56 = vld [vmem:[%s7952_s8 + $0x8] sm:$0xff]  ;;  %v3320_v48 = vmul.f32 %v6798_v27, %v3319_v41  ;;  %v3152_v41 = vld [vmem:[#allocation4 + $0x60] sm:$0xff] }
 0x4d3   : > { %3587 = vperm.xlu1 %4944, %v6856_v34   ;;  %v3287_v14 = vsel %vm6852_vm0, %v6764_v61, %v3283_v22  ;;  %v3333_v20 = vmul.f32 %v6778_v50, %v3332_v6  ;;  %v3168_v8 = vmul.f32 %v3150_v5, %v6642_v43  ;;  %v6898_v44 = vmul.f32 %v3307_v15, %v3217_v32  ;;  %v3114_v39 = vld [vmem:[#allocation3 + $0x88] sm:$0xff]  ;;  %v3219_v6 = vld [vmem:[%s7952_s8 + $0x38] sm:$0xff] }
 0x4d4   : > { %3577 = vperm.xlu0 %4943, %v6871_v58   ;;  %v3267_v25 = vsel %vm6866_vm1, %v6772_v42, %v3263_v37  ;;  %v6900_v61 = vmul.f32 %v3287_v14, %v3215_v53  ;;  %v6912_v42 = vadd.f32 1e-05, %v3200_v40  ;;  %v3321_v49 = vmul.f32 0.5, %v3320_v48  ;;  %v3153_v40 = vld [vmem:[#allocation4 + $0x68] sm:$0xff] }
 0x4d5   : > { %vm3325_vm5 = vweird.f32 %v6798_v27  ;;  %v6918_v0 = vadd.f32 1e-05, %v3205_v52  ;;  %v3186_v31 = vmul.f32 %v6755_v62, %v6755_v62  ;;  %v6922_v26 = vmul.f32 %v3267_v25, %v3213_v56 }
 0x4d6   : > { %4964 = vrsqrt.f32 %v6912_v42  ;;  %v6926_v51 = vmul.f32 %v6642_v43, %v3106_v54  ;;  %v3167_v17 = vmul.f32 %v3149_v19, %v6642_v43  ;;  %v3337_v38 = vsel %vm6904_vm3, %v6778_v50, %v3333_v20  ;;  %vm6937_vm6 = vmor %vm3324_vm4, %vm3325_vm5  ;;  %v3113_v54 = vld [vmem:[#allocation3 + $0x80] sm:$0xff] }
 0x4d7   : > { %v3322_v3 = vsub.f32 1.5, %v3321_v49  ;;  %4966 = vrsqrt.f32 %v6918_v0  ;;  %v3204_v52 = vsub.f32 %v3168_v8, %v3186_v31  ;;  %v6944_v36 = vmul.f32 %v6642_v43, %v3111_v2  ;;  %v3157_v8 = vld [vmem:[#allocation4 + $0x88] sm:$0xff] }
 0x4d8   : > { %v3185_v45 = vmul.f32 %v6926_v51, %v6926_v51  ;;  %v3172_v50 = vmul.f32 %v3154_v1, %v6642_v43  ;;  %v3171_v4 = vmul.f32 %v3153_v40, %v6642_v43  ;;  %v6959_v9 = vmul.f32 %v6642_v43, %v3109_v35 }
 0x4d9   : > { %v3323_v33 = vmul.f32 %v6798_v27, %v3322_v3  ;;  %v6955_v10 = vadd.f32 1e-05, %v3204_v52  ;;  %v3190_v46 = vmul.f32 %v6944_v36, %v6944_v36  ;;  %v3189_v23 = vmul.f32 %v6948_v47, %v6948_v47  ;;  %v3156_v52 = vld [vmem:[#allocation4 + $0x80] sm:$0xff] }
 0x4da   : > { %3602 = vperm.xlu2 %4945, %v6898_v44   ;;  %v3203_v59 = vsub.f32 %v3167_v17, %v3185_v45  ;;  %v3170_v22 = vmul.f32 %v3152_v41, %v6642_v43  ;;  %v3188_v32 = vmul.f32 %v6959_v9, %v6959_v9  ;;  %v6979_v53 = vmul.f32 %v3337_v38, %v3220_v13 }
 0x4db   : > { %3592 = vperm.xlu1 %4944, %v6900_v61   ;;  %v3327_v5 = vsel %vm6937_vm6, %v6798_v27, %v3323_v33  ;;  %4968 = vrsqrt.f32 %v6955_v10  ;;  %v3208_v14 = vsub.f32 %v3172_v50, %v3190_v46  ;;  %v3207_v56 = vsub.f32 %v3171_v4, %v3189_v23 }
 0x4dc   : > { %3582 = vperm.xlu0 %4943, %v6922_v26   ;;  %v6977_v15 = vpop.eup %4964  ;;  %v6981_v37 = vadd.f32 1e-05, %v3203_v59  ;;  %vm3314_vm7 = vweird.f32 %v6912_v42  ;;  %v3206_v27 = vsub.f32 %v3170_v22, %v3188_v32  ;;  %v6989_v48 = vmul.f32 %v6642_v43, %v3114_v39  ;;  %v3218_v22 = vld [vmem:[%s7952_s8 + $0x30] sm:$0xff]  ;;  %v3223_v32 = vld [vmem:[%s7952_s8 + $0x58] sm:$0xff] }
 0x4dd   : > { %v6983_v25 = vpop.eup %4966  ;;  %v3309_v20 = vmul.f32 %v6977_v15, %v6912_v42  ;;  %v6991_v19 = vmul.f32 %v3327_v5, %v3219_v6  ;;  %vm3364_vm8 = vweird.f32 %v6918_v0  ;;  %v6998_v31 = vadd.f32 1e-05, %v3208_v14 }
 0x4de   : > { %v3359_v12 = vmul.f32 %v6983_v25, %v6918_v0  ;;  %4970 = vrsqrt.f32 %v6981_v37  ;;  %v7000_v2 = vadd.f32 1e-05, %v3207_v56  ;;  %v7002_v1 = vadd.f32 1e-05, %v3206_v27  ;;  %v3112_v56 = vld [vmem:[#allocation3 + $0x78] sm:$0xff] }
 0x4df   : > { %v3310_v49 = vmul.f32 %v6977_v15, %v3309_v20  ;;  %v3175_v17 = vmul.f32 %v3157_v8, %v6642_v43  ;;  %v3193_v40 = vmul.f32 %v6989_v48, %v6989_v48  ;;  %v7009_v35 = vmul.f32 %v6642_v43, %v3113_v54 }
 0x4e0   : > { %v3360_v57 = vmul.f32 %v6983_v25, %v3359_v12  ;;  %vm3315_vm9 = vweird.f32 %v6977_v15  ;;  %vm3354_vm10 = vweird.f32 %v6955_v10  ;;  %4972 = vrsqrt.f32 %v6998_v31 }
 0x4e1   : > { %v7011_v38 = vpop.eup %4968  ;;  %v3311_v3 = vmul.f32 0.5, %v3310_v49  ;;  %vm3365_vm11 = vweird.f32 %v6983_v25  ;;  %4974 = vrsqrt.f32 %v7000_v2  ;;  %vm3344_vm12 = vweird.f32 %v6981_v37  ;;  %vm7028_vm13 = vmor %vm3314_vm7, %vm3315_vm9 }
 0x4e2   : > { %3617 = vperm.xlu2 %4945, %v6979_v53   ;;  %v3361_v41 = vmul.f32 0.5, %v3360_v57  ;;  %v3349_v11 = vmul.f32 %v7011_v38, %v6955_v10  ;;  %4976 = vrsqrt.f32 %v7002_v1  ;;  %v3211_v50 = vsub.f32 %v3175_v17, %v3193_v40  ;;  %vm7045_vm15 = vmor %vm3364_vm8, %vm3365_vm11 }
 0x4e3   : > { %3612 = vperm.xlu1 %4944, %v6991_v19   ;;  %v3312_v45 = vsub.f32 1.5, %v3311_v3  ;;  %vm3394_vm14 = vweird.f32 %v6998_v31  ;;  %v3174_v46 = vmul.f32 %v3156_v52, %v6642_v43  ;;  %v3192_v23 = vmul.f32 %v7009_v35, %v7009_v35 }
 0x4e4   : > { %v7024_v13 = vpop.eup %4970  ;;  %v3362_v4 = vsub.f32 1.5, %v3361_v41  ;;  %v3350_v59 = vmul.f32 %v7011_v38, %v3349_v11  ;;  %vm3355_vm0 = vweird.f32 %v7011_v38  ;;  %vm3384_vm1 = vweird.f32 %v7000_v2 }
 0x4e5   : > { %v3313_v42 = vmul.f32 %v6977_v15, %v3312_v45  ;;  %v3339_v6 = vmul.f32 %v7024_v13, %v6981_v37  ;;  %v7053_v5 = vadd.f32 1e-05, %v3211_v50  ;;  %vm3345_vm2 = vweird.f32 %v7024_v13  ;;  %vm7085_vm4 = vmor %vm3354_vm10, %vm3355_vm0  ;;  %v3155_v45 = vld [vmem:[#allocation4 + $0x78] sm:$0xff]  ;;  %v3222_v50 = vld [vmem:[%s7952_s8 + $0x50] sm:$0xff] }
 0x4e6   : > { %v3363_v14 = vmul.f32 %v6983_v25, %v3362_v4  ;;  %v3351_v0 = vmul.f32 0.5, %v3350_v59  ;;  %vm3374_vm3 = vweird.f32 %v7002_v1  ;;  %v7061_v20 = vpop.eup %4972  ;;  %v3210_v54 = vsub.f32 %v3174_v46, %v3192_v23  ;;  %vm7113_vm7 = vmor %vm3344_vm12, %vm3345_vm2 }
 0x4e7   : > { %v3317_v27 = vsel %vm7028_vm13, %v6977_v15, %v3313_v42  ;;  %v3340_v8 = vmul.f32 %v7024_v13, %v3339_v6  ;;  %4978 = vrsqrt.f32 %v7053_v5  ;;  %v7068_v12 = vpop.eup %4974  ;;  %v3389_v40 = vmul.f32 %v7061_v20, %v6998_v31  ;;  %v3448_v31 = vld [vmem:[%s7953_s9 + $0x10] sm:$0xff] }
 0x4e8   : > { %v7070_v49 = vmul.f32 %v3317_v27, %v3218_v22  ;;  %v3367_v57 = vsel %vm7045_vm15, %v6983_v25, %v3363_v14  ;;  %v3352_v17 = vsub.f32 1.5, %v3351_v0  ;;  %v7077_v3 = vpop.eup %4976  ;;  %v3379_v25 = vmul.f32 %v7068_v12, %v7000_v2 }
 0x4e9   : > { %v7079_v15 = vmul.f32 %v3367_v57, %v3223_v32  ;;  %v3341_v41 = vmul.f32 0.5, %v3340_v8  ;;  %v7092_v11 = vmul.f32 %v6642_v43, %v3112_v56  ;;  %v3390_v33 = vmul.f32 %v7061_v20, %v3389_v40 }
 0x4ea   : > { %3607 = vperm.xlu0 %4943, %v7070_v49   ;;  %v3353_v10 = vmul.f32 %v7011_v38, %v3352_v17  ;;  %vm3395_vm5 = vweird.f32 %v7061_v20  ;;  %v3369_v4 = vmul.f32 %v7077_v3, %v7002_v1  ;;  %v3380_v46 = vmul.f32 %v7068_v12, %v3379_v25 }
 0x4eb   : > { %3632 = vperm.xlu2 %4945, %v7079_v15   ;;  %v3342_v59 = vsub.f32 1.5, %v3341_v41  ;;  %vm3385_vm6 = vweird.f32 %v7068_v12  ;;  %v3246_v23 = vadd.f32 1e-05, %v3210_v54  ;;  %v3391_v39 = vmul.f32 0.5, %v3390_v33  ;;  %vm7135_vm9 = vmor %vm3394_vm14, %vm3395_vm5  ;;  %v3226_v41 = vld [vmem:[%s7952_s8 + $0x70] sm:$0xff]  ;;  %v3227_v33 = vld [vmem:[%s7952_s8 + $0x78] sm:$0xff] }
 0x4ec   : > { %v3357_v22 = vsel %vm7085_vm4, %v7011_v38, %v3353_v10  ;;  %v3370_v6 = vmul.f32 %v7077_v3, %v3369_v4  ;;  %v3173_v32 = vmul.f32 %v3155_v45, %v6642_v43  ;;  %v3221_v38 = vld [vmem:[%s7952_s8 + $0x48] sm:$0xff]  ;;  %v3381_v27 = vmul.f32 0.5, %v3380_v46  ;;  %vm7151_vm10 = vmor %vm3384_vm1, %vm3385_vm6 }
 0x4ed   : > { %v4979_v14 = vpop.eup %4978  ;;  %v7119_v0 = vmul.f32 %v3357_v22, %v3222_v50  ;;  %v3343_v56 = vmul.f32 %v7024_v13, %v3342_v59  ;;  %4980 = vrsqrt.f32 %v3246_v23  ;;  %v3392_v37 = vsub.f32 1.5, %v3391_v39  ;;  %v3225_v50 = vld [vmem:[%s7952_s8 + $0x68] sm:$0xff]  ;;  %v3224_v39 = vld [vmem:[%s7952_s8 + $0x60] sm:$0xff] }
 0x4ee   : > { %v3371_v8 = vmul.f32 0.5, %v3370_v6  ;;  %vm3375_vm8 = vweird.f32 %v7077_v3  ;;  %v3419_v54 = vmul.f32 %v4979_v14, %v7053_v5  ;;  %v3382_v17 = vsub.f32 1.5, %v3381_v27  ;;  %v3229_v27 = vld [vmem:[%s7952_s8 + $0x88] sm:$0xff] }
 0x4ef   : > { %3627 = vperm.xlu1 %4944, %v7119_v0   ;;  %v3347_v43 = vsel %vm7113_vm7, %v7024_v13, %v3343_v56  ;;  %v3191_v40 = vmul.f32 %v7092_v11, %v7092_v11  ;;  %v3393_v13 = vmul.f32 %v7061_v20, %v3392_v37  ;;  %vm7163_vm11 = vmor %vm3374_vm3, %vm3375_vm8  ;;  %vm3424_vm12 = vweird.f32 %v7053_v5 }
 0x4f0   : > { %v7141_v52 = vmul.f32 %v3347_v43, %v3221_v38  ;;  %v3372_v25 = vsub.f32 1.5, %v3371_v8  ;;  %v3420_v45 = vmul.f32 %v4979_v14, %v3419_v54  ;;  %v3383_v10 = vmul.f32 %v7068_v12, %v3382_v17  ;;  %v3228_v17 = vld [vmem:[%s7952_s8 + $0x80] sm:$0xff] }
 0x4f1   : > { %v3209_v2 = vsub.f32 %v3173_v32, %v3191_v40  ;;  %v3397_v4 = vsel %vm7135_vm9, %v7061_v20, %v3393_v13  ;;  %vm3425_vm13 = vweird.f32 %v4979_v14  ;;  %vm3414_vm15 = vweird.f32 %v3246_v23 }
 0x4f2   : > { %3622 = vperm.xlu0 %4943, %v7141_v52   ;;  %v3373_v59 = vmul.f32 %v7077_v3, %v3372_v25  ;;  %v3421_v46 = vmul.f32 0.5, %v3420_v45  ;;  %v7173_v42 = vmul.f32 %v3397_v4, %v3226_v41  ;;  %v3387_v1 = vsel %vm7151_vm10, %v7068_v12, %v3383_v10  ;;  %vm3426_vm14 = vmor %vm3424_vm12, %vm3425_vm13 }
 0x4f3   : > { %v4981_v22 = vpop.eup %4980  ;;  %v3245_v6 = vadd.f32 1e-05, %v3209_v2  ;;  %v7181_v32 = vmul.f32 %v3387_v1, %v3225_v50  ;;  %v3466_v13 = vmul.f32 %v6856_v34, %v6649_v28  ;;  %v3465_v10 = vmul.f32 %v6922_v26, %v6673_v21  ;;  %v3447_v34 = vld [vmem:[%s7953_s9 + $0x8] sm:$0xff] }
 0x4f4   : > { %v3377_v20 = vsel %vm7163_vm11, %v7077_v3, %v3373_v59  ;;  %v3422_v38 = vsub.f32 1.5, %v3421_v46  ;;  %v3409_v56 = vmul.f32 %v4981_v22, %v3246_v23  ;;  %3647 = vperm.xlu2 %4945, %v7173_v42   ;;  %vm3415_vm0 = vweird.f32 %v4981_v22  ;;  %v3451_v21 = vld [vmem:[%s7953_s9 + $0x28] sm:$0xff] }
 0x4f5   : > { %4982 = vrsqrt.f32 %v3245_v6  ;;  %v7189_v12 = vmul.f32 %v3377_v20, %v3224_v39  ;;  %vm3416_vm1 = vmor %vm3414_vm15, %vm3415_vm0  ;;  %vm3404_vm2 = vweird.f32 %v3245_v6  ;;  %v3484_v50 = vsub.f32 %v3448_v31, %v3466_v13 }
 0x4f6   : > { %v3423_v37 = vmul.f32 %v4979_v14, %v3422_v38  ;;  %v3410_v8 = vmul.f32 %v4981_v22, %v3409_v56  ;;  %v3483_v4 = vsub.f32 %v3447_v34, %v3465_v10  ;;  %v3469_v59 = vmul.f32 %v6898_v44, %v6657_v29  ;;  %v3450_v29 = vld [vmem:[%s7953_s9 + $0x20] sm:$0xff]  ;;  %v3449_v56 = vld [vmem:[%s7953_s9 + $0x18] sm:$0xff] }
 0x4f7   : > { %3642 = vperm.xlu1 %4944, %v7181_v32   ;;  %v3464_v1 = vmul.f32 %v6871_v58, %v6653_v16  ;;  %v3454_v16 = vld [vmem:[%s7953_s9 + $0x40] sm:$0xff]  ;;  %v3471_v38 = vmul.f32 %v6991_v19, %v6695_v60  ;;  %v3470_v60 = vmul.f32 %v7070_v49, %v6710_v24  ;;  %v3474_v19 = vmul.f32 %v7119_v0, %v6755_v62  ;;  %v3460_v24 = vld [vmem:[%s7953_s9 + $0x70] sm:$0xff] }
 0x4f8   : > { %v3427_v54 = vsel %vm3426_vm14, %v4979_v14, %v3423_v37  ;;  %v3411_v3 = vmul.f32 0.5, %v3410_v8  ;;  %v3487_v39 = vsub.f32 %v3451_v21, %v3469_v59  ;;  %v3475_v37 = vmul.f32 %v7079_v15, %v6719_v55  ;;  %v3452_v8 = vld [vmem:[%s7953_s9 + $0x30] sm:$0xff]  ;;  %v3514_v59 = vld [vmem:[#allocation2 + $0x58] sm:$0xff] }
 0x4f9   : > { %v7195_v43 = vmul.f32 %v3427_v54, %v3229_v27  ;;  %v3456_v55 = vld [vmem:[%s7953_s9 + $0x50] sm:$0xff]  ;;  %v3488_v15 = vsub.f32 %v3452_v8, %v3470_v60  ;;  %v3473_v62 = vmul.f32 %v7141_v52, %v6926_v51  ;;  %v3477_v0 = vmul.f32 %v7181_v32, %v6948_v47  ;;  %v3463_v51 = vld [vmem:[%s7953_s9 + $0x88] sm:$0xff]  ;;  %v3526_v8 = vld [vmem:[#allocation2 + $0xb8] sm:$0xff] }
 0x4fa   : > { %3637 = vperm.xlu0 %4943, %v7189_v12   ;;  %v3412_v5 = vsub.f32 1.5, %v3411_v3  ;;  %v3492_v54 = vsub.f32 %v3456_v55, %v3474_v19  ;;  %v3478_v3 = vmul.f32 %v7173_v42, %v6944_v36  ;;  %v3459_v36 = vld [vmem:[%s7953_s9 + $0x68] sm:$0xff]  ;;  %v3476_v47 = vmul.f32 %v7189_v12, %v6959_v9  ;;  %v3525_v60 = vld [vmem:[#allocation2 + $0xb0] sm:$0xff] }
 0x4fb   : > { %v4983_v57 = vpop.eup %4982  ;;  %vm3902_vm5 = vcmask 130048  }
 0x4fc   : > { %v3413_v40 = vmul.f32 %v4981_v22, %v3412_v5  ;;  %v3399_v41 = vmul.f32 %v4983_v57, %v3245_v6  ;;  %3662 = vperm.xlu2 %4945, %v7195_v43   ;;  %vm3405_vm3 = vweird.f32 %v4983_v57  ;;  %v3446_v6 = vld [vmem:[%s7953_s9] sm:$0xff]  ;;  %v3496_v49 = vsub.f32 %v3460_v24, %v3478_v3  ;;  %v3455_v5 = vld [vmem:[%s7953_s9 + $0x48] sm:$0xff] }
 0x4fd   : > { %vm3406_vm4 = vmor %vm3404_vm2, %vm3405_vm3  ;;  %v3482_v44 = vsub.f32 %v3446_v6, %v3464_v1  ;;  %v3491_v42 = vsub.f32 %v3455_v5, %v3473_v62  ;;  %v4736_v6 = vld [vmem:[#allocation2 + $0x290] sm:$0xff]  ;;  %v4747_v3 = vld [vmem:[#allocation2 + $0x2e8] sm:$0xff] }
 0x4fe   : > { %v3417_v23 = vsel %vm3416_vm1, %v4981_v22, %v3413_v40  ;;  %v3400_v14 = vmul.f32 %v4983_v57, %v3399_v41  ;;  %v3468_v22 = vmul.f32 %v6842_v18, %v6645_v7  ;;  %v3472_v7 = vmul.f32 %v6979_v53, %v6679_v30  ;;  %v3453_v30 = vld [vmem:[%s7953_s9 + $0x38] sm:$0xff]  ;;  %v3458_v40 = vld [vmem:[%s7953_s9 + $0x60] sm:$0xff] }
 0x4ff   : > { %v7207_v25 = vmul.f32 %v3417_v23, %v3228_v17  ;;  %v3467_v18 = vmul.f32 %v6900_v61, %v6665_v63  ;;  %v3489_v27 = vsub.f32 %v3453_v30, %v3471_v38  ;;  %v3457_v63 = vld [vmem:[%s7953_s9 + $0x58] sm:$0xff]  ;;  %v3481_v17 = vmul.f32 %v7195_v43, %v6989_v48  ;;  %v3462_v48 = vld [vmem:[%s7953_s9 + $0x80] sm:$0xff] }
 0x500   : > { %v3401_v45 = vmul.f32 0.5, %v3400_v14  ;;  %v3486_v20 = vsub.f32 %v3450_v29, %v3468_v22  ;;  %v3490_v58 = vsub.f32 %v3454_v16, %v3472_v7  ;;  %v3493_v61 = vsub.f32 %v3457_v63, %v3475_v37  ;;  %v3523_v37 = vld [vmem:[#allocation2 + $0xa0] sm:$0xff]  ;;  %v3524_v63 = vld [vmem:[#allocation2 + $0xa8] sm:$0xff] }
 0x501   : > { %3657 = vperm.xlu1 %4944, %v7207_v25   ;;  %v3485_v53 = vsub.f32 %v3449_v56, %v3467_v18  ;;  %v3499_v52 = vsub.f32 %v3463_v51, %v3481_v17  ;;  %v3480_v32 = vmul.f32 %v7207_v25, %v7009_v35  ;;  %v3494_v41 = vsub.f32 %v3458_v40, %v3476_v47  ;;  %v3461_v35 = vld [vmem:[%s7953_s9 + $0x78] sm:$0xff] }
 0x502   : > { %v3402_v28 = vsub.f32 1.5, %v3401_v45 }
 0x503   : > { %v3498_v13 = vsub.f32 %v3462_v48, %v3480_v32 }
 0x504   : > { %v3403_v2 = vmul.f32 %v4983_v57, %v3402_v28  ;;  %3749 = vperm.xlu2 %4945, %v3484_v50  }
 0x506   : > { %v3407_v46 = vsel %vm3406_vm4, %v4983_v57, %v3403_v2  ;;  %v3495_v57 = vsub.f32 %v3459_v36, %v3477_v0  ;;  %v3512_v2 = vld [vmem:[#allocation2 + $0x48] sm:$0xff]  ;;  %v4748_v0 = vld [vmem:[#allocation2 + $0x2f0] sm:$0xff] }
 0x507   : > { %v3443_v26 = vmul.f32 %v3407_v46, %v3227_v33  ;;  %v3511_v33 = vld [vmem:[#allocation2 + $0x40] sm:$0xff] }
 0x508   : > { %v4734_v46 = vld [vmem:[#allocation2 + $0x280] sm:$0xff] }
 0x509   : > { %3652 = vperm.xlu0 %4943, %v3443_v26   ;;  %3744 = vperm.xlu1 %4944, %v3483_v4   ;;  %v3479_v9 = vmul.f32 %v3443_v26, %v7092_v11  ;;  %v3513_v4 = vld [vmem:[#allocation2 + $0x50] sm:$0xff]  ;;  %v4735_v26 = vld [vmem:[#allocation2 + $0x288] sm:$0xff] }
 0x50b   : > { %v3497_v23 = vsub.f32 %v3461_v35, %v3479_v9  ;;  %v3535_v35 = vld [vmem:[#allocation2 + $0x100] sm:$0xff] }
 0x50c   : > { %3764 = vperm.xlu2 %4945, %v3487_v39  }
 0x511   : > { %3739 = vperm.xlu0 %4943, %v3482_v44   ;;  %3759 = vperm.xlu1 %4944, %v3486_v20   ;;  %v4737_v20 = vld [vmem:[#allocation2 + $0x298] sm:$0xff] }
 0x514   : > { %3779 = vperm.xlu2 %4945, %v3490_v58  }
 0x519   : > { %3754 = vperm.xlu0 %4943, %v3485_v53   ;;  %3774 = vperm.xlu1 %4944, %v3489_v27  }
 0x51c   : > { %3794 = vperm.xlu2 %4945, %v3493_v61  }
 0x521   : > { %3769 = vperm.xlu0 %4943, %v3488_v15   ;;  %3789 = vperm.xlu1 %4944, %v3492_v54   ;;  %v4746_v15 = vld [vmem:[#allocation2 + $0x2e0] sm:$0xff] }
 0x524   : > { %3809 = vperm.xlu2 %4945, %v3496_v49  }
 0x529   : > { %3784 = vperm.xlu0 %4943, %v3491_v42   ;;  %3804 = vperm.xlu1 %4944, %v3495_v57   ;;  %v4749_v57 = vld [vmem:[#allocation2 + $0x2f8] sm:$0xff] }
 0x52c   : > { %v7293_v43 = vpop.permute.xlu2 %3597  ;;  %3824 = vperm.xlu2 %4945, %v3499_v52  }
 0x531   : > { %3799 = vperm.xlu0 %4943, %v3494_v41   ;;  %3819 = vperm.xlu1 %4944, %v3498_v13  }
 0x534   : > { %v7299_v12 = vpop.permute.xlu2 %3602 }
 0x535   : > { %v3685_v24 = vmul.f32 %v7299_v12, %v3523_v37  ;;  %v3686_v62 = vmul.f32 %v7299_v12, %v3524_v63  ;;  %v3687_v49 = vmul.f32 %v7299_v12, %v3525_v60  ;;  %v3688_v5 = vmul.f32 %v7299_v12, %v3526_v8  ;;  %v3547_v63 = vld [vmem:[#allocation2 + $0x160] sm:$0xff]  ;;  %v3548_v60 = vld [vmem:[#allocation2 + $0x168] sm:$0xff] }
 0x536   : > { %v4067_v17 = vmul.f32 %v4746_v15, %v7299_v12  ;;  %v4068_v32 = vmul.f32 %v4747_v3, %v7299_v12  ;;  %v4069_v41 = vmul.f32 %v4748_v0, %v7299_v12  ;;  %v4070_v9 = vmul.f32 %v4749_v57, %v7299_v12  ;;  %v4771_v3 = vld [vmem:[#allocation2 + $0x3a8] sm:$0xff]  ;;  %v4772_v0 = vld [vmem:[#allocation2 + $0x3b0] sm:$0xff]  ;;  %v4773_v57 = vld [vmem:[#allocation2 + $0x3b8] sm:$0xff] }
 0x539   : > { %3814 = vperm.xlu0 %4943, %v3497_v23   ;;  %v3536_v23 = vld [vmem:[#allocation2 + $0x108] sm:$0xff] }
 0x53c   : > { %v7301_v14 = vpop.permute.xlu2 %3617 }
 0x545   : > { %v3588_v31 = vpop.permute.xlu1 %3587  ;;  %v7303_v25 = vpop.permute.xlu2 %3632 }
 0x546   : > { %v7305_v45 = vpop.permute.xlu0 %3577  ;;  %v3673_v22 = vmul.f32 %v3588_v31, %v3511_v33  ;;  %v3674_v1 = vmul.f32 %v3588_v31, %v3512_v2  ;;  %v3675_v39 = vmul.f32 %v3588_v31, %v3513_v4  ;;  %v3676_v29 = vmul.f32 %v3588_v31, %v3514_v59  ;;  %v3538_v2 = vld [vmem:[#allocation2 + $0x118] sm:$0xff]  ;;  %v4758_v59 = vld [vmem:[#allocation2 + $0x340] sm:$0xff] }
 0x547   : > { %v4055_v7 = vmul.f32 %v4734_v46, %v3588_v31  ;;  %v4056_v38 = vmul.f32 %v4735_v26, %v3588_v31  ;;  %v4057_v53 = vmul.f32 %v4736_v6, %v3588_v31  ;;  %v4058_v61 = vmul.f32 %v4737_v20, %v3588_v31  ;;  %v3537_v31 = vld [vmem:[#allocation2 + $0x110] sm:$0xff]  ;;  %v4759_v46 = vld [vmem:[#allocation2 + $0x348] sm:$0xff] }
 0x548   : > { %v3697_v26 = vmul.f32 %v7301_v14, %v3535_v35  ;;  %v3700_v6 = vmul.f32 %v7301_v14, %v3538_v2  ;;  %v4079_v20 = vmul.f32 %v4758_v59, %v7301_v14  ;;  %v3510_v59 = vld [vmem:[#allocation2 + $0x38] sm:$0xff] }
 0x54d   : > { %v7307_v50 = vpop.permute.xlu1 %3592 }
 0x54e   : > { %v7309_v10 = vpop.permute.xlu2 %3647  ;;  %v7311_v11 = vpop.permute.xlu0 %3582 }
 0x555   : > { %v7315_v34 = vpop.permute.xlu1 %3612 }
 0x556   : > { %v7313_v28 = vpop.permute.xlu2 %3662 }
 0x55c   : > { %v7317_v21 = vpop.permute.xlu0 %3607 }
 0x55e   : > { %v3750_v44 = vpop.permute.xlu2 %3749 }
 0x55f   : > { %v3835_v16 = vadd.f32 %v3750_v44, %v3673_v22  ;;  %v3836_v18 = vadd.f32 %v3750_v44, %v3674_v1  ;;  %v3837_v58 = vadd.f32 %v3750_v44, %v3675_v39  ;;  %v3838_v30 = vadd.f32 %v3750_v44, %v3676_v29  ;;  %v4760_v39 = vld [vmem:[#allocation2 + $0x350] sm:$0xff] }
 0x560   : > { %v4127_v27 = vadd.f32 %v4055_v7, %v3750_v44  ;;  %v4128_v19 = vadd.f32 %v4056_v38, %v3750_v44  ;;  %v4129_v55 = vadd.f32 %v4057_v53, %v3750_v44  ;;  %v4130_v54 = vadd.f32 %v4058_v61, %v3750_v44  ;;  %v4761_v44 = vld [vmem:[#allocation2 + $0x358] sm:$0xff]  ;;  %v3549_v61 = vld [vmem:[#allocation2 + $0x170] sm:$0xff] }
 0x561   : > { %v7319_v56 = vpop.permute.xlu1 %3627  ;;  %3908 = vst [vmem:[%s7954_s10 + $0x40] sm:$0xff] %v3835_v16  ;;  %v3698_v22 = vmul.f32 %v7301_v14, %v3536_v23  ;;  %v3699_v1 = vmul.f32 %v7301_v14, %v3537_v31  ;;  %v4081_v53 = vmul.f32 %v4760_v39, %v7301_v14  ;;  %v4082_v37 = vmul.f32 %v4761_v44, %v7301_v14  ;;  %v3509_v31 = vld [vmem:[#allocation2 + $0x30] sm:$0xff] }
 0x562   : > { %3909 = vst [vmem:[%s7954_s10 + $0x48] sm:$0xff] %v3836_v18  ;;  %v4094_v23 = vmul.f32 %v4773_v57, %v7303_v25  ;;  %v3671_v39 = vmul.f32 %v7311_v11, %v3509_v31  ;;  %v3672_v44 = vmul.f32 %v7311_v11, %v3510_v59 }
 0x563   : > { %3910 = vst [vmem:[%s7954_s10 + $0x50] sm:$0xff] %v3837_v58  ;;  %v4080_v58 = vmul.f32 %v4759_v46, %v7301_v14 }
 0x564   : > { %3911 = vst.msk [vmem:[%s7954_s10 + $0x58] sm:$0xff] %vm3902_vm5, %v3838_v30  ;;  %v7344_v36 = vpop.permute.xlu0 %3622 }
 0x565   : > { %4806 = vst [vmem:[%s7954_s10 + $0x280] sm:$0xff] %v4127_v27 }
 0x566   : > { %4807 = vst [vmem:[%s7954_s10 + $0x288] sm:$0xff] %v4128_v19  ;;  %v3765_v42 = vpop.permute.xlu2 %3764 }
 0x567   : > { %4808 = vst [vmem:[%s7954_s10 + $0x290] sm:$0xff] %v4129_v55  ;;  %v3847_v51 = vadd.f32 %v3765_v42, %v3685_v24  ;;  %v3848_v47 = vadd.f32 %v3765_v42, %v3686_v62  ;;  %v3849_v52 = vadd.f32 %v3765_v42, %v3687_v49  ;;  %v3850_v48 = vadd.f32 %v3765_v42, %v3688_v5  ;;  %v3550_v55 = vld [vmem:[#allocation2 + $0x178] sm:$0xff] }
 0x568   : > { %4809 = vst.msk [vmem:[%s7954_s10 + $0x298] sm:$0xff] %vm3902_vm5, %v4130_v54  ;;  %v4139_v13 = vadd.f32 %v4067_v17, %v3765_v42  ;;  %v4140_v33 = vadd.f32 %v4068_v32, %v3765_v42  ;;  %v4141_v4 = vadd.f32 %v4069_v41, %v3765_v42  ;;  %v4142_v12 = vadd.f32 %v4070_v9, %v3765_v42  ;;  %v4770_v54 = vld [vmem:[#allocation2 + $0x3a0] sm:$0xff]  ;;  %v3508_v9 = vld [vmem:[#allocation2 + $0x28] sm:$0xff] }
 0x569   : > { %v7355_v40 = vpop.permute.xlu1 %3642  ;;  %3920 = vst [vmem:[%s7954_s10 + $0xa0] sm:$0xff] %v3847_v51  ;;  %v3709_v24 = vmul.f32 %v7303_v25, %v3547_v63  ;;  %v3710_v62 = vmul.f32 %v7303_v25, %v3548_v60  ;;  %v3711_v49 = vmul.f32 %v7303_v25, %v3549_v61  ;;  %v3712_v5 = vmul.f32 %v7303_v25, %v3550_v55  ;;  %v3505_v60 = vld [vmem:[#allocation2 + $0x10] sm:$0xff] }
 0x56a   : > { %3921 = vst [vmem:[%s7954_s10 + $0xa8] sm:$0xff] %v3848_v47  ;;  %v4091_v17 = vmul.f32 %v4770_v54, %v7303_v25  ;;  %v4092_v32 = vmul.f32 %v4771_v3, %v7303_v25  ;;  %v4726_v3 = vld [vmem:[#allocation2 + $0x240] sm:$0xff] }
 0x56b   : > { %3922 = vst [vmem:[%s7954_s10 + $0xb0] sm:$0xff] %v3849_v52 }
 0x56c   : > { %3923 = vst.msk [vmem:[%s7954_s10 + $0xb8] sm:$0xff] %vm3902_vm5, %v3850_v48  ;;  %v7391_v38 = vpop.permute.xlu0 %3637  ;;  %v3507_v48 = vld [vmem:[#allocation2 + $0x20] sm:$0xff] }
 0x56d   : > { %4818 = vst [vmem:[%s7954_s10 + $0x2e0] sm:$0xff] %v4139_v13  ;;  %v4093_v13 = vmul.f32 %v4772_v0, %v7303_v25  ;;  %v3670_v25 = vmul.f32 %v7311_v11, %v3508_v9 }
 0x56e   : > { %4819 = vst [vmem:[%s7954_s10 + $0x2e8] sm:$0xff] %v4140_v33  ;;  %v3780_v29 = vpop.permute.xlu2 %3779 }
 0x56f   : > { %4820 = vst [vmem:[%s7954_s10 + $0x2f0] sm:$0xff] %v4141_v4  ;;  %v3859_v7 = vadd.f32 %v3780_v29, %v3697_v26  ;;  %v3860_v16 = vadd.f32 %v3780_v29, %v3698_v22  ;;  %v3861_v18 = vadd.f32 %v3780_v29, %v3699_v1  ;;  %v3862_v30 = vadd.f32 %v3780_v29, %v3700_v6  ;;  %v4730_v26 = vld [vmem:[#allocation2 + $0x260] sm:$0xff]  ;;  %v4731_v1 = vld [vmem:[#allocation2 + $0x268] sm:$0xff] }
 0x570   : > { %4821 = vst.msk [vmem:[%s7954_s10 + $0x2f8] sm:$0xff] %vm3902_vm5, %v4142_v12  ;;  %v4151_v27 = vadd.f32 %v4079_v20, %v3780_v29  ;;  %v4152_v8 = vadd.f32 %v4080_v58, %v3780_v29  ;;  %v4153_v15 = vadd.f32 %v4081_v53, %v3780_v29  ;;  %v4154_v14 = vadd.f32 %v4082_v37, %v3780_v29  ;;  %v4732_v29 = vld [vmem:[#allocation2 + $0x270] sm:$0xff]  ;;  %v3503_v58 = vld [vmem:[#allocation2] sm:$0xff] }
 0x571   : > { %3932 = vst [vmem:[%s7954_s10 + $0x100] sm:$0xff] %v3859_v7  ;;  %v3669_v12 = vmul.f32 %v7311_v11, %v3507_v48  ;;  %v4733_v7 = vld [vmem:[#allocation2 + $0x278] sm:$0xff]  ;;  %v4053_v37 = vmul.f32 %v4732_v29, %v7311_v11  ;;  %v3665_v54 = vmul.f32 %v7305_v45, %v3503_v58 }
 0x572   : > { %3933 = vst [vmem:[%s7954_s10 + $0x108] sm:$0xff] %v3860_v16  ;;  %v4051_v16 = vmul.f32 %v4730_v26, %v7311_v11  ;;  %v4054_v61 = vmul.f32 %v4733_v7, %v7311_v11 }
 0x573   : > { %v7398_v19 = vpop.permute.xlu1 %3657  ;;  %3934 = vst [vmem:[%s7954_s10 + $0x110] sm:$0xff] %v3861_v18 }
 0x574   : > { %3935 = vst.msk [vmem:[%s7954_s10 + $0x118] sm:$0xff] %vm3902_vm5, %v3862_v30  ;;  %v4052_v30 = vmul.f32 %v4731_v1, %v7311_v11 }
 0x575   : > { %4830 = vst [vmem:[%s7954_s10 + $0x340] sm:$0xff] %v4151_v27  ;;  %v3504_v27 = vld [vmem:[#allocation2 + $0x8] sm:$0xff] }
 0x576   : > { %4831 = vst [vmem:[%s7954_s10 + $0x348] sm:$0xff] %v4152_v8  ;;  %v3795_v42 = vpop.permute.xlu2 %3794 }
 0x577   : > { %4832 = vst [vmem:[%s7954_s10 + $0x350] sm:$0xff] %v4153_v15  ;;  %v3871_v51 = vadd.f32 %v3795_v42, %v3709_v24  ;;  %v3872_v47 = vadd.f32 %v3795_v42, %v3710_v62  ;;  %v3873_v52 = vadd.f32 %v3795_v42, %v3711_v49  ;;  %v3874_v41 = vadd.f32 %v3795_v42, %v3712_v5  ;;  %v3506_v15 = vld [vmem:[#allocation2 + $0x18] sm:$0xff]  ;;  %v4727_v62 = vld [vmem:[#allocation2 + $0x248] sm:$0xff]  ;;  %v4728_v5 = vld [vmem:[#allocation2 + $0x250] sm:$0xff] }
 0x578   : > { %4833 = vst.msk [vmem:[%s7954_s10 + $0x358] sm:$0xff] %vm3902_vm5, %v4154_v14  ;;  %v4163_v35 = vadd.f32 %v4091_v17, %v3795_v42  ;;  %v4164_v2 = vadd.f32 %v4092_v32, %v3795_v42  ;;  %v4165_v46 = vadd.f32 %v4093_v13, %v3795_v42  ;;  %v4166_v22 = vadd.f32 %v4094_v23, %v3795_v42  ;;  %v4729_v17 = vld [vmem:[#allocation2 + $0x258] sm:$0xff]  ;;  %v3559_v32 = vld [vmem:[#allocation2 + $0x1c0] sm:$0xff]  ;;  %v3560_v13 = vld [vmem:[#allocation2 + $0x1c8] sm:$0xff] }
 0x579   : > { %3944 = vst [vmem:[%s7954_s10 + $0x160] sm:$0xff] %v3871_v51  ;;  %v3666_v24 = vmul.f32 %v7305_v45, %v3504_v27  ;;  %v3667_v49 = vmul.f32 %v7305_v45, %v3505_v60  ;;  %v3668_v42 = vmul.f32 %v7305_v45, %v3506_v15  ;;  %v4047_v51 = vmul.f32 %v4726_v3, %v7305_v45  ;;  %v3561_v23 = vld [vmem:[#allocation2 + $0x1d0] sm:$0xff]  ;;  %v4743_v3 = vld [vmem:[#allocation2 + $0x2c8] sm:$0xff] }
 0x57a   : > { %3945 = vst [vmem:[%s7954_s10 + $0x168] sm:$0xff] %v3872_v47  ;;  %v3721_v59 = vmul.f32 %v7309_v10, %v3559_v32  ;;  %v3722_v26 = vmul.f32 %v7309_v10, %v3560_v13  ;;  %v3516_v32 = vld [vmem:[#allocation2 + $0x68] sm:$0xff]  ;;  %v3517_v13 = vld [vmem:[#allocation2 + $0x70] sm:$0xff] }
 0x57b   : > { %v7434_v33 = vpop.permute.xlu0 %3652  ;;  %v3745_v4 = vpop.permute.xlu1 %3744  ;;  %3946 = vst [vmem:[%s7954_s10 + $0x170] sm:$0xff] %v3873_v52  ;;  %v4048_v52 = vmul.f32 %v4727_v62, %v7305_v45  ;;  %v4744_v62 = vld [vmem:[#allocation2 + $0x2d0] sm:$0xff] }
 0x57c   : > { %3947 = vst.msk [vmem:[%s7954_s10 + $0x178] sm:$0xff] %vm3902_vm5, %v3874_v41  ;;  %v3831_v6 = vadd.f32 %v3745_v4, %v3669_v12  ;;  %v3832_v20 = vadd.f32 %v3745_v4, %v3670_v25  ;;  %v3833_v18 = vadd.f32 %v3745_v4, %v3671_v39  ;;  %v3834_v53 = vadd.f32 %v3745_v4, %v3672_v44  ;;  %v4783_v25 = vld [vmem:[#allocation2 + $0x408] sm:$0xff]  ;;  %v4784_v39 = vld [vmem:[#allocation2 + $0x410] sm:$0xff]  ;;  %v4785_v44 = vld [vmem:[#allocation2 + $0x418] sm:$0xff] }
 0x57d   : > { %4842 = vst [vmem:[%s7954_s10 + $0x3a0] sm:$0xff] %v4163_v35  ;;  %v4123_v63 = vadd.f32 %v4051_v16, %v3745_v4  ;;  %v4124_v8 = vadd.f32 %v4052_v30, %v3745_v4  ;;  %v4125_v14 = vadd.f32 %v4053_v37, %v3745_v4  ;;  %v4126_v11 = vadd.f32 %v4054_v61, %v3745_v4  ;;  %v3562_v4 = vld [vmem:[#allocation2 + $0x1d8] sm:$0xff]  ;;  %v3519_v16 = vld [vmem:[#allocation2 + $0x80] sm:$0xff]  ;;  %v3520_v30 = vld [vmem:[#allocation2 + $0x88] sm:$0xff] }
 0x57e   : > { %4843 = vst [vmem:[%s7954_s10 + $0x3a8] sm:$0xff] %v4164_v2  ;;  %v4049_v41 = vmul.f32 %v4728_v5, %v7305_v45  ;;  %v4050_v35 = vmul.f32 %v4729_v17, %v7305_v45  ;;  %v3810_v2 = vpop.permute.xlu2 %3809  ;;  %v3521_v37 = vld [vmem:[#allocation2 + $0x90] sm:$0xff]  ;;  %v4745_v5 = vld [vmem:[#allocation2 + $0x2d8] sm:$0xff]  ;;  %v4064_v17 = vmul.f32 %v4743_v3, %v7293_v43 }
 0x57f   : > { %4844 = vst [vmem:[%s7954_s10 + $0x3b0] sm:$0xff] %v4165_v46  ;;  %v4782_v46 = vld [vmem:[#allocation2 + $0x400] sm:$0xff]  ;;  %v3883_v1 = vadd.f32 %v3810_v2, %v3721_v59  ;;  %v3884_v29 = vadd.f32 %v3810_v2, %v3722_v26  ;;  %v3678_v59 = vmul.f32 %v7307_v50, %v3516_v32 }
 0x580   : > { %4845 = vst.msk [vmem:[%s7954_s10 + $0x3b8] sm:$0xff] %vm3902_vm5, %v4166_v22  ;;  %v3723_v22 = vmul.f32 %v7309_v10, %v3561_v23  ;;  %v3518_v23 = vld [vmem:[#allocation2 + $0x78] sm:$0xff] }
 0x581   : > { %3904 = vst [vmem:[%s7954_s10 + $0x20] sm:$0xff] %v3831_v6  ;;  %v3724_v6 = vmul.f32 %v7309_v10, %v3562_v4  ;;  %v4738_v4 = vld [vmem:[#allocation2 + $0x2a0] sm:$0xff] }
 0x582   : > { %3905 = vst [vmem:[%s7954_s10 + $0x28] sm:$0xff] %v3832_v20  ;;  %v4103_v20 = vmul.f32 %v4782_v46, %v7309_v10  ;;  %v3885_v7 = vadd.f32 %v3810_v2, %v3723_v22  ;;  %v3679_v46 = vmul.f32 %v7307_v50, %v3517_v13 }
 0x583   : > { %v3740_v55 = vpop.permute.xlu0 %3739  ;;  %3906 = vst [vmem:[%s7954_s10 + $0x30] sm:$0xff] %v3833_v18  ;;  %v4104_v18 = vmul.f32 %v4783_v25, %v7309_v10  ;;  %v3886_v58 = vadd.f32 %v3810_v2, %v3724_v6  ;;  %v3760_v61 = vpop.permute.xlu1 %3759  ;;  %v3680_v25 = vmul.f32 %v7307_v50, %v3518_v23  ;;  %v4755_v23 = vld [vmem:[#allocation2 + $0x328] sm:$0xff] }
 0x584   : > { %3907 = vst.msk [vmem:[%s7954_s10 + $0x38] sm:$0xff] %vm3902_vm5, %v3834_v53  ;;  %v3827_v0 = vadd.f32 %v3740_v55, %v3665_v54  ;;  %v3828_v57 = vadd.f32 %v3740_v55, %v3666_v24  ;;  %v3829_v47 = vadd.f32 %v3740_v55, %v3667_v49  ;;  %v3830_v48 = vadd.f32 %v3740_v55, %v3668_v42  ;;  %v4742_v54 = vld [vmem:[#allocation2 + $0x2c0] sm:$0xff] }
 0x585   : > { %4802 = vst [vmem:[%s7954_s10 + $0x260] sm:$0xff] %v4123_v63  ;;  %v4119_v9 = vadd.f32 %v4047_v51, %v3740_v55  ;;  %v4120_v31 = vadd.f32 %v4048_v52, %v3740_v55  ;;  %v4121_v12 = vadd.f32 %v4049_v41, %v3740_v55  ;;  %v4122_v45 = vadd.f32 %v4050_v35, %v3740_v55  ;;  %v3515_v51 = vld [vmem:[#allocation2 + $0x60] sm:$0xff] }
 0x586   : > { %4803 = vst [vmem:[%s7954_s10 + $0x268] sm:$0xff] %v4124_v8  ;;  %v4105_v53 = vmul.f32 %v4784_v39, %v7309_v10  ;;  %v4175_v27 = vadd.f32 %v4103_v20, %v3810_v2  ;;  %v4106_v63 = vmul.f32 %v4785_v44, %v7309_v10  ;;  %v4176_v60 = vadd.f32 %v4104_v18, %v3810_v2  ;;  %v3522_v8 = vld [vmem:[#allocation2 + $0x98] sm:$0xff]  ;;  %v3571_v20 = vld [vmem:[#allocation2 + $0x220] sm:$0xff]  ;;  %v3572_v18 = vld [vmem:[#allocation2 + $0x228] sm:$0xff] }
 0x587   : > { %4804 = vst [vmem:[%s7954_s10 + $0x270] sm:$0xff] %v4125_v14  ;;  %v3681_v55 = vmul.f32 %v7293_v43, %v3519_v16  ;;  %v3682_v14 = vmul.f32 %v7293_v43, %v3520_v30  ;;  %v3683_v24 = vmul.f32 %v7293_v43, %v3521_v37  ;;  %v3684_v49 = vmul.f32 %v7293_v43, %v3522_v8  ;;  %v4794_v8 = vld [vmem:[#allocation2 + $0x460] sm:$0xff] }
 0x588   : > { %4805 = vst.msk [vmem:[%s7954_s10 + $0x278] sm:$0xff] %vm3902_vm5, %v4126_v11  ;;  %v4177_v15 = vadd.f32 %v4105_v53, %v3810_v2  ;;  %v4178_v10 = vadd.f32 %v4106_v63, %v3810_v2  ;;  %v4063_v42 = vmul.f32 %v4742_v54, %v7293_v43  ;;  %v4065_v52 = vmul.f32 %v4744_v62, %v7293_v43  ;;  %v3573_v53 = vld [vmem:[#allocation2 + $0x230] sm:$0xff]  ;;  %v3574_v63 = vld [vmem:[#allocation2 + $0x238] sm:$0xff] }
 0x589   : > { %3899 = vst [vmem:[%s7954_s10] sm:$0xff] %v3827_v0  ;;  %v3843_v11 = vadd.f32 %v3760_v61, %v3681_v55  ;;  %v3844_v0 = vadd.f32 %v3760_v61, %v3682_v14  ;;  %v4066_v41 = vmul.f32 %v4745_v5, %v7293_v43  ;;  %v4059_v39 = vmul.f32 %v4738_v4, %v7307_v50  ;;  %v4756_v4 = vld [vmem:[#allocation2 + $0x330] sm:$0xff] }
 0x58a   : > { %3900 = vst [vmem:[%s7954_s10 + $0x8] sm:$0xff] %v3828_v57  ;;  %v3845_v57 = vadd.f32 %v3760_v61, %v3683_v24  ;;  %v4137_v2 = vadd.f32 %v4065_v52, %v3760_v61  ;;  %v3735_v55 = vmul.f32 %v7313_v28, %v3573_v53  ;;  %v3736_v14 = vmul.f32 %v7313_v28, %v3574_v63  ;;  %v4797_v24 = vld [vmem:[#allocation2 + $0x478] sm:$0xff] }
 0x58b   : > { %3901 = vst [vmem:[%s7954_s10 + $0x10] sm:$0xff] %v3829_v47  ;;  %v3846_v47 = vadd.f32 %v3760_v61, %v3684_v49  ;;  %v3755_v35 = vpop.permute.xlu0 %3754  ;;  %v4138_v43 = vadd.f32 %v4066_v41, %v3760_v61  ;;  %v3531_v49 = vld [vmem:[#allocation2 + $0xe0] sm:$0xff]  ;;  %v3775_v32 = vpop.permute.xlu1 %3774 }
 0x58c   : > { %3903 = vst.msk [vmem:[%s7954_s10 + $0x18] sm:$0xff] %vm3902_vm5, %v3830_v48  ;;  %v4135_v48 = vadd.f32 %v4063_v42, %v3760_v61  ;;  %v3840_v22 = vadd.f32 %v3755_v35, %v3678_v59  ;;  %v3841_v6 = vadd.f32 %v3755_v35, %v3679_v46  ;;  %v3842_v44 = vadd.f32 %v3755_v35, %v3680_v25  ;;  %v3532_v42 = vld [vmem:[#allocation2 + $0xe8] sm:$0xff]  ;;  %v3527_v25 = vld [vmem:[#allocation2 + $0xc0] sm:$0xff] }
 0x58d   : > { %4798 = vst [vmem:[%s7954_s10 + $0x240] sm:$0xff] %v4119_v9  ;;  %v4136_v9 = vadd.f32 %v4064_v17, %v3760_v61  ;;  %v4131_v16 = vadd.f32 %v4059_v39, %v3755_v35  ;;  %v3734_v61 = vmul.f32 %v7313_v28, %v3572_v18  ;;  %v3693_v41 = vmul.f32 %v7315_v34, %v3531_v49  ;;  %v3528_v39 = vld [vmem:[#allocation2 + $0xc8] sm:$0xff]  ;;  %v3545_v49 = vld [vmem:[#allocation2 + $0x150] sm:$0xff] }
 0x58e   : > { %4799 = vst [vmem:[%s7954_s10 + $0x248] sm:$0xff] %v4120_v31  ;;  %v3677_v31 = vmul.f32 %v7307_v50, %v3515_v51  ;;  %v3533_v51 = vld [vmem:[#allocation2 + $0xf0] sm:$0xff]  ;;  %v3689_v18 = vmul.f32 %v7317_v21, %v3527_v25  ;;  %v3690_v53 = vmul.f32 %v7317_v21, %v3528_v39 }
 0x58f   : > { %4800 = vst [vmem:[%s7954_s10 + $0x250] sm:$0xff] %v4121_v12  ;;  %v4739_v12 = vld [vmem:[#allocation2 + $0x2a8] sm:$0xff] }
 0x590   : > { %4801 = vst.msk [vmem:[%s7954_s10 + $0x258] sm:$0xff] %vm3902_vm5, %v4122_v45  ;;  %v3839_v26 = vadd.f32 %v3755_v35, %v3677_v31  ;;  %v4740_v45 = vld [vmem:[#allocation2 + $0x2b0] sm:$0xff]  ;;  %v3695_v31 = vmul.f32 %v7315_v34, %v3533_v51  ;;  %v4766_v51 = vld [vmem:[#allocation2 + $0x380] sm:$0xff] }
 0x591   : > { %3956 = vst [vmem:[%s7954_s10 + $0x1c0] sm:$0xff] %v3883_v1  ;;  %v4741_v1 = vld [vmem:[#allocation2 + $0x2b8] sm:$0xff] }
 0x592   : > { %3957 = vst [vmem:[%s7954_s10 + $0x1c8] sm:$0xff] %v3884_v29  ;;  %v4060_v29 = vmul.f32 %v4739_v12, %v7307_v50  ;;  %v4757_v12 = vld [vmem:[#allocation2 + $0x338] sm:$0xff] }
 0x593   : > { %3958 = vst [vmem:[%s7954_s10 + $0x1d0] sm:$0xff] %v3885_v7  ;;  %v4061_v7 = vmul.f32 %v4740_v45, %v7307_v50  ;;  %v4076_v45 = vmul.f32 %v4755_v23, %v7315_v34 }
 0x594   : > { %3959 = vst.msk [vmem:[%s7954_s10 + $0x1d8] sm:$0xff] %vm3902_vm5, %v3886_v58  ;;  %v4062_v58 = vmul.f32 %v4741_v1, %v7307_v50  ;;  %v4132_v30 = vadd.f32 %v4060_v29, %v3755_v35  ;;  %v4077_v1 = vmul.f32 %v4756_v4, %v7315_v34  ;;  %v4078_v29 = vmul.f32 %v4757_v12, %v7315_v34 }
 0x595   : > { %4854 = vst [vmem:[%s7954_s10 + $0x400] sm:$0xff] %v4175_v27  ;;  %v3825_v27 = vpop.permute.xlu2 %3824  ;;  %v4133_v37 = vadd.f32 %v4061_v7, %v3755_v35  ;;  %v3770_v7 = vpop.permute.xlu0 %3769 }
 0x596   : > { %4855 = vst [vmem:[%s7954_s10 + $0x408] sm:$0xff] %v4176_v60  ;;  %v3733_v60 = vmul.f32 %v7313_v28, %v3571_v20  ;;  %v4134_v50 = vadd.f32 %v4062_v58, %v3755_v35  ;;  %v3896_v3 = vadd.f32 %v3825_v27, %v3734_v61  ;;  %v3897_v62 = vadd.f32 %v3825_v27, %v3735_v55 }
 0x597   : > { %4856 = vst [vmem:[%s7954_s10 + $0x410] sm:$0xff] %v4177_v15  ;;  %v4795_v15 = vld [vmem:[#allocation2 + $0x468] sm:$0xff]  ;;  %v3898_v5 = vadd.f32 %v3825_v27, %v3736_v14  ;;  %v3694_v35 = vmul.f32 %v7315_v34, %v3532_v42  ;;  %v4148_v20 = vadd.f32 %v4076_v45, %v3775_v32  ;;  %v4149_v58 = vadd.f32 %v4077_v1, %v3775_v32  ;;  %v3543_v14 = vld [vmem:[#allocation2 + $0x140] sm:$0xff]  ;;  %v3546_v42 = vld [vmem:[#allocation2 + $0x158] sm:$0xff] }
 0x598   : > { %4857 = vst.msk [vmem:[%s7954_s10 + $0x418] sm:$0xff] %vm3902_vm5, %v4178_v10  ;;  %v3895_v54 = vadd.f32 %v3825_v27, %v3733_v60  ;;  %v4796_v10 = vld [vmem:[#allocation2 + $0x470] sm:$0xff]  ;;  %v3851_v63 = vadd.f32 %v3770_v7, %v3689_v18  ;;  %v3852_v61 = vadd.f32 %v3770_v7, %v3690_v53 }
 0x599   : > { %3916 = vst [vmem:[%s7954_s10 + $0x80] sm:$0xff] %v3843_v11  ;;  %v4115_v11 = vmul.f32 %v4794_v8, %v7313_v28  ;;  %v4752_v60 = vld [vmem:[#allocation2 + $0x310] sm:$0xff]  ;;  %v4753_v8 = vld [vmem:[#allocation2 + $0x318] sm:$0xff] }
 0x59a   : > { %3917 = vst [vmem:[%s7954_s10 + $0x88] sm:$0xff] %v3844_v0  ;;  %v4116_v0 = vmul.f32 %v4795_v15, %v7313_v28 }
 0x59b   : > { %3918 = vst [vmem:[%s7954_s10 + $0x90] sm:$0xff] %v3845_v57  ;;  %v4117_v57 = vmul.f32 %v4796_v10, %v7313_v28  ;;  %v4187_v17 = vadd.f32 %v4115_v11, %v3825_v27 }
 0x59c   : > { %3919 = vst.msk [vmem:[%s7954_s10 + $0x98] sm:$0xff] %vm3902_vm5, %v3846_v47  ;;  %v4118_v47 = vmul.f32 %v4797_v24, %v7313_v28  ;;  %v4188_v52 = vadd.f32 %v4116_v0, %v3825_v27  ;;  %v3544_v24 = vld [vmem:[#allocation2 + $0x148] sm:$0xff] }
 0x59d   : > { %4814 = vst [vmem:[%s7954_s10 + $0x2c0] sm:$0xff] %v4135_v48  ;;  %v3534_v48 = vld [vmem:[#allocation2 + $0xf8] sm:$0xff]  ;;  %v4189_v13 = vadd.f32 %v4117_v57, %v3825_v27  ;;  %v3705_v57 = vmul.f32 %v7319_v56, %v3543_v14  ;;  %v3785_v25 = vpop.permute.xlu0 %3784 }
 0x59e   : > { %4815 = vst [vmem:[%s7954_s10 + $0x2c8] sm:$0xff] %v4136_v9  ;;  %v4754_v9 = vld [vmem:[#allocation2 + $0x320] sm:$0xff]  ;;  %v4190_v28 = vadd.f32 %v4118_v47, %v3825_v27  ;;  %v3696_v59 = vmul.f32 %v7315_v34, %v3534_v48  ;;  %v4751_v27 = vld [vmem:[#allocation2 + $0x308] sm:$0xff]  ;;  %v3706_v47 = vmul.f32 %v7319_v56, %v3544_v24  ;;  %v3558_v14 = vld [vmem:[#allocation2 + $0x1b8] sm:$0xff] }
 0x59f   : > { %4816 = vst [vmem:[%s7954_s10 + $0x2d0] sm:$0xff] %v4137_v2  ;;  %v3855_v2 = vadd.f32 %v3775_v32, %v3693_v41  ;;  %v4075_v46 = vmul.f32 %v4754_v9, %v7315_v34  ;;  %v4150_v34 = vadd.f32 %v4078_v29, %v3775_v32  ;;  %v4768_v41 = vld [vmem:[#allocation2 + $0x390] sm:$0xff]  ;;  %v4778_v24 = vld [vmem:[#allocation2 + $0x3e0] sm:$0xff] }
 0x5a0   : > { %4817 = vst.msk [vmem:[%s7954_s10 + $0x2d8] sm:$0xff] %vm3902_vm5, %v4138_v43  ;;  %v3856_v43 = vadd.f32 %v3775_v32, %v3694_v35  ;;  %v4769_v35 = vld [vmem:[#allocation2 + $0x398] sm:$0xff] }
 0x5a1   : > { %3912 = vst [vmem:[%s7954_s10 + $0x60] sm:$0xff] %v3839_v26  ;;  %v3857_v26 = vadd.f32 %v3775_v32, %v3695_v31 }
 0x5a2   : > { %3913 = vst [vmem:[%s7954_s10 + $0x68] sm:$0xff] %v3840_v22  ;;  %v3858_v22 = vadd.f32 %v3775_v32, %v3696_v59  ;;  %v4089_v59 = vmul.f32 %v4768_v41, %v7319_v56  ;;  %v3552_v41 = vld [vmem:[#allocation2 + $0x188] sm:$0xff] }
 0x5a3   : > { %3914 = vst [vmem:[%s7954_s10 + $0x70] sm:$0xff] %v3841_v6  ;;  %v4147_v6 = vadd.f32 %v4075_v46, %v3775_v32  ;;  %v3707_v32 = vmul.f32 %v7319_v56, %v3545_v49  ;;  %v4090_v46 = vmul.f32 %v4769_v35, %v7319_v56  ;;  %v3553_v35 = vld [vmem:[#allocation2 + $0x190] sm:$0xff] }
 0x5a4   : > { %3915 = vst.msk [vmem:[%s7954_s10 + $0x78] sm:$0xff] %vm3902_vm5, %v3842_v44  ;;  %v3529_v44 = vld [vmem:[#allocation2 + $0xd0] sm:$0xff] }
 0x5a5   : > { %4810 = vst [vmem:[%s7954_s10 + $0x2a0] sm:$0xff] %v4131_v16  ;;  %v3530_v16 = vld [vmem:[#allocation2 + $0xd8] sm:$0xff] }
 0x5a6   : > { %4811 = vst [vmem:[%s7954_s10 + $0x2a8] sm:$0xff] %v4132_v30  ;;  %v4750_v30 = vld [vmem:[#allocation2 + $0x300] sm:$0xff] }
 0x5a7   : > { %4812 = vst [vmem:[%s7954_s10 + $0x2b0] sm:$0xff] %v4133_v37  ;;  %v3691_v37 = vmul.f32 %v7317_v21, %v3529_v44  ;;  %v4071_v55 = vmul.f32 %v4750_v30, %v7317_v21  ;;  %v4763_v44 = vld [vmem:[#allocation2 + $0x368] sm:$0xff]  ;;  %v4765_v30 = vld [vmem:[#allocation2 + $0x378] sm:$0xff] }
 0x5a8   : > { %4813 = vst.msk [vmem:[%s7954_s10 + $0x2b8] sm:$0xff] %vm3902_vm5, %v4134_v50  ;;  %v3692_v50 = vmul.f32 %v7317_v21, %v3530_v16  ;;  %v4764_v16 = vld [vmem:[#allocation2 + $0x370] sm:$0xff] }
 0x5a9   : > { %3968 = vst [vmem:[%s7954_s10 + $0x220] sm:$0xff] %v3895_v54  ;;  %v3853_v15 = vadd.f32 %v3770_v7, %v3691_v37  ;;  %v4072_v54 = vmul.f32 %v4751_v27, %v7317_v21  ;;  %v4143_v11 = vadd.f32 %v4071_v55, %v3770_v7  ;;  %v4084_v27 = vmul.f32 %v4763_v44, %v7344_v36  ;;  %v3555_v37 = vld [vmem:[#allocation2 + $0x1a0] sm:$0xff]  ;;  %v3557_v55 = vld [vmem:[#allocation2 + $0x1b0] sm:$0xff] }
 0x5aa   : > { %3969 = vst [vmem:[%s7954_s10 + $0x228] sm:$0xff] %v3896_v3  ;;  %v3854_v10 = vadd.f32 %v3770_v7, %v3692_v50  ;;  %v4073_v3 = vmul.f32 %v4752_v60, %v7317_v21  ;;  %v4085_v60 = vmul.f32 %v4764_v16, %v7344_v36  ;;  %v3556_v50 = vld [vmem:[#allocation2 + $0x1a8] sm:$0xff]  ;;  %v3719_v49 = vmul.f32 %v7355_v40, %v3557_v55  ;;  %v3567_v44 = vld [vmem:[#allocation2 + $0x200] sm:$0xff] }
 0x5ab   : > { %3970 = vst [vmem:[%s7954_s10 + $0x230] sm:$0xff] %v3897_v62  ;;  %v4074_v62 = vmul.f32 %v4753_v8, %v7317_v21  ;;  %v4144_v0 = vadd.f32 %v4072_v54, %v3770_v7  ;;  %v4086_v8 = vmul.f32 %v4765_v30, %v7344_v36  ;;  %v3568_v16 = vld [vmem:[#allocation2 + $0x208] sm:$0xff]  ;;  %v3569_v30 = vld [vmem:[#allocation2 + $0x210] sm:$0xff] }
 0x5ac   : > { %3971 = vst.msk [vmem:[%s7954_s10 + $0x238] sm:$0xff] %vm3902_vm5, %v3898_v5  ;;  %v3790_v5 = vpop.permute.xlu1 %3789 }
 0x5ad   : > { %4866 = vst [vmem:[%s7954_s10 + $0x460] sm:$0xff] %v4187_v17  ;;  %v4145_v17 = vadd.f32 %v4073_v3, %v3770_v7  ;;  %v4146_v21 = vadd.f32 %v4074_v62, %v3770_v7  ;;  %v3867_v48 = vadd.f32 %v3790_v5, %v3705_v57  ;;  %v3868_v9 = vadd.f32 %v3790_v5, %v3706_v47  ;;  %v4779_v62 = vld [vmem:[#allocation2 + $0x3e8] sm:$0xff] }
 0x5ae   : > { %4867 = vst [vmem:[%s7954_s10 + $0x468] sm:$0xff] %v4188_v52  ;;  %v4767_v52 = vld [vmem:[#allocation2 + $0x388] sm:$0xff]  ;;  %v3869_v23 = vadd.f32 %v3790_v5, %v3707_v32  ;;  %v4161_v39 = vadd.f32 %v4089_v59, %v3790_v5  ;;  %v4157_v3 = vadd.f32 %v4085_v60, %v3785_v25  ;;  %v4774_v59 = vld [vmem:[#allocation2 + $0x3c0] sm:$0xff] }
 0x5af   : > { %4868 = vst [vmem:[%s7954_s10 + $0x470] sm:$0xff] %v4189_v13  ;;  %v3708_v13 = vmul.f32 %v7319_v56, %v3546_v42  ;;  %v4088_v31 = vmul.f32 %v4767_v52, %v7319_v56  ;;  %v3720_v42 = vmul.f32 %v7355_v40, %v3558_v14  ;;  %v3551_v52 = vld [vmem:[#allocation2 + $0x180] sm:$0xff]  ;;  %v4793_v14 = vld [vmem:[#allocation2 + $0x458] sm:$0xff] }
 0x5b0   : > { %4869 = vst.msk [vmem:[%s7954_s10 + $0x478] sm:$0xff] %vm3902_vm5, %v4190_v28  ;;  %v4087_v28 = vmul.f32 %v4766_v51, %v7319_v56  ;;  %v4162_v56 = vadd.f32 %v4090_v46, %v3790_v5  ;;  %v4099_v51 = vmul.f32 %v4778_v24, %v7355_v40  ;;  %v3715_v46 = vmul.f32 %v7391_v38, %v3553_v35  ;;  %v4790_v60 = vld [vmem:[#allocation2 + $0x440] sm:$0xff]  ;;  %v4788_v35 = vld [vmem:[#allocation2 + $0x430] sm:$0xff] }
 0x5b1   : > { %3928 = vst [vmem:[%s7954_s10 + $0xe0] sm:$0xff] %v3855_v2  ;;  %v3539_v2 = vld [vmem:[#allocation2 + $0x120] sm:$0xff]  ;;  %v3870_v4 = vadd.f32 %v3790_v5, %v3708_v13  ;;  %v4160_v45 = vadd.f32 %v4088_v31, %v3790_v5  ;;  %v3554_v31 = vld [vmem:[#allocation2 + $0x198] sm:$0xff] }
 0x5b2   : > { %3929 = vst [vmem:[%s7954_s10 + $0xe8] sm:$0xff] %v3856_v43  ;;  %v3540_v43 = vld [vmem:[#allocation2 + $0x128] sm:$0xff]  ;;  %v4159_v12 = vadd.f32 %v4087_v28, %v3790_v5  ;;  %v3701_v1 = vmul.f32 %v7344_v36, %v3539_v2  ;;  %v4780_v5 = vld [vmem:[#allocation2 + $0x3f0] sm:$0xff]  ;;  %v3713_v2 = vmul.f32 %v7391_v38, %v3551_v52 }
 0x5b3   : > { %3930 = vst [vmem:[%s7954_s10 + $0xf0] sm:$0xff] %v3857_v26  ;;  %v3541_v26 = vld [vmem:[#allocation2 + $0x130] sm:$0xff]  ;;  %v3702_v29 = vmul.f32 %v7344_v36, %v3540_v43  ;;  %v3714_v43 = vmul.f32 %v7391_v38, %v3552_v41  ;;  %v4787_v41 = vld [vmem:[#allocation2 + $0x428] sm:$0xff] }
 0x5b4   : > { %3931 = vst.msk [vmem:[%s7954_s10 + $0xf8] sm:$0xff] %vm3902_vm5, %v3858_v22  ;;  %v3542_v22 = vld [vmem:[#allocation2 + $0x138] sm:$0xff]  ;;  %v3863_v7 = vadd.f32 %v3785_v25, %v3701_v1  ;;  %v3805_v54 = vpop.permute.xlu1 %3804 }
 0x5b5   : > { %4826 = vst [vmem:[%s7954_s10 + $0x320] sm:$0xff] %v4147_v6  ;;  %v4762_v6 = vld [vmem:[#allocation2 + $0x360] sm:$0xff]  ;;  %v3704_v18 = vmul.f32 %v7344_v36, %v3542_v22  ;;  %v3881_v47 = vadd.f32 %v3805_v54, %v3719_v49  ;;  %v3882_v32 = vadd.f32 %v3805_v54, %v3720_v42  ;;  %v4171_v13 = vadd.f32 %v4099_v51, %v3805_v54  ;;  %v4777_v1 = vld [vmem:[#allocation2 + $0x3d8] sm:$0xff] }
 0x5b6   : > { %4827 = vst [vmem:[%s7954_s10 + $0x328] sm:$0xff] %v4148_v20  ;;  %v3703_v20 = vmul.f32 %v7344_v36, %v3541_v26  ;;  %v4083_v53 = vmul.f32 %v4762_v6, %v7344_v36  ;;  %v4158_v36 = vadd.f32 %v4086_v8, %v3785_v25 }
 0x5b7   : > { %4828 = vst [vmem:[%s7954_s10 + $0x330] sm:$0xff] %v4149_v58  ;;  %v3864_v58 = vadd.f32 %v3785_v25, %v3702_v29 }
 0x5b8   : > { %4829 = vst.msk [vmem:[%s7954_s10 + $0x338] sm:$0xff] %vm3902_vm5, %v4150_v34  ;;  %v3865_v34 = vadd.f32 %v3785_v25, %v3703_v20 }
 0x5b9   : > { %3924 = vst [vmem:[%s7954_s10 + $0xc0] sm:$0xff] %v3851_v63  ;;  %v3866_v63 = vadd.f32 %v3785_v25, %v3704_v18  ;;  %v4098_v18 = vmul.f32 %v4777_v1, %v7391_v38 }
 0x5ba   : > { %3925 = vst [vmem:[%s7954_s10 + $0xc8] sm:$0xff] %v3852_v61  ;;  %v4155_v61 = vadd.f32 %v4083_v53, %v3785_v25 }
 0x5bb   : > { %3926 = vst [vmem:[%s7954_s10 + $0xd0] sm:$0xff] %v3853_v15  ;;  %v4156_v15 = vadd.f32 %v4084_v27, %v3785_v25  ;;  %v3716_v25 = vmul.f32 %v7391_v38, %v3554_v31  ;;  %v3570_v27 = vld [vmem:[#allocation2 + $0x218] sm:$0xff] }
 0x5bc   : > { %3927 = vst.msk [vmem:[%s7954_s10 + $0xd8] sm:$0xff] %vm3902_vm5, %v3854_v10  ;;  %v3717_v10 = vmul.f32 %v7355_v40, %v3555_v37  ;;  %v3820_v53 = vpop.permute.xlu1 %3819  ;;  %v3729_v37 = vmul.f32 %v7398_v19, %v3567_v44  ;;  %v3732_v55 = vmul.f32 %v7398_v19, %v3570_v27 }
 0x5bd   : > { %4822 = vst [vmem:[%s7954_s10 + $0x300] sm:$0xff] %v4143_v11  ;;  %v3718_v11 = vmul.f32 %v7355_v40, %v3556_v50  ;;  %v3731_v50 = vmul.f32 %v7398_v19, %v3569_v30 }
 0x5be   : > { %4823 = vst [vmem:[%s7954_s10 + $0x308] sm:$0xff] %v4144_v0  ;;  %v3879_v0 = vadd.f32 %v3805_v54, %v3717_v10  ;;  %v3891_v8 = vadd.f32 %v3820_v53, %v3729_v37  ;;  %v4111_v10 = vmul.f32 %v4790_v60, %v7398_v19 }
 0x5bf   : > { %4824 = vst [vmem:[%s7954_s10 + $0x310] sm:$0xff] %v4145_v17  ;;  %v3880_v57 = vadd.f32 %v3805_v54, %v3718_v11  ;;  %v4781_v17 = vld [vmem:[#allocation2 + $0x3f8] sm:$0xff]  ;;  %v3894_v11 = vadd.f32 %v3820_v53, %v3732_v55 }
 0x5c0   : > { %4825 = vst.msk [vmem:[%s7954_s10 + $0x318] sm:$0xff] %vm3902_vm5, %v4146_v21  ;;  %v4100_v21 = vmul.f32 %v4779_v62, %v7355_v40  ;;  %v4183_v49 = vadd.f32 %v4111_v10, %v3820_v53 }
 0x5c1   : > { %3940 = vst [vmem:[%s7954_s10 + $0x140] sm:$0xff] %v3867_v48  ;;  %v4101_v48 = vmul.f32 %v4780_v5, %v7355_v40  ;;  %v4114_v5 = vmul.f32 %v4793_v14, %v7398_v19 }
 0x5c2   : > { %3941 = vst [vmem:[%s7954_s10 + $0x148] sm:$0xff] %v3868_v9  ;;  %v4102_v9 = vmul.f32 %v4781_v17, %v7355_v40  ;;  %v4172_v28 = vadd.f32 %v4100_v21, %v3805_v54 }
 0x5c3   : > { %3942 = vst [vmem:[%s7954_s10 + $0x150] sm:$0xff] %v3869_v23  ;;  %v3800_v23 = vpop.permute.xlu0 %3799 }
 0x5c4   : > { %3943 = vst.msk [vmem:[%s7954_s10 + $0x158] sm:$0xff] %vm3902_vm5, %v3870_v4  ;;  %v4173_v4 = vadd.f32 %v4101_v48, %v3805_v54  ;;  %v4174_v40 = vadd.f32 %v4102_v9, %v3805_v54  ;;  %v3875_v26 = vadd.f32 %v3800_v23, %v3713_v2  ;;  %v3876_v22 = vadd.f32 %v3800_v23, %v3714_v43 }
 0x5c5   : > { %4838 = vst [vmem:[%s7954_s10 + $0x380] sm:$0xff] %v4159_v12  ;;  %v4775_v12 = vld [vmem:[#allocation2 + $0x3c8] sm:$0xff]  ;;  %v3877_v6 = vadd.f32 %v3800_v23, %v3715_v46  ;;  %v4109_v43 = vmul.f32 %v4788_v35, %v7434_v33 }
 0x5c6   : > { %4839 = vst [vmem:[%s7954_s10 + $0x388] sm:$0xff] %v4160_v45  ;;  %v4776_v45 = vld [vmem:[#allocation2 + $0x3d0] sm:$0xff]  ;;  %v4096_v29 = vmul.f32 %v4775_v12, %v7391_v38 }
 0x5c7   : > { %4840 = vst [vmem:[%s7954_s10 + $0x390] sm:$0xff] %v4161_v39  ;;  %v4095_v39 = vmul.f32 %v4774_v59, %v7391_v38  ;;  %v4097_v20 = vmul.f32 %v4776_v45, %v7391_v38  ;;  %v4170_v38 = vadd.f32 %v4098_v18, %v3800_v23 }
 0x5c8   : > { %4841 = vst.msk [vmem:[%s7954_s10 + $0x398] sm:$0xff] %vm3902_vm5, %v4162_v56  ;;  %v3878_v56 = vadd.f32 %v3800_v23, %v3716_v25 }
 0x5c9   : > { %3936 = vst [vmem:[%s7954_s10 + $0x120] sm:$0xff] %v3863_v7  ;;  %v4167_v7 = vadd.f32 %v4095_v39, %v3800_v23 }
 0x5ca   : > { %3937 = vst [vmem:[%s7954_s10 + $0x128] sm:$0xff] %v3864_v58  ;;  %v4168_v58 = vadd.f32 %v4096_v29, %v3800_v23 }
 0x5cb   : > { %3938 = vst [vmem:[%s7954_s10 + $0x130] sm:$0xff] %v3865_v34  ;;  %v4169_v34 = vadd.f32 %v4097_v20, %v3800_v23  ;;  %v3815_v17 = vpop.permute.xlu0 %3814  ;;  %v4789_v23 = vld [vmem:[#allocation2 + $0x438] sm:$0xff] }
 0x5cc   : > { %3939 = vst.msk [vmem:[%s7954_s10 + $0x138] sm:$0xff] %vm3902_vm5, %v3866_v63  ;;  %v3730_v63 = vmul.f32 %v7398_v19, %v3568_v16  ;;  %v4110_v12 = vmul.f32 %v4789_v23, %v7434_v33 }
 0x5cd   : > { %4834 = vst [vmem:[%s7954_s10 + $0x360] sm:$0xff] %v4155_v61  ;;  %v4791_v61 = vld [vmem:[#allocation2 + $0x448] sm:$0xff] }
 0x5ce   : > { %4835 = vst [vmem:[%s7954_s10 + $0x368] sm:$0xff] %v4156_v15  ;;  %v4792_v15 = vld [vmem:[#allocation2 + $0x450] sm:$0xff]  ;;  %v3892_v54 = vadd.f32 %v3820_v53, %v3730_v63  ;;  %v4112_v24 = vmul.f32 %v4791_v61, %v7398_v19  ;;  %v4182_v45 = vadd.f32 %v4110_v12, %v3815_v17 }
 0x5cf   : > { %4836 = vst [vmem:[%s7954_s10 + $0x370] sm:$0xff] %v4157_v3  ;;  %v3893_v3 = vadd.f32 %v3820_v53, %v3731_v50  ;;  %v4113_v62 = vmul.f32 %v4792_v15, %v7398_v19  ;;  %v4186_v19 = vadd.f32 %v4114_v5, %v3820_v53 }
 0x5d0   : > { %4837 = vst.msk [vmem:[%s7954_s10 + $0x378] sm:$0xff] %vm3902_vm5, %v4158_v36  ;;  %v3563_v36 = vld [vmem:[#allocation2 + $0x1e0] sm:$0xff]  ;;  %v4184_v42 = vadd.f32 %v4112_v24, %v3820_v53 }
 0x5d1   : > { %3952 = vst [vmem:[%s7954_s10 + $0x1a0] sm:$0xff] %v3879_v0  ;;  %v3564_v0 = vld [vmem:[#allocation2 + $0x1e8] sm:$0xff]  ;;  %v4185_v51 = vadd.f32 %v4113_v62, %v3820_v53  ;;  %v3725_v21 = vmul.f32 %v7434_v33, %v3563_v36 }
 0x5d2   : > { %3953 = vst [vmem:[%s7954_s10 + $0x1a8] sm:$0xff] %v3880_v57  ;;  %v3565_v57 = vld [vmem:[#allocation2 + $0x1f0] sm:$0xff]  ;;  %v3726_v52 = vmul.f32 %v7434_v33, %v3564_v0 }
 0x5d3   : > { %3954 = vst [vmem:[%s7954_s10 + $0x1b0] sm:$0xff] %v3881_v47  ;;  %v3566_v47 = vld [vmem:[#allocation2 + $0x1f8] sm:$0xff]  ;;  %v3727_v48 = vmul.f32 %v7434_v33, %v3565_v57 }
 0x5d4   : > { %3955 = vst.msk [vmem:[%s7954_s10 + $0x1b8] sm:$0xff] %vm3902_vm5, %v3882_v32  ;;  %v4786_v32 = vld [vmem:[#allocation2 + $0x420] sm:$0xff]  ;;  %v3728_v9 = vmul.f32 %v7434_v33, %v3566_v47 }
 0x5d5   : > { %4850 = vst [vmem:[%s7954_s10 + $0x3e0] sm:$0xff] %v4171_v13  ;;  %v3887_v13 = vadd.f32 %v3815_v17, %v3725_v21  ;;  %v4107_v31 = vmul.f32 %v4786_v32, %v7434_v33  ;;  %v3889_v2 = vadd.f32 %v3815_v17, %v3727_v48 }
 0x5d6   : > { %4851 = vst [vmem:[%s7954_s10 + $0x3e8] sm:$0xff] %v4172_v28  ;;  %v3888_v28 = vadd.f32 %v3815_v17, %v3726_v52  ;;  %v3890_v59 = vadd.f32 %v3815_v17, %v3728_v9 }
 0x5d7   : > { %4852 = vst [vmem:[%s7954_s10 + $0x3f0] sm:$0xff] %v4173_v4  ;;  %v4108_v4 = vmul.f32 %v4787_v41, %v7434_v33 }
 0x5d8   : > { %4853 = vst.msk [vmem:[%s7954_s10 + $0x3f8] sm:$0xff] %vm3902_vm5, %v4174_v40  ;;  %v4179_v40 = vadd.f32 %v4107_v31, %v3815_v17 }
 0x5d9   : > { %3948 = vst [vmem:[%s7954_s10 + $0x180] sm:$0xff] %v3875_v26  ;;  %v4180_v46 = vadd.f32 %v4108_v4, %v3815_v17  ;;  %v4181_v26 = vadd.f32 %v4109_v43, %v3815_v17 }
 0x5da   : > { %3949 = vst [vmem:[%s7954_s10 + $0x188] sm:$0xff] %v3876_v22 }
 0x5db   : > { %3950 = vst [vmem:[%s7954_s10 + $0x190] sm:$0xff] %v3877_v6 }
 0x5dc   : > { %3951 = vst.msk [vmem:[%s7954_s10 + $0x198] sm:$0xff] %vm3902_vm5, %v3878_v56 }
 0x5dd   : > { %4846 = vst [vmem:[%s7954_s10 + $0x3c0] sm:$0xff] %v4167_v7 }
 0x5de   : > { %4847 = vst [vmem:[%s7954_s10 + $0x3c8] sm:$0xff] %v4168_v58 }
 0x5df   : > { %4848 = vst [vmem:[%s7954_s10 + $0x3d0] sm:$0xff] %v4169_v34 }
 0x5e0   : > { %4849 = vst.msk [vmem:[%s7954_s10 + $0x3d8] sm:$0xff] %vm3902_vm5, %v4170_v38 }
 0x5e1   : > { %3964 = vst [vmem:[%s7954_s10 + $0x200] sm:$0xff] %v3891_v8 }
 0x5e2   : > { %3965 = vst [vmem:[%s7954_s10 + $0x208] sm:$0xff] %v3892_v54 }
 0x5e3   : > { %3966 = vst [vmem:[%s7954_s10 + $0x210] sm:$0xff] %v3893_v3 }
 0x5e4   : > { %3967 = vst.msk [vmem:[%s7954_s10 + $0x218] sm:$0xff] %vm3902_vm5, %v3894_v11 }
 0x5e5   : > { %4862 = vst [vmem:[%s7954_s10 + $0x440] sm:$0xff] %v4183_v49 }
 0x5e6   : > { %4863 = vst [vmem:[%s7954_s10 + $0x448] sm:$0xff] %v4184_v42 }
 0x5e7   : > { %4864 = vst [vmem:[%s7954_s10 + $0x450] sm:$0xff] %v4185_v51 }
 0x5e8   : > { %4865 = vst.msk [vmem:[%s7954_s10 + $0x458] sm:$0xff] %vm3902_vm5, %v4186_v19 }
 0x5e9   : > { %3960 = vst [vmem:[%s7954_s10 + $0x1e0] sm:$0xff] %v3887_v13 }
 0x5ea   : > { %3961 = vst [vmem:[%s7954_s10 + $0x1e8] sm:$0xff] %v3888_v28 }
 0x5eb   : > { %3962 = vst [vmem:[%s7954_s10 + $0x1f0] sm:$0xff] %v3889_v2 }
 0x5ec   : > { %3963 = vst.msk [vmem:[%s7954_s10 + $0x1f8] sm:$0xff] %vm3902_vm5, %v3890_v59 }
 0x5ed   : > { %4858 = vst [vmem:[%s7954_s10 + $0x420] sm:$0xff] %v4179_v40 }
 0x5ee   : > { %4859 = vst [vmem:[%s7954_s10 + $0x428] sm:$0xff] %v4180_v46 }
 0x5ef   : > { %4860 = vst [vmem:[%s7954_s10 + $0x430] sm:$0xff] %v4181_v26 }
 0x5f0   : > { %4861 = vst.msk [vmem:[%s7954_s10 + $0x438] sm:$0xff] %vm3902_vm5, %v4182_v45 }
 0x5f1 PF: > { %s20_s15 = sadd.s32 1, %s5006_s15   ;;  %s8025_s13 = smov %s5002_s14 }
 0x5f2   : > { %p17_p7 = scmp.ge.s32.totalorder %s20_s15, 4   ;;  %s8026_s14 = smov %s8028_s16 }
 0x5f4   :  { %19 = sbr.rel (!%p17_p7) target bundleno = 2 (0x2), region = 112 }

</bundles_post_ra>
